<compile_context>
chip_gen: v5e
topology: v5e:2x2
jax: 0.10.0
libtpu: 0.0.40
codegen_flags: <defaults>
</compile_context>

<pallas_src>
import functools

import jax
import jax.numpy as jnp
from jax.experimental import pallas as pl
from jax.experimental.pallas import tpu as pltpu


# ----------------------------- generic GEMM + bias (+ReLU) kernel ---------------
# Used for the conv im2col GEMMs (small N, large M).

def _matmul_bias_kernel(a_ref, b_ref, bias_ref, o_ref, *, relu):
    acc = jnp.dot(a_ref[...], b_ref[...], preferred_element_type=jnp.float32)
    acc = acc + bias_ref[...]
    if relu:
        acc = jnp.maximum(acc, 0.0)
    o_ref[...] = acc.astype(o_ref.dtype)


def matmul_bias(a, b, bias, *, relu=False, tm=512, tn=512):
    """out = relu?(a @ b + bias).  a:(M,K) b:(K,N) bias:(N,) -> (M,N) f32.

    a/b are fed to the MXU as bf16, accumulation + epilogue stay f32."""
    M, K = a.shape
    K2, N = b.shape
    assert K == K2
    if M % tm != 0:
        tm = M          # small / odd M -> single full-height tile
    if N % tn != 0:
        tn = N          # small / odd N -> single full-width tile (conv Cout=8/16)
    bias2 = bias.reshape(1, N).astype(jnp.float32)
    grid = (M // tm, N // tn)
    return pl.pallas_call(
        functools.partial(_matmul_bias_kernel, relu=relu),
        out_shape=jax.ShapeDtypeStruct((M, N), jnp.float32),
        grid=grid,
        in_specs=[
            pl.BlockSpec((tm, K), lambda i, j: (i, 0)),
            pl.BlockSpec((K, tn), lambda i, j: (0, j)),
            pl.BlockSpec((1, tn), lambda i, j: (0, j)),
        ],
        out_specs=pl.BlockSpec((tm, tn), lambda i, j: (i, j)),
        compiler_params=pltpu.CompilerParams(
            dimension_semantics=("parallel", "parallel")),
    )(a.astype(jnp.bfloat16), b.astype(jnp.bfloat16), bias2)


# ----------------------------- fused classifier kernel --------------------------
# fc1 -> ReLU -> fc2 -> ReLU -> fc3 in one pallas_call.
# Grid axis j tiles the 2048 hidden dim: it is fc1's N axis and fc2's K axis.
#   h1_j   = relu(f @ W1[:, j] + b1[j])           (B, tn)   computed per step
#   acc   += h1_j @ W2[j, :]                      (B, 2048) VMEM-resident f32
#   last j: out = relu(acc + b2) @ W3 + b3        (B, 2)

def _classifier_kernel(f_ref, w1_ref, b1_ref, w2_ref, b2_ref, w3_ref, b3_ref,
                       o_ref, acc_ref):
    j = pl.program_id(0)

    @pl.when(j == 0)
    def _():
        acc_ref[...] = jnp.zeros_like(acc_ref)

    f_bf = f_ref[...].astype(jnp.bfloat16)
    h1 = jnp.dot(f_bf, w1_ref[...], preferred_element_type=jnp.float32)
    h1 = jnp.maximum(h1 + b1_ref[...], 0.0)                      # f32 epilogue

    acc_ref[...] += jnp.dot(h1.astype(jnp.bfloat16), w2_ref[...],
                            preferred_element_type=jnp.float32)

    @pl.when(j == pl.num_programs(0) - 1)
    def _():
        h2 = jnp.maximum(acc_ref[...] + b2_ref[...], 0.0)        # f32 epilogue
        out = jnp.dot(h2.astype(jnp.bfloat16), w3_ref[...],
                      preferred_element_type=jnp.float32) + b3_ref[...]
        o_ref[...] = out.astype(o_ref.dtype)


def classifier_fused(f, w1, b1, w2, b2, w3, b3, *, tn=512):
    """f:(B,359) -> (B,2).  Weights streamed as bf16 tiles; h2 accumulator in VMEM."""
    B, K1 = f.shape                     # (B, 359)
    H1 = w1.shape[1]                    # 2048
    H2 = w2.shape[1]                    # 2048
    N = w3.shape[1]                     # num_class
    assert H1 % tn == 0 and w2.shape[0] == H1 and w3.shape[0] == H2
    grid = (H1 // tn,)
    return pl.pallas_call(
        _classifier_kernel,
        out_shape=jax.ShapeDtypeStruct((B, N), jnp.float32),
        grid=grid,
        in_specs=[
            pl.BlockSpec((B, K1), lambda j: (0, 0)),    # f           (resident)
            pl.BlockSpec((K1, tn), lambda j: (0, j)),   # W1 tile     (streamed)
            pl.BlockSpec((1, tn), lambda j: (0, j)),    # b1 tile     (streamed)
            pl.BlockSpec((tn, H2), lambda j: (j, 0)),   # W2 tile     (streamed)
            pl.BlockSpec((1, H2), lambda j: (0, 0)),    # b2          (resident)
            pl.BlockSpec((H2, N), lambda j: (0, 0)),    # W3          (resident)
            pl.BlockSpec((1, N), lambda j: (0, 0)),     # b3          (resident)
        ],
        out_specs=pl.BlockSpec((B, N), lambda j: (0, 0)),
        scratch_shapes=[pltpu.VMEM((B, H2), jnp.float32)],          # fc2 accumulator
        compiler_params=pltpu.CompilerParams(
            dimension_semantics=("arbitrary",)),         # reduction-style pass
    )(f.astype(jnp.float32),
      w1.astype(jnp.bfloat16), b1.reshape(1, H1).astype(jnp.float32),
      w2.astype(jnp.bfloat16), b2.reshape(1, H2).astype(jnp.float32),
      w3.astype(jnp.bfloat16), b3.reshape(1, N).astype(jnp.float32))


# ----------------------------- pooling (plain jnp glue) --------------------------
# These are tiny, memory-bound and lane-sparse (C=8/16 of 128 lanes); per review
# they fuse better in XLA than as standalone single-shot pallas_calls.

def maxpool3d_2(x):
    """MaxPool3d(kernel=2, stride=2).  x: (B, D, H, W, C)."""
    B, D, H, W, C = x.shape
    xr = x.reshape(B, D // 2, 2, H // 2, 2, W // 2, 2, C)
    return jnp.max(xr, axis=(2, 4, 6))


def adaptive_avgpool_111(x):
    """AdaptiveAvgPool3d((1,1,1)) + flatten.  x: (B, D, H, W, C) -> (B, C)."""
    return jnp.mean(x.astype(jnp.float32), axis=(1, 2, 3))


# ----------------------------- conv via bf16 im2col + Pallas GEMM ----------------

def conv3d_relu(x, w, b):
    """Conv3d(k=3, stride=1, pad=1) + ReLU.
    x: (B, D, H, W, Cin), w: (3, 3, 3, Cin, Cout), b: (Cout,)."""
    B, D, H, W, Cin = x.shape
    k = 3
    Cout = w.shape[-1]
    # im2col built directly in bf16 so the expanded patch matrix costs half the
    # HBM traffic.  (At larger feature maps, move the 27-tap accumulation into
    # the GEMM kernel instead of materializing im2col at all.)
    xb = x.astype(jnp.bfloat16)
    xp = jnp.pad(xb, ((0, 0), (1, 1), (1, 1), (1, 1), (0, 0)))
    patches = []
    for dz in range(k):
        for dy in range(k):
            for dx in range(k):
                patches.append(xp[:, dz:dz + D, dy:dy + H, dx:dx + W, :])
    p = jnp.stack(patches, axis=-2)                         # (B,D,H,W,27,Cin)
    a = p.reshape(B * D * H * W, k * k * k * Cin)           # (M, 27*Cin) bf16
    wm = w.reshape(k * k * k * Cin, Cout).astype(jnp.bfloat16)
    out = matmul_bias(a, wm, b, relu=True)                  # Pallas MXU GEMM
    return out.reshape(B, D, H, W, Cout)


# ----------------------------- model -----------------------------

def init_params(key):
    ks = jax.random.split(key, 5)
    s = 0.05
    bf = jnp.bfloat16
    return {
        # features (synthetic 3-D VGG block) — bf16 weights, f32 biases
        "conv1_w": (jax.random.normal(ks[0], (3, 3, 3, 1, 8), jnp.float32) * s).astype(bf),
        "conv1_b": jnp.zeros((8,), jnp.float32),
        "conv2_w": (jax.random.normal(ks[1], (3, 3, 3, 8, 16), jnp.float32) * s).astype(bf),
        "conv2_b": jnp.zeros((16,), jnp.float32),
        # classifier: Linear(359,2048) -> ReLU -> Dropout -> Linear(2048,2048)
        #             -> ReLU -> Dropout -> Linear(2048,2)   (bf16 weights)
        "fc1_w": (jax.random.normal(ks[2], (359, 2048), jnp.float32) * s).astype(bf),
        "fc1_b": jnp.zeros((2048,), jnp.float32),
        "fc2_w": (jax.random.normal(ks[3], (2048, 2048), jnp.float32) * s).astype(bf),
        "fc2_b": jnp.zeros((2048,), jnp.float32),
        "fc3_w": (jax.random.normal(ks[4], (2048, 2), jnp.float32) * s).astype(bf),
        "fc3_b": jnp.zeros((2,), jnp.float32),
    }


def vgg_forward(params, x_ncdhw, feature):
    # x_ncdhw: (B, 1, D, H, W)   feature: (B, 343)
    x = jnp.transpose(x_ncdhw, (0, 2, 3, 4, 1))            # NCDHW -> NDHWC
    # features(x)
    x = conv3d_relu(x, params["conv1_w"], params["conv1_b"])
    x = maxpool3d_2(x)
    x = conv3d_relu(x, params["conv2_w"], params["conv2_b"])
    x = maxpool3d_2(x)
    # extra = AdaptiveAvgPool3d((1,1,1)) + Dropout(0.5) [identity in eval], flatten
    extra = adaptive_avgpool_111(x)                        # (B, 16)
    # f = cat((feature, extra), dim=-1)
    f = jnp.concatenate([feature.astype(jnp.float32), extra], axis=-1)  # (B, 359)
    # classifier, fully fused (Dropouts are identity in eval mode)
    out = classifier_fused(f,
                           params["fc1_w"], params["fc1_b"],
                           params["fc2_w"], params["fc2_b"],
                           params["fc3_w"], params["fc3_b"])
    return out                                             # (B, 2) f32


if __name__ == "__main__":
    key = jax.random.PRNGKey(0)
    kx, kf, kp = jax.random.split(key, 3)

    B, Cin, D, H, W = 2, 1, 8, 16, 16
    x = jax.random.normal(kx, (B, Cin, D, H, W), jnp.float32)
    feature = jax.random.normal(kf, (B, 343), jnp.float32)

    params = init_params(kp)

    out = jax.jit(vgg_forward)(params, x, feature)
    out = jax.block_until_ready(out)
    assert out.shape == (B, 2) and out.dtype == jnp.float32
    print("KERNEL_OK")
</pallas_src>

<mosaic_0001>
module attributes {stable_mosaic.version = 11 : i64} {
  func.func @_matmul_bias_kernel(%arg0: i32, %arg1: i32, %arg2: memref<512x27xbf16, #tpu.memory_space<vmem>>, %arg3: memref<27x8xbf16, #tpu.memory_space<vmem>>, %arg4: memref<1x8xf32, #tpu.memory_space<vmem>>, %arg5: memref<512x8xf32, #tpu.memory_space<vmem>>) attributes {dimension_semantics = [#tpu.dimension_semantics<parallel>, #tpu.dimension_semantics<parallel>], iteration_bounds = array<i64: 8, 1>, scalar_prefetch = 0 : i64, scratch_operands = 0 : i64, tpu.core_type = #tpu.core_type<tc>, window_params = [{transform_indices = @transform_0, window_bounds = array<i64: 512, 27>}, {transform_indices = @transform_1, window_bounds = array<i64: 27, 8>}, {transform_indices = @transform_2, window_bounds = array<i64: 1, 8>}, {transform_indices = @transform_3, window_bounds = array<i64: 512, 8>}]} {
    %c0 = arith.constant 0 : index
    %c0_0 = arith.constant 0 : index
    %0 = vector.load %arg2[%c0, %c0_0] : memref<512x27xbf16, #tpu.memory_space<vmem>>, vector<512x27xbf16>
    %c0_1 = arith.constant 0 : index
    %c0_2 = arith.constant 0 : index
    %1 = vector.load %arg3[%c0_1, %c0_2] : memref<27x8xbf16, #tpu.memory_space<vmem>>, vector<27x8xbf16>
    %cst = arith.constant dense<0.000000e+00> : vector<512x8xf32>
    %2 = tpu.matmul %0, %1, %cst {dimension_numbers = #tpu.dot_dimension_numbers<[1], [0], [0], [1], [0, 0, 1, 1], [], []>} : vector<512x27xbf16>, vector<27x8xbf16>, vector<512x8xf32> -> vector<512x8xf32>
    %c0_3 = arith.constant 0 : index
    %c0_4 = arith.constant 0 : index
    %3 = vector.load %arg4[%c0_3, %c0_4] : memref<1x8xf32, #tpu.memory_space<vmem>>, vector<1x8xf32>
    %4 = vector.broadcast %3 : vector<1x8xf32> to vector<512x8xf32>
    %5 = arith.addf %2, %4 : vector<512x8xf32>
    %cst_5 = arith.constant 0.000000e+00 : f32
    %6 = vector.broadcast %cst_5 : f32 to vector<512x8xf32>
    %7 = arith.maximumf %5, %6 : vector<512x8xf32>
    %c0_6 = arith.constant 0 : index
    %c0_7 = arith.constant 0 : index
    %8 = vector.load %arg5[%c0_6, %c0_7] : memref<512x8xf32, #tpu.memory_space<vmem>>, vector<512x8xf32>
    tpu.vector_store %arg5[%c0_6, %c0_7], %7 {strides = array<i32>} : memref<512x8xf32, #tpu.memory_space<vmem>>, vector<512x8xf32>,
    return
  }
  func.func @transform_0(%arg0: i32, %arg1: i32) -> (i32, i32) {
    %c0_i32 = arith.constant 0 : i32
    %c0_i32_0 = arith.constant 0 : i32
    return %arg0, %c0_i32 : i32, i32
  }
  func.func @transform_1(%arg0: i32, %arg1: i32) -> (i32, i32) {
    %c0_i32 = arith.constant 0 : i32
    %c0_i32_0 = arith.constant 0 : i32
    return %c0_i32, %arg1 : i32, i32
  }
  func.func @transform_2(%arg0: i32, %arg1: i32) -> (i32, i32) {
    %c0_i32 = arith.constant 0 : i32
    %c0_i32_0 = arith.constant 0 : i32
    return %c0_i32, %arg1 : i32, i32
  }
  func.func @transform_3(%arg0: i32, %arg1: i32) -> (i32, i32) {
    %c0_i32 = arith.constant 0 : i32
    return %arg0, %arg1 : i32, i32
  }
}

module attributes {stable_mosaic.version = 11 : i64} {
  func.func @_matmul_bias_kernel(%arg0: i32, %arg1: i32, %arg2: memref<512x216xbf16, #tpu.memory_space<vmem>>, %arg3: memref<216x16xbf16, #tpu.memory_space<vmem>>, %arg4: memref<1x16xf32, #tpu.memory_space<vmem>>, %arg5: memref<512x16xf32, #tpu.memory_space<vmem>>) attributes {dimension_semantics = [#tpu.dimension_semantics<parallel>, #tpu.dimension_semantics<parallel>], iteration_bounds = array<i64: 1, 1>, scalar_prefetch = 0 : i64, scratch_operands = 0 : i64, tpu.core_type = #tpu.core_type<tc>, window_params = [{transform_indices = @transform_0, window_bounds = array<i64: 512, 216>}, {transform_indices = @transform_1, window_bounds = array<i64: 216, 16>}, {transform_indices = @transform_2, window_bounds = array<i64: 1, 16>}, {transform_indices = @transform_3, window_bounds = array<i64: 512, 16>}]} {
    %c0 = arith.constant 0 : index
    %c0_0 = arith.constant 0 : index
    %0 = vector.load %arg2[%c0, %c0_0] : memref<512x216xbf16, #tpu.memory_space<vmem>>, vector<512x216xbf16>
    %c0_1 = arith.constant 0 : index
    %c0_2 = arith.constant 0 : index
    %1 = vector.load %arg3[%c0_1, %c0_2] : memref<216x16xbf16, #tpu.memory_space<vmem>>, vector<216x16xbf16>
    %cst = arith.constant dense<0.000000e+00> : vector<512x16xf32>
    %2 = tpu.matmul %0, %1, %cst {dimension_numbers = #tpu.dot_dimension_numbers<[1], [0], [0], [1], [0, 0, 1, 1], [], []>} : vector<512x216xbf16>, vector<216x16xbf16>, vector<512x16xf32> -> vector<512x16xf32>
    %c0_3 = arith.constant 0 : index
    %c0_4 = arith.constant 0 : index
    %3 = vector.load %arg4[%c0_3, %c0_4] : memref<1x16xf32, #tpu.memory_space<vmem>>, vector<1x16xf32>
    %4 = vector.broadcast %3 : vector<1x16xf32> to vector<512x16xf32>
    %5 = arith.addf %2, %4 : vector<512x16xf32>
    %cst_5 = arith.constant 0.000000e+00 : f32
    %6 = vector.broadcast %cst_5 : f32 to vector<512x16xf32>
    %7 = arith.maximumf %5, %6 : vector<512x16xf32>
    %c0_6 = arith.constant 0 : index
    %c0_7 = arith.constant 0 : index
    %8 = vector.load %arg5[%c0_6, %c0_7] : memref<512x16xf32, #tpu.memory_space<vmem>>, vector<512x16xf32>
    tpu.vector_store %arg5[%c0_6, %c0_7], %7 {strides = array<i32>} : memref<512x16xf32, #tpu.memory_space<vmem>>, vector<512x16xf32>,
    return
  }
  func.func @transform_0(%arg0: i32, %arg1: i32) -> (i32, i32) {
    %c0_i32 = arith.constant 0 : i32
    %c0_i32_0 = arith.constant 0 : i32
    return %arg0, %c0_i32 : i32, i32
  }
  func.func @transform_1(%arg0: i32, %arg1: i32) -> (i32, i32) {
    %c0_i32 = arith.constant 0 : i32
    %c0_i32_0 = arith.constant 0 : i32
    return %c0_i32, %arg1 : i32, i32
  }
  func.func @transform_2(%arg0: i32, %arg1: i32) -> (i32, i32) {
    %c0_i32 = arith.constant 0 : i32
    %c0_i32_0 = arith.constant 0 : i32
    return %c0_i32, %arg1 : i32, i32
  }
  func.func @transform_3(%arg0: i32, %arg1: i32) -> (i32, i32) {
    %c0_i32 = arith.constant 0 : i32
    return %arg0, %arg1 : i32, i32
  }
}

module attributes {stable_mosaic.version = 11 : i64} {
  func.func @_classifier_kernel(%arg0: i32, %arg1: memref<2x359xf32, #tpu.memory_space<vmem>>, %arg2: memref<359x512xbf16, #tpu.memory_space<vmem>>, %arg3: memref<1x512xf32, #tpu.memory_space<vmem>>, %arg4: memref<512x2048xbf16, #tpu.memory_space<vmem>>, %arg5: memref<1x2048xf32, #tpu.memory_space<vmem>>, %arg6: memref<2048x2xbf16, #tpu.memory_space<vmem>>, %arg7: memref<1x2xf32, #tpu.memory_space<vmem>>, %arg8: memref<2x2xf32, #tpu.memory_space<vmem>>, %arg9: memref<2x2048xf32, #tpu.memory_space<vmem>>) attributes {dimension_semantics = [#tpu.dimension_semantics<arbitrary>], iteration_bounds = array<i64: 4>, scalar_prefetch = 0 : i64, scratch_operands = 1 : i64, tpu.core_type = #tpu.core_type<tc>, window_params = [{pipeline_mode = #tpu.pipeline_mode<synchronous>, transform_indices = @transform_0, window_bounds = array<i64: 2, 359>}, {transform_indices = @transform_1, window_bounds = array<i64: 359, 512>}, {transform_indices = @transform_2, window_bounds = array<i64: 1, 512>}, {transform_indices = @transform_3, window_bounds = array<i64: 512, 2048>}, {pipeline_mode = #tpu.pipeline_mode<synchronous>, transform_indices = @transform_4, window_bounds = array<i64: 1, 2048>}, {pipeline_mode = #tpu.pipeline_mode<synchronous>, transform_indices = @transform_5, window_bounds = array<i64: 2048, 2>}, {pipeline_mode = #tpu.pipeline_mode<synchronous>, transform_indices = @transform_6, window_bounds = array<i64: 1, 2>}, {pipeline_mode = #tpu.pipeline_mode<synchronous>, transform_indices = @transform_7, window_bounds = array<i64: 2, 2>}]} {
    %c0_i32 = arith.constant 0 : i32
    %0 = arith.cmpi eq, %arg0, %c0_i32 : i32
    %1 = arith.extui %0 : i1 to i32
    %c0_i32_0 = arith.constant 0 : i32
    %2 = arith.cmpi ne, %1, %c0_i32_0 : i32
    scf.if %2 {
      %cst_15 = arith.constant 0.000000e+00 : f32
      %21 = vector.broadcast %cst_15 : f32 to vector<2x2048xf32>
      %c0_16 = arith.constant 0 : index
      %c0_17 = arith.constant 0 : index
      %22 = vector.load %arg9[%c0_16, %c0_17] : memref<2x2048xf32, #tpu.memory_space<vmem>>, vector<2x2048xf32>
      tpu.vector_store %arg9[%c0_16, %c0_17], %21 {strides = array<i32>} : memref<2x2048xf32, #tpu.memory_space<vmem>>, vector<2x2048xf32>,
    } else {
    }
    %c0 = arith.constant 0 : index
    %c0_1 = arith.constant 0 : index
    %3 = vector.load %arg1[%c0, %c0_1] : memref<2x359xf32, #tpu.memory_space<vmem>>, vector<2x359xf32>
    %4 = arith.truncf %3 : vector<2x359xf32> to vector<2x359xbf16>
    %c0_2 = arith.constant 0 : index
    %c0_3 = arith.constant 0 : index
    %5 = vector.load %arg2[%c0_2, %c0_3] : memref<359x512xbf16, #tpu.memory_space<vmem>>, vector<359x512xbf16>
    %cst = arith.constant dense<0.000000e+00> : vector<2x512xf32>
    %6 = tpu.matmul %4, %5, %cst {dimension_numbers = #tpu.dot_dimension_numbers<[1], [0], [0], [1], [0, 0, 1, 1], [], []>} : vector<2x359xbf16>, vector<359x512xbf16>, vector<2x512xf32> -> vector<2x512xf32>
    %c0_4 = arith.constant 0 : index
    %c0_5 = arith.constant 0 : index
    %7 = vector.load %arg3[%c0_4, %c0_5] : memref<1x512xf32, #tpu.memory_space<vmem>>, vector<1x512xf32>
    %8 = vector.broadcast %7 : vector<1x512xf32> to vector<2x512xf32>
    %9 = arith.addf %6, %8 : vector<2x512xf32>
    %cst_6 = arith.constant 0.000000e+00 : f32
    %10 = vector.broadcast %cst_6 : f32 to vector<2x512xf32>
    %11 = arith.maximumf %9, %10 : vector<2x512xf32>
    %c0_7 = arith.constant 0 : index
    %c0_8 = arith.constant 0 : index
    %12 = vector.load %arg9[%c0_7, %c0_8] : memref<2x2048xf32, #tpu.memory_space<vmem>>, vector<2x2048xf32>
    %13 = arith.truncf %11 : vector<2x512xf32> to vector<2x512xbf16>
    %c0_9 = arith.constant 0 : index
    %c0_10 = arith.constant 0 : index
    %14 = vector.load %arg4[%c0_9, %c0_10] : memref<512x2048xbf16, #tpu.memory_space<vmem>>, vector<512x2048xbf16>
    %cst_11 = arith.constant dense<0.000000e+00> : vector<2x2048xf32>
    %15 = tpu.matmul %13, %14, %cst_11 {dimension_numbers = #tpu.dot_dimension_numbers<[1], [0], [0], [1], [0, 0, 1, 1], [], []>} : vector<2x512xbf16>, vector<512x2048xbf16>, vector<2x2048xf32> -> vector<2x2048xf32>
    %16 = arith.addf %12, %15 : vector<2x2048xf32>
    %c0_12 = arith.constant 0 : index
    %c0_13 = arith.constant 0 : index
    %17 = vector.load %arg9[%c0_12, %c0_13] : memref<2x2048xf32, #tpu.memory_space<vmem>>, vector<2x2048xf32>
    tpu.vector_store %arg9[%c0_12, %c0_13], %16 {strides = array<i32>} : memref<2x2048xf32, #tpu.memory_space<vmem>>, vector<2x2048xf32>,
    %c3_i32 = arith.constant 3 : i32
    %18 = arith.cmpi eq, %arg0, %c3_i32 : i32
    %19 = arith.extui %18 : i1 to i32
    %c0_i32_14 = arith.constant 0 : i32
    %20 = arith.cmpi ne, %19, %c0_i32_14 : i32
    scf.if %20 {
      %c0_15 = arith.constant 0 : index
      %c0_16 = arith.constant 0 : index
      %21 = vector.load %arg9[%c0_15, %c0_16] : memref<2x2048xf32, #tpu.memory_space<vmem>>, vector<2x2048xf32>
      %c0_17 = arith.constant 0 : index
      %c0_18 = arith.constant 0 : index
      %22 = vector.load %arg5[%c0_17, %c0_18] : memref<1x2048xf32, #tpu.memory_space<vmem>>, vector<1x2048xf32>
      %23 = vector.broadcast %22 : vector<1x2048xf32> to vector<2x2048xf32>
      %24 = arith.addf %21, %23 : vector<2x2048xf32>
      %cst_19 = arith.constant 0.000000e+00 : f32
      %25 = vector.broadcast %cst_19 : f32 to vector<2x2048xf32>
      %26 = arith.maximumf %24, %25 : vector<2x2048xf32>
      %27 = arith.truncf %26 : vector<2x2048xf32> to vector<2x2048xbf16>
      %c0_20 = arith.constant 0 : index
      %c0_21 = arith.constant 0 : index
      %28 = vector.load %arg6[%c0_20, %c0_21] : memref<2048x2xbf16, #tpu.memory_space<vmem>>, vector<2048x2xbf16>
      %cst_22 = arith.constant dense<0.000000e+00> : vector<2x2xf32>
      %29 = tpu.matmul %27, %28, %cst_22 {dimension_numbers = #tpu.dot_dimension_numbers<[1], [0], [0], [1], [0, 0, 1, 1], [], []>} : vector<2x2048xbf16>, vector<2048x2xbf16>, vector<2x2xf32> -> vector<2x2xf32>
      %c0_23 = arith.constant 0 : index
      %c0_24 = arith.constant 0 : index
      %30 = vector.load %arg7[%c0_23, %c0_24] : memref<1x2xf32, #tpu.memory_space<vmem>>, vector<1x2xf32>
      %31 = vector.broadcast %30 : vector<1x2xf32> to vector<2x2xf32>
      %32 = arith.addf %29, %31 : vector<2x2xf32>
      %c0_25 = arith.constant 0 : index
      %c0_26 = arith.constant 0 : index
      %33 = vector.load %arg8[%c0_25, %c0_26] : memref<2x2xf32, #tpu.memory_space<vmem>>, vector<2x2xf32>
      tpu.vector_store %arg8[%c0_25, %c0_26], %32 {strides = array<i32>} : memref<2x2xf32, #tpu.memory_space<vmem>>, vector<2x2xf32>,
    } else {
    }
    return
  }
  func.func @transform_0(%arg0: i32) -> (i32, i32) {
    %c0_i32 = arith.constant 0 : i32
    %c0_i32_0 = arith.constant 0 : i32
    %c0_i32_1 = arith.constant 0 : i32
    return %c0_i32, %c0_i32_0 : i32, i32
  }
  func.func @transform_1(%arg0: i32) -> (i32, i32) {
    %c0_i32 = arith.constant 0 : i32
    %c0_i32_0 = arith.constant 0 : i32
    return %c0_i32, %arg0 : i32, i32
  }
  func.func @transform_2(%arg0: i32) -> (i32, i32) {
    %c0_i32 = arith.constant 0 : i32
    %c0_i32_0 = arith.constant 0 : i32
    return %c0_i32, %arg0 : i32, i32
  }
  func.func @transform_3(%arg0: i32) -> (i32, i32) {
    %c0_i32 = arith.constant 0 : i32
    %c0_i32_0 = arith.constant 0 : i32
    return %arg0, %c0_i32 : i32, i32
  }
  func.func @transform_4(%arg0: i32) -> (i32, i32) {
    %c0_i32 = arith.constant 0 : i32
    %c0_i32_0 = arith.constant 0 : i32
    %c0_i32_1 = arith.constant 0 : i32
    return %c0_i32, %c0_i32_0 : i32, i32
  }
  func.func @transform_5(%arg0: i32) -> (i32, i32) {
    %c0_i32 = arith.constant 0 : i32
    %c0_i32_0 = arith.constant 0 : i32
    %c0_i32_1 = arith.constant 0 : i32
    return %c0_i32, %c0_i32_0 : i32, i32
  }
  func.func @transform_6(%arg0: i32) -> (i32, i32) {
    %c0_i32 = arith.constant 0 : i32
    %c0_i32_0 = arith.constant 0 : i32
    %c0_i32_1 = arith.constant 0 : i32
    return %c0_i32, %c0_i32_0 : i32, i32
  }
  func.func @transform_7(%arg0: i32) -> (i32, i32) {
    %c0_i32 = arith.constant 0 : i32
    %c0_i32_0 = arith.constant 0 : i32
    %c0_i32_1 = arith.constant 0 : i32
    return %c0_i32, %c0_i32_0 : i32, i32
  }
}

</mosaic_0001>

<bundles_post_ra>
// kernel: vgg_forward.3
= control target key start
LH: loop header
LB: loop body
LE: loop exit
PB: predicated region body
PF: predicated region fallthrough
CT: control target
= control target key end

     0   :  { %s1265_s12 = smov 0   ;;  %s1267_s13 = smov 0   ;;  %s1576_s0 = inlined_call_operand.vmem [shape: bf16[4096,27], index: 0, kind: input, shape index: {}]   ;;  %s1577_s1 = inlined_call_operand.vmem [shape: bf16[27,8], index: 1, kind: input, shape index: {}]   ;;  %s1578_s2 = inlined_call_operand.vmem [shape: f32[1,8], index: 2, kind: input, shape index: {}]   ;;  %s1579_s3 = inlined_call_operand.vmem [shape: f32[4096,8], index: 3, kind: output, shape index: {}]  }
   0x1   :  { %s1269_s14 = smov 0  }
   0x2 LB: > { %s25_s15 = sadd.s32 1, %s1238_s13  ;;  %p979_p0 = scmp.ge.s32.totalorder %s1242_s14, 1  ;;  %s1242_s14 = sphi %s1269_s14, %s13_s14   ;;  %s1238_s13 = sphi %s1267_s13, %s1581_s13   ;;  %s1234_s12 = sphi %s1265_s12, %s1580_s12  }
   0x3   : > { %p27_p1 = scmp.ge.s32.totalorder %s25_s15, 8  ;;  %p169_p2 = scmp.lt.s32.totalorder %s1242_s14, 9 }
   0x5   : > { %s1583_s15 = smov (%p27_p1, %s25_s15), 0  ;;  %p170_p3 = pnand %p979_p0, %p169_p2 }
   0x6   : > { %s980_s20 = sshll.u32 (!%p170_p3), %s1234_s12, 6 }
   0x7   : > { %173 = sbr.rel (%p170_p3) target bundleno = 284 (0x11c), region = 32  ;;  %p204_p4 = scmp.lt.s32.totalorder (!%p170_p3), %s980_s20, 511 }
   0xc   : > { %v1118_v0 = vld [vmem:[%s1577_s1 + $0x8] sm:$0xf]  ;;  %v1187_v1 = vld [vmem:[%s1577_s1 + $0x8] sm:$0x30]  ;;  %vm566_vm0 = vcmask 1044480   ;;  %vm567_vm1 = vcmask 1045504  }
   0xd   : > { %v1119_v2 = vor.u32 %v1187_v1, %v1118_v0  ;;  %v1244_v3 = vmov 65535   ;;  %s1585_s20 = smov (!%p204_p4, %s980_s20), 511  ;;  %v1186_v7 = vld [vmem:[%s1577_s1] sm:$0xff]  ;;  %vm469_vm2 = vcmask 220160   ;;  %vm806_vm3 = vcmask 64512  }
   0xe   : > { %v568_v4 = vsel %vm566_vm0, 4294967295, %v1244_v3  ;;  %s981_s23 = sshll.u32 %s1585_s20, 2  ;;  %v1367_v40 = vld [vmem:[%s1578_s2] ss:$0 sm:$0xff]  ;;  %s983_s29 = sshll.u32 %s1585_s20, 3 }
   0xf   : > { %v569_v5 = vsel %vm567_vm1, %v568_v4, 0  ;;  %s1298_s26 = scalar_lea.vmem %s1576_s0, %s981_s23  ;;  %s1375_s5 = scalar_lea.vmem %s1579_s3, %s983_s29 }
  0x10   : > { %v571_v6 = vand.u32 %v1119_v2, %v569_v5  ;;  %v1154_v8 = vld [vmem:[%s1298_s26] sm:$0xff]  ;;  %v1155_v12 = vld [vmem:[%s1298_s26 + $0x8] sm:$0xff]  ;;  %v1156_v16 = vld [vmem:[%s1298_s26 + $0x10] sm:$0xff] }
  0x11   : > { %v1162_v9 = vld [vmem:[%s1298_s26 + $0x40] sm:$0xff]  ;;  %v1163_v13 = vld [vmem:[%s1298_s26 + $0x48] sm:$0xff]  ;;  %v1164_v17 = vld [vmem:[%s1298_s26 + $0x50] sm:$0xff] }
  0x12   : > { %579 = vmatpush.bf16.msra.mxu0 %v571_v6  ;;  %1188 = vmatpush.bf16.msra.mxu1 %v571_v6  ;;  %v1170_v10 = vld [vmem:[%s1298_s26 + $0x80] sm:$0xff]  ;;  %v1171_v14 = vld [vmem:[%s1298_s26 + $0x88] sm:$0xff]  ;;  %v1172_v18 = vld [vmem:[%s1298_s26 + $0x90] sm:$0xff] }
  0x13   : > { %1189 = vmatpush.bf16.msra.mxu2 %v571_v6  ;;  %1190 = vmatpush.bf16.msra.mxu3 %v571_v6  ;;  %v1178_v11 = vld [vmem:[%s1298_s26 + $0xc0] sm:$0xff]  ;;  %v1179_v15 = vld [vmem:[%s1298_s26 + $0xc8] sm:$0xff]  ;;  %v1180_v19 = vld [vmem:[%s1298_s26 + $0xd0] sm:$0xff] }
  0x14   : > { %v1157_v20 = vld [vmem:[%s1298_s26 + $0x18] sm:$0xff]  ;;  %v1158_v24 = vld [vmem:[%s1298_s26 + $0x20] sm:$0xff]  ;;  %v1159_v28 = vld [vmem:[%s1298_s26 + $0x28] sm:$0xff] }
  0x15   : > { %v1165_v21 = vld [vmem:[%s1298_s26 + $0x58] sm:$0xff]  ;;  %v1166_v25 = vld [vmem:[%s1298_s26 + $0x60] sm:$0xff]  ;;  %v1167_v29 = vld [vmem:[%s1298_s26 + $0x68] sm:$0xff] }
  0x16   : > { %580 = vmatpush.bf16.msra.mxu0 %v1186_v7  ;;  %1191 = vmatpush.bf16.msra.mxu1 %v1186_v7  ;;  %v1173_v22 = vld [vmem:[%s1298_s26 + $0x98] sm:$0xff]  ;;  %v1174_v26 = vld [vmem:[%s1298_s26 + $0xa0] sm:$0xff]  ;;  %v1175_v30 = vld [vmem:[%s1298_s26 + $0xa8] sm:$0xff] }
  0x17   : > { %1192 = vmatpush.bf16.msra.mxu2 %v1186_v7  ;;  %1193 = vmatpush.bf16.msra.mxu3 %v1186_v7  ;;  %v1181_v23 = vld [vmem:[%s1298_s26 + $0xd8] sm:$0xff]  ;;  %v1182_v27 = vld [vmem:[%s1298_s26 + $0xe0] sm:$0xff]  ;;  %v1183_v31 = vld [vmem:[%s1298_s26 + $0xe8] sm:$0xff] }
  0x18   : > { %v1160_v32 = vld [vmem:[%s1298_s26 + $0x30] sm:$0xff]  ;;  %v1161_v36 = vld [vmem:[%s1298_s26 + $0x38] sm:$0xff] }
  0x19   : > { %1120 = vmatmul.msk.bf16.vlgmr.msra.gmra.mxu0 %vm469_vm2, %v1154_v8  ;;  %1128 = vmatmul.msk.bf16.vlgmr.msra.gmra.mxu1 %vm469_vm2, %v1162_v9  ;;  %v1168_v33 = vld [vmem:[%s1298_s26 + $0x70] sm:$0xff]  ;;  %v1169_v37 = vld [vmem:[%s1298_s26 + $0x78] sm:$0xff] }
  0x1a   : > { %1136 = vmatmul.msk.bf16.vlgmr.msra.gmra.mxu2 %vm469_vm2, %v1170_v10  ;;  %1144 = vmatmul.msk.bf16.vlgmr.msra.gmra.mxu3 %vm469_vm2, %v1178_v11  ;;  %v1176_v34 = vld [vmem:[%s1298_s26 + $0xb0] sm:$0xff]  ;;  %v1177_v38 = vld [vmem:[%s1298_s26 + $0xb8] sm:$0xff] }
  0x1b   : > { %v1184_v35 = vld [vmem:[%s1298_s26 + $0xf0] sm:$0xff]  ;;  %v1185_v39 = vld [vmem:[%s1298_s26 + $0xf8] sm:$0xff] }
  0x29   : > { %1121 = vmatmul.msk.bf16.gmra.mxu0 %vm469_vm2, %v1155_v12  ;;  %1129 = vmatmul.msk.bf16.gmra.mxu1 %vm469_vm2, %v1163_v13 }
  0x2a   : > { %1137 = vmatmul.msk.bf16.gmra.mxu2 %vm469_vm2, %v1171_v14  ;;  %1145 = vmatmul.msk.bf16.gmra.mxu3 %vm469_vm2, %v1179_v15 }
  0x39   : > { %1122 = vmatmul.msk.bf16.gmra.mxu0 %vm469_vm2, %v1156_v16  ;;  %1130 = vmatmul.msk.bf16.gmra.mxu1 %vm469_vm2, %v1164_v17 }
  0x3a   : > { %1138 = vmatmul.msk.bf16.gmra.mxu2 %vm469_vm2, %v1172_v18  ;;  %1146 = vmatmul.msk.bf16.gmra.mxu3 %vm469_vm2, %v1180_v19 }
  0x49   : > { %1123 = vmatmul.msk.bf16.gmra.mxu0 %vm469_vm2, %v1157_v20  ;;  %1131 = vmatmul.msk.bf16.gmra.mxu1 %vm469_vm2, %v1165_v21 }
  0x4a   : > { %1139 = vmatmul.msk.bf16.gmra.mxu2 %vm469_vm2, %v1173_v22  ;;  %1147 = vmatmul.msk.bf16.gmra.mxu3 %vm469_vm2, %v1181_v23 }
  0x59   : > { %1124 = vmatmul.msk.bf16.gmra.mxu0 %vm469_vm2, %v1158_v24  ;;  %1132 = vmatmul.msk.bf16.gmra.mxu1 %vm469_vm2, %v1166_v25 }
  0x5a   : > { %1140 = vmatmul.msk.bf16.gmra.mxu2 %vm469_vm2, %v1174_v26  ;;  %1148 = vmatmul.msk.bf16.gmra.mxu3 %vm469_vm2, %v1182_v27 }
  0x69   : > { %1125 = vmatmul.msk.bf16.gmra.mxu0 %vm469_vm2, %v1159_v28  ;;  %1133 = vmatmul.msk.bf16.gmra.mxu1 %vm469_vm2, %v1167_v29 }
  0x6a   : > { %1141 = vmatmul.msk.bf16.gmra.mxu2 %vm469_vm2, %v1175_v30  ;;  %1149 = vmatmul.msk.bf16.gmra.mxu3 %vm469_vm2, %v1183_v31 }
  0x79   : > { %1126 = vmatmul.msk.bf16.gmra.mxu0 %vm469_vm2, %v1160_v32  ;;  %1134 = vmatmul.msk.bf16.gmra.mxu1 %vm469_vm2, %v1168_v33 }
  0x7a   : > { %1142 = vmatmul.msk.bf16.gmra.mxu2 %vm469_vm2, %v1176_v34  ;;  %1150 = vmatmul.msk.bf16.gmra.mxu3 %vm469_vm2, %v1184_v35 }
  0x89   : > { %1127 = vmatmul.msk.bf16.gmra.mxu0 %vm469_vm2, %v1161_v36  ;;  %1135 = vmatmul.msk.bf16.gmra.mxu1 %vm469_vm2, %v1169_v37 }
  0x8a   : > { %1143 = vmatmul.msk.bf16.gmra.mxu2 %vm469_vm2, %v1177_v38  ;;  %1151 = vmatmul.msk.bf16.gmra.mxu3 %vm469_vm2, %v1185_v39 }
  0x96   : > { %v582_v41 = vpop.f32.mrf.mxu0  ;;  %v622_v42 = vpop.f32.mrf.mxu1 }
  0x97   : > { %v583_v43 = vadd.f32 %v1367_v40, %v582_v41  ;;  %v623_v44 = vadd.f32 %v1367_v40, %v622_v42 }
  0x99   : > { %v742_v45 = vmax.f32 %v583_v43, 0.0  ;;  %v758_v46 = vmax.f32 %v623_v44, 0.0 }
  0x9b   : > { %807 = vst.msk [vmem:[%s1375_s5] sm:$0xff] %vm806_vm3, %v742_v45 }
  0x9c   : > { %823 = vst.msk [vmem:[%s1375_s5 + $0x80] sm:$0xff] %vm806_vm3, %v758_v46 }
  0x9d   : > { %v662_v47 = vpop.f32.mrf.mxu2  ;;  %v702_v48 = vpop.f32.mrf.mxu3 }
  0x9e   : > { %v663_v49 = vadd.f32 %v1367_v40, %v662_v47  ;;  %v703_v50 = vadd.f32 %v1367_v40, %v702_v48  ;;  %v584_v51 = vpop.f32.mrf.mxu0  ;;  %v624_v52 = vpop.f32.mrf.mxu1 }
  0x9f   : > { %v585_v53 = vadd.f32 %v1367_v40, %v584_v51  ;;  %v625_v54 = vadd.f32 %v1367_v40, %v624_v52 }
  0xa0   : > { %v774_v55 = vmax.f32 %v663_v49, 0.0  ;;  %v790_v56 = vmax.f32 %v703_v50, 0.0 }
  0xa1   : > { %v743_v57 = vmax.f32 %v585_v53, 0.0  ;;  %v759_v58 = vmax.f32 %v625_v54, 0.0 }
  0xa2   : > { %839 = vst.msk [vmem:[%s1375_s5 + $0x100] sm:$0xff] %vm806_vm3, %v774_v55 }
  0xa3   : > { %855 = vst.msk [vmem:[%s1375_s5 + $0x180] sm:$0xff] %vm806_vm3, %v790_v56 }
  0xa4   : > { %808 = vst.msk [vmem:[%s1375_s5 + $0x8] sm:$0xff] %vm806_vm3, %v743_v57 }
  0xa5   : > { %824 = vst.msk [vmem:[%s1375_s5 + $0x88] sm:$0xff] %vm806_vm3, %v759_v58  ;;  %v664_v59 = vpop.f32.mrf.mxu2  ;;  %v704_v60 = vpop.f32.mrf.mxu3 }
  0xa6   : > { %v665_v61 = vadd.f32 %v1367_v40, %v664_v59  ;;  %v705_v62 = vadd.f32 %v1367_v40, %v704_v60  ;;  %v587_v63 = vpop.f32.mrf.mxu0  ;;  %v627_v0 = vpop.f32.mrf.mxu1 }
  0xa7   : > { %v588_v1 = vadd.f32 %v1367_v40, %v587_v63  ;;  %v628_v2 = vadd.f32 %v1367_v40, %v627_v0 }
  0xa8   : > { %v775_v3 = vmax.f32 %v665_v61, 0.0  ;;  %v791_v4 = vmax.f32 %v705_v62, 0.0 }
  0xa9   : > { %v744_v5 = vmax.f32 %v588_v1, 0.0  ;;  %v760_v6 = vmax.f32 %v628_v2, 0.0 }
  0xaa   : > { %840 = vst.msk [vmem:[%s1375_s5 + $0x108] sm:$0xff] %vm806_vm3, %v775_v3 }
  0xab   : > { %856 = vst.msk [vmem:[%s1375_s5 + $0x188] sm:$0xff] %vm806_vm3, %v791_v4 }
  0xac   : > { %809 = vst.msk [vmem:[%s1375_s5 + $0x10] sm:$0xff] %vm806_vm3, %v744_v5 }
  0xad   : > { %825 = vst.msk [vmem:[%s1375_s5 + $0x90] sm:$0xff] %vm806_vm3, %v760_v6  ;;  %v667_v7 = vpop.f32.mrf.mxu2  ;;  %v707_v8 = vpop.f32.mrf.mxu3 }
  0xae   : > { %v668_v9 = vadd.f32 %v1367_v40, %v667_v7  ;;  %v708_v10 = vadd.f32 %v1367_v40, %v707_v8  ;;  %v589_v11 = vpop.f32.mrf.mxu0  ;;  %v629_v12 = vpop.f32.mrf.mxu1 }
  0xaf   : > { %v590_v13 = vadd.f32 %v1367_v40, %v589_v11  ;;  %v630_v14 = vadd.f32 %v1367_v40, %v629_v12 }
  0xb0   : > { %v776_v15 = vmax.f32 %v668_v9, 0.0  ;;  %v792_v16 = vmax.f32 %v708_v10, 0.0 }
  0xb1   : > { %v745_v17 = vmax.f32 %v590_v13, 0.0  ;;  %v761_v18 = vmax.f32 %v630_v14, 0.0 }
  0xb2   : > { %841 = vst.msk [vmem:[%s1375_s5 + $0x110] sm:$0xff] %vm806_vm3, %v776_v15 }
  0xb3   : > { %857 = vst.msk [vmem:[%s1375_s5 + $0x190] sm:$0xff] %vm806_vm3, %v792_v16 }
  0xb4   : > { %810 = vst.msk [vmem:[%s1375_s5 + $0x18] sm:$0xff] %vm806_vm3, %v745_v17 }
  0xb5   : > { %826 = vst.msk [vmem:[%s1375_s5 + $0x98] sm:$0xff] %vm806_vm3, %v761_v18  ;;  %v669_v19 = vpop.f32.mrf.mxu2  ;;  %v709_v20 = vpop.f32.mrf.mxu3 }
  0xb6   : > { %v670_v21 = vadd.f32 %v1367_v40, %v669_v19  ;;  %v710_v22 = vadd.f32 %v1367_v40, %v709_v20  ;;  %v592_v23 = vpop.f32.mrf.mxu0  ;;  %v632_v24 = vpop.f32.mrf.mxu1 }
  0xb7   : > { %v593_v25 = vadd.f32 %v1367_v40, %v592_v23  ;;  %v633_v26 = vadd.f32 %v1367_v40, %v632_v24 }
  0xb8   : > { %v777_v27 = vmax.f32 %v670_v21, 0.0  ;;  %v793_v28 = vmax.f32 %v710_v22, 0.0 }
  0xb9   : > { %v746_v29 = vmax.f32 %v593_v25, 0.0  ;;  %v762_v30 = vmax.f32 %v633_v26, 0.0 }
  0xba   : > { %842 = vst.msk [vmem:[%s1375_s5 + $0x118] sm:$0xff] %vm806_vm3, %v777_v27 }
  0xbb   : > { %858 = vst.msk [vmem:[%s1375_s5 + $0x198] sm:$0xff] %vm806_vm3, %v793_v28 }
  0xbc   : > { %811 = vst.msk [vmem:[%s1375_s5 + $0x20] sm:$0xff] %vm806_vm3, %v746_v29 }
  0xbd   : > { %827 = vst.msk [vmem:[%s1375_s5 + $0xa0] sm:$0xff] %vm806_vm3, %v762_v30  ;;  %v672_v31 = vpop.f32.mrf.mxu2  ;;  %v712_v32 = vpop.f32.mrf.mxu3 }
  0xbe   : > { %v673_v33 = vadd.f32 %v1367_v40, %v672_v31  ;;  %v713_v34 = vadd.f32 %v1367_v40, %v712_v32  ;;  %v594_v35 = vpop.f32.mrf.mxu0  ;;  %v634_v36 = vpop.f32.mrf.mxu1 }
  0xbf   : > { %v595_v37 = vadd.f32 %v1367_v40, %v594_v35  ;;  %v635_v38 = vadd.f32 %v1367_v40, %v634_v36 }
  0xc0   : > { %v778_v39 = vmax.f32 %v673_v33, 0.0  ;;  %v794_v41 = vmax.f32 %v713_v34, 0.0 }
  0xc1   : > { %v747_v42 = vmax.f32 %v595_v37, 0.0  ;;  %v763_v43 = vmax.f32 %v635_v38, 0.0 }
  0xc2   : > { %843 = vst.msk [vmem:[%s1375_s5 + $0x120] sm:$0xff] %vm806_vm3, %v778_v39 }
  0xc3   : > { %859 = vst.msk [vmem:[%s1375_s5 + $0x1a0] sm:$0xff] %vm806_vm3, %v794_v41 }
  0xc4   : > { %812 = vst.msk [vmem:[%s1375_s5 + $0x28] sm:$0xff] %vm806_vm3, %v747_v42 }
  0xc5   : > { %828 = vst.msk [vmem:[%s1375_s5 + $0xa8] sm:$0xff] %vm806_vm3, %v763_v43  ;;  %v674_v44 = vpop.f32.mrf.mxu2  ;;  %v714_v45 = vpop.f32.mrf.mxu3 }
  0xc6   : > { %v675_v46 = vadd.f32 %v1367_v40, %v674_v44  ;;  %v715_v47 = vadd.f32 %v1367_v40, %v714_v45  ;;  %v597_v48 = vpop.f32.mrf.mxu0  ;;  %v637_v49 = vpop.f32.mrf.mxu1 }
  0xc7   : > { %v598_v50 = vadd.f32 %v1367_v40, %v597_v48  ;;  %v638_v51 = vadd.f32 %v1367_v40, %v637_v49 }
  0xc8   : > { %v779_v52 = vmax.f32 %v675_v46, 0.0  ;;  %v795_v53 = vmax.f32 %v715_v47, 0.0 }
  0xc9   : > { %v748_v54 = vmax.f32 %v598_v50, 0.0  ;;  %v764_v55 = vmax.f32 %v638_v51, 0.0 }
  0xca   : > { %844 = vst.msk [vmem:[%s1375_s5 + $0x128] sm:$0xff] %vm806_vm3, %v779_v52 }
  0xcb   : > { %860 = vst.msk [vmem:[%s1375_s5 + $0x1a8] sm:$0xff] %vm806_vm3, %v795_v53 }
  0xcc   : > { %813 = vst.msk [vmem:[%s1375_s5 + $0x30] sm:$0xff] %vm806_vm3, %v748_v54 }
  0xcd   : > { %829 = vst.msk [vmem:[%s1375_s5 + $0xb0] sm:$0xff] %vm806_vm3, %v764_v55  ;;  %v677_v56 = vpop.f32.mrf.mxu2  ;;  %v717_v57 = vpop.f32.mrf.mxu3 }
  0xce   : > { %v678_v58 = vadd.f32 %v1367_v40, %v677_v56  ;;  %v718_v59 = vadd.f32 %v1367_v40, %v717_v57  ;;  %v599_v60 = vpop.f32.mrf.mxu0  ;;  %v639_v61 = vpop.f32.mrf.mxu1 }
  0xcf   : > { %v600_v62 = vadd.f32 %v1367_v40, %v599_v60  ;;  %v640_v63 = vadd.f32 %v1367_v40, %v639_v61 }
  0xd0   : > { %v780_v0 = vmax.f32 %v678_v58, 0.0  ;;  %v796_v1 = vmax.f32 %v718_v59, 0.0 }
  0xd1   : > { %v749_v2 = vmax.f32 %v600_v62, 0.0  ;;  %v765_v3 = vmax.f32 %v640_v63, 0.0 }
  0xd2   : > { %845 = vst.msk [vmem:[%s1375_s5 + $0x130] sm:$0xff] %vm806_vm3, %v780_v0 }
  0xd3   : > { %861 = vst.msk [vmem:[%s1375_s5 + $0x1b0] sm:$0xff] %vm806_vm3, %v796_v1 }
  0xd4   : > { %814 = vst.msk [vmem:[%s1375_s5 + $0x38] sm:$0xff] %vm806_vm3, %v749_v2 }
  0xd5   : > { %830 = vst.msk [vmem:[%s1375_s5 + $0xb8] sm:$0xff] %vm806_vm3, %v765_v3  ;;  %v679_v4 = vpop.f32.mrf.mxu2  ;;  %v719_v5 = vpop.f32.mrf.mxu3 }
  0xd6   : > { %v680_v6 = vadd.f32 %v1367_v40, %v679_v4  ;;  %v720_v7 = vadd.f32 %v1367_v40, %v719_v5  ;;  %v602_v8 = vpop.f32.mrf.mxu0  ;;  %v642_v9 = vpop.f32.mrf.mxu1 }
  0xd7   : > { %v603_v10 = vadd.f32 %v1367_v40, %v602_v8  ;;  %v643_v11 = vadd.f32 %v1367_v40, %v642_v9 }
  0xd8   : > { %v781_v12 = vmax.f32 %v680_v6, 0.0  ;;  %v797_v13 = vmax.f32 %v720_v7, 0.0 }
  0xd9   : > { %v750_v14 = vmax.f32 %v603_v10, 0.0  ;;  %v766_v15 = vmax.f32 %v643_v11, 0.0 }
  0xda   : > { %846 = vst.msk [vmem:[%s1375_s5 + $0x138] sm:$0xff] %vm806_vm3, %v781_v12 }
  0xdb   : > { %862 = vst.msk [vmem:[%s1375_s5 + $0x1b8] sm:$0xff] %vm806_vm3, %v797_v13 }
  0xdc   : > { %815 = vst.msk [vmem:[%s1375_s5 + $0x40] sm:$0xff] %vm806_vm3, %v750_v14 }
  0xdd   : > { %831 = vst.msk [vmem:[%s1375_s5 + $0xc0] sm:$0xff] %vm806_vm3, %v766_v15  ;;  %v682_v16 = vpop.f32.mrf.mxu2  ;;  %v722_v17 = vpop.f32.mrf.mxu3 }
  0xde   : > { %v683_v18 = vadd.f32 %v1367_v40, %v682_v16  ;;  %v723_v19 = vadd.f32 %v1367_v40, %v722_v17  ;;  %v604_v20 = vpop.f32.mrf.mxu0  ;;  %v644_v21 = vpop.f32.mrf.mxu1 }
  0xdf   : > { %v605_v22 = vadd.f32 %v1367_v40, %v604_v20  ;;  %v645_v23 = vadd.f32 %v1367_v40, %v644_v21 }
  0xe0   : > { %v782_v24 = vmax.f32 %v683_v18, 0.0  ;;  %v798_v25 = vmax.f32 %v723_v19, 0.0 }
  0xe1   : > { %v751_v26 = vmax.f32 %v605_v22, 0.0  ;;  %v767_v27 = vmax.f32 %v645_v23, 0.0 }
  0xe2   : > { %847 = vst.msk [vmem:[%s1375_s5 + $0x140] sm:$0xff] %vm806_vm3, %v782_v24 }
  0xe3   : > { %863 = vst.msk [vmem:[%s1375_s5 + $0x1c0] sm:$0xff] %vm806_vm3, %v798_v25 }
  0xe4   : > { %816 = vst.msk [vmem:[%s1375_s5 + $0x48] sm:$0xff] %vm806_vm3, %v751_v26 }
  0xe5   : > { %832 = vst.msk [vmem:[%s1375_s5 + $0xc8] sm:$0xff] %vm806_vm3, %v767_v27  ;;  %v684_v28 = vpop.f32.mrf.mxu2  ;;  %v724_v29 = vpop.f32.mrf.mxu3 }
  0xe6   : > { %v685_v30 = vadd.f32 %v1367_v40, %v684_v28  ;;  %v725_v31 = vadd.f32 %v1367_v40, %v724_v29  ;;  %v607_v32 = vpop.f32.mrf.mxu0  ;;  %v647_v33 = vpop.f32.mrf.mxu1 }
  0xe7   : > { %v608_v34 = vadd.f32 %v1367_v40, %v607_v32  ;;  %v648_v35 = vadd.f32 %v1367_v40, %v647_v33 }
  0xe8   : > { %v783_v36 = vmax.f32 %v685_v30, 0.0  ;;  %v799_v37 = vmax.f32 %v725_v31, 0.0 }
  0xe9   : > { %v752_v38 = vmax.f32 %v608_v34, 0.0  ;;  %v768_v39 = vmax.f32 %v648_v35, 0.0 }
  0xea   : > { %848 = vst.msk [vmem:[%s1375_s5 + $0x148] sm:$0xff] %vm806_vm3, %v783_v36 }
  0xeb   : > { %864 = vst.msk [vmem:[%s1375_s5 + $0x1c8] sm:$0xff] %vm806_vm3, %v799_v37 }
  0xec   : > { %817 = vst.msk [vmem:[%s1375_s5 + $0x50] sm:$0xff] %vm806_vm3, %v752_v38 }
  0xed   : > { %833 = vst.msk [vmem:[%s1375_s5 + $0xd0] sm:$0xff] %vm806_vm3, %v768_v39  ;;  %v687_v41 = vpop.f32.mrf.mxu2  ;;  %v727_v42 = vpop.f32.mrf.mxu3 }
  0xee   : > { %v688_v43 = vadd.f32 %v1367_v40, %v687_v41  ;;  %v728_v44 = vadd.f32 %v1367_v40, %v727_v42  ;;  %v609_v45 = vpop.f32.mrf.mxu0  ;;  %v649_v46 = vpop.f32.mrf.mxu1 }
  0xef   : > { %v610_v47 = vadd.f32 %v1367_v40, %v609_v45  ;;  %v650_v48 = vadd.f32 %v1367_v40, %v649_v46 }
  0xf0   : > { %v784_v49 = vmax.f32 %v688_v43, 0.0  ;;  %v800_v50 = vmax.f32 %v728_v44, 0.0 }
  0xf1   : > { %v753_v51 = vmax.f32 %v610_v47, 0.0  ;;  %v769_v52 = vmax.f32 %v650_v48, 0.0 }
  0xf2   : > { %849 = vst.msk [vmem:[%s1375_s5 + $0x150] sm:$0xff] %vm806_vm3, %v784_v49 }
  0xf3   : > { %865 = vst.msk [vmem:[%s1375_s5 + $0x1d0] sm:$0xff] %vm806_vm3, %v800_v50 }
  0xf4   : > { %818 = vst.msk [vmem:[%s1375_s5 + $0x58] sm:$0xff] %vm806_vm3, %v753_v51 }
  0xf5   : > { %834 = vst.msk [vmem:[%s1375_s5 + $0xd8] sm:$0xff] %vm806_vm3, %v769_v52  ;;  %v689_v53 = vpop.f32.mrf.mxu2  ;;  %v729_v54 = vpop.f32.mrf.mxu3 }
  0xf6   : > { %v690_v55 = vadd.f32 %v1367_v40, %v689_v53  ;;  %v730_v56 = vadd.f32 %v1367_v40, %v729_v54  ;;  %v612_v57 = vpop.f32.mrf.mxu0  ;;  %v652_v58 = vpop.f32.mrf.mxu1 }
  0xf7   : > { %v613_v59 = vadd.f32 %v1367_v40, %v612_v57  ;;  %v653_v60 = vadd.f32 %v1367_v40, %v652_v58 }
  0xf8   : > { %v785_v61 = vmax.f32 %v690_v55, 0.0  ;;  %v801_v62 = vmax.f32 %v730_v56, 0.0 }
  0xf9   : > { %v754_v63 = vmax.f32 %v613_v59, 0.0  ;;  %v770_v0 = vmax.f32 %v653_v60, 0.0 }
  0xfa   : > { %850 = vst.msk [vmem:[%s1375_s5 + $0x158] sm:$0xff] %vm806_vm3, %v785_v61 }
  0xfb   : > { %866 = vst.msk [vmem:[%s1375_s5 + $0x1d8] sm:$0xff] %vm806_vm3, %v801_v62 }
  0xfc   : > { %819 = vst.msk [vmem:[%s1375_s5 + $0x60] sm:$0xff] %vm806_vm3, %v754_v63 }
  0xfd   : > { %835 = vst.msk [vmem:[%s1375_s5 + $0xe0] sm:$0xff] %vm806_vm3, %v770_v0  ;;  %v692_v1 = vpop.f32.mrf.mxu2  ;;  %v732_v2 = vpop.f32.mrf.mxu3 }
  0xfe   : > { %v693_v3 = vadd.f32 %v1367_v40, %v692_v1  ;;  %v733_v4 = vadd.f32 %v1367_v40, %v732_v2  ;;  %v614_v5 = vpop.f32.mrf.mxu0  ;;  %v654_v6 = vpop.f32.mrf.mxu1 }
  0xff   : > { %v615_v7 = vadd.f32 %v1367_v40, %v614_v5  ;;  %v655_v8 = vadd.f32 %v1367_v40, %v654_v6 }
 0x100   : > { %v786_v9 = vmax.f32 %v693_v3, 0.0  ;;  %v802_v10 = vmax.f32 %v733_v4, 0.0 }
 0x101   : > { %v755_v11 = vmax.f32 %v615_v7, 0.0  ;;  %v771_v12 = vmax.f32 %v655_v8, 0.0 }
 0x102   : > { %851 = vst.msk [vmem:[%s1375_s5 + $0x160] sm:$0xff] %vm806_vm3, %v786_v9 }
 0x103   : > { %867 = vst.msk [vmem:[%s1375_s5 + $0x1e0] sm:$0xff] %vm806_vm3, %v802_v10 }
 0x104   : > { %820 = vst.msk [vmem:[%s1375_s5 + $0x68] sm:$0xff] %vm806_vm3, %v755_v11 }
 0x105   : > { %836 = vst.msk [vmem:[%s1375_s5 + $0xe8] sm:$0xff] %vm806_vm3, %v771_v12  ;;  %v694_v13 = vpop.f32.mrf.mxu2  ;;  %v734_v14 = vpop.f32.mrf.mxu3 }
 0x106   : > { %v695_v15 = vadd.f32 %v1367_v40, %v694_v13  ;;  %v735_v16 = vadd.f32 %v1367_v40, %v734_v14  ;;  %v617_v17 = vpop.f32.mrf.mxu0  ;;  %v657_v18 = vpop.f32.mrf.mxu1 }
 0x107   : > { %v618_v19 = vadd.f32 %v1367_v40, %v617_v17  ;;  %v658_v20 = vadd.f32 %v1367_v40, %v657_v18 }
 0x108   : > { %v787_v21 = vmax.f32 %v695_v15, 0.0  ;;  %v803_v22 = vmax.f32 %v735_v16, 0.0 }
 0x109   : > { %v756_v23 = vmax.f32 %v618_v19, 0.0  ;;  %v772_v24 = vmax.f32 %v658_v20, 0.0 }
 0x10a   : > { %852 = vst.msk [vmem:[%s1375_s5 + $0x168] sm:$0xff] %vm806_vm3, %v787_v21 }
 0x10b   : > { %868 = vst.msk [vmem:[%s1375_s5 + $0x1e8] sm:$0xff] %vm806_vm3, %v803_v22 }
 0x10c   : > { %821 = vst.msk [vmem:[%s1375_s5 + $0x70] sm:$0xff] %vm806_vm3, %v756_v23 }
 0x10d   : > { %837 = vst.msk [vmem:[%s1375_s5 + $0xf0] sm:$0xff] %vm806_vm3, %v772_v24  ;;  %v697_v25 = vpop.f32.mrf.mxu2  ;;  %v737_v26 = vpop.f32.mrf.mxu3 }
 0x10e   : > { %v698_v27 = vadd.f32 %v1367_v40, %v697_v25  ;;  %v738_v28 = vadd.f32 %v1367_v40, %v737_v26  ;;  %v619_v29 = vpop.f32.mrf.mxu0  ;;  %v659_v30 = vpop.f32.mrf.mxu1 }
 0x10f   : > { %v620_v31 = vadd.f32 %v1367_v40, %v619_v29  ;;  %v660_v32 = vadd.f32 %v1367_v40, %v659_v30 }
 0x110   : > { %v788_v33 = vmax.f32 %v698_v27, 0.0  ;;  %v804_v34 = vmax.f32 %v738_v28, 0.0 }
 0x111   : > { %v757_v35 = vmax.f32 %v620_v31, 0.0  ;;  %v773_v36 = vmax.f32 %v660_v32, 0.0 }
 0x112   : > { %853 = vst.msk [vmem:[%s1375_s5 + $0x170] sm:$0xff] %vm806_vm3, %v788_v33 }
 0x113   : > { %869 = vst.msk [vmem:[%s1375_s5 + $0x1f0] sm:$0xff] %vm806_vm3, %v804_v34 }
 0x114   : > { %822 = vst.msk [vmem:[%s1375_s5 + $0x78] sm:$0xff] %vm806_vm3, %v757_v35 }
 0x115   : > { %838 = vst.msk [vmem:[%s1375_s5 + $0xf8] sm:$0xff] %vm806_vm3, %v773_v36  ;;  %v699_v37 = vpop.f32.mrf.mxu2  ;;  %v739_v38 = vpop.f32.mrf.mxu3 }
 0x116   : > { %v700_v39 = vadd.f32 %v1367_v40, %v699_v37  ;;  %v740_v41 = vadd.f32 %v1367_v40, %v739_v38 }
 0x118   : > { %v789_v42 = vmax.f32 %v700_v39, 0.0  ;;  %v805_v43 = vmax.f32 %v740_v41, 0.0 }
 0x11a   : > { %854 = vst.msk [vmem:[%s1375_s5 + $0x178] sm:$0xff] %vm806_vm3, %v789_v42 }
 0x11b   : > { %870 = vst.msk [vmem:[%s1375_s5 + $0x1f8] sm:$0xff] %vm806_vm3, %v805_v43 }
 0x11c PF: > { %s13_s14 = sadd.s32 1, %s1242_s14   ;;  %s1580_s12 = smov %s1238_s13 }
 0x11d   : > { %p10_p5 = scmp.ge.s32.totalorder %s13_s14, 10   ;;  %s1581_s13 = smov %s1583_s15 }
 0x11f   :  { %12 = sbr.rel (!%p10_p5) target bundleno = 2 (0x2), region = 68 }

// kernel: vgg_forward.4
= control target key start
LH: loop header
LB: loop body
LE: loop exit
PB: predicated region body
PF: predicated region fallthrough
CT: control target
= control target key end

     0   :  { %vm576_vm0 = vcmask 1043456   ;;  %vm479_vm1 = vcmask 719872   ;;  %vm982_vm2 = vcmask 130048   ;;  %s2292_s1 = inlined_call_operand.vmem [shape: bf16[216,16], index: 1, kind: input, shape index: {}]   ;;  %s2293_s0 = inlined_call_operand.vmem [shape: bf16[512,216], index: 0, kind: input, shape index: {}]   ;;  %s2294_s2 = inlined_call_operand.vmem [shape: f32[1,16], index: 2, kind: input, shape index: {}]   ;;  %s2295_s3 = inlined_call_operand.vmem [shape: f32[512,16], index: 3, kind: output, shape index: {}]  }
   0x1   :  { %v1462_v0 = vld [vmem:[%s2292_s1 + $0x38] sm:$0xff]  ;;  %v105_v1 = vld [vmem:[%s2292_s1 + $0x68] sm:$0xf]  ;;  %v1461_v3 = vld [vmem:[%s2292_s1 + $0x30] sm:$0xff] }
   0x2   :  { %v451_v2 = vunpack.c.l.b16 %v105_v1  ;;  %580 = vmatpush.bf16.msra.mxu0 %v1462_v0  ;;  %1468 = vmatpush.bf16.msra.mxu2 %v1462_v0  ;;  %v1467_v6 = vld [vmem:[%s2292_s1 + $0x60] sm:$0xff]  ;;  %v1460_v7 = vld [vmem:[%s2292_s1 + $0x28] sm:$0xff]  ;;  %v1466_v8 = vld [vmem:[%s2292_s1 + $0x58] sm:$0xff] }
   0x3   :  { %v1459_v9 = vld [vmem:[%s2292_s1 + $0x20] sm:$0xff]  ;;  %v1465_v10 = vld [vmem:[%s2292_s1 + $0x50] sm:$0xff]  ;;  %v1458_v11 = vld [vmem:[%s2292_s1 + $0x18] sm:$0xff] }
   0x4   :  { %v465_v4 = vpack.c.b16 %v451_v2, %v451_v2  ;;  %v1464_v12 = vld [vmem:[%s2292_s1 + $0x48] sm:$0xff]  ;;  %v1457_v13 = vld [vmem:[%s2292_s1 + $0x10] sm:$0xff]  ;;  %v1463_v14 = vld [vmem:[%s2292_s1 + $0x40] sm:$0xff] }
   0x5   :  { %v1456_v15 = vld [vmem:[%s2292_s1 + $0x8] sm:$0xff]  ;;  %v1391_v16 = vld [vmem:[%s2293_s0 + $0x4] sm:$0xf]  ;;  %v1425_v18 = vld [vmem:[%s2293_s0 + $0x114] sm:$0xf] }
   0x6   :  { %v578_v5 = vsel %vm576_vm0, %v465_v4, 0  ;;  %581 = vmatpush.bf16.msra.mxu0 %v1461_v3  ;;  %1469 = vmatpush.bf16.msra.mxu2 %v1461_v3  ;;  %v1055_v17 = vld [vmem:[%s2293_s0 + $0x8] sm:$0xf0]  ;;  %v1191_v19 = vld [vmem:[%s2293_s0 + $0x118] sm:$0xf0]  ;;  %v1455_v21 = vld [vmem:[%s2292_s1] sm:$0xff] }
   0x7   :  { %751 = vmatpush.bf16.msra.mxu1 %v578_v5  ;;  %1476 = vmatpush.bf16.msra.mxu3 %v578_v5  ;;  %v1058_v20 = vor.u32 %v1391_v16, %v1055_v17  ;;  %v1053_v22 = vld [vmem:[%s2293_s0] sm:$0xf]  ;;  %v1392_v23 = vld [vmem:[%s2293_s0 + $0x4] sm:$0xf0]  ;;  %v1194_v24 = vor.u32 %v1425_v18, %v1191_v19  ;;  %v1393_v29 = vld [vmem:[%s2293_s0 + $0x14] sm:$0xf] }
   0x8   :  { %v1181_v25 = vld [vmem:[%s2293_s0 + $0x100] sm:$0xf]  ;;  %v1424_v26 = vld [vmem:[%s2293_s0 + $0x104] sm:$0xf0]  ;;  %v1054_v27 = vor.u32 %v1392_v23, %v1053_v22  ;;  %v1063_v30 = vld [vmem:[%s2293_s0 + $0x18] sm:$0xf0] }
   0x9   :  { %v1182_v28 = vor.u32 %v1424_v26, %v1181_v25  ;;  %v1427_v31 = vld [vmem:[%s2293_s0 + $0x124] sm:$0xf]  ;;  %v1199_v32 = vld [vmem:[%s2293_s0 + $0x128] sm:$0xf0]  ;;  %v1066_v33 = vor.u32 %v1393_v29, %v1063_v30  ;;  %v1061_v34 = vld [vmem:[%s2293_s0 + $0x10] sm:$0xf] }
   0xa   :  { %582 = vmatpush.bf16.msra.mxu0 %v1460_v7  ;;  %1470 = vmatpush.bf16.msra.mxu2 %v1460_v7  ;;  %v1394_v35 = vld [vmem:[%s2293_s0 + $0x14] sm:$0xf0]  ;;  %v1202_v36 = vor.u32 %v1427_v31, %v1199_v32  ;;  %v1189_v37 = vld [vmem:[%s2293_s0 + $0x110] sm:$0xf]  ;;  %v1395_v41 = vld [vmem:[%s2293_s0 + $0x24] sm:$0xf] }
   0xb   :  { %752 = vmatpush.bf16.msra.mxu1 %v1467_v6  ;;  %1477 = vmatpush.bf16.msra.mxu3 %v1467_v6  ;;  %v1426_v38 = vld [vmem:[%s2293_s0 + $0x114] sm:$0xf0]  ;;  %v1062_v39 = vor.u32 %v1394_v35, %v1061_v34  ;;  %v1071_v42 = vld [vmem:[%s2293_s0 + $0x28] sm:$0xf0]  ;;  %v1429_v43 = vld [vmem:[%s2293_s0 + $0x134] sm:$0xf] }
   0xc   :  { %v1190_v40 = vor.u32 %v1426_v38, %v1189_v37  ;;  %v1207_v44 = vld [vmem:[%s2293_s0 + $0x138] sm:$0xf0]  ;;  %v1074_v45 = vor.u32 %v1395_v41, %v1071_v42  ;;  %v1069_v46 = vld [vmem:[%s2293_s0 + $0x20] sm:$0xf]  ;;  %v1396_v47 = vld [vmem:[%s2293_s0 + $0x24] sm:$0xf0] }
   0xd   :  { %v1210_v48 = vor.u32 %v1429_v43, %v1207_v44  ;;  %v1197_v49 = vld [vmem:[%s2293_s0 + $0x120] sm:$0xf]  ;;  %v1428_v50 = vld [vmem:[%s2293_s0 + $0x124] sm:$0xf0]  ;;  %v1070_v51 = vor.u32 %v1396_v47, %v1069_v46  ;;  %v1397_v53 = vld [vmem:[%s2293_s0 + $0x34] sm:$0xf] }
   0xe   :  { %583 = vmatpush.bf16.msra.mxu0 %v1459_v9  ;;  %1471 = vmatpush.bf16.msra.mxu2 %v1459_v9  ;;  %v1198_v52 = vor.u32 %v1428_v50, %v1197_v49  ;;  %v1079_v54 = vld [vmem:[%s2293_s0 + $0x38] sm:$0xf0]  ;;  %v1431_v55 = vld [vmem:[%s2293_s0 + $0x144] sm:$0xf]  ;;  %v1215_v56 = vld [vmem:[%s2293_s0 + $0x148] sm:$0xf0] }
   0xf   :  { %753 = vmatpush.bf16.msra.mxu1 %v1466_v8  ;;  %1478 = vmatpush.bf16.msra.mxu3 %v1466_v8  ;;  %v1082_v57 = vor.u32 %v1397_v53, %v1079_v54  ;;  %v1077_v58 = vld [vmem:[%s2293_s0 + $0x30] sm:$0xf]  ;;  %v1398_v59 = vld [vmem:[%s2293_s0 + $0x34] sm:$0xf0]  ;;  %v1218_v60 = vor.u32 %v1431_v55, %v1215_v56  ;;  %v1399_v1 = vld [vmem:[%s2293_s0 + $0x44] sm:$0xf] }
  0x10   :  { %v1205_v61 = vld [vmem:[%s2293_s0 + $0x130] sm:$0xf]  ;;  %v1430_v62 = vld [vmem:[%s2293_s0 + $0x134] sm:$0xf0]  ;;  %v1078_v63 = vor.u32 %v1398_v59, %v1077_v58  ;;  %v1087_v2 = vld [vmem:[%s2293_s0 + $0x48] sm:$0xf0] }
  0x11   :  { %v1206_v0 = vor.u32 %v1430_v62, %v1205_v61  ;;  %v1433_v3 = vld [vmem:[%s2293_s0 + $0x154] sm:$0xf]  ;;  %v1223_v4 = vld [vmem:[%s2293_s0 + $0x158] sm:$0xf0]  ;;  %v1090_v5 = vor.u32 %v1399_v1, %v1087_v2  ;;  %v1085_v6 = vld [vmem:[%s2293_s0 + $0x40] sm:$0xf] }
  0x12   :  { %584 = vmatpush.bf16.msra.mxu0 %v1458_v11  ;;  %1472 = vmatpush.bf16.msra.mxu2 %v1458_v11  ;;  %v1400_v7 = vld [vmem:[%s2293_s0 + $0x44] sm:$0xf0]  ;;  %v1226_v8 = vor.u32 %v1433_v3, %v1223_v4  ;;  %v1213_v9 = vld [vmem:[%s2293_s0 + $0x140] sm:$0xf]  ;;  %v1231_v16 = vld [vmem:[%s2293_s0 + $0x168] sm:$0xf0] }
  0x13   :  { %754 = vmatpush.bf16.msra.mxu1 %v1465_v10  ;;  %1479 = vmatpush.bf16.msra.mxu3 %v1465_v10  ;;  %v1432_v10 = vld [vmem:[%s2293_s0 + $0x144] sm:$0xf0]  ;;  %v1086_v11 = vor.u32 %v1400_v7, %v1085_v6  ;;  %v1093_v18 = vld [vmem:[%s2293_s0 + $0x50] sm:$0xf]  ;;  %v1402_v19 = vld [vmem:[%s2293_s0 + $0x54] sm:$0xf0] }
  0x14   :  { %v1434_v22 = vld [vmem:[%s2293_s0 + $0x154] sm:$0xf0]  ;;  %v1094_v23 = vor.u32 %v1402_v19, %v1093_v18  ;;  %v1403_v25 = vld [vmem:[%s2293_s0 + $0x64] sm:$0xf]  ;;  %v1103_v26 = vld [vmem:[%s2293_s0 + $0x68] sm:$0xf0] }
  0x15   :  { %v1106_v29 = vor.u32 %v1403_v25, %v1103_v26  ;;  %v1101_v30 = vld [vmem:[%s2293_s0 + $0x60] sm:$0xf]  ;;  %v1404_v31 = vld [vmem:[%s2293_s0 + $0x64] sm:$0xf0]  ;;  %v1405_v37 = vld [vmem:[%s2293_s0 + $0x74] sm:$0xf] }
  0x16   :  { %585 = vmatpush.bf16.msra.mxu0 %v1457_v13  ;;  %1473 = vmatpush.bf16.msra.mxu2 %v1457_v13  ;;  %v1401_v13 = vld [vmem:[%s2293_s0 + $0x54] sm:$0xf]  ;;  %v1436_v34 = vld [vmem:[%s2293_s0 + $0x164] sm:$0xf0]  ;;  %v1102_v35 = vor.u32 %v1404_v31, %v1101_v30  ;;  %v1111_v38 = vld [vmem:[%s2293_s0 + $0x78] sm:$0xf0] }
  0x17   :  { %755 = vmatpush.bf16.msra.mxu1 %v1464_v12  ;;  %1480 = vmatpush.bf16.msra.mxu3 %v1464_v12  ;;  %v1214_v12 = vor.u32 %v1432_v10, %v1213_v9  ;;  %v1114_v41 = vor.u32 %v1405_v37, %v1111_v38  ;;  %v1109_v42 = vld [vmem:[%s2293_s0 + $0x70] sm:$0xf]  ;;  %v1406_v43 = vld [vmem:[%s2293_s0 + $0x74] sm:$0xf0]  ;;  %v1407_v49 = vld [vmem:[%s2293_s0 + $0x84] sm:$0xf] }
  0x18   :  { %v1438_v46 = vld [vmem:[%s2293_s0 + $0x174] sm:$0xf0]  ;;  %v1110_v47 = vor.u32 %v1406_v43, %v1109_v42  ;;  %v1119_v50 = vld [vmem:[%s2293_s0 + $0x88] sm:$0xf0]  ;;  %v1117_v55 = vld [vmem:[%s2293_s0 + $0x80] sm:$0xf] }
  0x19   :  { %v1122_v53 = vor.u32 %v1407_v49, %v1119_v50  ;;  %v1408_v56 = vld [vmem:[%s2293_s0 + $0x84] sm:$0xf0]  ;;  %v1774_v58 = vld [vmem:[%s2294_s2] ss:$0 sm:$0xff]  ;;  %v1409_v7 = vld [vmem:[%s2293_s0 + $0x94] sm:$0xf] }
  0x1a   :  { %586 = vmatpush.bf16.msra.mxu0 %v1456_v15  ;;  %1474 = vmatpush.bf16.msra.mxu2 %v1456_v15  ;;  %v1435_v15 = vld [vmem:[%s2293_s0 + $0x164] sm:$0xf]  ;;  %v1245_v59 = vld [vmem:[%s2293_s0 + $0x180] sm:$0xf]  ;;  %v1118_v61 = vor.u32 %v1408_v56, %v1117_v55  ;;  %v1445_v37 = vld [vmem:[%s2293_s0 + $0x1b4] sm:$0xf] }
  0x1b   :  { %756 = vmatpush.bf16.msra.mxu1 %v1463_v14  ;;  %1481 = vmatpush.bf16.msra.mxu3 %v1463_v14  ;;  %v1095_v14 = vld [vmem:[%s2293_s0 + $0x58] sm:$0xf0]  ;;  %v1443_v10 = vld [vmem:[%s2293_s0 + $0x1a4] sm:$0xf]  ;;  %v1261_v49 = vld [vmem:[%s2293_s0 + $0x1a0] sm:$0xf] }
  0x1c   :  { %v1098_v17 = vor.u32 %v1401_v13, %v1095_v14  ;;  %v1271_v38 = vld [vmem:[%s2293_s0 + $0x1b8] sm:$0xf0]  ;;  %v1444_v50 = vld [vmem:[%s2293_s0 + $0x1a4] sm:$0xf0] }
  0x1d   :  { %v1262_v55 = vor.u32 %v1444_v50, %v1261_v49  ;;  %v1416_v49 = vld [vmem:[%s2293_s0 + $0xc4] sm:$0xf0] }
  0x1e   :  { %1359 = vmatmul.msk.bf16.vlgmr.msra.gmra.mxu1 %vm479_vm1, %v1058_v20  ;;  %587 = vmatpush.bf16.msra.mxu0 %v1455_v21  ;;  %v1234_v20 = vor.u32 %v1435_v15, %v1231_v16  ;;  %v1125_v16 = vld [vmem:[%s2293_s0 + $0x90] sm:$0xf] }
  0x1f   :  { %1376 = vmatmul.msk.bf16.vlgmr.msra.gmra.mxu3 %vm479_vm1, %v1194_v24  ;;  %1475 = vmatpush.bf16.msra.mxu2 %v1455_v21  ;;  %v1221_v21 = vld [vmem:[%s2293_s0 + $0x150] sm:$0xf] }
  0x20   :  { %v1222_v24 = vor.u32 %v1434_v22, %v1221_v21  ;;  %v1442_v21 = vld [vmem:[%s2293_s0 + $0x194] sm:$0xf0] }
  0x21   :  { %588 = vmatmul.bf16.vlgmr.msra.gmra.mxu0 %v1054_v27  ;;  %v1437_v27 = vld [vmem:[%s2293_s0 + $0x174] sm:$0xf] }
  0x22   :  { %668 = vmatmul.bf16.vlgmr.msra.gmra.mxu2 %v1182_v28  ;;  %v1239_v28 = vld [vmem:[%s2293_s0 + $0x178] sm:$0xf0] }
  0x23   :  { %v1242_v32 = vor.u32 %v1437_v27, %v1239_v28 }
  0x2e   :  { %1360 = vmatmul.msk.bf16.gmra.mxu1 %vm479_vm1, %v1066_v33  ;;  %v1229_v33 = vld [vmem:[%s2293_s0 + $0x160] sm:$0xf] }
  0x2f   :  { %1377 = vmatmul.msk.bf16.gmra.mxu3 %vm479_vm1, %v1202_v36  ;;  %v1230_v36 = vor.u32 %v1436_v34, %v1229_v33  ;;  %v1411_v34 = vld [vmem:[%s2293_s0 + $0xa4] sm:$0xf] }
  0x31   :  { %593 = vmatmul.bf16.gmra.mxu0 %v1062_v39  ;;  %v1439_v39 = vld [vmem:[%s2293_s0 + $0x184] sm:$0xf] }
  0x32   :  { %673 = vmatmul.bf16.gmra.mxu2 %v1190_v40  ;;  %v1247_v40 = vld [vmem:[%s2293_s0 + $0x188] sm:$0xf0] }
  0x33   :  { %v1250_v44 = vor.u32 %v1439_v39, %v1247_v40 }
  0x3e   :  { %1361 = vmatmul.msk.bf16.gmra.mxu1 %vm479_vm1, %v1074_v45  ;;  %v1237_v45 = vld [vmem:[%s2293_s0 + $0x170] sm:$0xf] }
  0x3f   :  { %1378 = vmatmul.msk.bf16.gmra.mxu3 %vm479_vm1, %v1210_v48  ;;  %v1238_v48 = vor.u32 %v1438_v46, %v1237_v45  ;;  %v1133_v45 = vld [vmem:[%s2293_s0 + $0xa0] sm:$0xf]  ;;  %v1412_v46 = vld [vmem:[%s2293_s0 + $0xa4] sm:$0xf0] }
  0x41   :  { %598 = vmatmul.bf16.gmra.mxu0 %v1070_v51  ;;  %v1441_v51 = vld [vmem:[%s2293_s0 + $0x194] sm:$0xf] }
  0x42   :  { %678 = vmatmul.bf16.gmra.mxu2 %v1198_v52  ;;  %v1255_v52 = vld [vmem:[%s2293_s0 + $0x198] sm:$0xf0] }
  0x4e   :  { %1362 = vmatmul.msk.bf16.gmra.mxu1 %vm479_vm1, %v1082_v57  ;;  %v1258_v57 = vor.u32 %v1441_v51, %v1255_v52  ;;  %v1134_v52 = vor.u32 %v1412_v46, %v1133_v45 }
  0x4f   :  { %1379 = vmatmul.msk.bf16.gmra.mxu3 %vm479_vm1, %v1218_v60  ;;  %v1440_v60 = vld [vmem:[%s2293_s0 + $0x184] sm:$0xf0] }
  0x51   :  { %603 = vmatmul.bf16.gmra.mxu0 %v1078_v63  ;;  %v1246_v63 = vor.u32 %v1440_v60, %v1245_v59 }
  0x52   :  { %683 = vmatmul.bf16.gmra.mxu2 %v1206_v0 }
  0x5e   :  { %1363 = vmatmul.msk.bf16.gmra.mxu1 %vm479_vm1, %v1090_v5 }
  0x5f   :  { %1380 = vmatmul.msk.bf16.gmra.mxu3 %vm479_vm1, %v1226_v8  ;;  %v1127_v8 = vld [vmem:[%s2293_s0 + $0x98] sm:$0xf0] }
  0x60   :  { %v1130_v13 = vor.u32 %v1409_v7, %v1127_v8  ;;  %v1447_v7 = vld [vmem:[%s2293_s0 + $0x1c4] sm:$0xf]  ;;  %v1279_v8 = vld [vmem:[%s2293_s0 + $0x1c8] sm:$0xf0] }
  0x61   :  { %608 = vmatmul.bf16.gmra.mxu0 %v1086_v11  ;;  %v1263_v11 = vld [vmem:[%s2293_s0 + $0x1a8] sm:$0xf0] }
  0x62   :  { %688 = vmatmul.bf16.gmra.mxu2 %v1214_v12  ;;  %v1266_v18 = vor.u32 %v1443_v10, %v1263_v11 }
  0x6e   :  { %1364 = vmatmul.msk.bf16.gmra.mxu1 %vm479_vm1, %v1098_v17  ;;  %v1410_v17 = vld [vmem:[%s2293_s0 + $0x94] sm:$0xf0] }
  0x6f   :  { %1381 = vmatmul.msk.bf16.gmra.mxu3 %vm479_vm1, %v1234_v20  ;;  %v1253_v20 = vld [vmem:[%s2293_s0 + $0x190] sm:$0xf] }
  0x70   :  { %v1254_v25 = vor.u32 %v1442_v21, %v1253_v20  ;;  %v1446_v20 = vld [vmem:[%s2293_s0 + $0x1b4] sm:$0xf0] }
  0x71   :  { %613 = vmatmul.bf16.gmra.mxu0 %v1094_v23  ;;  %v1126_v23 = vor.u32 %v1410_v17, %v1125_v16  ;;  %v1414_v16 = vld [vmem:[%s2293_s0 + $0xb4] sm:$0xf0]  ;;  %v1282_v17 = vor.u32 %v1447_v7, %v1279_v8  ;;  %v1417_v7 = vld [vmem:[%s2293_s0 + $0xd4] sm:$0xf]  ;;  %v1159_v8 = vld [vmem:[%s2293_s0 + $0xd8] sm:$0xf0] }
  0x72   :  { %693 = vmatmul.bf16.gmra.mxu2 %v1222_v24 }
  0x7e   :  { %1365 = vmatmul.msk.bf16.gmra.mxu1 %vm479_vm1, %v1106_v29 }
  0x7f   :  { %1382 = vmatmul.msk.bf16.gmra.mxu3 %vm479_vm1, %v1242_v32 }
  0x81   :  { %618 = vmatmul.bf16.gmra.mxu0 %v1102_v35  ;;  %v1135_v35 = vld [vmem:[%s2293_s0 + $0xa8] sm:$0xf0] }
  0x82   :  { %698 = vmatmul.bf16.gmra.mxu2 %v1230_v36 }
  0x8e   :  { %1366 = vmatmul.msk.bf16.gmra.mxu1 %vm479_vm1, %v1114_v41  ;;  %v1138_v41 = vor.u32 %v1411_v34, %v1135_v35 }
  0x8f   :  { %1383 = vmatmul.msk.bf16.gmra.mxu3 %vm479_vm1, %v1250_v44 }
  0x91   :  { %623 = vmatmul.bf16.gmra.mxu0 %v1110_v47  ;;  %v1274_v47 = vor.u32 %v1445_v37, %v1271_v38  ;;  %v1415_v37 = vld [vmem:[%s2293_s0 + $0xc4] sm:$0xf]  ;;  %v1151_v38 = vld [vmem:[%s2293_s0 + $0xc8] sm:$0xf0] }
  0x92   :  { %703 = vmatmul.bf16.gmra.mxu2 %v1238_v48 }
  0x9b   :  { %v758_v54 = vpop.f32.mrf.mxu1 }
  0x9e   :  { %1367 = vmatmul.msk.bf16.gmra.mxu1 %vm479_vm1, %v1122_v53  ;;  %v589_v62 = vpop.f32.mrf.mxu0 }
  0x9f   :  { %1384 = vmatmul.msk.bf16.gmra.mxu3 %vm479_vm1, %v1258_v57  ;;  %v590_v0 = vadd.f32 %v1774_v58, %v589_v62 }
  0xa1   :  { %v759_v1 = vadd.f32 %v758_v54, %v590_v0  ;;  %628 = vmatmul.bf16.gmra.mxu0 %v1118_v61 }
  0xa2   :  { %v843_v2 = vpop.f32.mrf.mxu3  ;;  %708 = vmatmul.bf16.gmra.mxu2 %v1246_v63 }
  0xa3   :  { %v760_v3 = vpop.f32.mrf.mxu1  ;;  %v918_v4 = vmax.f32 %v759_v1, 0.0 }
  0xa5   :  { %983 = vst.msk [vmem:[%s2295_s3] sm:$0xff] %vm982_vm2, %v918_v4  ;;  %v1789_v5 = vpop.f32.mrf.mxu2  ;;  %v1143_v4 = vld [vmem:[%s2293_s0 + $0xb8] sm:$0xf0] }
  0xa6   :  { %v591_v6 = vpop.f32.mrf.mxu0 }
  0xa7   :  { %v592_v9 = vadd.f32 %v1774_v58, %v591_v6 }
  0xa9   :  { %v761_v12 = vadd.f32 %v760_v3, %v592_v9  ;;  %v1413_v3 = vld [vmem:[%s2293_s0 + $0xb4] sm:$0xf] }
  0xaa   :  { %v845_v14 = vpop.f32.mrf.mxu3  ;;  %v1146_v11 = vor.u32 %v1413_v3, %v1143_v4 }
  0xab   :  { %v763_v15 = vpop.f32.mrf.mxu1  ;;  %v919_v19 = vmax.f32 %v761_v12, 0.0 }
  0xad   :  { %984 = vst.msk [vmem:[%s2295_s3 + $0x8] sm:$0xff] %vm982_vm2, %v919_v19  ;;  %v1820_v22 = vpop.f32.mrf.mxu2  ;;  %v1269_v19 = vld [vmem:[%s2293_s0 + $0x1b0] sm:$0xf] }
  0xae   :  { %1368 = vmatmul.msk.bf16.gmra.mxu1 %vm479_vm1, %v1130_v13  ;;  %v594_v24 = vpop.f32.mrf.mxu0 }
  0xaf   :  { %1385 = vmatmul.msk.bf16.gmra.mxu3 %vm479_vm1, %v1266_v18  ;;  %v595_v26 = vadd.f32 %v1774_v58, %v594_v24 }
  0xb1   :  { %v764_v27 = vadd.f32 %v763_v15, %v595_v26  ;;  %633 = vmatmul.bf16.gmra.mxu0 %v1126_v23  ;;  %v1141_v15 = vld [vmem:[%s2293_s0 + $0xb0] sm:$0xf]  ;;  %v1270_v26 = vor.u32 %v1446_v20, %v1269_v19  ;;  %v1418_v19 = vld [vmem:[%s2293_s0 + $0xd4] sm:$0xf0] }
  0xb2   :  { %v848_v28 = vpop.f32.mrf.mxu3  ;;  %713 = vmatmul.bf16.gmra.mxu2 %v1254_v25  ;;  %v1142_v23 = vor.u32 %v1414_v16, %v1141_v15 }
  0xb3   :  { %v765_v29 = vpop.f32.mrf.mxu1  ;;  %v920_v30 = vmax.f32 %v764_v27, 0.0 }
  0xb5   :  { %985 = vst.msk [vmem:[%s2295_s3 + $0x10] sm:$0xff] %vm982_vm2, %v920_v30  ;;  %v674_v31 = vpop.f32.mrf.mxu2 }
  0xb6   :  { %v675_v32 = vadd.f32 %v1774_v58, %v674_v31  ;;  %v596_v33 = vpop.f32.mrf.mxu0 }
  0xb7   :  { %v597_v36 = vadd.f32 %v1774_v58, %v596_v33 }
  0xb8   :  { %v844_v39 = vadd.f32 %v843_v2, %v675_v32 }
  0xb9   :  { %v766_v40 = vadd.f32 %v765_v29, %v597_v36 }
  0xba   :  { %v850_v42 = vpop.f32.mrf.mxu3  ;;  %v952_v43 = vmax.f32 %v844_v39, 0.0 }
  0xbb   :  { %v768_v44 = vpop.f32.mrf.mxu1  ;;  %v921_v48 = vmax.f32 %v766_v40, 0.0  ;;  %v1449_v40 = vld [vmem:[%s2293_s0 + $0x1d4] sm:$0xf] }
  0xbc   :  { %1017 = vst.msk [vmem:[%s2295_s3 + $0x110] sm:$0xff] %vm982_vm2, %v952_v43 }
  0xbd   :  { %986 = vst.msk [vmem:[%s2295_s3 + $0x18] sm:$0xff] %vm982_vm2, %v921_v48  ;;  %v676_v51 = vpop.f32.mrf.mxu2  ;;  %v1149_v48 = vld [vmem:[%s2293_s0 + $0xc0] sm:$0xf] }
  0xbe   :  { %1369 = vmatmul.msk.bf16.gmra.mxu1 %vm479_vm1, %v1138_v41  ;;  %v677_v53 = vadd.f32 %v1774_v58, %v676_v51  ;;  %v599_v54 = vpop.f32.mrf.mxu0  ;;  %v1287_v41 = vld [vmem:[%s2293_s0 + $0x1d8] sm:$0xf0] }
  0xbf   :  { %1386 = vmatmul.msk.bf16.gmra.mxu3 %vm479_vm1, %v1274_v47  ;;  %v600_v56 = vadd.f32 %v1774_v58, %v599_v54  ;;  %v1290_v50 = vor.u32 %v1449_v40, %v1287_v41  ;;  %v1419_v40 = vld [vmem:[%s2293_s0 + $0xe4] sm:$0xf]  ;;  %v1167_v41 = vld [vmem:[%s2293_s0 + $0xe8] sm:$0xf0] }
  0xc0   :  { %v846_v57 = vadd.f32 %v845_v14, %v677_v53  ;;  %v1448_v53 = vld [vmem:[%s2293_s0 + $0x1c4] sm:$0xf0] }
  0xc1   :  { %v769_v59 = vadd.f32 %v768_v44, %v600_v56  ;;  %638 = vmatmul.bf16.gmra.mxu0 %v1134_v52  ;;  %v1154_v44 = vor.u32 %v1415_v37, %v1151_v38  ;;  %v1277_v52 = vld [vmem:[%s2293_s0 + $0x1c0] sm:$0xf] }
  0xc2   :  { %v853_v60 = vpop.f32.mrf.mxu3  ;;  %v953_v61 = vmax.f32 %v846_v57, 0.0  ;;  %718 = vmatmul.bf16.gmra.mxu2 %v1262_v55  ;;  %v1150_v55 = vor.u32 %v1416_v49, %v1149_v48 }
  0xc3   :  { %v770_v62 = vpop.f32.mrf.mxu1  ;;  %v922_v63 = vmax.f32 %v769_v59, 0.0  ;;  %v1278_v59 = vor.u32 %v1448_v53, %v1277_v52  ;;  %v1420_v52 = vld [vmem:[%s2293_s0 + $0xe4] sm:$0xf0] }
  0xc4   :  { %1018 = vst.msk [vmem:[%s2295_s3 + $0x118] sm:$0xff] %vm982_vm2, %v953_v61 }
  0xc5   :  { %987 = vst.msk [vmem:[%s2295_s3 + $0x20] sm:$0xff] %vm982_vm2, %v922_v63  ;;  %v679_v0 = vpop.f32.mrf.mxu2 }
  0xc6   :  { %v680_v1 = vadd.f32 %v1774_v58, %v679_v0  ;;  %v601_v2 = vpop.f32.mrf.mxu0 }
  0xc7   :  { %v602_v6 = vadd.f32 %v1774_v58, %v601_v2 }
  0xc8   :  { %v849_v9 = vadd.f32 %v848_v28, %v680_v1 }
  0xc9   :  { %v771_v10 = vadd.f32 %v770_v62, %v602_v6 }
  0xca   :  { %v855_v12 = vpop.f32.mrf.mxu3  ;;  %v954_v13 = vmax.f32 %v849_v9, 0.0 }
  0xcb   :  { %v773_v14 = vpop.f32.mrf.mxu1  ;;  %v923_v18 = vmax.f32 %v771_v10, 0.0  ;;  %v1451_v10 = vld [vmem:[%s2293_s0 + $0x1e4] sm:$0xf] }
  0xcc   :  { %1019 = vst.msk [vmem:[%s2295_s3 + $0x120] sm:$0xff] %vm982_vm2, %v954_v13 }
  0xcd   :  { %988 = vst.msk [vmem:[%s2295_s3 + $0x28] sm:$0xff] %vm982_vm2, %v923_v18  ;;  %v681_v21 = vpop.f32.mrf.mxu2  ;;  %v1157_v18 = vld [vmem:[%s2293_s0 + $0xd0] sm:$0xf] }
  0xce   :  { %1370 = vmatmul.msk.bf16.gmra.mxu1 %vm479_vm1, %v1146_v11  ;;  %v682_v24 = vadd.f32 %v1774_v58, %v681_v21  ;;  %v604_v25 = vpop.f32.mrf.mxu0  ;;  %v1295_v11 = vld [vmem:[%s2293_s0 + $0x1e8] sm:$0xf0] }
  0xcf   :  { %1387 = vmatmul.msk.bf16.gmra.mxu3 %vm479_vm1, %v1282_v17  ;;  %v605_v27 = vadd.f32 %v1774_v58, %v604_v25  ;;  %v1298_v20 = vor.u32 %v1451_v10, %v1295_v11  ;;  %v1421_v10 = vld [vmem:[%s2293_s0 + $0xf4] sm:$0xf]  ;;  %v1175_v11 = vld [vmem:[%s2293_s0 + $0xf8] sm:$0xf0] }
  0xd0   :  { %v851_v28 = vadd.f32 %v850_v42, %v682_v24  ;;  %v1450_v24 = vld [vmem:[%s2293_s0 + $0x1d4] sm:$0xf0] }
  0xd1   :  { %v774_v29 = vadd.f32 %v773_v14, %v605_v27  ;;  %643 = vmatmul.bf16.gmra.mxu0 %v1142_v23  ;;  %v1162_v14 = vor.u32 %v1417_v7, %v1159_v8  ;;  %v1285_v23 = vld [vmem:[%s2293_s0 + $0x1d0] sm:$0xf] }
  0xd2   :  { %v858_v30 = vpop.f32.mrf.mxu3  ;;  %v955_v31 = vmax.f32 %v851_v28, 0.0  ;;  %723 = vmatmul.bf16.gmra.mxu2 %v1270_v26  ;;  %v1158_v26 = vor.u32 %v1418_v19, %v1157_v18  ;;  %v1173_v19 = vld [vmem:[%s2293_s0 + $0xf0] sm:$0xf] }
  0xd3   :  { %v775_v32 = vpop.f32.mrf.mxu1  ;;  %v924_v33 = vmax.f32 %v774_v29, 0.0  ;;  %v1286_v29 = vor.u32 %v1450_v24, %v1285_v23  ;;  %v1301_v23 = vld [vmem:[%s2293_s0 + $0x1f0] sm:$0xf]  ;;  %v1454_v24 = vld [vmem:[%s2293_s0 + $0x1f4] sm:$0xf0] }
  0xd4   :  { %1020 = vst.msk [vmem:[%s2295_s3 + $0x128] sm:$0xff] %vm982_vm2, %v955_v31 }
  0xd5   :  { %989 = vst.msk [vmem:[%s2295_s3 + $0x30] sm:$0xff] %vm982_vm2, %v924_v33  ;;  %v684_v34 = vpop.f32.mrf.mxu2 }
  0xd6   :  { %v685_v35 = vadd.f32 %v1774_v58, %v684_v34  ;;  %v606_v36 = vpop.f32.mrf.mxu0 }
  0xd7   :  { %v607_v39 = vadd.f32 %v1774_v58, %v606_v36 }
  0xd8   :  { %v854_v42 = vadd.f32 %v853_v60, %v685_v35 }
  0xd9   :  { %v776_v43 = vadd.f32 %v775_v32, %v607_v39 }
  0xda   :  { %v860_v45 = vpop.f32.mrf.mxu3  ;;  %v956_v46 = vmax.f32 %v854_v42, 0.0 }
  0xdb   :  { %v778_v47 = vpop.f32.mrf.mxu1  ;;  %v925_v51 = vmax.f32 %v776_v43, 0.0  ;;  %v1453_v43 = vld [vmem:[%s2293_s0 + $0x1f4] sm:$0xf] }
  0xdc   :  { %1021 = vst.msk [vmem:[%s2295_s3 + $0x130] sm:$0xff] %vm982_vm2, %v956_v46 }
  0xdd   :  { %990 = vst.msk [vmem:[%s2295_s3 + $0x38] sm:$0xff] %vm982_vm2, %v925_v51  ;;  %v686_v54 = vpop.f32.mrf.mxu2  ;;  %v1165_v51 = vld [vmem:[%s2293_s0 + $0xe0] sm:$0xf] }
  0xde   :  { %1371 = vmatmul.msk.bf16.gmra.mxu1 %vm479_vm1, %v1154_v44  ;;  %v687_v56 = vadd.f32 %v1774_v58, %v686_v54  ;;  %v609_v57 = vpop.f32.mrf.mxu0  ;;  %v1303_v44 = vld [vmem:[%s2293_s0 + $0x1f8] sm:$0xf0] }
  0xdf   :  { %1388 = vmatmul.msk.bf16.gmra.mxu3 %vm479_vm1, %v1290_v50  ;;  %v610_v60 = vadd.f32 %v1774_v58, %v609_v57  ;;  %v1306_v53 = vor.u32 %v1453_v43, %v1303_v44 }
  0xe0   :  { %v856_v61 = vadd.f32 %v855_v12, %v687_v56  ;;  %v1452_v56 = vld [vmem:[%s2293_s0 + $0x1e4] sm:$0xf0] }
  0xe1   :  { %v779_v62 = vadd.f32 %v778_v47, %v610_v60  ;;  %648 = vmatmul.bf16.gmra.mxu0 %v1150_v55  ;;  %v1170_v47 = vor.u32 %v1419_v40, %v1167_v41  ;;  %v1293_v55 = vld [vmem:[%s2293_s0 + $0x1e0] sm:$0xf]  ;;  %v1423_v40 = vld [vmem:[%s2293_s0 + $0x104] sm:$0xf]  ;;  %v1183_v41 = vld [vmem:[%s2293_s0 + $0x108] sm:$0xf0] }
  0xe2   :  { %v863_v63 = vpop.f32.mrf.mxu3  ;;  %v957_v0 = vmax.f32 %v856_v61, 0.0  ;;  %728 = vmatmul.bf16.gmra.mxu2 %v1278_v59  ;;  %v1166_v59 = vor.u32 %v1420_v52, %v1165_v51 }
  0xe3   :  { %v780_v1 = vpop.f32.mrf.mxu1  ;;  %v926_v2 = vmax.f32 %v779_v62, 0.0  ;;  %v1294_v62 = vor.u32 %v1452_v56, %v1293_v55 }
  0xe4   :  { %1022 = vst.msk [vmem:[%s2295_s3 + $0x138] sm:$0xff] %vm982_vm2, %v957_v0 }
  0xe5   :  { %991 = vst.msk [vmem:[%s2295_s3 + $0x40] sm:$0xff] %vm982_vm2, %v926_v2  ;;  %v689_v3 = vpop.f32.mrf.mxu2 }
  0xe6   :  { %v690_v4 = vadd.f32 %v1774_v58, %v689_v3  ;;  %v611_v6 = vpop.f32.mrf.mxu0 }
  0xe7   :  { %v612_v9 = vadd.f32 %v1774_v58, %v611_v6 }
  0xe8   :  { %v859_v12 = vadd.f32 %v858_v30, %v690_v4 }
  0xe9   :  { %v781_v13 = vadd.f32 %v780_v1, %v612_v9 }
  0xea   :  { %v865_v15 = vpop.f32.mrf.mxu3  ;;  %v958_v16 = vmax.f32 %v859_v12, 0.0 }
  0xeb   :  { %v783_v17 = vpop.f32.mrf.mxu1  ;;  %v927_v21 = vmax.f32 %v781_v13, 0.0 }
  0xec   :  { %1023 = vst.msk [vmem:[%s2295_s3 + $0x140] sm:$0xff] %vm982_vm2, %v958_v16 }
  0xed   :  { %992 = vst.msk [vmem:[%s2295_s3 + $0x48] sm:$0xff] %vm982_vm2, %v927_v21  ;;  %v691_v25 = vpop.f32.mrf.mxu2 }
  0xee   :  { %1372 = vmatmul.msk.bf16.gmra.mxu1 %vm479_vm1, %v1162_v14  ;;  %v692_v27 = vadd.f32 %v1774_v58, %v691_v25  ;;  %v614_v28 = vpop.f32.mrf.mxu0 }
  0xef   :  { %1389 = vmatmul.msk.bf16.gmra.mxu3 %vm479_vm1, %v1298_v20  ;;  %v615_v30 = vadd.f32 %v1774_v58, %v614_v28  ;;  %v1422_v20 = vld [vmem:[%s2293_s0 + $0xf4] sm:$0xf0] }
  0xf0   :  { %v861_v31 = vadd.f32 %v860_v45, %v692_v27 }
  0xf1   :  { %v784_v32 = vadd.f32 %v783_v17, %v615_v30  ;;  %653 = vmatmul.bf16.gmra.mxu0 %v1158_v26  ;;  %v1174_v26 = vor.u32 %v1422_v20, %v1173_v19 }
  0xf2   :  { %v868_v33 = vpop.f32.mrf.mxu3  ;;  %v959_v34 = vmax.f32 %v861_v31, 0.0  ;;  %733 = vmatmul.bf16.gmra.mxu2 %v1286_v29  ;;  %v1302_v29 = vor.u32 %v1454_v24, %v1301_v23 }
  0xf3   :  { %v785_v35 = vpop.f32.mrf.mxu1  ;;  %v928_v36 = vmax.f32 %v784_v32, 0.0 }
  0xf4   :  { %1024 = vst.msk [vmem:[%s2295_s3 + $0x148] sm:$0xff] %vm982_vm2, %v959_v34 }
  0xf5   :  { %993 = vst.msk [vmem:[%s2295_s3 + $0x50] sm:$0xff] %vm982_vm2, %v928_v36  ;;  %v694_v37 = vpop.f32.mrf.mxu2 }
  0xf6   :  { %v695_v38 = vadd.f32 %v1774_v58, %v694_v37  ;;  %v616_v39 = vpop.f32.mrf.mxu0 }
  0xf7   :  { %v617_v42 = vadd.f32 %v1774_v58, %v616_v39 }
  0xf8   :  { %v864_v45 = vadd.f32 %v863_v63, %v695_v38 }
  0xf9   :  { %v786_v46 = vadd.f32 %v785_v35, %v617_v42 }
  0xfa   :  { %v870_v48 = vpop.f32.mrf.mxu3  ;;  %v960_v49 = vmax.f32 %v864_v45, 0.0  ;;  %v1186_v45 = vor.u32 %v1423_v40, %v1183_v41 }
  0xfb   :  { %v788_v50 = vpop.f32.mrf.mxu1  ;;  %v929_v54 = vmax.f32 %v786_v46, 0.0 }
  0xfc   :  { %1025 = vst.msk [vmem:[%s2295_s3 + $0x150] sm:$0xff] %vm982_vm2, %v960_v49 }
  0xfd   :  { %994 = vst.msk [vmem:[%s2295_s3 + $0x58] sm:$0xff] %vm982_vm2, %v929_v54  ;;  %v696_v57 = vpop.f32.mrf.mxu2 }
  0xfe   :  { %1373 = vmatmul.msk.bf16.gmra.mxu1 %vm479_vm1, %v1170_v47  ;;  %v697_v60 = vadd.f32 %v1774_v58, %v696_v57  ;;  %v619_v61 = vpop.f32.mrf.mxu0 }
  0xff   :  { %1390 = vmatmul.msk.bf16.gmra.mxu3 %vm479_vm1, %v1306_v53  ;;  %v620_v63 = vadd.f32 %v1774_v58, %v619_v61 }
 0x100   :  { %v866_v0 = vadd.f32 %v865_v15, %v697_v60  ;;  %v1178_v15 = vor.u32 %v1421_v10, %v1175_v11 }
 0x101   :  { %v789_v1 = vadd.f32 %v788_v50, %v620_v63  ;;  %658 = vmatmul.bf16.gmra.mxu0 %v1166_v59 }
 0x102   :  { %v873_v2 = vpop.f32.mrf.mxu3  ;;  %v961_v3 = vmax.f32 %v866_v0, 0.0  ;;  %738 = vmatmul.bf16.gmra.mxu2 %v1294_v62 }
 0x103   :  { %v790_v4 = vpop.f32.mrf.mxu1  ;;  %v930_v6 = vmax.f32 %v789_v1, 0.0 }
 0x104   :  { %1026 = vst.msk [vmem:[%s2295_s3 + $0x158] sm:$0xff] %vm982_vm2, %v961_v3 }
 0x105   :  { %995 = vst.msk [vmem:[%s2295_s3 + $0x60] sm:$0xff] %vm982_vm2, %v930_v6  ;;  %v699_v7 = vpop.f32.mrf.mxu2 }
 0x106   :  { %v700_v8 = vadd.f32 %v1774_v58, %v699_v7  ;;  %v621_v9 = vpop.f32.mrf.mxu0 }
 0x107   :  { %v622_v12 = vadd.f32 %v1774_v58, %v621_v9 }
 0x108   :  { %v869_v13 = vadd.f32 %v868_v33, %v700_v8 }
 0x109   :  { %v791_v14 = vadd.f32 %v790_v4, %v622_v12 }
 0x10a   :  { %v875_v16 = vpop.f32.mrf.mxu3  ;;  %v962_v17 = vmax.f32 %v869_v13, 0.0 }
 0x10b   :  { %v793_v18 = vpop.f32.mrf.mxu1  ;;  %v931_v21 = vmax.f32 %v791_v14, 0.0 }
 0x10c   :  { %1027 = vst.msk [vmem:[%s2295_s3 + $0x160] sm:$0xff] %vm982_vm2, %v962_v17 }
 0x10d   :  { %996 = vst.msk [vmem:[%s2295_s3 + $0x68] sm:$0xff] %vm982_vm2, %v931_v21  ;;  %v701_v25 = vpop.f32.mrf.mxu2 }
 0x10e   :  { %1374 = vmatmul.msk.bf16.gmra.mxu1 %vm479_vm1, %v1178_v15  ;;  %v702_v27 = vadd.f32 %v1774_v58, %v701_v25  ;;  %v624_v28 = vpop.f32.mrf.mxu0 }
 0x10f   :  { %v625_v30 = vadd.f32 %v1774_v58, %v624_v28 }
 0x110   :  { %v871_v31 = vadd.f32 %v870_v48, %v702_v27 }
 0x111   :  { %v794_v32 = vadd.f32 %v793_v18, %v625_v30  ;;  %663 = vmatmul.bf16.gmra.mxu0 %v1174_v26 }
 0x112   :  { %v878_v33 = vpop.f32.mrf.mxu3  ;;  %v963_v34 = vmax.f32 %v871_v31, 0.0  ;;  %743 = vmatmul.bf16.gmra.mxu2 %v1302_v29 }
 0x113   :  { %v795_v35 = vpop.f32.mrf.mxu1  ;;  %v932_v36 = vmax.f32 %v794_v32, 0.0 }
 0x114   :  { %1028 = vst.msk [vmem:[%s2295_s3 + $0x168] sm:$0xff] %vm982_vm2, %v963_v34 }
 0x115   :  { %997 = vst.msk [vmem:[%s2295_s3 + $0x70] sm:$0xff] %vm982_vm2, %v932_v36  ;;  %v704_v37 = vpop.f32.mrf.mxu2 }
 0x116   :  { %v705_v38 = vadd.f32 %v1774_v58, %v704_v37  ;;  %v626_v39 = vpop.f32.mrf.mxu0 }
 0x117   :  { %v627_v42 = vadd.f32 %v1774_v58, %v626_v39 }
 0x118   :  { %v874_v43 = vadd.f32 %v873_v2, %v705_v38 }
 0x119   :  { %v796_v44 = vadd.f32 %v795_v35, %v627_v42 }
 0x11a   :  { %v880_v46 = vpop.f32.mrf.mxu3  ;;  %v964_v47 = vmax.f32 %v874_v43, 0.0 }
 0x11b   :  { %v798_v48 = vpop.f32.mrf.mxu1  ;;  %v933_v49 = vmax.f32 %v796_v44, 0.0 }
 0x11c   :  { %1029 = vst.msk [vmem:[%s2295_s3 + $0x170] sm:$0xff] %vm982_vm2, %v964_v47 }
 0x11d   :  { %998 = vst.msk [vmem:[%s2295_s3 + $0x78] sm:$0xff] %vm982_vm2, %v933_v49  ;;  %v706_v50 = vpop.f32.mrf.mxu2 }
 0x11e   :  { %1375 = vmatmul.msk.bf16.gmra.mxu1 %vm479_vm1, %v1186_v45  ;;  %v707_v51 = vadd.f32 %v1774_v58, %v706_v50  ;;  %v629_v52 = vpop.f32.mrf.mxu0 }
 0x11f   :  { %v630_v53 = vadd.f32 %v1774_v58, %v629_v52 }
 0x120   :  { %v876_v54 = vadd.f32 %v875_v16, %v707_v51 }
 0x121   :  { %v799_v55 = vadd.f32 %v798_v48, %v630_v53 }
 0x122   :  { %v883_v56 = vpop.f32.mrf.mxu3  ;;  %v965_v57 = vmax.f32 %v876_v54, 0.0 }
 0x123   :  { %v800_v59 = vpop.f32.mrf.mxu1  ;;  %v934_v60 = vmax.f32 %v799_v55, 0.0 }
 0x124   :  { %1030 = vst.msk [vmem:[%s2295_s3 + $0x178] sm:$0xff] %vm982_vm2, %v965_v57 }
 0x125   :  { %999 = vst.msk [vmem:[%s2295_s3 + $0x80] sm:$0xff] %vm982_vm2, %v934_v60  ;;  %v709_v61 = vpop.f32.mrf.mxu2 }
 0x126   :  { %v710_v62 = vadd.f32 %v1774_v58, %v709_v61  ;;  %v631_v63 = vpop.f32.mrf.mxu0 }
 0x127   :  { %v632_v0 = vadd.f32 %v1774_v58, %v631_v63 }
 0x128   :  { %v879_v1 = vadd.f32 %v878_v33, %v710_v62 }
 0x129   :  { %v801_v2 = vadd.f32 %v800_v59, %v632_v0 }
 0x12a   :  { %v885_v3 = vpop.f32.mrf.mxu3  ;;  %v966_v4 = vmax.f32 %v879_v1, 0.0 }
 0x12b   :  { %v803_v6 = vpop.f32.mrf.mxu1  ;;  %v935_v7 = vmax.f32 %v801_v2, 0.0 }
 0x12c   :  { %1031 = vst.msk [vmem:[%s2295_s3 + $0x180] sm:$0xff] %vm982_vm2, %v966_v4 }
 0x12d   :  { %1000 = vst.msk [vmem:[%s2295_s3 + $0x88] sm:$0xff] %vm982_vm2, %v935_v7  ;;  %v711_v8 = vpop.f32.mrf.mxu2 }
 0x12e   :  { %v712_v9 = vadd.f32 %v1774_v58, %v711_v8  ;;  %v634_v10 = vpop.f32.mrf.mxu0 }
 0x12f   :  { %v635_v11 = vadd.f32 %v1774_v58, %v634_v10 }
 0x130   :  { %v881_v12 = vadd.f32 %v880_v46, %v712_v9 }
 0x131   :  { %v804_v13 = vadd.f32 %v803_v6, %v635_v11 }
 0x132   :  { %v888_v14 = vpop.f32.mrf.mxu3  ;;  %v967_v15 = vmax.f32 %v881_v12, 0.0 }
 0x133   :  { %v805_v16 = vpop.f32.mrf.mxu1  ;;  %v936_v17 = vmax.f32 %v804_v13, 0.0 }
 0x134   :  { %1032 = vst.msk [vmem:[%s2295_s3 + $0x188] sm:$0xff] %vm982_vm2, %v967_v15 }
 0x135   :  { %1001 = vst.msk [vmem:[%s2295_s3 + $0x90] sm:$0xff] %vm982_vm2, %v936_v17  ;;  %v714_v18 = vpop.f32.mrf.mxu2 }
 0x136   :  { %v715_v19 = vadd.f32 %v1774_v58, %v714_v18  ;;  %v636_v20 = vpop.f32.mrf.mxu0 }
 0x137   :  { %v637_v21 = vadd.f32 %v1774_v58, %v636_v20 }
 0x138   :  { %v884_v23 = vadd.f32 %v883_v56, %v715_v19 }
 0x139   :  { %v806_v24 = vadd.f32 %v805_v16, %v637_v21 }
 0x13a   :  { %v968_v25 = vmax.f32 %v884_v23, 0.0  ;;  %v890_v28 = vpop.f32.mrf.mxu3 }
 0x13b   :  { %v808_v26 = vpop.f32.mrf.mxu1  ;;  %v937_v27 = vmax.f32 %v806_v24, 0.0 }
 0x13c   :  { %1033 = vst.msk [vmem:[%s2295_s3 + $0x190] sm:$0xff] %vm982_vm2, %v968_v25 }
 0x13d   :  { %1002 = vst.msk [vmem:[%s2295_s3 + $0x98] sm:$0xff] %vm982_vm2, %v937_v27  ;;  %v716_v29 = vpop.f32.mrf.mxu2 }
 0x13e   :  { %v717_v30 = vadd.f32 %v1774_v58, %v716_v29  ;;  %v639_v31 = vpop.f32.mrf.mxu0 }
 0x13f   :  { %v640_v32 = vadd.f32 %v1774_v58, %v639_v31 }
 0x140   :  { %v886_v33 = vadd.f32 %v885_v3, %v717_v30 }
 0x141   :  { %v809_v34 = vadd.f32 %v808_v26, %v640_v32 }
 0x142   :  { %v969_v35 = vmax.f32 %v886_v33, 0.0  ;;  %v893_v39 = vpop.f32.mrf.mxu3 }
 0x143   :  { %v810_v36 = vpop.f32.mrf.mxu1  ;;  %v938_v37 = vmax.f32 %v809_v34, 0.0 }
 0x144   :  { %1034 = vst.msk [vmem:[%s2295_s3 + $0x198] sm:$0xff] %vm982_vm2, %v969_v35 }
 0x145   :  { %1003 = vst.msk [vmem:[%s2295_s3 + $0xa0] sm:$0xff] %vm982_vm2, %v938_v37  ;;  %v719_v38 = vpop.f32.mrf.mxu2 }
 0x146   :  { %v720_v40 = vadd.f32 %v1774_v58, %v719_v38  ;;  %v641_v41 = vpop.f32.mrf.mxu0 }
 0x147   :  { %v642_v42 = vadd.f32 %v1774_v58, %v641_v41 }
 0x148   :  { %v889_v43 = vadd.f32 %v888_v14, %v720_v40 }
 0x149   :  { %v811_v44 = vadd.f32 %v810_v36, %v642_v42 }
 0x14a   :  { %v970_v45 = vmax.f32 %v889_v43, 0.0  ;;  %v895_v52 = vpop.f32.mrf.mxu3 }
 0x14b   :  { %v813_v46 = vpop.f32.mrf.mxu1  ;;  %v939_v47 = vmax.f32 %v811_v44, 0.0 }
 0x14c   :  { %1035 = vst.msk [vmem:[%s2295_s3 + $0x1a0] sm:$0xff] %vm982_vm2, %v970_v45 }
 0x14d   :  { %1004 = vst.msk [vmem:[%s2295_s3 + $0xa8] sm:$0xff] %vm982_vm2, %v939_v47  ;;  %v721_v48 = vpop.f32.mrf.mxu2 }
 0x14e   :  { %v722_v49 = vadd.f32 %v1774_v58, %v721_v48  ;;  %v644_v50 = vpop.f32.mrf.mxu0 }
 0x14f   :  { %v645_v51 = vadd.f32 %v1774_v58, %v644_v50 }
 0x150   :  { %v891_v53 = vadd.f32 %v890_v28, %v722_v49 }
 0x151   :  { %v814_v54 = vadd.f32 %v813_v46, %v645_v51 }
 0x152   :  { %v971_v55 = vmax.f32 %v891_v53, 0.0  ;;  %v898_v1 = vpop.f32.mrf.mxu3 }
 0x153   :  { %v815_v56 = vpop.f32.mrf.mxu1  ;;  %v940_v57 = vmax.f32 %v814_v54, 0.0 }
 0x154   :  { %1036 = vst.msk [vmem:[%s2295_s3 + $0x1a8] sm:$0xff] %vm982_vm2, %v971_v55 }
 0x155   :  { %1005 = vst.msk [vmem:[%s2295_s3 + $0xb0] sm:$0xff] %vm982_vm2, %v940_v57  ;;  %v724_v59 = vpop.f32.mrf.mxu2 }
 0x156   :  { %v725_v60 = vadd.f32 %v1774_v58, %v724_v59  ;;  %v646_v61 = vpop.f32.mrf.mxu0 }
 0x157   :  { %v647_v62 = vadd.f32 %v1774_v58, %v646_v61 }
 0x158   :  { %v894_v63 = vadd.f32 %v893_v39, %v725_v60 }
 0x159   :  { %v816_v0 = vadd.f32 %v815_v56, %v647_v62 }
 0x15a   :  { %v972_v2 = vmax.f32 %v894_v63, 0.0  ;;  %v900_v15 = vpop.f32.mrf.mxu3 }
 0x15b   :  { %v818_v3 = vpop.f32.mrf.mxu1  ;;  %v941_v4 = vmax.f32 %v816_v0, 0.0 }
 0x15c   :  { %1037 = vst.msk [vmem:[%s2295_s3 + $0x1b0] sm:$0xff] %vm982_vm2, %v972_v2 }
 0x15d   :  { %1006 = vst.msk [vmem:[%s2295_s3 + $0xb8] sm:$0xff] %vm982_vm2, %v941_v4  ;;  %v726_v6 = vpop.f32.mrf.mxu2 }
 0x15e   :  { %v727_v7 = vadd.f32 %v1774_v58, %v726_v6  ;;  %v649_v8 = vpop.f32.mrf.mxu0 }
 0x15f   :  { %v650_v9 = vadd.f32 %v1774_v58, %v649_v8 }
 0x160   :  { %v896_v10 = vadd.f32 %v895_v52, %v727_v7 }
 0x161   :  { %v819_v11 = vadd.f32 %v818_v3, %v650_v9 }
 0x162   :  { %v973_v12 = vmax.f32 %v896_v10, 0.0  ;;  %v903_v27 = vpop.f32.mrf.mxu3 }
 0x163   :  { %v820_v13 = vpop.f32.mrf.mxu1  ;;  %v942_v14 = vmax.f32 %v819_v11, 0.0 }
 0x164   :  { %1038 = vst.msk [vmem:[%s2295_s3 + $0x1b8] sm:$0xff] %vm982_vm2, %v973_v12 }
 0x165   :  { %1007 = vst.msk [vmem:[%s2295_s3 + $0xc0] sm:$0xff] %vm982_vm2, %v942_v14  ;;  %v729_v16 = vpop.f32.mrf.mxu2 }
 0x166   :  { %v730_v17 = vadd.f32 %v1774_v58, %v729_v16  ;;  %v651_v18 = vpop.f32.mrf.mxu0 }
 0x167   :  { %v652_v19 = vadd.f32 %v1774_v58, %v651_v18 }
 0x168   :  { %v899_v20 = vadd.f32 %v898_v1, %v730_v17 }
 0x169   :  { %v821_v21 = vadd.f32 %v820_v13, %v652_v19  ;;  %v670_v19 = vadd.f32 %v1774_v58, %v1789_v5 }
 0x16a   :  { %v974_v23 = vmax.f32 %v899_v20, 0.0  ;;  %v905_v40 = vpop.f32.mrf.mxu3 }
 0x16b   :  { %v823_v24 = vpop.f32.mrf.mxu1  ;;  %v943_v25 = vmax.f32 %v821_v21, 0.0 }
 0x16c   :  { %1039 = vst.msk [vmem:[%s2295_s3 + $0x1c0] sm:$0xff] %vm982_vm2, %v974_v23 }
 0x16d   :  { %1008 = vst.msk [vmem:[%s2295_s3 + $0xc8] sm:$0xff] %vm982_vm2, %v943_v25  ;;  %v731_v26 = vpop.f32.mrf.mxu2 }
 0x16e   :  { %v732_v28 = vadd.f32 %v1774_v58, %v731_v26  ;;  %v654_v29 = vpop.f32.mrf.mxu0 }
 0x16f   :  { %v655_v30 = vadd.f32 %v1774_v58, %v654_v29 }
 0x170   :  { %v901_v31 = vadd.f32 %v900_v15, %v732_v28 }
 0x171   :  { %v824_v32 = vadd.f32 %v823_v24, %v655_v30  ;;  %v672_v30 = vadd.f32 %v1774_v58, %v1820_v22 }
 0x172   :  { %v975_v33 = vmax.f32 %v901_v31, 0.0  ;;  %v908_v52 = vpop.f32.mrf.mxu3 }
 0x173   :  { %v825_v34 = vpop.f32.mrf.mxu1  ;;  %v944_v35 = vmax.f32 %v824_v32, 0.0 }
 0x174   :  { %1040 = vst.msk [vmem:[%s2295_s3 + $0x1c8] sm:$0xff] %vm982_vm2, %v975_v33 }
 0x175   :  { %1009 = vst.msk [vmem:[%s2295_s3 + $0xd0] sm:$0xff] %vm982_vm2, %v944_v35  ;;  %v734_v36 = vpop.f32.mrf.mxu2 }
 0x176   :  { %v735_v37 = vadd.f32 %v1774_v58, %v734_v36  ;;  %v656_v38 = vpop.f32.mrf.mxu0 }
 0x177   :  { %v657_v39 = vadd.f32 %v1774_v58, %v656_v38 }
 0x178   :  { %v904_v41 = vadd.f32 %v903_v27, %v735_v37 }
 0x179   :  { %v826_v42 = vadd.f32 %v825_v34, %v657_v39 }
 0x17a   :  { %v976_v43 = vmax.f32 %v904_v41, 0.0  ;;  %v910_v2 = vpop.f32.mrf.mxu3 }
 0x17b   :  { %v828_v44 = vpop.f32.mrf.mxu1  ;;  %v945_v45 = vmax.f32 %v826_v42, 0.0 }
 0x17c   :  { %1041 = vst.msk [vmem:[%s2295_s3 + $0x1d0] sm:$0xff] %vm982_vm2, %v976_v43 }
 0x17d   :  { %1010 = vst.msk [vmem:[%s2295_s3 + $0xd8] sm:$0xff] %vm982_vm2, %v945_v45  ;;  %v736_v46 = vpop.f32.mrf.mxu2 }
 0x17e   :  { %v737_v47 = vadd.f32 %v1774_v58, %v736_v46  ;;  %v659_v48 = vpop.f32.mrf.mxu0 }
 0x17f   :  { %v660_v49 = vadd.f32 %v1774_v58, %v659_v48 }
 0x180   :  { %v906_v50 = vadd.f32 %v905_v40, %v737_v47 }
 0x181   :  { %v829_v51 = vadd.f32 %v828_v44, %v660_v49 }
 0x182   :  { %v977_v53 = vmax.f32 %v906_v50, 0.0  ;;  %v913_v13 = vpop.f32.mrf.mxu3 }
 0x183   :  { %v830_v54 = vpop.f32.mrf.mxu1  ;;  %v946_v55 = vmax.f32 %v829_v51, 0.0 }
 0x184   :  { %1042 = vst.msk [vmem:[%s2295_s3 + $0x1d8] sm:$0xff] %vm982_vm2, %v977_v53 }
 0x185   :  { %1011 = vst.msk [vmem:[%s2295_s3 + $0xe0] sm:$0xff] %vm982_vm2, %v946_v55  ;;  %v739_v56 = vpop.f32.mrf.mxu2 }
 0x186   :  { %v740_v57 = vadd.f32 %v1774_v58, %v739_v56  ;;  %v661_v59 = vpop.f32.mrf.mxu0 }
 0x187   :  { %v662_v60 = vadd.f32 %v1774_v58, %v661_v59 }
 0x188   :  { %v909_v61 = vadd.f32 %v908_v52, %v740_v57 }
 0x189   :  { %v831_v62 = vadd.f32 %v830_v54, %v662_v60 }
 0x18a   :  { %v978_v63 = vmax.f32 %v909_v61, 0.0  ;;  %v915_v5 = vpop.f32.mrf.mxu3 }
 0x18b   :  { %v833_v0 = vpop.f32.mrf.mxu1  ;;  %v947_v1 = vmax.f32 %v831_v62, 0.0 }
 0x18c   :  { %1043 = vst.msk [vmem:[%s2295_s3 + $0x1e0] sm:$0xff] %vm982_vm2, %v978_v63 }
 0x18d   :  { %1012 = vst.msk [vmem:[%s2295_s3 + $0xe8] sm:$0xff] %vm982_vm2, %v947_v1  ;;  %v741_v3 = vpop.f32.mrf.mxu2 }
 0x18e   :  { %v742_v4 = vadd.f32 %v1774_v58, %v741_v3  ;;  %v664_v6 = vpop.f32.mrf.mxu0 }
 0x18f   :  { %v665_v7 = vadd.f32 %v1774_v58, %v664_v6 }
 0x190   :  { %v911_v8 = vadd.f32 %v910_v2, %v742_v4 }
 0x191   :  { %v834_v9 = vadd.f32 %v833_v0, %v665_v7 }
 0x192   :  { %v979_v10 = vmax.f32 %v911_v8, 0.0 }
 0x193   :  { %v835_v11 = vpop.f32.mrf.mxu1  ;;  %v948_v12 = vmax.f32 %v834_v9, 0.0 }
 0x194   :  { %1044 = vst.msk [vmem:[%s2295_s3 + $0x1e8] sm:$0xff] %vm982_vm2, %v979_v10 }
 0x195   :  { %1013 = vst.msk [vmem:[%s2295_s3 + $0xf0] sm:$0xff] %vm982_vm2, %v948_v12  ;;  %v744_v14 = vpop.f32.mrf.mxu2 }
 0x196   :  { %v745_v15 = vadd.f32 %v1774_v58, %v744_v14  ;;  %v666_v16 = vpop.f32.mrf.mxu0 }
 0x197   :  { %v667_v17 = vadd.f32 %v1774_v58, %v666_v16 }
 0x198   :  { %v914_v18 = vadd.f32 %v913_v13, %v745_v15 }
 0x199   :  { %v836_v20 = vadd.f32 %v835_v11, %v667_v17 }
 0x19a   :  { %v980_v21 = vmax.f32 %v914_v18, 0.0 }
 0x19b   :  { %v838_v23 = vpop.f32.mrf.mxu1  ;;  %v949_v24 = vmax.f32 %v836_v20, 0.0 }
 0x19c   :  { %v839_v25 = vadd.f32 %v838_v23, %v670_v19  ;;  %1045 = vst.msk [vmem:[%s2295_s3 + $0x1f0] sm:$0xff] %vm982_vm2, %v980_v21 }
 0x19d   :  { %1014 = vst.msk [vmem:[%s2295_s3 + $0xf8] sm:$0xff] %vm982_vm2, %v949_v24  ;;  %v746_v27 = vpop.f32.mrf.mxu2 }
 0x19e   :  { %v950_v26 = vmax.f32 %v839_v25, 0.0  ;;  %v747_v28 = vadd.f32 %v1774_v58, %v746_v27 }
 0x1a0   :  { %1015 = vst.msk [vmem:[%s2295_s3 + $0x100] sm:$0xff] %vm982_vm2, %v950_v26  ;;  %v916_v29 = vadd.f32 %v915_v5, %v747_v28 }
 0x1a2   :  { %v981_v31 = vmax.f32 %v916_v29, 0.0 }
 0x1a3   :  { %v840_v32 = vpop.f32.mrf.mxu1 }
 0x1a4   :  { %v841_v33 = vadd.f32 %v840_v32, %v672_v30  ;;  %1046 = vst.msk [vmem:[%s2295_s3 + $0x1f8] sm:$0xff] %vm982_vm2, %v981_v31 }
 0x1a6   :  { %v951_v34 = vmax.f32 %v841_v33, 0.0 }
 0x1a8   :  { %1016 = vst.msk [vmem:[%s2295_s3 + $0x108] sm:$0xff] %vm982_vm2, %v951_v34 }

// kernel: vgg_forward.5
= control target key start
LH: loop header
LB: loop body
LE: loop exit
PB: predicated region body
PF: predicated region fallthrough
CT: control target
= control target key end

     0   :  { %12 = vsyncpa [#allocation5], 0  ;;  %s10456_s24 = smov 0   ;;  %s10458_s25 = smov 0   ;;  %s12563_s0 = inlined_call_operand.vmem [shape: f32[2,359], index: 0, kind: input, shape index: {}]   ;;  %s12564_s1 = inlined_call_operand.vmem [shape: bf16[359,2048], index: 1, kind: input, shape index: {}]   ;;  %s12565_s2 = inlined_call_operand.vmem [shape: f32[1,2048], index: 2, kind: input, shape index: {}]   ;;  %s12566_s3 = inlined_call_operand.vmem [shape: bf16[2048,2048], index: 3, kind: input, shape index: {}]   ;;  %s12567_s4 = inlined_call_operand.vmem [shape: f32[1,2048], index: 4, kind: input, shape index: {}]   ;;  %s12568_s5 = inlined_call_operand.vmem [shape: bf16[2048,2], index: 5, kind: input, shape index: {}]   ;;  %s12569_s6 = inlined_call_operand.vmem [shape: f32[1,2], index: 6, kind: input, shape index: {}]   ;;  %s12570_s7 = inlined_call_operand.hbm [shape: f32[2,2], index: 7, kind: output, shape index: {}]  }
   0x1   :  { %s10460_s26 = smov 0  }
   0x2 LB: > { %s10472_s27 = sadd.s32 4294967295, %s10411_s26   ;;  %s10475_s28 = sadd.s32 1, %s10411_s26   ;;  %s10411_s26 = sphi %s10460_s26, %s12573_s26   ;;  %s10407_s25 = sphi %s10458_s25, %s12572_s25   ;;  %s10403_s24 = sphi %s10456_s24, %s12571_s24  }
   0x3   : > { %s43_s29 = ssub.s32 %s10411_s26, %s10475_s28  ;;  %s46_s30 = sadd.s32 1, %s10407_s25 }
   0x4   : > { %p44_p0 = scmp.eq.s32.totalorder %s43_s29, 0  ;;  %p53_p1 = scmp.ne.s32.totalorder %s10407_s25, %s10403_s24 }
   0x5   : > { %p54_p2 = scmp.eq.s32.totalorder %s10411_s26, 0  ;;  %p6661_p4 = scmp.ge.s32.totalorder %s10411_s26, 4 }
   0x6   : > { %s10484_s8 = scalar_select %p44_p0, %s10407_s25, %s46_s30  }
   0x7   : > { %p55_p3 = por %p54_p2, %p53_p1  ;;  %227 = sbr.rel (%p6661_p4) target bundleno = 106 (0x6a), region = 32 }
   0xc   : > { %230 = sbr.rel (!%p55_p3) target bundleno = 106 (0x6a), region = 36  ;;  %s232_s9 = sand.u32 (%p55_p3), 1, %s10407_s25  }
   0xd   : > { %s9591_s10 = sshll.u32 (%p55_p3), %s10411_s26, 4  ;;  %s10321_s11 = smul.u32 (%p55_p3), 720, %s232_s9 }
   0xe   : > { %s10492_s14 = scalar_lea.vmem (%p55_p3), %s12564_s1, %s9591_s10 }
   0xf   : > { %v250_v0 = vld [vmem:[%s10492_s14] sm:$0xff] (%p55_p3)  ;;  %v252_v1 = vld [vmem:[%s10492_s14 + $0x8] sm:$0xff] (%p55_p3)  ;;  %s10497_s15 = scalar_lea.vmem (%p55_p3), [#allocation3], %s10321_s11 }
  0x10   : > { %v254_v2 = vld [vmem:[%s10492_s14 + $0x40] sm:$0xff] (%p55_p3)  ;;  %251 = vst [vmem:[%s10497_s15] sm:$0xff] (%p55_p3), %v250_v0  ;;  %v256_v3 = vld [vmem:[%s10492_s14 + $0x48] sm:$0xff] (%p55_p3) }
  0x11   : > { %253 = vst [vmem:[%s10497_s15 + $0x8] sm:$0xff] %v252_v1  ;;  %v258_v4 = vld [vmem:[%s10492_s14 + $0x80] sm:$0xff]  ;;  %v260_v5 = vld [vmem:[%s10492_s14 + $0x88] sm:$0xff] }
  0x12   : > { %255 = vst [vmem:[%s10497_s15 + $0x10] sm:$0xff] %v254_v2  ;;  %v262_v6 = vld [vmem:[%s10492_s14 + $0xc0] sm:$0xff]  ;;  %v264_v7 = vld [vmem:[%s10492_s14 + $0xc8] sm:$0xff] }
  0x13   : > { %257 = vst [vmem:[%s10497_s15 + $0x18] sm:$0xff] %v256_v3  ;;  %v266_v8 = vld [vmem:[%s10492_s14 + $0x100] sm:$0xff]  ;;  %v268_v9 = vld [vmem:[%s10492_s14 + $0x108] sm:$0xff] }
  0x14   : > { %259 = vst [vmem:[%s10497_s15 + $0x20] sm:$0xff] %v258_v4  ;;  %v270_v10 = vld [vmem:[%s10492_s14 + $0x140] sm:$0xff]  ;;  %v272_v11 = vld [vmem:[%s10492_s14 + $0x148] sm:$0xff] }
  0x15   : > { %261 = vst [vmem:[%s10497_s15 + $0x28] sm:$0xff] %v260_v5  ;;  %v274_v12 = vld [vmem:[%s10492_s14 + $0x180] sm:$0xff]  ;;  %v276_v13 = vld [vmem:[%s10492_s14 + $0x188] sm:$0xff] }
  0x16   : > { %263 = vst [vmem:[%s10497_s15 + $0x30] sm:$0xff] %v262_v6  ;;  %v278_v14 = vld [vmem:[%s10492_s14 + $0x1c0] sm:$0xff]  ;;  %v280_v15 = vld [vmem:[%s10492_s14 + $0x1c8] sm:$0xff] }
  0x17   : > { %265 = vst [vmem:[%s10497_s15 + $0x38] sm:$0xff] %v264_v7  ;;  %v282_v16 = vld [vmem:[%s10492_s14 + $0x200] sm:$0xff]  ;;  %v284_v17 = vld [vmem:[%s10492_s14 + $0x208] sm:$0xff] }
  0x18   : > { %267 = vst [vmem:[%s10497_s15 + $0x40] sm:$0xff] %v266_v8  ;;  %v286_v18 = vld [vmem:[%s10492_s14 + $0x240] sm:$0xff]  ;;  %v288_v19 = vld [vmem:[%s10492_s14 + $0x248] sm:$0xff] }
  0x19   : > { %269 = vst [vmem:[%s10497_s15 + $0x48] sm:$0xff] %v268_v9  ;;  %v290_v20 = vld [vmem:[%s10492_s14 + $0x280] sm:$0xff]  ;;  %v292_v21 = vld [vmem:[%s10492_s14 + $0x288] sm:$0xff] }
  0x1a   : > { %271 = vst [vmem:[%s10497_s15 + $0x50] sm:$0xff] %v270_v10  ;;  %v294_v22 = vld [vmem:[%s10492_s14 + $0x2c0] sm:$0xff]  ;;  %v296_v23 = vld [vmem:[%s10492_s14 + $0x2c8] sm:$0xff] }
  0x1b   : > { %273 = vst [vmem:[%s10497_s15 + $0x58] sm:$0xff] %v272_v11  ;;  %v298_v24 = vld [vmem:[%s10492_s14 + $0x300] sm:$0xff]  ;;  %v300_v25 = vld [vmem:[%s10492_s14 + $0x308] sm:$0xff] }
  0x1c   : > { %275 = vst [vmem:[%s10497_s15 + $0x60] sm:$0xff] %v274_v12  ;;  %v302_v26 = vld [vmem:[%s10492_s14 + $0x340] sm:$0xff]  ;;  %v304_v27 = vld [vmem:[%s10492_s14 + $0x348] sm:$0xff] }
  0x1d   : > { %277 = vst [vmem:[%s10497_s15 + $0x68] sm:$0xff] %v276_v13  ;;  %v306_v28 = vld [vmem:[%s10492_s14 + $0x380] sm:$0xff]  ;;  %v308_v29 = vld [vmem:[%s10492_s14 + $0x388] sm:$0xff] }
  0x1e   : > { %279 = vst [vmem:[%s10497_s15 + $0x70] sm:$0xff] %v278_v14  ;;  %v310_v30 = vld [vmem:[%s10492_s14 + $0x3c0] sm:$0xff]  ;;  %v312_v31 = vld [vmem:[%s10492_s14 + $0x3c8] sm:$0xff] }
  0x1f   : > { %281 = vst [vmem:[%s10497_s15 + $0x78] sm:$0xff] %v280_v15  ;;  %v314_v32 = vld [vmem:[%s10492_s14 + $0x400] sm:$0xff]  ;;  %v316_v33 = vld [vmem:[%s10492_s14 + $0x408] sm:$0xff] }
  0x20   : > { %283 = vst [vmem:[%s10497_s15 + $0x80] sm:$0xff] %v282_v16  ;;  %v318_v34 = vld [vmem:[%s10492_s14 + $0x440] sm:$0xff]  ;;  %v320_v35 = vld [vmem:[%s10492_s14 + $0x448] sm:$0xff] }
  0x21   : > { %285 = vst [vmem:[%s10497_s15 + $0x88] sm:$0xff] %v284_v17  ;;  %v322_v36 = vld [vmem:[%s10492_s14 + $0x480] sm:$0xff]  ;;  %v324_v37 = vld [vmem:[%s10492_s14 + $0x488] sm:$0xff] }
  0x22   : > { %287 = vst [vmem:[%s10497_s15 + $0x90] sm:$0xff] %v286_v18  ;;  %v326_v38 = vld [vmem:[%s10492_s14 + $0x4c0] sm:$0xff]  ;;  %v328_v39 = vld [vmem:[%s10492_s14 + $0x4c8] sm:$0xff] }
  0x23   : > { %289 = vst [vmem:[%s10497_s15 + $0x98] sm:$0xff] %v288_v19  ;;  %v330_v40 = vld [vmem:[%s10492_s14 + $0x500] sm:$0xff]  ;;  %v332_v41 = vld [vmem:[%s10492_s14 + $0x508] sm:$0xff] }
  0x24   : > { %291 = vst [vmem:[%s10497_s15 + $0xa0] sm:$0xff] %v290_v20  ;;  %v334_v42 = vld [vmem:[%s10492_s14 + $0x540] sm:$0xff]  ;;  %v336_v43 = vld [vmem:[%s10492_s14 + $0x548] sm:$0xff] }
  0x25   : > { %293 = vst [vmem:[%s10497_s15 + $0xa8] sm:$0xff] %v292_v21  ;;  %v338_v44 = vld [vmem:[%s10492_s14 + $0x580] sm:$0xff]  ;;  %v340_v45 = vld [vmem:[%s10492_s14 + $0x588] sm:$0xff] }
  0x26   : > { %295 = vst [vmem:[%s10497_s15 + $0xb0] sm:$0xff] %v294_v22  ;;  %v342_v46 = vld [vmem:[%s10492_s14 + $0x5c0] sm:$0xff]  ;;  %v344_v47 = vld [vmem:[%s10492_s14 + $0x5c8] sm:$0xff] }
  0x27   : > { %297 = vst [vmem:[%s10497_s15 + $0xb8] sm:$0xff] %v296_v23  ;;  %v346_v48 = vld [vmem:[%s10492_s14 + $0x600] sm:$0xff]  ;;  %v348_v49 = vld [vmem:[%s10492_s14 + $0x608] sm:$0xff] }
  0x28   : > { %299 = vst [vmem:[%s10497_s15 + $0xc0] sm:$0xff] %v298_v24  ;;  %v350_v50 = vld [vmem:[%s10492_s14 + $0x640] sm:$0xff]  ;;  %v352_v51 = vld [vmem:[%s10492_s14 + $0x648] sm:$0xff] }
  0x29   : > { %301 = vst [vmem:[%s10497_s15 + $0xc8] sm:$0xff] %v300_v25  ;;  %v354_v52 = vld [vmem:[%s10492_s14 + $0x680] sm:$0xff]  ;;  %v356_v53 = vld [vmem:[%s10492_s14 + $0x688] sm:$0xff] }
  0x2a   : > { %303 = vst [vmem:[%s10497_s15 + $0xd0] sm:$0xff] %v302_v26  ;;  %v358_v54 = vld [vmem:[%s10492_s14 + $0x6c0] sm:$0xff]  ;;  %v360_v55 = vld [vmem:[%s10492_s14 + $0x6c8] sm:$0xff] }
  0x2b   : > { %305 = vst [vmem:[%s10497_s15 + $0xd8] sm:$0xff] %v304_v27  ;;  %v362_v56 = vld [vmem:[%s10492_s14 + $0x700] sm:$0xff]  ;;  %v364_v57 = vld [vmem:[%s10492_s14 + $0x708] sm:$0xff] }
  0x2c   : > { %307 = vst [vmem:[%s10497_s15 + $0xe0] sm:$0xff] %v306_v28  ;;  %v366_v58 = vld [vmem:[%s10492_s14 + $0x740] sm:$0xff]  ;;  %v368_v59 = vld [vmem:[%s10492_s14 + $0x748] sm:$0xff] }
  0x2d   : > { %309 = vst [vmem:[%s10497_s15 + $0xe8] sm:$0xff] %v308_v29  ;;  %v370_v60 = vld [vmem:[%s10492_s14 + $0x780] sm:$0xff]  ;;  %v372_v61 = vld [vmem:[%s10492_s14 + $0x788] sm:$0xff] }
  0x2e   : > { %311 = vst [vmem:[%s10497_s15 + $0xf0] sm:$0xff] %v310_v30  ;;  %v374_v62 = vld [vmem:[%s10492_s14 + $0x7c0] sm:$0xff]  ;;  %v376_v63 = vld [vmem:[%s10492_s14 + $0x7c8] sm:$0xff] }
  0x2f   : > { %313 = vst [vmem:[%s10497_s15 + $0xf8] sm:$0xff] %v312_v31  ;;  %v378_v0 = vld [vmem:[%s10492_s14 + $0x800] sm:$0xff]  ;;  %v380_v1 = vld [vmem:[%s10492_s14 + $0x808] sm:$0xff] }
  0x30   : > { %315 = vst [vmem:[%s10497_s15 + $0x100] sm:$0xff] %v314_v32  ;;  %v382_v2 = vld [vmem:[%s10492_s14 + $0x840] sm:$0xff]  ;;  %v384_v3 = vld [vmem:[%s10492_s14 + $0x848] sm:$0xff] }
  0x31   : > { %317 = vst [vmem:[%s10497_s15 + $0x108] sm:$0xff] %v316_v33  ;;  %v386_v4 = vld [vmem:[%s10492_s14 + $0x880] sm:$0xff]  ;;  %v388_v5 = vld [vmem:[%s10492_s14 + $0x888] sm:$0xff] }
  0x32   : > { %319 = vst [vmem:[%s10497_s15 + $0x110] sm:$0xff] %v318_v34  ;;  %v390_v6 = vld [vmem:[%s10492_s14 + $0x8c0] sm:$0xff]  ;;  %v392_v7 = vld [vmem:[%s10492_s14 + $0x8c8] sm:$0xff] }
  0x33   : > { %321 = vst [vmem:[%s10497_s15 + $0x118] sm:$0xff] %v320_v35  ;;  %v394_v8 = vld [vmem:[%s10492_s14 + $0x900] sm:$0xff]  ;;  %v396_v9 = vld [vmem:[%s10492_s14 + $0x908] sm:$0xff] }
  0x34   : > { %323 = vst [vmem:[%s10497_s15 + $0x120] sm:$0xff] %v322_v36  ;;  %v398_v10 = vld [vmem:[%s10492_s14 + $0x940] sm:$0xff]  ;;  %v400_v11 = vld [vmem:[%s10492_s14 + $0x948] sm:$0xff] }
  0x35   : > { %325 = vst [vmem:[%s10497_s15 + $0x128] sm:$0xff] %v324_v37  ;;  %v402_v12 = vld [vmem:[%s10492_s14 + $0x980] sm:$0xff]  ;;  %v404_v13 = vld [vmem:[%s10492_s14 + $0x988] sm:$0xff] }
  0x36   : > { %327 = vst [vmem:[%s10497_s15 + $0x130] sm:$0xff] %v326_v38  ;;  %v406_v14 = vld [vmem:[%s10492_s14 + $0x9c0] sm:$0xff]  ;;  %v408_v15 = vld [vmem:[%s10492_s14 + $0x9c8] sm:$0xff] }
  0x37   : > { %329 = vst [vmem:[%s10497_s15 + $0x138] sm:$0xff] %v328_v39  ;;  %v410_v16 = vld [vmem:[%s10492_s14 + $0xa00] sm:$0xff]  ;;  %v412_v17 = vld [vmem:[%s10492_s14 + $0xa08] sm:$0xff] }
  0x38   : > { %331 = vst [vmem:[%s10497_s15 + $0x140] sm:$0xff] %v330_v40  ;;  %v414_v18 = vld [vmem:[%s10492_s14 + $0xa40] sm:$0xff]  ;;  %v416_v19 = vld [vmem:[%s10492_s14 + $0xa48] sm:$0xff] }
  0x39   : > { %333 = vst [vmem:[%s10497_s15 + $0x148] sm:$0xff] %v332_v41  ;;  %v418_v20 = vld [vmem:[%s10492_s14 + $0xa80] sm:$0xff]  ;;  %v420_v21 = vld [vmem:[%s10492_s14 + $0xa88] sm:$0xff] }
  0x3a   : > { %335 = vst [vmem:[%s10497_s15 + $0x150] sm:$0xff] %v334_v42  ;;  %v422_v22 = vld [vmem:[%s10492_s14 + $0xac0] sm:$0xff]  ;;  %v424_v23 = vld [vmem:[%s10492_s14 + $0xac8] sm:$0xff] }
  0x3b   : > { %337 = vst [vmem:[%s10497_s15 + $0x158] sm:$0xff] %v336_v43  ;;  %v426_v24 = vld [vmem:[%s10492_s14 + $0xb00] sm:$0xff]  ;;  %v428_v25 = vld [vmem:[%s10492_s14 + $0xb08] sm:$0xff] }
  0x3c   : > { %339 = vst [vmem:[%s10497_s15 + $0x160] sm:$0xff] %v338_v44 }
  0x3d   : > { %341 = vst [vmem:[%s10497_s15 + $0x168] sm:$0xff] %v340_v45 }
  0x3e   : > { %343 = vst [vmem:[%s10497_s15 + $0x170] sm:$0xff] %v342_v46 }
  0x3f   : > { %345 = vst [vmem:[%s10497_s15 + $0x178] sm:$0xff] %v344_v47 }
  0x40   : > { %347 = vst [vmem:[%s10497_s15 + $0x180] sm:$0xff] %v346_v48 }
  0x41   : > { %349 = vst [vmem:[%s10497_s15 + $0x188] sm:$0xff] %v348_v49 }
  0x42   : > { %351 = vst [vmem:[%s10497_s15 + $0x190] sm:$0xff] %v350_v50 }
  0x43   : > { %353 = vst [vmem:[%s10497_s15 + $0x198] sm:$0xff] %v352_v51 }
  0x44   : > { %355 = vst [vmem:[%s10497_s15 + $0x1a0] sm:$0xff] %v354_v52 }
  0x45   : > { %357 = vst [vmem:[%s10497_s15 + $0x1a8] sm:$0xff] %v356_v53 }
  0x46   : > { %359 = vst [vmem:[%s10497_s15 + $0x1b0] sm:$0xff] %v358_v54 }
  0x47   : > { %361 = vst [vmem:[%s10497_s15 + $0x1b8] sm:$0xff] %v360_v55 }
  0x48   : > { %363 = vst [vmem:[%s10497_s15 + $0x1c0] sm:$0xff] %v362_v56 }
  0x49   : > { %365 = vst [vmem:[%s10497_s15 + $0x1c8] sm:$0xff] %v364_v57 }
  0x4a   : > { %367 = vst [vmem:[%s10497_s15 + $0x1d0] sm:$0xff] %v366_v58 }
  0x4b   : > { %369 = vst [vmem:[%s10497_s15 + $0x1d8] sm:$0xff] %v368_v59 }
  0x4c   : > { %371 = vst [vmem:[%s10497_s15 + $0x1e0] sm:$0xff] %v370_v60 }
  0x4d   : > { %373 = vst [vmem:[%s10497_s15 + $0x1e8] sm:$0xff] %v372_v61 }
  0x4e   : > { %375 = vst [vmem:[%s10497_s15 + $0x1f0] sm:$0xff] %v374_v62 }
  0x4f   : > { %377 = vst [vmem:[%s10497_s15 + $0x1f8] sm:$0xff] %v376_v63 }
  0x50   : > { %379 = vst [vmem:[%s10497_s15 + $0x200] sm:$0xff] %v378_v0 }
  0x51   : > { %381 = vst [vmem:[%s10497_s15 + $0x208] sm:$0xff] %v380_v1 }
  0x52   : > { %383 = vst [vmem:[%s10497_s15 + $0x210] sm:$0xff] %v382_v2 }
  0x53   : > { %385 = vst [vmem:[%s10497_s15 + $0x218] sm:$0xff] %v384_v3 }
  0x54   : > { %387 = vst [vmem:[%s10497_s15 + $0x220] sm:$0xff] %v386_v4 }
  0x55   : > { %389 = vst [vmem:[%s10497_s15 + $0x228] sm:$0xff] %v388_v5 }
  0x56   : > { %391 = vst [vmem:[%s10497_s15 + $0x230] sm:$0xff] %v390_v6 }
  0x57   : > { %393 = vst [vmem:[%s10497_s15 + $0x238] sm:$0xff] %v392_v7 }
  0x58   : > { %395 = vst [vmem:[%s10497_s15 + $0x240] sm:$0xff] %v394_v8 }
  0x59   : > { %397 = vst [vmem:[%s10497_s15 + $0x248] sm:$0xff] %v396_v9 }
  0x5a   : > { %399 = vst [vmem:[%s10497_s15 + $0x250] sm:$0xff] %v398_v10 }
  0x5b   : > { %401 = vst [vmem:[%s10497_s15 + $0x258] sm:$0xff] %v400_v11 }
  0x5c   : > { %403 = vst [vmem:[%s10497_s15 + $0x260] sm:$0xff] %v402_v12 }
  0x5d   : > { %405 = vst [vmem:[%s10497_s15 + $0x268] sm:$0xff] %v404_v13 }
  0x5e   : > { %407 = vst [vmem:[%s10497_s15 + $0x270] sm:$0xff] %v406_v14 }
  0x5f   : > { %409 = vst [vmem:[%s10497_s15 + $0x278] sm:$0xff] %v408_v15 }
  0x60   : > { %411 = vst [vmem:[%s10497_s15 + $0x280] sm:$0xff] %v410_v16 }
  0x61   : > { %413 = vst [vmem:[%s10497_s15 + $0x288] sm:$0xff] %v412_v17 }
  0x62   : > { %415 = vst [vmem:[%s10497_s15 + $0x290] sm:$0xff] %v414_v18 }
  0x63   : > { %417 = vst [vmem:[%s10497_s15 + $0x298] sm:$0xff] %v416_v19 }
  0x64   : > { %419 = vst [vmem:[%s10497_s15 + $0x2a0] sm:$0xff] %v418_v20 }
  0x65   : > { %421 = vst [vmem:[%s10497_s15 + $0x2a8] sm:$0xff] %v420_v21 }
  0x66   : > { %423 = vst [vmem:[%s10497_s15 + $0x2b0] sm:$0xff] %v422_v22 }
  0x67   : > { %425 = vst [vmem:[%s10497_s15 + $0x2b8] sm:$0xff] %v424_v23 }
  0x68   : > { %427 = vst [vmem:[%s10497_s15 + $0x2c0] sm:$0xff] %v426_v24 }
  0x69   : > { %429 = vst [vmem:[%s10497_s15 + $0x2c8] sm:$0xff] %v428_v25 }
  0x6a PF: > { %p6664_p5 = scmp.ge.s32.totalorder %s10411_s26, 1  ;;  %p452_p6 = scmp.lt.s32.totalorder %s10411_s26, 5 }
  0x6c   : > { %p453_p7 = pnand %p6664_p5, %p452_p6 }
  0x6d   : > { %s459_s16 = sand.u32 (!%p453_p7), 1, %s10403_s24   ;;  %s6665_s17 = sshll.u32 (!%p453_p7), %s10472_s27, 2 }
  0x6e   : > { %456 = sbr.rel (%p453_p7) target bundleno = 1230 (0x4ce), region = 67  ;;  %p497_p8 = scmp.lt.s32.totalorder (!%p453_p7), %s6665_s17, 15 }
  0x6f   : > { %s10322_s18 = smul.u32 (!%p453_p7), 720, %s459_s16  ;;  %s6666_s19 = sshll.u32 (!%p453_p7), %s10472_s27, 6 }
  0x70   : > { %p502_p9 = scmp.lt.s32.totalorder (!%p453_p7), %s6666_s19, 255  ;;  %p6669_p10 = scmp.ne.s32.totalorder (!%p453_p7), %s10472_s27, 0 }
  0x71   : > { %s10692_s24 = scalar_lea.vmem (!%p453_p7), [#allocation3], %s10322_s18 }
  0x73   : > { %s12575_s17 = smov (!%p497_p8, %s6665_s17), 15  ;;  %s12577_s19 = smov (!%p502_p9, %s6666_s19), 255 }
  0x74   : > { %s499_s22 = scalar_lea.vmem %s12565_s2, %s12575_s17  ;;  %s9592_s23 = sshll.u32 %s12577_s19, 6 }
  0x75   : > { %s10690_s30 = scalar_lea.vmem %s12566_s3, %s9592_s23  ;;  %512 = sbr.rel (%p6669_p10) target bundleno = 127 (0x7f), region = 75 }
  0x7a   : > { %v10413_v26 = vmov 0.0  }
  0x7b   : > { %513 = vst [vmem:[#allocation2 + $0x10] sm:$0xff] %v10413_v26 }
  0x7c   : > { %514 = vst [vmem:[#allocation2] sm:$0xff] %v10413_v26 }
  0x7d   : > { %515 = vst [vmem:[#allocation2 + $0x18] sm:$0xff] %v10413_v26 }
  0x7e   : > { %516 = vst [vmem:[#allocation2 + $0x8] sm:$0xff] %v10413_v26 }
  0x7f PF: > { %v6784_v27 = vld [vmem:[%s10692_s24 + $0xe0] sm:$0xf]  ;;  %v9623_v28 = vld [vmem:[%s10692_s24 + $0xec] sm:$0xf0]  ;;  %v9621_v32 = vld [vmem:[%s10692_s24 + $0xe4] sm:$0xf] }
  0x80   : > { %v6912_v29 = vld [vmem:[%s10692_s24 + $0x1e0] sm:$0xf]  ;;  %v6785_v30 = vor.u32 %v9623_v28, %v6784_v27  ;;  %v9655_v31 = vld [vmem:[%s10692_s24 + $0x1ec] sm:$0xf0]  ;;  %v6786_v33 = vld [vmem:[%s10692_s24 + $0xf0] sm:$0xf0] }
  0x81   : > { %v6913_v34 = vor.u32 %v9655_v31, %v6912_v29  ;;  %v6789_v35 = vor.u32 %v9621_v32, %v6786_v33  ;;  %v6768_v36 = vld [vmem:[%s10692_s24 + $0xc0] sm:$0xf]  ;;  %v9619_v37 = vld [vmem:[%s10692_s24 + $0xcc] sm:$0xf0]  ;;  %vm1083_vm0 = vcmask 1042432   ;;  %vm1084_vm1 = vcmask 1043456  }
  0x82   : > { %v6896_v38 = vld [vmem:[%s10692_s24 + $0x1c0] sm:$0xf]  ;;  %1099 = vmatpush.bf16.msra.mxu0 %v6785_v30  ;;  %v6769_v39 = vor.u32 %v9619_v37, %v6768_v36  ;;  %v9651_v40 = vld [vmem:[%s10692_s24 + $0x1cc] sm:$0xf0]  ;;  %v10414_v44 = vmov 65535   ;;  %vm1079_vm2 = vcmask 842752  }
  0x83   : > { %v10706_v41 = vld [vmem:[%s10692_s24 + $0x2c0] sm:$0xff]  ;;  %1112 = vmatpush.bf16.msra.mxu1 %v6913_v34  ;;  %1138 = vmatpush.bf16.msra.mxu3 %v6789_v35  ;;  %v6897_v42 = vor.u32 %v9651_v40, %v6896_v38  ;;  %v1085_v45 = vsel %vm1083_vm0, 4294967295, %v10414_v44  ;;  %v6770_v47 = vld [vmem:[%s10692_s24 + $0xd0] sm:$0xf0]  ;;  %v9615_v51 = vld [vmem:[%s10692_s24 + $0xac] sm:$0xf0] }
  0x84   : > { %v895_v43 = vunpack.c.l.b16 %v10706_v41  ;;  %v9617_v46 = vld [vmem:[%s10692_s24 + $0xc4] sm:$0xf]  ;;  %v10712_v48 = vsel %vm1084_vm1, %v1085_v45, 0  ;;  %v6752_v50 = vld [vmem:[%s10692_s24 + $0xa0] sm:$0xf]  ;;  %vm5199_vm3 = vcmask 1041408  }
  0x85   : > { %v6773_v49 = vor.u32 %v9617_v46, %v6770_v47  ;;  %v6880_v53 = vld [vmem:[%s10692_s24 + $0x1a0] sm:$0xf]  ;;  %v9647_v54 = vld [vmem:[%s10692_s24 + $0x1ac] sm:$0xf0]  ;;  %v6753_v56 = vor.u32 %v9615_v51, %v6752_v50  ;;  %v9613_v58 = vld [vmem:[%s10692_s24 + $0xa4] sm:$0xf] }
  0x86   : > { %v987_v52 = vpack.c.b16 %v895_v43, %v895_v43  ;;  %v7008_v55 = vld [vmem:[%s10692_s24 + $0x2a0] sm:$0xf]  ;;  %1100 = vmatpush.bf16.msra.mxu0 %v6769_v39  ;;  %v9679_v57 = vld [vmem:[%s10692_s24 + $0x2ac] sm:$0xf0]  ;;  %v6754_v59 = vld [vmem:[%s10692_s24 + $0xb0] sm:$0xf0]  ;;  %v6881_v61 = vor.u32 %v9647_v54, %v6880_v53 }
  0x87   : > { %1113 = vmatpush.bf16.msra.mxu1 %v6897_v42  ;;  %1139 = vmatpush.bf16.msra.mxu3 %v6773_v49  ;;  %v6757_v62 = vor.u32 %v9613_v58, %v6754_v59  ;;  %v6736_v63 = vld [vmem:[%s10692_s24 + $0x80] sm:$0xf]  ;;  %v9611_v0 = vld [vmem:[%s10692_s24 + $0x8c] sm:$0xf0]  ;;  %v7009_v3 = vor.u32 %v9679_v57, %v7008_v55  ;;  %v9609_v4 = vld [vmem:[%s10692_s24 + $0x84] sm:$0xf]  ;;  %v896_v42 = vunpack.c.h.b16 %v10706_v41 }
  0x88   : > { %v1088_v60 = vand.u32 %v10712_v48, %v987_v52  ;;  %v6864_v1 = vld [vmem:[%s10692_s24 + $0x180] sm:$0xf]  ;;  %v9643_v2 = vld [vmem:[%s10692_s24 + $0x18c] sm:$0xf0]  ;;  %v6738_v5 = vld [vmem:[%s10692_s24 + $0x90] sm:$0xf0]  ;;  %v6737_v6 = vor.u32 %v9611_v0, %v6736_v63 }
  0x89   : > { %v6992_v7 = vld [vmem:[%s10692_s24 + $0x280] sm:$0xf]  ;;  %v9675_v8 = vld [vmem:[%s10692_s24 + $0x28c] sm:$0xf0]  ;;  %v6865_v9 = vor.u32 %v9643_v2, %v6864_v1  ;;  %v6741_v10 = vor.u32 %v9609_v4, %v6738_v5  ;;  %v9605_v15 = vld [vmem:[%s10692_s24 + $0x64] sm:$0xf] }
  0x8a   : > { %1126 = vmatpush.bf16.msra.mxu2 %v1088_v60  ;;  %1101 = vmatpush.bf16.msra.mxu0 %v6753_v56  ;;  %v6720_v11 = vld [vmem:[%s10692_s24 + $0x60] sm:$0xf]  ;;  %v9607_v12 = vld [vmem:[%s10692_s24 + $0x6c] sm:$0xf0]  ;;  %v6722_v16 = vld [vmem:[%s10692_s24 + $0x70] sm:$0xf0]  ;;  %v6993_v17 = vor.u32 %v9675_v8, %v6992_v7  ;;  %v988_v56 = vpack.c.b16 %v896_v42, %v896_v42 }
  0x8b   : > { %1114 = vmatpush.bf16.msra.mxu1 %v6881_v61  ;;  %1140 = vmatpush.bf16.msra.mxu3 %v6757_v62  ;;  %v6848_v13 = vld [vmem:[%s10692_s24 + $0x160] sm:$0xf]  ;;  %v9639_v14 = vld [vmem:[%s10692_s24 + $0x16c] sm:$0xf0]  ;;  %v6721_v18 = vor.u32 %v9607_v12, %v6720_v11  ;;  %v6725_v22 = vor.u32 %v9605_v15, %v6722_v16  ;;  %v9601_v27 = vld [vmem:[%s10692_s24 + $0x44] sm:$0xf] }
  0x8c   : > { %v6976_v19 = vld [vmem:[%s10692_s24 + $0x260] sm:$0xf]  ;;  %v9671_v20 = vld [vmem:[%s10692_s24 + $0x26c] sm:$0xf0]  ;;  %v6849_v21 = vor.u32 %v9639_v14, %v6848_v13  ;;  %v6706_v28 = vld [vmem:[%s10692_s24 + $0x50] sm:$0xf0]  ;;  %v1091_v5 = vand.u32 %v10712_v48, %v988_v56 }
  0x8d   : > { %v6704_v23 = vld [vmem:[%s10692_s24 + $0x40] sm:$0xf]  ;;  %v9603_v24 = vld [vmem:[%s10692_s24 + $0x4c] sm:$0xf0]  ;;  %v6977_v29 = vor.u32 %v9671_v20, %v6976_v19  ;;  %v6709_v34 = vor.u32 %v9601_v27, %v6706_v28  ;;  %v9597_v39 = vld [vmem:[%s10692_s24 + $0x24] sm:$0xf] }
  0x8e   : > { %1127 = vmatpush.bf16.msra.mxu2 %v7009_v3  ;;  %1102 = vmatpush.bf16.msra.mxu0 %v6737_v6  ;;  %v6832_v25 = vld [vmem:[%s10692_s24 + $0x140] sm:$0xf]  ;;  %v9635_v26 = vld [vmem:[%s10692_s24 + $0x14c] sm:$0xf0]  ;;  %v6705_v30 = vor.u32 %v9603_v24, %v6704_v23  ;;  %v6690_v40 = vld [vmem:[%s10692_s24 + $0x30] sm:$0xf0] }
  0x8f   : > { %1115 = vmatpush.bf16.msra.mxu1 %v6865_v9  ;;  %1141 = vmatpush.bf16.msra.mxu3 %v6741_v10  ;;  %v6960_v31 = vld [vmem:[%s10692_s24 + $0x240] sm:$0xf]  ;;  %v9667_v32 = vld [vmem:[%s10692_s24 + $0x24c] sm:$0xf0]  ;;  %v6833_v33 = vor.u32 %v9635_v26, %v6832_v25  ;;  %v517_v49 = vld [vmem:[%s12563_s0] sm:$0x3f]  ;;  %v6693_v50 = vor.u32 %v9597_v39, %v6690_v40 }
  0x90   : > { %v6688_v35 = vld [vmem:[%s10692_s24 + $0x20] sm:$0xf]  ;;  %v9599_v36 = vld [vmem:[%s10692_s24 + $0x2c] sm:$0xf0]  ;;  %v6961_v43 = vor.u32 %v9667_v32, %v6960_v31  ;;  %519 = vst [vmem:[#allocation1] ss:$4 sm:$0xff] %v517_v49 }
  0x91   : > { %v6816_v37 = vld [vmem:[%s10692_s24 + $0x120] sm:$0xf]  ;;  %v9631_v38 = vld [vmem:[%s10692_s24 + $0x12c] sm:$0xf0]  ;;  %v6689_v45 = vor.u32 %v9599_v36, %v6688_v35  ;;  %v9593_v54 = vld [vmem:[%s10692_s24 + $0x4] sm:$0xf] }
  0x92   : > { %1128 = vmatpush.bf16.msra.mxu2 %v6993_v17  ;;  %1103 = vmatpush.bf16.msra.mxu0 %v6721_v18  ;;  %v6944_v44 = vld [vmem:[%s10692_s24 + $0x220] sm:$0xf]  ;;  %v9663_v46 = vld [vmem:[%s10692_s24 + $0x22c] sm:$0xf0]  ;;  %v6817_v41 = vor.u32 %v9631_v38, %v6816_v37  ;;  %v6674_v55 = vld [vmem:[%s10692_s24 + $0x10] sm:$0xf0] }
  0x93   : > { %1116 = vmatpush.bf16.msra.mxu1 %v6849_v21  ;;  %1142 = vmatpush.bf16.msra.mxu3 %v6725_v22  ;;  %v6672_v47 = vld [vmem:[%s10692_s24] sm:$0xf]  ;;  %v9595_v51 = vld [vmem:[%s10692_s24 + $0xc] sm:$0xf0]  ;;  %v6945_v57 = vor.u32 %v9663_v46, %v6944_v44  ;;  %v6792_v59 = vld [vmem:[%s10692_s24 + $0xe8] sm:$0xf]  ;;  %v6677_v2 = vor.u32 %v9593_v54, %v6674_v55 }
  0x94   : > { %v6800_v52 = vld [vmem:[%s10692_s24 + $0x100] sm:$0xf]  ;;  %v9627_v53 = vld [vmem:[%s10692_s24 + $0x10c] sm:$0xf0]  ;;  %v9624_v60 = vld [vmem:[%s10692_s24 + $0xf4] sm:$0xf0]  ;;  %v6673_v61 = vor.u32 %v9595_v51, %v6672_v47 }
  0x95   : > { %v6928_v58 = vld [vmem:[%s10692_s24 + $0x200] sm:$0xf]  ;;  %v9659_v62 = vld [vmem:[%s10692_s24 + $0x20c] sm:$0xf0]  ;;  %v6920_v63 = vld [vmem:[%s10692_s24 + $0x1e8] sm:$0xf]  ;;  %v6801_v1 = vor.u32 %v9627_v53, %v6800_v52  ;;  %v6793_v6 = vor.u32 %v9624_v60, %v6792_v59 }
  0x96   : > { %1129 = vmatpush.bf16.msra.mxu2 %v6977_v29  ;;  %1104 = vmatpush.bf16.msra.mxu0 %v6705_v30  ;;  %v9656_v0 = vld [vmem:[%s10692_s24 + $0x1f4] sm:$0xf0]  ;;  %v9653_v3 = vld [vmem:[%s10692_s24 + $0x1e4] sm:$0xf]  ;;  %v6914_v4 = vld [vmem:[%s10692_s24 + $0x1f0] sm:$0xf0]  ;;  %v6929_v10 = vor.u32 %v9659_v62, %v6928_v58 }
  0x97   : > { %1117 = vmatpush.bf16.msra.mxu1 %v6833_v33  ;;  %1143 = vmatpush.bf16.msra.mxu3 %v6709_v34  ;;  %v9677_v7 = vld [vmem:[%s10692_s24 + $0x2a4] sm:$0xf]  ;;  %v7010_v8 = vld [vmem:[%s10692_s24 + $0x2b0] sm:$0xf0]  ;;  %v6776_v9 = vld [vmem:[%s10692_s24 + $0xc8] sm:$0xf]  ;;  %v6921_v11 = vor.u32 %v9656_v0, %v6920_v63  ;;  %v6917_v16 = vor.u32 %v9653_v3, %v6914_v4 }
  0x98   : > { %v9649_v12 = vld [vmem:[%s10692_s24 + $0x1c4] sm:$0xf]  ;;  %v9620_v13 = vld [vmem:[%s10692_s24 + $0xd4] sm:$0xf0]  ;;  %v6904_v14 = vld [vmem:[%s10692_s24 + $0x1c8] sm:$0xf]  ;;  %v7013_v23 = vor.u32 %v9677_v7, %v7010_v8 }
  0x99   : > { %v9652_v15 = vld [vmem:[%s10692_s24 + $0x1d4] sm:$0xf0]  ;;  %v6898_v20 = vld [vmem:[%s10692_s24 + $0x1d0] sm:$0xf0]  ;;  %v6777_v25 = vor.u32 %v9620_v13, %v6776_v9  ;;  %v9673_v27 = vld [vmem:[%s10692_s24 + $0x284] sm:$0xf] }
  0x9a   : > { %1130 = vmatpush.bf16.msra.mxu2 %v6961_v43  ;;  %1105 = vmatpush.bf16.msra.mxu0 %v6689_v45  ;;  %v522_v17 = vld.sshfl [vmem:[#allocation1 + $0x10] sm:$0xff pattern:$0x73625140]  ;;  %v520_v18 = vld.sshfl [vmem:[#allocation1] sm:$0xff pattern:$0x73625140]  ;;  %v6905_v26 = vor.u32 %v9652_v15, %v6904_v14  ;;  %v6901_v30 = vor.u32 %v9649_v12, %v6898_v20 }
  0x9b   : > { %1118 = vmatpush.bf16.msra.mxu1 %v6817_v41  ;;  %1144 = vmatpush.bf16.msra.mxu3 %v6693_v50  ;;  %v10781_v19 = vpack.c.bf16 %v520_v18, %v520_v18  ;;  %v521_v21 = vld.sshfl [vmem:[#allocation1 + $0x8] sm:$0xff pattern:$0x73625140]  ;;  %v10784_v22 = vpack.c.bf16 %v522_v17, %v522_v17  ;;  %v6760_v29 = vld [vmem:[%s10692_s24 + $0xa8] sm:$0xf]  ;;  %vm5201_vm4 = vcmask 1045508  }
  0x9c   : > { %v10786_v24 = vpack.c.bf16 %v521_v21, %v521_v21  ;;  %v6994_v28 = vld [vmem:[%s10692_s24 + $0x290] sm:$0xf0]  ;;  %v9616_v31 = vld [vmem:[%s10692_s24 + $0xb4] sm:$0xf0]  ;;  %v6888_v32 = vld [vmem:[%s10692_s24 + $0x1a8] sm:$0xf] }
  0x9d   : > { %v9648_v33 = vld [vmem:[%s10692_s24 + $0x1b4] sm:$0xf0]  ;;  %v9645_v34 = vld [vmem:[%s10692_s24 + $0x1a4] sm:$0xf]  ;;  %v6882_v35 = vld [vmem:[%s10692_s24 + $0x1b0] sm:$0xf0]  ;;  %v6997_v36 = vor.u32 %v9673_v27, %v6994_v28  ;;  %v6761_v37 = vor.u32 %v9616_v31, %v6760_v29 }
  0x9e   : > { %1131 = vmatpush.bf16.msra.mxu2 %v6945_v57  ;;  %1106 = vmatpush.bf16.msra.mxu0 %v6673_v61  ;;  %v6889_v38 = vor.u32 %v9648_v33, %v6888_v32  ;;  %v9669_v39 = vld [vmem:[%s10692_s24 + $0x264] sm:$0xf]  ;;  %v6978_v40 = vld [vmem:[%s10692_s24 + $0x270] sm:$0xf0]  ;;  %v6744_v42 = vld [vmem:[%s10692_s24 + $0x88] sm:$0xf]  ;;  %v6885_v43 = vor.u32 %v9645_v34, %v6882_v35 }
  0x9f   : > { %1119 = vmatpush.bf16.msra.mxu1 %v6801_v1  ;;  %1145 = vmatpush.bf16.msra.mxu3 %v6677_v2  ;;  %v9612_v44 = vld [vmem:[%s10692_s24 + $0x94] sm:$0xf0]  ;;  %v6872_v45 = vld [vmem:[%s10692_s24 + $0x188] sm:$0xf]  ;;  %v9641_v47 = vld [vmem:[%s10692_s24 + $0x184] sm:$0xf]  ;;  %v6981_v41 = vor.u32 %v9669_v39, %v6978_v40 }
  0xa0   : > { %v9644_v46 = vld [vmem:[%s10692_s24 + $0x194] sm:$0xf0]  ;;  %v6866_v49 = vld [vmem:[%s10692_s24 + $0x190] sm:$0xf0]  ;;  %v6745_v50 = vor.u32 %v9612_v44, %v6744_v42  ;;  %v9665_v52 = vld [vmem:[%s10692_s24 + $0x244] sm:$0xf] }
  0xa1   : > { %1107 = vmatmul.bf16.vlgmr.msra.gmra.mxu0 %v10781_v19  ;;  %v6873_v51 = vor.u32 %v9644_v46, %v6872_v45  ;;  %v6962_v53 = vld [vmem:[%s10692_s24 + $0x250] sm:$0xf0]  ;;  %v6728_v54 = vld [vmem:[%s10692_s24 + $0x68] sm:$0xf]  ;;  %v6869_v55 = vor.u32 %v9641_v47, %v6866_v49  ;;  %v9608_v56 = vld [vmem:[%s10692_s24 + $0x74] sm:$0xf0] }
  0xa2   : > { %1165 = vmatpush.bf16.msrb.mxu0 %v1091_v5  ;;  %1132 = vmatpush.bf16.msra.mxu2 %v6929_v10  ;;  %v6856_v57 = vld [vmem:[%s10692_s24 + $0x168] sm:$0xf]  ;;  %v9640_v58 = vld [vmem:[%s10692_s24 + $0x174] sm:$0xf0]  ;;  %v9637_v59 = vld [vmem:[%s10692_s24 + $0x164] sm:$0xf]  ;;  %v6965_v62 = vor.u32 %v9665_v52, %v6962_v53  ;;  %v6729_v63 = vor.u32 %v9608_v56, %v6728_v54 }
  0xa3   : > { %1177 = vmatpush.bf16.msrb.mxu1 %v6793_v6  ;;  %1190 = vmatpush.bf16.msrb.mxu3 %v6921_v11  ;;  %v6850_v60 = vld [vmem:[%s10692_s24 + $0x170] sm:$0xf0]  ;;  %v618_v61 = vld [vmem:[%s10692_s24 + $0x2c8] sm:$0xff]  ;;  %v6857_v0 = vor.u32 %v9640_v58, %v6856_v57  ;;  %v9661_v1 = vld [vmem:[%s10692_s24 + $0x224] sm:$0xf]  ;;  %p9074_p11 = scmp.ne.s32.totalorder %s10472_s27, 3 }
  0xa4   : > { %1120 = vmatmul.bf16.vlgmr.msra.gmra.mxu1 %v10786_v24  ;;  %1146 = vmatmul.bf16.vlgmr.msra.gmra.mxu3 %v10781_v19  ;;  %v6946_v2 = vld [vmem:[%s10692_s24 + $0x230] sm:$0xf0]  ;;  %v6712_v3 = vld [vmem:[%s10692_s24 + $0x48] sm:$0xf]  ;;  %v6853_v4 = vor.u32 %v9637_v59, %v6850_v60  ;;  %v9604_v5 = vld [vmem:[%s10692_s24 + $0x54] sm:$0xf0]  ;;  %v897_v8 = vunpack.c.l.b16 %v618_v61  ;;  %v898_v28 = vunpack.c.h.b16 %v618_v61 }
  0xa5   : > { %7022 = vmatmul.msk.bf16.vlgmr.msra.gmra.mxu2 %vm1079_vm2, %v10784_v22  ;;  %v6840_v6 = vld [vmem:[%s10692_s24 + $0x148] sm:$0xf]  ;;  %v9636_v7 = vld [vmem:[%s10692_s24 + $0x154] sm:$0xf0]  ;;  %v9633_v9 = vld [vmem:[%s10692_s24 + $0x144] sm:$0xf]  ;;  %v6949_v11 = vor.u32 %v9661_v1, %v6946_v2  ;;  %v6713_v12 = vor.u32 %v9604_v5, %v6712_v3 }
  0xa6   : > { %1151 = vmatpush.bf16.msrb.mxu2 %v6917_v16  ;;  %1166 = vmatpush.bf16.msrb.mxu0 %v7013_v23  ;;  %v6834_v10 = vld [vmem:[%s10692_s24 + $0x150] sm:$0xf0]  ;;  %v6841_v13 = vor.u32 %v9636_v7, %v6840_v6  ;;  %v9657_v14 = vld [vmem:[%s10692_s24 + $0x204] sm:$0xf]  ;;  %v6696_v16 = vld [vmem:[%s10692_s24 + $0x28] sm:$0xf]  ;;  %v989_v23 = vpack.c.b16 %v897_v8, %v897_v8  ;;  %v990_v46 = vpack.c.b16 %v898_v28, %v898_v28 }
  0xa7   : > { %1178 = vmatpush.bf16.msrb.mxu1 %v6777_v25  ;;  %1191 = vmatpush.bf16.msrb.mxu3 %v6905_v26  ;;  %v6930_v15 = vld [vmem:[%s10692_s24 + $0x210] sm:$0xf0]  ;;  %v6837_v17 = vor.u32 %v9633_v9, %v6834_v10  ;;  %v9600_v18 = vld [vmem:[%s10692_s24 + $0x34] sm:$0xf0]  ;;  %v6824_v20 = vld [vmem:[%s10692_s24 + $0x128] sm:$0xf] }
  0xa8   : > { %v9632_v21 = vld [vmem:[%s10692_s24 + $0x134] sm:$0xf0]  ;;  %v9629_v25 = vld [vmem:[%s10692_s24 + $0x124] sm:$0xf]  ;;  %v6818_v26 = vld [vmem:[%s10692_s24 + $0x130] sm:$0xf0]  ;;  %v6933_v27 = vor.u32 %v9657_v14, %v6930_v15  ;;  %v6697_v29 = vor.u32 %v9600_v18, %v6696_v16  ;;  %v1094_v35 = vand.u32 %v10712_v48, %v989_v23  ;;  %v1097_v56 = vand.u32 %v10712_v48, %v990_v46 }
  0xa9   : > { %v9625_v31 = vld [vmem:[%s10692_s24 + $0x104] sm:$0xf]  ;;  %v6802_v32 = vld [vmem:[%s10692_s24 + $0x110] sm:$0xf0]  ;;  %v6680_v33 = vld [vmem:[%s10692_s24 + $0x8] sm:$0xf]  ;;  %v6821_v34 = vor.u32 %v9629_v25, %v6818_v26 }
  0xaa   : > { %1152 = vmatpush.bf16.msrb.mxu2 %v6901_v30  ;;  %1167 = vmatpush.bf16.msrb.mxu0 %v6997_v36  ;;  %v6825_v30 = vor.u32 %v9632_v21, %v6824_v20  ;;  %v9596_v36 = vld [vmem:[%s10692_s24 + $0x14] sm:$0xf0]  ;;  %v7016_v39 = vld [vmem:[%s10692_s24 + $0x2a8] sm:$0xf]  ;;  %v9622_v42 = vld [vmem:[%s10692_s24 + $0xec] sm:$0xf] }
  0xab   : > { %1179 = vmatpush.bf16.msrb.mxu1 %v6761_v37  ;;  %1192 = vmatpush.bf16.msrb.mxu3 %v6889_v38  ;;  %v6808_v37 = vld [vmem:[%s10692_s24 + $0x108] sm:$0xf]  ;;  %v9628_v38 = vld [vmem:[%s10692_s24 + $0x114] sm:$0xf0]  ;;  %v9654_v44 = vld [vmem:[%s10692_s24 + $0x1ec] sm:$0xf]  ;;  %v6681_v47 = vor.u32 %v9596_v36, %v6680_v33 }
  0xac   : > { %v9680_v40 = vld [vmem:[%s10692_s24 + $0x2b4] sm:$0xf0]  ;;  %v6922_v45 = vld [vmem:[%s10692_s24 + $0x1f8] sm:$0xf0]  ;;  %v6809_v49 = vor.u32 %v9628_v38, %v6808_v37  ;;  %v7000_v53 = vld [vmem:[%s10692_s24 + $0x288] sm:$0xf] }
  0xad   : > { %v6925_v52 = vor.u32 %v9654_v44, %v6922_v45  ;;  %v9676_v54 = vld [vmem:[%s10692_s24 + $0x294] sm:$0xf0]  ;;  %v6778_v57 = vld [vmem:[%s10692_s24 + $0xd8] sm:$0xf0]  ;;  %v9650_v58 = vld [vmem:[%s10692_s24 + $0x1cc] sm:$0xf] }
  0xae   : > { %1153 = vmatpush.bf16.msrb.mxu2 %v6885_v43  ;;  %1168 = vmatpush.bf16.msrb.mxu0 %v6981_v41  ;;  %v6794_v43 = vld [vmem:[%s10692_s24 + $0xf8] sm:$0xf0]  ;;  %v6805_v41 = vor.u32 %v9625_v31, %v6802_v32  ;;  %v9678_v60 = vld [vmem:[%s10692_s24 + $0x2ac] sm:$0xf]  ;;  %v9672_v1 = vld [vmem:[%s10692_s24 + $0x274] sm:$0xf0] }
  0xaf   : > { %1180 = vmatpush.bf16.msrb.mxu1 %v6745_v50  ;;  %1193 = vmatpush.bf16.msrb.mxu3 %v6873_v51  ;;  %v7017_v50 = vor.u32 %v9680_v40, %v7016_v39  ;;  %v6797_v51 = vor.u32 %v9622_v42, %v6794_v43  ;;  %v6906_v59 = vld [vmem:[%s10692_s24 + $0x1d8] sm:$0xf0]  ;;  %v9614_v2 = vld [vmem:[%s10692_s24 + $0xac] sm:$0xf]  ;;  %v9664_v28 = vld [vmem:[%s10692_s24 + $0x234] sm:$0xf0] }
  0xb0   : > { %v7018_v61 = vld [vmem:[%s10692_s24 + $0x2b8] sm:$0xf0]  ;;  %v9646_v5 = vld [vmem:[%s10692_s24 + $0x1ac] sm:$0xf]  ;;  %v6936_v37 = vld [vmem:[%s10692_s24 + $0x208] sm:$0xf] }
  0xb1   : > { %v7021_v3 = vor.u32 %v9678_v60, %v7018_v61  ;;  %v6890_v6 = vld [vmem:[%s10692_s24 + $0x1b8] sm:$0xf0]  ;;  %v9674_v7 = vld [vmem:[%s10692_s24 + $0x28c] sm:$0xf]  ;;  %v9660_v40 = vld [vmem:[%s10692_s24 + $0x214] sm:$0xf0] }
  0xb2   : > { %1154 = vmatpush.bf16.msrb.mxu2 %v6869_v55  ;;  %1169 = vmatpush.bf16.msrb.mxu0 %v6965_v62  ;;  %v9618_v55 = vld [vmem:[%s10692_s24 + $0xcc] sm:$0xf]  ;;  %v7001_v62 = vor.u32 %v9676_v54, %v7000_v53  ;;  %v7002_v8 = vld [vmem:[%s10692_s24 + $0x298] sm:$0xf0] }
  0xb3   : > { %1181 = vmatpush.bf16.msrb.mxu1 %v6729_v63  ;;  %1194 = vmatpush.bf16.msrb.mxu3 %v6857_v0  ;;  %v6781_v48 = vor.u32 %v9618_v55, %v6778_v57  ;;  %v6909_v63 = vor.u32 %v9650_v58, %v6906_v59  ;;  %v6984_v0 = vld [vmem:[%s10692_s24 + $0x268] sm:$0xf]  ;;  %v9610_v14 = vld [vmem:[%s10692_s24 + $0x8c] sm:$0xf]  ;;  %v7005_v15 = vor.u32 %v9674_v7, %v7002_v8  ;;  %v6746_v16 = vld [vmem:[%s10692_s24 + $0x98] sm:$0xf0] }
  0xb4   : > { %v6985_v9 = vor.u32 %v9672_v1, %v6984_v0  ;;  %v6874_v18 = vld [vmem:[%s10692_s24 + $0x198] sm:$0xf0]  ;;  %v9670_v20 = vld [vmem:[%s10692_s24 + $0x26c] sm:$0xf]  ;;  %v6749_v25 = vor.u32 %v9610_v14, %v6746_v16  ;;  %v7348_v7 = vld [vmem:[%s10690_s30 + $0x280] sm:$0xf] }
  0xb5   : > { %v6986_v21 = vld [vmem:[%s10692_s24 + $0x278] sm:$0xf0]  ;;  %v9638_v32 = vld [vmem:[%s10692_s24 + $0x16c] sm:$0xf]  ;;  %v9769_v8 = vld [vmem:[%s10690_s30 + $0x2bc] sm:$0xf0] }
  0xb6   : > { %1155 = vmatpush.bf16.msrb.mxu2 %v6853_v4  ;;  %1170 = vmatpush.bf16.msrb.mxu0 %v6949_v11  ;;  %v6762_v4 = vld [vmem:[%s10692_s24 + $0xb8] sm:$0xf0]  ;;  %v6893_v11 = vor.u32 %v9646_v5, %v6890_v6  ;;  %v9602_v42 = vld [vmem:[%s10692_s24 + $0x4c] sm:$0xf]  ;;  %v7284_v14 = vld [vmem:[%s10690_s30 + $0x200] sm:$0xf] }
  0xb7   : > { %1182 = vmatpush.bf16.msrb.mxu1 %v6713_v12  ;;  %1195 = vmatpush.bf16.msrb.mxu3 %v6841_v13  ;;  %v6765_v10 = vor.u32 %v9614_v2, %v6762_v4  ;;  %v6968_v12 = vld [vmem:[%s10692_s24 + $0x248] sm:$0xf]  ;;  %v9668_v13 = vld [vmem:[%s10692_s24 + $0x254] sm:$0xf0]  ;;  %v6730_v31 = vld [vmem:[%s10692_s24 + $0x78] sm:$0xf0] }
  0xb8   : > { %v6969_v23 = vor.u32 %v9668_v13, %v6968_v12  ;;  %v6858_v33 = vld [vmem:[%s10692_s24 + $0x178] sm:$0xf0]  ;;  %v9634_v45 = vld [vmem:[%s10692_s24 + $0x14c] sm:$0xf]  ;;  %v7349_v13 = vor.u32 %v9769_v8, %v7348_v7 }
  0xb9   : > { %v6861_v39 = vor.u32 %v9638_v32, %v6858_v33  ;;  %v6714_v43 = vld [vmem:[%s10692_s24 + $0x58] sm:$0xf0]  ;;  %v9598_v54 = vld [vmem:[%s10692_s24 + $0x2c] sm:$0xf]  ;;  %v9721_v32 = vld [vmem:[%s10690_s30 + $0x13c] sm:$0xf0] }
  0xba   : > { %1156 = vmatpush.bf16.msrb.mxu2 %v6837_v17  ;;  %1171 = vmatpush.bf16.msrb.mxu0 %v6933_v27  ;;  %v9642_v17 = vld [vmem:[%s10692_s24 + $0x18c] sm:$0xf]  ;;  %v6952_v27 = vld [vmem:[%s10692_s24 + $0x228] sm:$0xf]  ;;  %v6842_v46 = vld [vmem:[%s10692_s24 + $0x158] sm:$0xf0] }
  0xbb   : > { %1183 = vmatpush.bf16.msrb.mxu1 %v6697_v29  ;;  %1196 = vmatpush.bf16.msrb.mxu3 %v6825_v30  ;;  %v6877_v26 = vor.u32 %v9642_v17, %v6874_v18  ;;  %v9606_v29 = vld [vmem:[%s10692_s24 + $0x6c] sm:$0xf]  ;;  %v6989_v30 = vor.u32 %v9670_v20, %v6986_v21  ;;  %v6953_v36 = vor.u32 %v9664_v28, %v6952_v27  ;;  %v6698_v55 = vld [vmem:[%s10692_s24 + $0x38] sm:$0xf0]  ;;  %v7924_v17 = vld [vmem:[%s10690_s30 + $0x700] sm:$0xf] }
  0xbc   : > { %v6733_v38 = vor.u32 %v9606_v29, %v6730_v31  ;;  %v6845_v53 = vor.u32 %v9634_v45, %v6842_v46  ;;  %v9630_v57 = vld [vmem:[%s10692_s24 + $0x12c] sm:$0xf]  ;;  %v6826_v58 = vld [vmem:[%s10692_s24 + $0x138] sm:$0xf0]  ;;  %v9913_v18 = vld [vmem:[%s10690_s30 + $0x73c] sm:$0xf0] }
  0xbd   : > { %7023 = vmatmul.msk.bf16.vlgmr.msrb.gmra.mxu0 %vm1079_vm2, %v10784_v22  ;;  %v9658_v59 = vld [vmem:[%s10692_s24 + $0x20c] sm:$0xf]  ;;  %v6938_v61 = vld [vmem:[%s10692_s24 + $0x218] sm:$0xf0]  ;;  %v6829_v0 = vor.u32 %v9630_v57, %v6826_v58  ;;  %v7220_v21 = vld [vmem:[%s10690_s30 + $0x180] sm:$0xf] }
  0xbe   : > { %1157 = vmatpush.bf16.msrb.mxu2 %v6821_v34  ;;  %1204 = vmatpush.bf16.msra.mxu0 %v1094_v35  ;;  %v9666_v34 = vld [vmem:[%s10692_s24 + $0x24c] sm:$0xf]  ;;  %v6970_v35 = vld [vmem:[%s10692_s24 + $0x258] sm:$0xf0]  ;;  %v6941_v1 = vor.u32 %v9658_v59, %v6938_v61  ;;  %v7860_v27 = vld [vmem:[%s10690_s30 + $0x680] sm:$0xf] }
  0xbf   : > { %1184 = vmatpush.bf16.msrb.mxu1 %v6681_v47  ;;  %1197 = vmatpush.bf16.msrb.mxu3 %v6809_v49  ;;  %v6973_v44 = vor.u32 %v9666_v34, %v6970_v35  ;;  %v9662_v47 = vld [vmem:[%s10692_s24 + $0x22c] sm:$0xf]  ;;  %v6954_v49 = vld [vmem:[%s10692_s24 + $0x238] sm:$0xf0]  ;;  %v9897_v28 = vld [vmem:[%s10690_s30 + $0x6bc] sm:$0xf0] }
  0xc0   : > { %v9594_v2 = vld [vmem:[%s10692_s24 + $0xc] sm:$0xf]  ;;  %v6810_v6 = vld [vmem:[%s10692_s24 + $0x118] sm:$0xf0]  ;;  %v7156_v31 = vld [vmem:[%s10690_s30 + $0x100] sm:$0xf]  ;;  %v7861_v33 = vor.u32 %v9897_v28, %v7860_v27 }
  0xc1   : > { %v9626_v4 = vld [vmem:[%s10692_s24 + $0x10c] sm:$0xf]  ;;  %v9881_v34 = vld [vmem:[%s10690_s30 + $0x63c] sm:$0xf0]  ;;  %v7157_v35 = vor.u32 %v9721_v32, %v7156_v31 }
  0xc2   : > { %1158 = vmatpush.bf16.msrb.mxu2 %v6805_v41  ;;  %1205 = vmatpush.bf16.msra.mxu0 %v7017_v50  ;;  %v7476_v41 = vld [vmem:[%s10690_s30 + $0x380] sm:$0xf]  ;;  %v6813_v12 = vor.u32 %v9626_v4, %v6810_v6  ;;  %v9777_v46 = vld [vmem:[%s10690_s30 + $0x304] sm:$0xf] }
  0xc3   : > { %1229 = vmatpush.bf16.msra.mxu1 %v6925_v52  ;;  %1243 = vmatpush.bf16.msra.mxu3 %v1097_v56  ;;  %v9801_v50 = vld [vmem:[%s10690_s30 + $0x3bc] sm:$0xf0]  ;;  %v6717_v52 = vor.u32 %v9602_v42, %v6714_v43  ;;  %v6957_v56 = vor.u32 %v9662_v47, %v6954_v49  ;;  %v9793_v42 = vld [vmem:[%s10690_s30 + $0x384] sm:$0xf] }
  0xc4   : > { %1185 = vmatmul.bf16.vlgmr.msrb.gmra.mxu1 %v10781_v19  ;;  %1198 = vmatmul.bf16.vlgmr.msrb.gmra.mxu3 %v10786_v24  ;;  %v7477_v60 = vor.u32 %v9801_v50, %v7476_v41  ;;  %v7478_v43 = vld [vmem:[%s10690_s30 + $0x3c0] sm:$0xf0]  ;;  %v7732_v58 = vld [vmem:[%s10690_s30 + $0x580] sm:$0xf] }
  0xc5   : > { %1159 = vmatmul.bf16.vlgmr.msrb.gmra.mxu2 %v10786_v24  ;;  %v7481_v45 = vor.u32 %v9793_v42, %v7478_v43  ;;  %v7414_v47 = vld [vmem:[%s10690_s30 + $0x340] sm:$0xf0]  ;;  %v9865_v59 = vld [vmem:[%s10690_s30 + $0x5bc] sm:$0xf0] }
  0xc6   : > { %1216 = vmatpush.bf16.msra.mxu2 %v6797_v51  ;;  %1206 = vmatpush.bf16.msra.mxu0 %v7001_v62  ;;  %v6937_v51 = vor.u32 %v9660_v40, %v6936_v37  ;;  %v7412_v62 = vld [vmem:[%s10690_s30 + $0x300] sm:$0xf]  ;;  %v7417_v49 = vor.u32 %v9777_v46, %v7414_v47  ;;  %v9761_v41 = vld [vmem:[%s10690_s30 + $0x284] sm:$0xf]  ;;  %v7733_v61 = vor.u32 %v9865_v59, %v7732_v58 }
  0xc7   : > { %1230 = vmatpush.bf16.msra.mxu1 %v6909_v63  ;;  %1244 = vmatpush.bf16.msra.mxu3 %v7021_v3  ;;  %v6701_v63 = vor.u32 %v9598_v54, %v6698_v55  ;;  %v6682_v3 = vld [vmem:[%s10692_s24 + $0x18] sm:$0xf0]  ;;  %v9689_v40 = vld [vmem:[%s10690_s30 + $0x3c] sm:$0xf0] }
  0xc8   : > { %v7350_v50 = vld [vmem:[%s10690_s30 + $0x2c0] sm:$0xf0]  ;;  %v10025_v6 = vld [vmem:[%s10690_s30 + $0xabc] sm:$0xf0] }
  0xc9   : > { %v9729_v55 = vld [vmem:[%s10690_s30 + $0x184] sm:$0xf]  ;;  %v9993_v27 = vld [vmem:[%s10690_s30 + $0x9bc] sm:$0xf0] }
  0xca   : > { %1217 = vmatpush.bf16.msra.mxu2 %v6781_v48  ;;  %1207 = vmatpush.bf16.msra.mxu0 %v6985_v9  ;;  %v9785_v48 = vld [vmem:[%s10690_s30 + $0x33c] sm:$0xf0]  ;;  %v9697_v8 = vld [vmem:[%s10690_s30 + $0x84] sm:$0xf] }
  0xcb   : > { %1231 = vmatpush.bf16.msra.mxu1 %v6893_v11  ;;  %1245 = vmatpush.bf16.msra.mxu3 %v7005_v15  ;;  %v7413_v5 = vor.u32 %v9785_v48, %v7412_v62  ;;  %v7988_v9 = vld [vmem:[%s10690_s30 + $0x780] sm:$0xf]  ;;  %v6685_v11 = vor.u32 %v9594_v2, %v6682_v3  ;;  %v9921_v28 = vld [vmem:[%s10690_s30 + $0x784] sm:$0xf] }
  0xcc   : > { %v9753_v15 = vld [vmem:[%s10690_s30 + $0x23c] sm:$0xf0]  ;;  %v7862_v46 = vld [vmem:[%s10690_s30 + $0x6c0] sm:$0xf0] }
  0xcd   : > { %v7285_v20 = vor.u32 %v9753_v15, %v7284_v14  ;;  %v10041_v62 = vld [vmem:[%s10690_s30 + $0xb3c] sm:$0xf0]  ;;  %v10049_v58 = vld [vmem:[%s10690_s30 + $0xb84] sm:$0xf] }
  0xce   : > { %1218 = vmatpush.bf16.msra.mxu2 %v6765_v10  ;;  %1208 = vmatpush.bf16.msra.mxu0 %v6969_v23  ;;  %v9929_v10 = vld [vmem:[%s10690_s30 + $0x7bc] sm:$0xf0] }
  0xcf   : > { %1232 = vmatpush.bf16.msra.mxu1 %v6877_v26  ;;  %1246 = vmatpush.bf16.msra.mxu3 %v6989_v30  ;;  %v7989_v16 = vor.u32 %v9929_v10, %v7988_v9  ;;  %v9737_v23 = vld [vmem:[%s10690_s30 + $0x1bc] sm:$0xf0]  ;;  %v7094_v9 = vld [vmem:[%s10690_s30 + $0xc0] sm:$0xf0] }
  0xd0   : > { %v8500_v26 = vld [vmem:[%s10690_s30 + $0xb80] sm:$0xf]  ;;  %v7221_v30 = vor.u32 %v9737_v23, %v7220_v21  ;;  %v7097_v10 = vor.u32 %v9697_v8, %v7094_v9 }
  0xd1   : > { %v7668_v2 = vld [vmem:[%s10690_s30 + $0x500] sm:$0xf] }
  0xd2   : > { %1219 = vmatpush.bf16.msra.mxu2 %v6749_v25  ;;  %1209 = vmatpush.bf16.msra.mxu0 %v6953_v36  ;;  %v7925_v25 = vor.u32 %v9913_v18, %v7924_v17  ;;  %v7092_v36 = vld [vmem:[%s10690_s30 + $0x80] sm:$0xf]  ;;  %v9681_v17 = vld [vmem:[%s10690_s30 + $0x4] sm:$0xf] }
  0xd3   : > { %1233 = vmatpush.bf16.msra.mxu1 %v6861_v39  ;;  %1247 = vmatpush.bf16.msra.mxu3 %v6973_v44  ;;  %v7028_v39 = vld [vmem:[%s10690_s30] sm:$0xf]  ;;  %v7030_v18 = vld [vmem:[%s10690_s30 + $0x40] sm:$0xf0] }
  0xd4   : > { %v7029_v44 = vor.u32 %v9689_v40, %v7028_v39  ;;  %v9849_v3 = vld [vmem:[%s10690_s30 + $0x53c] sm:$0xf0] }
  0xd5   : > { %v7669_v4 = vor.u32 %v9849_v3, %v7668_v2  ;;  %v8308_v14 = vld [vmem:[%s10690_s30 + $0xa00] sm:$0xf] }
  0xd6   : > { %1220 = vmatpush.bf16.msra.mxu2 %v6733_v38  ;;  %1210 = vmatpush.bf16.msra.mxu0 %v6937_v51  ;;  %v7353_v51 = vor.u32 %v9761_v41, %v7350_v50  ;;  %v10009_v15 = vld [vmem:[%s10690_s30 + $0xa3c] sm:$0xf0] }
  0xd7   : > { %1234 = vmatpush.bf16.msra.mxu1 %v6845_v53  ;;  %1248 = vmatpush.bf16.msra.mxu3 %v6957_v56  ;;  %v7286_v53 = vld [vmem:[%s10690_s30 + $0x240] sm:$0xf0]  ;;  %v7540_v21 = vld [vmem:[%s10690_s30 + $0x400] sm:$0xf] }
  0xd8   : > { %v7222_v56 = vld [vmem:[%s10690_s30 + $0x1c0] sm:$0xf0]  ;;  %v9817_v23 = vld [vmem:[%s10690_s30 + $0x43c] sm:$0xf0] }
  0xd9   : > { %7024 = vmatmul.msk.bf16.vlgmr.msra.gmra.mxu0 %vm1079_vm2, %v10784_v22  ;;  %v7225_v57 = vor.u32 %v9729_v55, %v7222_v56  ;;  %v10185_v31 = vld [vmem:[%s10690_s30 + $0xfbc] sm:$0xf0] }
  0xda   : > { %1221 = vmatpush.bf16.msra.mxu2 %v6717_v52  ;;  %4339 = vmatpush.bf16.msrb.mxu0 %v7477_v60  ;;  %v9745_v52 = vld [vmem:[%s10690_s30 + $0x204] sm:$0xf]  ;;  %v8436_v60 = vld [vmem:[%s10690_s30 + $0xb00] sm:$0xf] }
  0xdb   : > { %1235 = vmatpush.bf16.msra.mxu1 %v6829_v0  ;;  %1249 = vmatpush.bf16.msra.mxu3 %v6941_v1  ;;  %v7289_v54 = vor.u32 %v9745_v52, %v7286_v53  ;;  %v8437_v48 = vor.u32 %v10041_v62, %v8436_v60  ;;  %v7158_v0 = vld [vmem:[%s10690_s30 + $0x140] sm:$0xf0]  ;;  %v8116_v42 = vld [vmem:[%s10690_s30 + $0x880] sm:$0xf] }
  0xdc   : > { %v9961_v43 = vld [vmem:[%s10690_s30 + $0x8bc] sm:$0xf0]  ;;  %v8502_v60 = vld [vmem:[%s10690_s30 + $0xbc0] sm:$0xf0] }
  0xdd   : > { %v8884_v47 = vld [vmem:[%s10690_s30 + $0xe80] sm:$0xf] }
  0xde   : > { %1222 = vmatpush.bf16.msra.mxu2 %v6701_v63  ;;  %4340 = vmatpush.bf16.msrb.mxu0 %v7413_v5  ;;  %v9713_v63 = vld [vmem:[%s10690_s30 + $0x104] sm:$0xf]  ;;  %v8372_v5 = vld [vmem:[%s10690_s30 + $0xa80] sm:$0xf] }
  0xdf   : > { %7025 = vmatmul.msk.bf16.vlgmr.msra.gmra.mxu3 %vm1079_vm2, %v10784_v22  ;;  %1236 = vmatpush.bf16.msra.mxu1 %v6813_v12  ;;  %v10057_v22 = vld [vmem:[%s10690_s30 + $0xbbc] sm:$0xf0]  ;;  %v7161_v1 = vor.u32 %v9713_v63, %v7158_v0  ;;  %v8373_v7 = vor.u32 %v10025_v6, %v8372_v5  ;;  %v9857_v0 = vld [vmem:[%s10690_s30 + $0x584] sm:$0xf] }
  0xe0   : > { %v8501_v29 = vor.u32 %v10057_v22, %v8500_v26  ;;  %v9833_v12 = vld [vmem:[%s10690_s30 + $0x4bc] sm:$0xf0]  ;;  %v8438_v5 = vld [vmem:[%s10690_s30 + $0xb40] sm:$0xf0] }
  0xe1   : > { %v8244_v26 = vld [vmem:[%s10690_s30 + $0x980] sm:$0xf] }
  0xe2   : > { %1223 = vmatpush.bf16.msra.mxu2 %v6685_v11  ;;  %4341 = vmatpush.bf16.msrb.mxu0 %v7349_v13  ;;  %v7604_v11 = vld [vmem:[%s10690_s30 + $0x480] sm:$0xf]  ;;  %v8245_v22 = vor.u32 %v9993_v27, %v8244_v26  ;;  %v9825_v26 = vld [vmem:[%s10690_s30 + $0x484] sm:$0xf] }
  0xe3   : > { %1237 = vmatmul.bf16.vlgmr.msra.gmra.mxu1 %v10786_v24  ;;  %4365 = vmatpush.bf16.msrb.mxu3 %v8501_v29  ;;  %v9705_v24 = vld [vmem:[%s10690_s30 + $0xbc] sm:$0xf0]  ;;  %v7605_v13 = vor.u32 %v9833_v12, %v7604_v11  ;;  %v7990_v29 = vld [vmem:[%s10690_s30 + $0x7c0] sm:$0xf0] }
  0xe4   : > { %v7093_v38 = vor.u32 %v9705_v24, %v7092_v36  ;;  %v7993_v32 = vor.u32 %v9921_v28, %v7990_v29  ;;  %v7926_v24 = vld [vmem:[%s10690_s30 + $0x740] sm:$0xf0]  ;;  %v10988_v41 = vld [vmem:[%s499_s22] sm:$0xf] }
  0xe5   : > { %1224 = vmatmul.bf16.vlgmr.msra.gmra.mxu2 %v10781_v19  ;;  %v7796_v19 = vld [vmem:[%s10690_s30 + $0x600] sm:$0xf]  ;;  %v621_v55 = vperm.slane %v10988_v41, 0  ;;  %v9841_v12 = vld [vmem:[%s10690_s30 + $0x504] sm:$0xf] }
  0xe6   : > { %4352 = vmatpush.bf16.msrb.mxu2 %v7989_v16  ;;  %4342 = vmatpush.bf16.msrb.mxu0 %v7285_v20  ;;  %v7797_v37 = vor.u32 %v9881_v34, %v7796_v19  ;;  %v8309_v16 = vor.u32 %v10009_v15, %v8308_v14  ;;  %v7033_v20 = vor.u32 %v9681_v17, %v7030_v18  ;;  %v8180_v19 = vld [vmem:[%s10690_s30 + $0x900] sm:$0xf]  ;;  %v10017_v15 = vld [vmem:[%s10690_s30 + $0xa84] sm:$0xf] }
  0xe7   : > { %4366 = vmatpush.bf16.msrb.mxu3 %v8437_v48  ;;  %v9977_v34 = vld [vmem:[%s10690_s30 + $0x93c] sm:$0xf0]  ;;  %v8505_v48 = vor.u32 %v10049_v58, %v8502_v60  ;;  %v7606_v27 = vld [vmem:[%s10690_s30 + $0x4c0] sm:$0xf0] }
  0xe8   : > { %v8181_v36 = vor.u32 %v9977_v34, %v8180_v19  ;;  %v8052_v52 = vld [vmem:[%s10690_s30 + $0x800] sm:$0xf]  ;;  %v9802_v19 = vld [vmem:[%s10690_s30 + $0x3c4] sm:$0xf0]  ;;  %v9969_v60 = vld [vmem:[%s10690_s30 + $0x904] sm:$0xf] }
  0xe9   : > { %v9945_v53 = vld [vmem:[%s10690_s30 + $0x83c] sm:$0xf0] }
  0xea   : > { %4353 = vmatpush.bf16.msrb.mxu2 %v7925_v25  ;;  %4343 = vmatpush.bf16.msrb.mxu0 %v7221_v30  ;;  %v7541_v25 = vor.u32 %v9817_v23, %v7540_v21  ;;  %v9012_v30 = vld [vmem:[%s10690_s30 + $0xf80] sm:$0xf]  ;;  %v8053_v56 = vor.u32 %v9945_v53, %v8052_v52  ;;  %v10177_v53 = vld [vmem:[%s10690_s30 + $0xf84] sm:$0xf] }
  0xeb   : > { %4367 = vmatpush.bf16.msrb.mxu3 %v8373_v7  ;;  %v10137_v62 = vld [vmem:[%s10690_s30 + $0xe3c] sm:$0xf0] }
  0xec   : > { %v8756_v6 = vld [vmem:[%s10690_s30 + $0xd80] sm:$0xf] }
  0xed   : > { %v10105_v21 = vld [vmem:[%s10690_s30 + $0xd3c] sm:$0xf0] }
  0xee   : > { %4354 = vmatpush.bf16.msrb.mxu2 %v7861_v33  ;;  %4344 = vmatpush.bf16.msrb.mxu0 %v7157_v35  ;;  %v9013_v33 = vor.u32 %v10185_v31, %v9012_v30  ;;  %v9905_v35 = vld [vmem:[%s10690_s30 + $0x704] sm:$0xf]  ;;  %v7609_v30 = vor.u32 %v9825_v26, %v7606_v27  ;;  %v10073_v52 = vld [vmem:[%s10690_s30 + $0xc3c] sm:$0xf0]  ;;  %v7164_v27 = vld [vmem:[%s10690_s30 + $0x108] sm:$0xf] }
  0xef   : > { %4368 = vmatpush.bf16.msrb.mxu3 %v8309_v16  ;;  %v7929_v39 = vor.u32 %v9905_v35, %v7926_v24  ;;  %v8374_v16 = vld [vmem:[%s10690_s30 + $0xac0] sm:$0xf0]  ;;  %v10089_v24 = vld [vmem:[%s10690_s30 + $0xcbc] sm:$0xf0] }
  0xf0   : > { %4378 = vmatpush.bf16.msrb.mxu1 %v9013_v33  ;;  %v8377_v18 = vor.u32 %v10017_v15, %v8374_v16  ;;  %v10001_v31 = vld [vmem:[%s10690_s30 + $0xa04] sm:$0xf]  ;;  %v7228_v15 = vld [vmem:[%s10690_s30 + $0x188] sm:$0xf] }
  0xf1   : > { %v9738_v16 = vld [vmem:[%s10690_s30 + $0x1c4] sm:$0xf0] }
  0xf2   : > { %4355 = vmatpush.bf16.msrb.mxu2 %v7797_v37  ;;  %4345 = vmatpush.bf16.msrb.mxu0 %v7093_v38  ;;  %v8948_v37 = vld [vmem:[%s10690_s30 + $0xf00] sm:$0xf]  ;;  %v7229_v26 = vor.u32 %v9738_v16, %v7228_v15  ;;  %v9746_v15 = vld [vmem:[%s10690_s30 + $0x20c] sm:$0xf] }
  0xf3   : > { %4369 = vmatpush.bf16.msrb.mxu3 %v8245_v22  ;;  %v10169_v38 = vld [vmem:[%s10690_s30 + $0xf3c] sm:$0xf0]  ;;  %v7484_v22 = vld [vmem:[%s10690_s30 + $0x388] sm:$0xf]  ;;  %v7294_v16 = vld [vmem:[%s10690_s30 + $0x248] sm:$0xf0] }
  0xf4   : > { %v8949_v40 = vor.u32 %v10169_v38, %v8948_v37 }
  0xf6   : > { %4346 = vmatpush.bf16.msrb.mxu0 %v7029_v44  ;;  %4356 = vmatpush.bf16.msrb.mxu2 %v7733_v61  ;;  %v9889_v44 = vld [vmem:[%s10690_s30 + $0x684] sm:$0xf]  ;;  %v8820_v61 = vld [vmem:[%s10690_s30 + $0xe00] sm:$0xf] }
  0xf7   : > { %4370 = vmatpush.bf16.msrb.mxu3 %v8181_v36  ;;  %4379 = vmatpush.bf16.msrb.mxu1 %v8949_v40  ;;  %v7865_v50 = vor.u32 %v9889_v44, %v7862_v46  ;;  %v8821_v63 = vor.u32 %v10137_v62, %v8820_v61  ;;  %v8628_v36 = vld [vmem:[%s10690_s30 + $0xc80] sm:$0xf]  ;;  %v7542_v40 = vld [vmem:[%s10690_s30 + $0x440] sm:$0xf0]  ;;  %v7356_v62 = vld [vmem:[%s10690_s30 + $0x288] sm:$0xf] }
  0xf8   : > { %v8629_v37 = vor.u32 %v10089_v24, %v8628_v36  ;;  %v9985_v44 = vld [vmem:[%s10690_s30 + $0x984] sm:$0xf] }
  0xf9   : > { %v8182_v61 = vld [vmem:[%s10690_s30 + $0x940] sm:$0xf0] }
  0xfa   : > { %4391 = vmatpush.bf16.msra.mxu0 %v7481_v45  ;;  %4357 = vmatpush.bf16.msrb.mxu2 %v7669_v4  ;;  %v8117_v45 = vor.u32 %v9961_v43, %v8116_v42  ;;  %v10033_v4 = vld [vmem:[%s10690_s30 + $0xb04] sm:$0xf]  ;;  %v7485_v42 = vor.u32 %v9802_v19, %v7484_v22  ;;  %v622_v22 = vperm.slane %v10988_v41, 1  ;;  %v7100_v19 = vld [vmem:[%s10690_s30 + $0x88] sm:$0xf] }
  0xfb   : > { %v8441_v9 = vor.u32 %v10033_v4, %v8438_v5  ;;  %v9953_v4 = vld [vmem:[%s10690_s30 + $0x884] sm:$0xf] }
  0xfc   : > { %4371 = vmatpush.bf16.msrb.mxu3 %v8117_v45  ;;  %v8246_v45 = vld [vmem:[%s10690_s30 + $0x9c0] sm:$0xf0] }
  0xfd   : > { %v8118_v5 = vld [vmem:[%s10690_s30 + $0x8c0] sm:$0xf0] }
  0xfe   : > { %4392 = vmatpush.bf16.msra.mxu0 %v7417_v49  ;;  %4358 = vmatpush.bf16.msrb.mxu2 %v7605_v13  ;;  %v10153_v49 = vld [vmem:[%s10690_s30 + $0xebc] sm:$0xf0]  ;;  %v7670_v13 = vld [vmem:[%s10690_s30 + $0x540] sm:$0xf0] }
  0xff   : > { %v7673_v14 = vor.u32 %v9841_v12, %v7670_v13  ;;  %v9937_v13 = vld [vmem:[%s10690_s30 + $0x804] sm:$0xf] }
 0x100   : > { %4372 = vmatpush.bf16.msrb.mxu3 %v8053_v56  ;;  %v10097_v24 = vld [vmem:[%s10690_s30 + $0xd04] sm:$0xf] }
 0x102   : > { %4393 = vmatpush.bf16.msra.mxu0 %v7353_v51  ;;  %4359 = vmatpush.bf16.msrb.mxu2 %v7541_v25  ;;  %v8885_v51 = vor.u32 %v10153_v49, %v8884_v47  ;;  %v7420_v47 = vld [vmem:[%s10690_s30 + $0x308] sm:$0xf] }
 0x103   : > { %v9786_v49 = vld [vmem:[%s10690_s30 + $0x344] sm:$0xf0] }
 0x104   : > { %4380 = vmatpush.bf16.msrb.mxu1 %v8885_v51  ;;  %4417 = vmatpush.bf16.msra.mxu3 %v8505_v48  ;;  %v8564_v51 = vld [vmem:[%s10690_s30 + $0xc00] sm:$0xf]  ;;  %v7421_v58 = vor.u32 %v9786_v49, %v7420_v47  ;;  %v9770_v48 = vld [vmem:[%s10690_s30 + $0x2c4] sm:$0xf0]  ;;  %v7486_v49 = vld [vmem:[%s10690_s30 + $0x3c8] sm:$0xf0] }
 0x105   : > { %v8565_v56 = vor.u32 %v10073_v52, %v8564_v51  ;;  %v8630_v51 = vld [vmem:[%s10690_s30 + $0xcc0] sm:$0xf0] }
 0x106   : > { %4394 = vmatpush.bf16.msra.mxu0 %v7289_v54  ;;  %4404 = vmatpush.bf16.msra.mxu2 %v7993_v32  ;;  %v9873_v54 = vld [vmem:[%s10690_s30 + $0x604] sm:$0xf] }
 0x107   : > { %v8310_v32 = vld [vmem:[%s10690_s30 + $0xa40] sm:$0xf0] }
 0x108   : > { %4381 = vmatpush.bf16.msrb.mxu1 %v8821_v63  ;;  %4418 = vmatpush.bf16.msra.mxu3 %v8441_v9  ;;  %v8313_v35 = vor.u32 %v10001_v31, %v8310_v32  ;;  %v8185_v63 = vor.u32 %v9969_v60, %v8182_v61  ;;  %v10145_v9 = vld [vmem:[%s10690_s30 + $0xe84] sm:$0xf]  ;;  %v7422_v61 = vld [vmem:[%s10690_s30 + $0x348] sm:$0xf0] }
 0x109   : > { %v8758_v31 = vld [vmem:[%s10690_s30 + $0xdc0] sm:$0xf0] }
 0x10a   : > { %4395 = vmatpush.bf16.msra.mxu0 %v7225_v57  ;;  %4405 = vmatpush.bf16.msra.mxu2 %v7929_v39  ;;  %v7798_v57 = vld [vmem:[%s10690_s30 + $0x640] sm:$0xf0] }
 0x10b   : > { %v7801_v59 = vor.u32 %v9873_v54, %v7798_v57  ;;  %v9809_v39 = vld [vmem:[%s10690_s30 + $0x404] sm:$0xf] }
 0x10c   : > { %4419 = vmatpush.bf16.msra.mxu3 %v8377_v18  ;;  %v7545_v43 = vor.u32 %v9809_v39, %v7542_v40  ;;  %v9014_v54 = vld [vmem:[%s10690_s30 + $0xfc0] sm:$0xf0] }
 0x10d   : > { %v9017_v57 = vor.u32 %v10177_v53, %v9014_v54 }
 0x10e   : > { %4396 = vmatpush.bf16.msra.mxu0 %v7161_v1  ;;  %4406 = vmatpush.bf16.msra.mxu2 %v7865_v50  ;;  %v7734_v1 = vld [vmem:[%s10690_s30 + $0x5c0] sm:$0xf0]  ;;  %v8249_v50 = vor.u32 %v9985_v44, %v8246_v45  ;;  %v9794_v44 = vld [vmem:[%s10690_s30 + $0x38c] sm:$0xf] }
 0x10f   : > { %v7737_v3 = vor.u32 %v9857_v0, %v7734_v1  ;;  %v10161_v0 = vld [vmem:[%s10690_s30 + $0xf04] sm:$0xf] }
 0x110   : > { %4420 = vmatpush.bf16.msra.mxu3 %v8313_v35  ;;  %v8950_v1 = vld [vmem:[%s10690_s30 + $0xf40] sm:$0xf0] }
 0x112   : > { %4397 = vmatpush.bf16.msra.mxu0 %v7097_v10  ;;  %4407 = vmatpush.bf16.msra.mxu2 %v7801_v59  ;;  %v10121_v10 = vld [vmem:[%s10690_s30 + $0xdbc] sm:$0xf0] }
 0x113   : > { %v8757_v11 = vor.u32 %v10121_v10, %v8756_v6  ;;  %v7292_v6 = vld [vmem:[%s10690_s30 + $0x208] sm:$0xf]  ;;  %v8886_v10 = vld [vmem:[%s10690_s30 + $0xec0] sm:$0xf0] }
 0x114   : > { %4421 = vmatpush.bf16.msra.mxu3 %v8249_v50  ;;  %v10081_v50 = vld [vmem:[%s10690_s30 + $0xc84] sm:$0xf] }
 0x115   : > { %4382 = vmatpush.bf16.msrb.mxu1 %v8757_v11  ;;  %v8889_v11 = vor.u32 %v10145_v9, %v8886_v10  ;;  %v8633_v52 = vor.u32 %v10081_v50, %v8630_v51  ;;  %v7358_v9 = vld [vmem:[%s10690_s30 + $0x2c8] sm:$0xf0] }
 0x116   : > { %4398 = vmatpush.bf16.msra.mxu0 %v7033_v20  ;;  %4408 = vmatpush.bf16.msra.mxu2 %v7737_v3  ;;  %v8692_v20 = vld [vmem:[%s10690_s30 + $0xd00] sm:$0xf]  ;;  %v7357_v3 = vor.u32 %v9770_v48, %v7356_v62  ;;  %v10065_v62 = vld [vmem:[%s10690_s30 + $0xc04] sm:$0xf]  ;;  %v9698_v50 = vld [vmem:[%s10690_s30 + $0x8c] sm:$0xf] }
 0x117   : > { %v8693_v23 = vor.u32 %v10105_v21, %v8692_v20  ;;  %v10129_v20 = vld [vmem:[%s10690_s30 + $0xe04] sm:$0xf]  ;;  %v7102_v51 = vld [vmem:[%s10690_s30 + $0xc8] sm:$0xf0] }
 0x118   : > { %4422 = vmatpush.bf16.msra.mxu3 %v8185_v63  ;;  %v8822_v21 = vld [vmem:[%s10690_s30 + $0xe40] sm:$0xf0] }
 0x119   : > { %4383 = vmatpush.bf16.msrb.mxu1 %v8693_v23  ;;  %v8825_v23 = vor.u32 %v10129_v20, %v8822_v21  ;;  %v8566_v63 = vld [vmem:[%s10690_s30 + $0xc40] sm:$0xf0]  ;;  %v7804_v20 = vld [vmem:[%s10690_s30 + $0x608] sm:$0xf] }
 0x11a   : > { %4409 = vmatpush.bf16.msra.mxu2 %v7673_v14  ;;  %v8054_v14 = vld [vmem:[%s10690_s30 + $0x840] sm:$0xf0] }
 0x11b   : > { %v8057_v18 = vor.u32 %v9937_v13, %v8054_v14  ;;  %v9898_v13 = vld [vmem:[%s10690_s30 + $0x6c4] sm:$0xf0] }
 0x11d   : > { %4384 = vmatpush.bf16.msrb.mxu1 %v8629_v37  ;;  %v8694_v37 = vld [vmem:[%s10690_s30 + $0xd40] sm:$0xf0] }
 0x11e   : > { %v1108_v2 = vpop.f32.mrf.mxu0  ;;  %4410 = vmatpush.bf16.msra.mxu2 %v7609_v30  ;;  %v10113_v30 = vld [vmem:[%s10690_s30 + $0xd84] sm:$0xf] }
 0x11f   : > { %v1109_v7 = vadd.f32 %v1108_v2, %v621_v55  ;;  %v8953_v2 = vor.u32 %v10161_v0, %v8950_v1  ;;  %v8761_v32 = vor.u32 %v10113_v30, %v8758_v31  ;;  %v7230_v30 = vld [vmem:[%s10690_s30 + $0x1c8] sm:$0xf0] }
 0x121   : > { %v1121_v8 = vpop.f32.mrf.mxu1  ;;  %4385 = vmatpush.bf16.msrb.mxu1 %v8565_v56  ;;  %v7996_v56 = vld [vmem:[%s10690_s30 + $0x788] sm:$0xf] }
 0x122   : > { %v1122_v17 = vadd.f32 %v1121_v8, %v1109_v7  ;;  %4411 = vmatpush.bf16.msra.mxu2 %v7545_v43  ;;  %v9754_v7 = vld [vmem:[%s10690_s30 + $0x244] sm:$0xf0]  ;;  %v8121_v8 = vor.u32 %v9953_v4, %v8118_v5  ;;  %v8569_v4 = vor.u32 %v10065_v62, %v8566_v63  ;;  %v9682_v62 = vld [vmem:[%s10690_s30 + $0xc] sm:$0xf] }
 0x123   : > { %v7293_v12 = vor.u32 %v9754_v7, %v7292_v6  ;;  %v9690_v43 = vld [vmem:[%s10690_s30 + $0x44] sm:$0xf0] }
 0x124   : > { %4423 = vmatpush.bf16.msra.mxu3 %v8121_v8  ;;  %v9762_v8 = vld [vmem:[%s10690_s30 + $0x28c] sm:$0xf] }
 0x125   : > { %4430 = vmatpush.bf16.msra.mxu1 %v9017_v57  ;;  %v9930_v57 = vld [vmem:[%s10690_s30 + $0x7c4] sm:$0xf0]  ;;  %v7361_v14 = vor.u32 %v9762_v8, %v7358_v9 }
 0x126   : > { %v1110_v29 = vpop.f32.mrf.mxu0  ;;  %v7997_v48 = vor.u32 %v9930_v57, %v7996_v56  ;;  %v7612_v56 = vld [vmem:[%s10690_s30 + $0x488] sm:$0xf] }
 0x127   : > { %v11011_v25 = vpop.f32.mrf.mxu3  ;;  %v9834_v57 = vld [vmem:[%s10690_s30 + $0x4c4] sm:$0xf0] }
 0x128   : > { %v1134_v28 = vpop.f32.mrf.mxu2  ;;  %4424 = vmatpush.bf16.msra.mxu3 %v8057_v18  ;;  %v1148_v36 = vadd.f32 %v11011_v25, %v622_v22 }
 0x129   : > { %v1135_v33 = vadd.f32 %v1134_v28, %v1122_v17  ;;  %v1123_v34 = vpop.f32.mrf.mxu1  ;;  %4431 = vmatpush.bf16.msra.mxu1 %v8953_v2  ;;  %v9722_v28 = vld [vmem:[%s10690_s30 + $0x144] sm:$0xf0] }
 0x12a   : > { %v9706_v34 = vld [vmem:[%s10690_s30 + $0xc4] sm:$0xf0] }
 0x12b   : > { %v1255_v38 = vmax.f32 %v1135_v33, 0.0  ;;  %v7165_v33 = vor.u32 %v9722_v28, %v7164_v27  ;;  %v7101_v39 = vor.u32 %v9706_v34, %v7100_v19  ;;  %v7932_v2 = vld [vmem:[%s10690_s30 + $0x708] sm:$0xf]  ;;  %v7297_v28 = vor.u32 %v9746_v15, %v7294_v16 }
 0x12c   : > { %v10058_v27 = vld [vmem:[%s10690_s30 + $0xbc4] sm:$0xf0] }
 0x12d   : > { %v11025_v46 = vpack.c.bf16 %v1255_v38, %v1255_v38  ;;  %4432 = vmatpush.bf16.msra.mxu1 %v8889_v11  ;;  %v8697_v38 = vor.u32 %v10097_v24, %v8694_v37  ;;  %v9866_v34 = vld [vmem:[%s10690_s30 + $0x5c4] sm:$0xf0]  ;;  %v9714_v37 = vld [vmem:[%s10690_s30 + $0x10c] sm:$0xf] }
 0x12f   : > { %4347 = vmatmul.bf16.vlgmr.msrb.gmra.mxu0 %v11025_v46  ;;  %v1149_v55 = vpop.f32.mrf.mxu3 }
 0x130   : > { %4443 = vmatpush.bf16.msrb.mxu0 %v7485_v42  ;;  %v1136_v59 = vpop.f32.mrf.mxu2  ;;  %v7036_v42 = vld [vmem:[%s10690_s30 + $0x8] sm:$0xf]  ;;  %v623_v55 = vperm.slane %v10988_v41, 2 }
 0x131   : > { %4433 = vmatpush.bf16.msra.mxu1 %v8825_v23  ;;  %v7037_v54 = vor.u32 %v9690_v43, %v7036_v42  ;;  %v9778_v59 = vld [vmem:[%s10690_s30 + $0x30c] sm:$0xf]  ;;  %v9882_v23 = vld [vmem:[%s10690_s30 + $0x644] sm:$0xf0] }
 0x132   : > { %v7425_v5 = vor.u32 %v9778_v59, %v7422_v61  ;;  %v7805_v31 = vor.u32 %v9882_v23, %v7804_v20  ;;  %v7676_v43 = vld [vmem:[%s10690_s30 + $0x508] sm:$0xf]  ;;  %v9787_v23 = vld [vmem:[%s10690_s30 + $0x34c] sm:$0xf0] }
 0x133   : > { %v10010_v59 = vld [vmem:[%s10690_s30 + $0xa44] sm:$0xf0] }
 0x134   : > { %4444 = vmatpush.bf16.msrb.mxu0 %v7421_v58  ;;  %v7489_v58 = vor.u32 %v9794_v44, %v7486_v49  ;;  %v9850_v44 = vld [vmem:[%s10690_s30 + $0x544] sm:$0xf0] }
 0x135   : > { %4434 = vmatpush.bf16.msra.mxu1 %v8761_v32  ;;  %v10186_v20 = vld [vmem:[%s10690_s30 + $0xfc4] sm:$0xf0] }
 0x138   : > { %4445 = vmatpush.bf16.msrb.mxu0 %v7357_v3  ;;  %v9914_v3 = vld [vmem:[%s10690_s30 + $0x744] sm:$0xf0] }
 0x139   : > { %4435 = vmatpush.bf16.msra.mxu1 %v8697_v38  ;;  %v7933_v10 = vor.u32 %v9914_v3, %v7932_v2  ;;  %v7166_v38 = vld [vmem:[%s10690_s30 + $0x148] sm:$0xf0]  ;;  %v7492_v2 = vld [vmem:[%s10690_s30 + $0x390] sm:$0xf] }
 0x13a   : > { %v1173_v17 = vpop.f32.mrf.mxu0  ;;  %v9803_v3 = vld [vmem:[%s10690_s30 + $0x3cc] sm:$0xf0] }
 0x13c   : > { %4446 = vmatpush.bf16.msrb.mxu0 %v7293_v12  ;;  %v7868_v12 = vld [vmem:[%s10690_s30 + $0x688] sm:$0xf] }
 0x13d   : > { %4436 = vmatpush.bf16.msra.mxu1 %v8633_v52  ;;  %v7869_v18 = vor.u32 %v9898_v13, %v7868_v12  ;;  %v7998_v12 = vld [vmem:[%s10690_s30 + $0x7c8] sm:$0xf0]  ;;  %v7493_v13 = vor.u32 %v9803_v3, %v7492_v2 }
 0x13f   : > { %4399 = vmatmul.bf16.vlgmr.msra.gmra.mxu0 %v11025_v46 }
 0x140   : > { %4447 = vmatpush.bf16.msrb.mxu0 %v7229_v26  ;;  %v8508_v26 = vld [vmem:[%s10690_s30 + $0xb88] sm:$0xf] }
 0x141   : > { %v1186_v29 = vpop.f32.mrf.mxu1  ;;  %4437 = vmatpush.bf16.msra.mxu1 %v8569_v4  ;;  %v8509_v32 = vor.u32 %v10058_v27, %v8508_v26  ;;  %v7548_v4 = vld [vmem:[%s10690_s30 + $0x408] sm:$0xf] }
 0x142   : > { %v1175_v35 = vpop.f32.mrf.mxu0  ;;  %v1187_v1 = vadd.f32 %v1186_v29, %v623_v55  ;;  %v9730_v29 = vld [vmem:[%s10690_s30 + $0x18c] sm:$0xf]  ;;  %v8188_v27 = vld [vmem:[%s10690_s30 + $0x908] sm:$0xf] }
 0x143   : > { %v8444_v35 = vld [vmem:[%s10690_s30 + $0xb08] sm:$0xf]  ;;  %v7233_v24 = vor.u32 %v9730_v29, %v7230_v30  ;;  %v9906_v29 = vld [vmem:[%s10690_s30 + $0x70c] sm:$0xf] }
 0x144   : > { %4448 = vmatpush.bf16.msrb.mxu0 %v7165_v33  ;;  %v7740_v33 = vld [vmem:[%s10690_s30 + $0x588] sm:$0xf]  ;;  %v7934_v30 = vld [vmem:[%s10690_s30 + $0x748] sm:$0xf0] }
 0x147   : > { %v1199_v45 = vpop.f32.mrf.mxu3 }
 0x148   : > { %v1160_v40 = vpop.f32.mrf.mxu2  ;;  %4449 = vmatpush.bf16.msrb.mxu0 %v7101_v39  ;;  %v1200_v11 = vadd.f32 %v1199_v45, %v1187_v1  ;;  %v8380_v45 = vld [vmem:[%s10690_s30 + $0xa88] sm:$0xf] }
 0x149   : > { %v1161_v47 = vadd.f32 %v1160_v40, %v1148_v36  ;;  %v1188_v25 = vpop.f32.mrf.mxu1  ;;  %v10042_v36 = vld [vmem:[%s10690_s30 + $0xb44] sm:$0xf0]  ;;  %v7741_v40 = vor.u32 %v9866_v34, %v7740_v33 }
 0x14a   : > { %v8445_v42 = vor.u32 %v10042_v36, %v8444_v35  ;;  %v7169_v25 = vor.u32 %v9714_v37, %v7166_v38  ;;  %v8956_v34 = vld [vmem:[%s10690_s30 + $0xf08] sm:$0xf]  ;;  %v7364_v37 = vld [vmem:[%s10690_s30 + $0x290] sm:$0xf] }
 0x14b   : > { %v1174_v53 = vadd.f32 %v1173_v17, %v1161_v47  ;;  %v10026_v47 = vld [vmem:[%s10690_s30 + $0xac4] sm:$0xf0]  ;;  %v9771_v38 = vld [vmem:[%s10690_s30 + $0x2cc] sm:$0xf0] }
 0x14c   : > { %4450 = vmatpush.bf16.msrb.mxu0 %v7037_v54  ;;  %v7677_v54 = vor.u32 %v9850_v44, %v7676_v43  ;;  %v8381_v55 = vor.u32 %v10026_v47, %v8380_v45  ;;  %v9890_v43 = vld [vmem:[%s10690_s30 + $0x68c] sm:$0xf]  ;;  %v7365_v47 = vor.u32 %v9771_v38, %v7364_v37  ;;  %v8636_v37 = vld [vmem:[%s10690_s30 + $0xc88] sm:$0xf] }
 0x14d   : > { %v1256_v60 = vmax.f32 %v1174_v53, 0.0  ;;  %v624_v53 = vperm.slane %v10988_v41, 3  ;;  %v7613_v41 = vor.u32 %v9834_v57, %v7612_v56  ;;  %v7870_v44 = vld [vmem:[%s10690_s30 + $0x6c8] sm:$0xf0]  ;;  %v10090_v38 = vld [vmem:[%s10690_s30 + $0xcc4] sm:$0xf0] }
 0x14e   : > { %v9874_v56 = vld [vmem:[%s10690_s30 + $0x60c] sm:$0xf] }
 0x14f   : > { %v11076_v0 = vpack.c.bf16 %v1256_v60, %v1256_v60  ;;  %v1201_v7 = vpop.f32.mrf.mxu3  ;;  %4451 = vmatmul.bf16.vlgmr.msrb.gmra.mxu0 %v11025_v46  ;;  %v7105_v60 = vor.u32 %v9698_v50, %v7102_v51  ;;  %v10154_v50 = vld [vmem:[%s10690_s30 + $0xec4] sm:$0xf0]  ;;  %v7300_v51 = vld [vmem:[%s10690_s30 + $0x210] sm:$0xf]  ;;  %v7806_v57 = vld [vmem:[%s10690_s30 + $0x648] sm:$0xf0] }
 0x150   : > { %4495 = vmatpush.bf16.msra.mxu0 %v7489_v58  ;;  %v1162_v6 = vpop.f32.mrf.mxu2  ;;  %v8316_v58 = vld [vmem:[%s10690_s30 + $0xa08] sm:$0xf]  ;;  %v7809_v2 = vor.u32 %v9874_v56, %v7806_v57 }
 0x151   : > { %4360 = vmatmul.bf16.vlgmr.msrb.gmra.mxu2 %v11076_v0  ;;  %v8317_v1 = vor.u32 %v10010_v59, %v8316_v58  ;;  %v8252_v6 = vld [vmem:[%s10690_s30 + $0x988] sm:$0xf]  ;;  %v10050_v58 = vld [vmem:[%s10690_s30 + $0xb8c] sm:$0xf] }
 0x152   : > { %4456 = vmatpush.bf16.msrb.mxu2 %v7997_v48  ;;  %v7038_v48 = vld [vmem:[%s10690_s30 + $0x48] sm:$0xf0]  ;;  %v9994_v7 = vld [vmem:[%s10690_s30 + $0x9c4] sm:$0xf0] }
 0x153   : > { %v8510_v59 = vld [vmem:[%s10690_s30 + $0xbc8] sm:$0xf0]  ;;  %v8572_v56 = vld [vmem:[%s10690_s30 + $0xc08] sm:$0xf] }
 0x154   : > { %4496 = vmatpush.bf16.msra.mxu0 %v7425_v5  ;;  %v9818_v5 = vld [vmem:[%s10690_s30 + $0x444] sm:$0xf0]  ;;  %v8513_v3 = vor.u32 %v10050_v58, %v8510_v59 }
 0x155   : > { %v10074_v57 = vld [vmem:[%s10690_s30 + $0xc44] sm:$0xf0] }
 0x156   : > { %4457 = vmatpush.bf16.msrb.mxu2 %v7933_v10  ;;  %v1212_v17 = vpop.f32.mrf.mxu0  ;;  %v7041_v10 = vor.u32 %v9682_v62, %v7038_v48  ;;  %v8828_v62 = vld [vmem:[%s10690_s30 + $0xe08] sm:$0xf] }
 0x157   : > { %v1213_v21 = vadd.f32 %v1212_v17, %v1200_v11  ;;  %v9922_v11 = vld [vmem:[%s10690_s30 + $0x78c] sm:$0xf]  ;;  %v7549_v17 = vor.u32 %v9818_v5, %v7548_v4 }
 0x158   : > { %4497 = vmatpush.bf16.msra.mxu0 %v7361_v14  ;;  %v9020_v14 = vld [vmem:[%s10690_s30 + $0xf88] sm:$0xf]  ;;  %v8001_v26 = vor.u32 %v9922_v11, %v7998_v12  ;;  %v9858_v4 = vld [vmem:[%s10690_s30 + $0x58c] sm:$0xf]  ;;  %v7172_v12 = vld [vmem:[%s10690_s30 + $0x110] sm:$0xf] }
 0x159   : > { %v1257_v22 = vmax.f32 %v1213_v21, 0.0  ;;  %v7428_v21 = vld [vmem:[%s10690_s30 + $0x310] sm:$0xf]  ;;  %v7742_v5 = vld [vmem:[%s10690_s30 + $0x5c8] sm:$0xf0] }
 0x15a   : > { %4458 = vmatpush.bf16.msrb.mxu2 %v7869_v18  ;;  %v8253_v18 = vor.u32 %v9994_v7, %v8252_v6  ;;  %v7429_v33 = vor.u32 %v9787_v23, %v7428_v21  ;;  %v10034_v6 = vld [vmem:[%s10690_s30 + $0xb0c] sm:$0xf]  ;;  %v10122_v11 = vld [vmem:[%s10690_s30 + $0xdc4] sm:$0xf0] }
 0x15b   : > { %v11095_v19 = vpack.c.bf16 %v1257_v22, %v1257_v22  ;;  %v8446_v7 = vld [vmem:[%s10690_s30 + $0xb48] sm:$0xf0] }
 0x15c   : > { %4498 = vmatpush.bf16.msra.mxu0 %v7297_v28  ;;  %v9978_v28 = vld [vmem:[%s10690_s30 + $0x944] sm:$0xf0] }
 0x15d   : > { %4373 = vmatmul.bf16.vlgmr.msrb.gmra.mxu3 %v11095_v19  ;;  %v8189_v36 = vor.u32 %v9978_v28, %v8188_v27  ;;  %v10106_v27 = vld [vmem:[%s10690_s30 + $0xd44] sm:$0xf0]  ;;  %v7108_v28 = vld [vmem:[%s10690_s30 + $0x90] sm:$0xf] }
 0x15e   : > { %4459 = vmatpush.bf16.msrb.mxu2 %v7805_v31  ;;  %4469 = vmatpush.bf16.msrb.mxu3 %v8509_v32  ;;  %v1214_v39 = vpop.f32.mrf.mxu0  ;;  %v9021_v32 = vor.u32 %v10186_v20, %v9020_v14  ;;  %v7745_v14 = vor.u32 %v9858_v4, %v7742_v5  ;;  %v8382_v20 = vld [vmem:[%s10690_s30 + $0xac8] sm:$0xf0]  ;;  %v9915_v4 = vld [vmem:[%s10690_s30 + $0x74c] sm:$0xf0] }
 0x15f   : > { %v7937_v39 = vor.u32 %v9906_v29, %v7934_v30 }
 0x160   : > { %v1238_v49 = vpop.f32.mrf.mxu1  ;;  %4499 = vmatpush.bf16.msra.mxu0 %v7233_v24  ;;  %v10170_v24 = vld [vmem:[%s10690_s30 + $0xf44] sm:$0xf0] }
 0x161   : > { %4412 = vmatmul.bf16.vlgmr.msra.gmra.mxu2 %v11076_v0  ;;  %v8957_v45 = vor.u32 %v10170_v24, %v8956_v34  ;;  %v8318_v34 = vld [vmem:[%s10690_s30 + $0xa48] sm:$0xf0] }
 0x162   : > { %v1251_v52 = vpop.f32.mrf.mxu3  ;;  %4460 = vmatpush.bf16.msrb.mxu2 %v7741_v40  ;;  %4470 = vmatpush.bf16.msrb.mxu3 %v8445_v42  ;;  %v8124_v40 = vld [vmem:[%s10690_s30 + $0x888] sm:$0xf] }
 0x163   : > { %v9962_v42 = vld [vmem:[%s10690_s30 + $0x8c4] sm:$0xf0] }
 0x164   : > { %4500 = vmatpush.bf16.msra.mxu0 %v7169_v25  ;;  %v8125_v25 = vor.u32 %v9962_v42, %v8124_v40  ;;  %v9691_v40 = vld [vmem:[%s10690_s30 + $0x4c] sm:$0xf0] }
 0x166   : > { %4461 = vmatpush.bf16.msrb.mxu2 %v7677_v54  ;;  %4471 = vmatpush.bf16.msrb.mxu3 %v8381_v55  ;;  %v8060_v54 = vld [vmem:[%s10690_s30 + $0x808] sm:$0xf] }
 0x167   : > { %v9946_v55 = vld [vmem:[%s10690_s30 + $0x844] sm:$0xf0] }
 0x168   : > { %v1225_v61 = vpop.f32.mrf.mxu2  ;;  %v1240_v9 = vpop.f32.mrf.mxu1  ;;  %4501 = vmatpush.bf16.msra.mxu0 %v7105_v60  ;;  %v8061_v48 = vor.u32 %v9946_v55, %v8060_v54  ;;  %v9931_v54 = vld [vmem:[%s10690_s30 + $0x7cc] sm:$0xf0] }
 0x169   : > { %v1226_v63 = vadd.f32 %v1225_v61, %v624_v53  ;;  %v7873_v53 = vor.u32 %v9890_v43, %v7870_v44  ;;  %v9795_v44 = vld [vmem:[%s10690_s30 + $0x394] sm:$0xf] }
 0x16a   : > { %v1253_v16 = vpop.f32.mrf.mxu3  ;;  %4462 = vmatpush.bf16.msrb.mxu2 %v7613_v41  ;;  %4472 = vmatpush.bf16.msrb.mxu3 %v8317_v1  ;;  %v7236_v41 = vld [vmem:[%s10690_s30 + $0x190] sm:$0xf] }
 0x16b   : > { %v1239_v8 = vadd.f32 %v1238_v49, %v1226_v63  ;;  %v8892_v49 = vld [vmem:[%s10690_s30 + $0xe88] sm:$0xf]  ;;  %v9739_v1 = vld [vmem:[%s10690_s30 + $0x1cc] sm:$0xf0]  ;;  %v9842_v16 = vld [vmem:[%s10690_s30 + $0x50c] sm:$0xf] }
 0x16c   : > { %4502 = vmatpush.bf16.msra.mxu0 %v7041_v10  ;;  %v8893_v60 = vor.u32 %v10154_v50, %v8892_v49  ;;  %v10138_v63 = vld [vmem:[%s10690_s30 + $0xe44] sm:$0xf0]  ;;  %v7237_v9 = vor.u32 %v9739_v1, %v7236_v41  ;;  %v7550_v49 = vld [vmem:[%s10690_s30 + $0x448] sm:$0xf0] }
 0x16d   : > { %v1252_v15 = vadd.f32 %v1251_v52, %v1239_v8  ;;  %4425 = vmatmul.bf16.vlgmr.msra.gmra.mxu3 %v11095_v19  ;;  %v9755_v52 = vld [vmem:[%s10690_s30 + $0x24c] sm:$0xf0]  ;;  %v8829_v8 = vor.u32 %v10138_v63, %v8828_v62  ;;  %v8764_v10 = vld [vmem:[%s10690_s30 + $0xd88] sm:$0xf]  ;;  %v8254_v50 = vld [vmem:[%s10690_s30 + $0x9c8] sm:$0xf0] }
 0x16e   : > { %4463 = vmatpush.bf16.msrb.mxu2 %v7549_v17  ;;  %4473 = vmatpush.bf16.msrb.mxu3 %v8253_v18  ;;  %v7301_v61 = vor.u32 %v9755_v52, %v7300_v51  ;;  %v7678_v17 = vld [vmem:[%s10690_s30 + $0x548] sm:$0xf0]  ;;  %v8765_v21 = vor.u32 %v10122_v11, %v8764_v10  ;;  %v8637_v51 = vor.u32 %v10090_v38, %v8636_v37  ;;  %v9779_v62 = vld [vmem:[%s10690_s30 + $0x314] sm:$0xf] }
 0x16f   : > { %v1258_v22 = vmax.f32 %v1252_v15, 0.0  ;;  %4503 = vmatmul.bf16.vlgmr.msra.gmra.mxu0 %v11025_v46  ;;  %v8449_v15 = vor.u32 %v10034_v6, %v8446_v7  ;;  %v10018_v18 = vld [vmem:[%s10690_s30 + $0xa8c] sm:$0xf]  ;;  %v7681_v29 = vor.u32 %v9842_v16, %v7678_v17  ;;  %v7430_v63 = vld [vmem:[%s10690_s30 + $0x350] sm:$0xf0] }
 0x170   : > { %4547 = vmatpush.bf16.msrb.mxu0 %v7493_v13  ;;  %v1227_v31 = vpop.f32.mrf.mxu2  ;;  %v9723_v13 = vld [vmem:[%s10690_s30 + $0x14c] sm:$0xf0]  ;;  %v8385_v30 = vor.u32 %v10018_v18, %v8382_v20  ;;  %v9970_v41 = vld [vmem:[%s10690_s30 + $0x90c] sm:$0xf]  ;;  %v7433_v6 = vor.u32 %v9779_v62, %v7430_v63  ;;  %v9763_v10 = vld [vmem:[%s10690_s30 + $0x294] sm:$0xf] }
 0x171   : > { %v11135_v35 = vpack.c.bf16 %v1258_v22, %v1258_v22  ;;  %4464 = vmatmul.bf16.vlgmr.msrb.gmra.mxu2 %v11076_v0  ;;  %v7173_v23 = vor.u32 %v9723_v13, %v7172_v12  ;;  %v9707_v22 = vld [vmem:[%s10690_s30 + $0xcc] sm:$0xf0]  ;;  %v9826_v31 = vld [vmem:[%s10690_s30 + $0x48c] sm:$0xf]  ;;  %v7366_v12 = vld [vmem:[%s10690_s30 + $0x2d0] sm:$0xf0] }
 0x172   : > { %4508 = vmatpush.bf16.msra.mxu2 %v8001_v26  ;;  %4474 = vmatpush.bf16.msrb.mxu3 %v8189_v36  ;;  %v8700_v26 = vld [vmem:[%s10690_s30 + $0xd08] sm:$0xf]  ;;  %v7109_v24 = vor.u32 %v9707_v22, %v7108_v28  ;;  %v8190_v1 = vld [vmem:[%s10690_s30 + $0x948] sm:$0xf0]  ;;  %v9899_v16 = vld [vmem:[%s10690_s30 + $0x6cc] sm:$0xf0]  ;;  %v7369_v20 = vor.u32 %v9763_v10, %v7366_v12 }
 0x173   : > { %4386 = vmatmul.bf16.vlgmr.msrb.gmra.mxu1 %v11135_v35  ;;  %v8701_v36 = vor.u32 %v10106_v27, %v8700_v26  ;;  %v8193_v7 = vor.u32 %v9970_v41, %v8190_v1  ;;  %v9954_v13 = vld [vmem:[%s10690_s30 + $0x88c] sm:$0xf]  ;;  %v9747_v26 = vld [vmem:[%s10690_s30 + $0x214] sm:$0xf] }
 0x174   : > { %4482 = vmatpush.bf16.msrb.mxu1 %v9021_v32  ;;  %4548 = vmatpush.bf16.msrb.mxu0 %v7429_v33  ;;  %v7614_v32 = vld [vmem:[%s10690_s30 + $0x4c8] sm:$0xf0]  ;;  %v7302_v27 = vld [vmem:[%s10690_s30 + $0x250] sm:$0xf0] }
 0x175   : > { %v10002_v33 = vld [vmem:[%s10690_s30 + $0xa0c] sm:$0xf]  ;;  %v7617_v42 = vor.u32 %v9826_v31, %v7614_v32  ;;  %v9883_v31 = vld [vmem:[%s10690_s30 + $0x64c] sm:$0xf0]  ;;  %v9683_v12 = vld [vmem:[%s10690_s30 + $0x14] sm:$0xf] }
 0x176   : > { %4509 = vmatpush.bf16.msra.mxu2 %v7937_v39  ;;  %4475 = vmatpush.bf16.msrb.mxu3 %v8125_v25  ;;  %v7044_v39 = vld [vmem:[%s10690_s30 + $0x10] sm:$0xf]  ;;  %v8321_v43 = vor.u32 %v10002_v33, %v8318_v34  ;;  %v9986_v25 = vld [vmem:[%s10690_s30 + $0x98c] sm:$0xf] }
 0x177   : > { %v7045_v52 = vor.u32 %v9691_v40, %v7044_v39  ;;  %v8257_v59 = vor.u32 %v9986_v25, %v8254_v50  ;;  %v10146_v18 = vld [vmem:[%s10690_s30 + $0xe8c] sm:$0xf]  ;;  %v8516_v32 = vld [vmem:[%s10690_s30 + $0xb90] sm:$0xf] }
 0x178   : > { %4483 = vmatpush.bf16.msrb.mxu1 %v8957_v45  ;;  %4549 = vmatpush.bf16.msrb.mxu0 %v7365_v47  ;;  %v7494_v45 = vld [vmem:[%s10690_s30 + $0x3d0] sm:$0xf0]  ;;  %v9810_v47 = vld [vmem:[%s10690_s30 + $0x40c] sm:$0xf]  ;;  %v10059_v33 = vld [vmem:[%s10690_s30 + $0xbcc] sm:$0xf0] }
 0x179   : > { %v7497_v55 = vor.u32 %v9795_v44, %v7494_v45  ;;  %v7553_v58 = vor.u32 %v9810_v47, %v7550_v49  ;;  %v9938_v22 = vld [vmem:[%s10690_s30 + $0x80c] sm:$0xf]  ;;  %v8517_v40 = vor.u32 %v10059_v33, %v8516_v32  ;;  %v7748_v44 = vld [vmem:[%s10690_s30 + $0x590] sm:$0xf] }
 0x17a   : > { %4510 = vmatpush.bf16.msra.mxu2 %v7873_v53  ;;  %4476 = vmatpush.bf16.msrb.mxu3 %v8061_v48  ;;  %v8004_v53 = vld [vmem:[%s10690_s30 + $0x790] sm:$0xf]  ;;  %v10130_v37 = vld [vmem:[%s10690_s30 + $0xe0c] sm:$0xf] }
 0x17b   : > { %v8005_v48 = vor.u32 %v9931_v54, %v8004_v53  ;;  %v8830_v38 = vld [vmem:[%s10690_s30 + $0xe48] sm:$0xf0]  ;;  %v9867_v45 = vld [vmem:[%s10690_s30 + $0x5cc] sm:$0xf0] }
 0x17c   : > { %4484 = vmatpush.bf16.msrb.mxu1 %v8893_v60  ;;  %4550 = vmatpush.bf16.msrb.mxu0 %v7301_v61  ;;  %v10178_v60 = vld [vmem:[%s10690_s30 + $0xf8c] sm:$0xf]  ;;  %v8452_v47 = vld [vmem:[%s10690_s30 + $0xb10] sm:$0xf]  ;;  %v8833_v25 = vor.u32 %v10130_v37, %v8830_v38  ;;  %v7749_v53 = vor.u32 %v9867_v45, %v7748_v44  ;;  %v7436_v37 = vld [vmem:[%s10690_s30 + $0x318] sm:$0xf] }
 0x17d   : > { %4477 = vmatmul.bf16.vlgmr.msrb.gmra.mxu3 %v11095_v19  ;;  %v9022_v61 = vld [vmem:[%s10690_s30 + $0xfc8] sm:$0xf0]  ;;  %v10043_v49 = vld [vmem:[%s10690_s30 + $0xb4c] sm:$0xf0]  ;;  %v9788_v38 = vld [vmem:[%s10690_s30 + $0x354] sm:$0xf0] }
 0x17e   : > { %4511 = vmatpush.bf16.msra.mxu2 %v7809_v2  ;;  %4521 = vmatpush.bf16.msra.mxu3 %v8513_v3  ;;  %v8573_v2 = vor.u32 %v10074_v57, %v8572_v56  ;;  %v7940_v3 = vld [vmem:[%s10690_s30 + $0x710] sm:$0xf]  ;;  %v9025_v5 = vor.u32 %v10178_v60, %v9022_v61  ;;  %v8453_v54 = vor.u32 %v10043_v49, %v8452_v47  ;;  %v7174_v56 = vld [vmem:[%s10690_s30 + $0x150] sm:$0xf0]  ;;  %v8702_v63 = vld [vmem:[%s10690_s30 + $0xd48] sm:$0xf0] }
 0x17f   : > { %v7941_v11 = vor.u32 %v9915_v4, %v7940_v3  ;;  %v7684_v57 = vld [vmem:[%s10690_s30 + $0x510] sm:$0xf]  ;;  %v7110_v3 = vld [vmem:[%s10690_s30 + $0xd0] sm:$0xf0]  ;;  %v10082_v10 = vld [vmem:[%s10690_s30 + $0xc8c] sm:$0xf]  ;;  %v7437_v47 = vor.u32 %v9788_v38, %v7436_v37 }
 0x180   : > { %4485 = vmatpush.bf16.msrb.mxu1 %v8829_v8  ;;  %4551 = vmatpush.bf16.msrb.mxu0 %v7237_v9  ;;  %v10162_v8 = vld [vmem:[%s10690_s30 + $0xf0c] sm:$0xf]  ;;  %v10027_v60 = vld [vmem:[%s10690_s30 + $0xacc] sm:$0xf0]  ;;  %v9907_v44 = vld [vmem:[%s10690_s30 + $0x714] sm:$0xf] }
 0x181   : > { %v8958_v9 = vld [vmem:[%s10690_s30 + $0xf48] sm:$0xf0]  ;;  %v7620_v4 = vld [vmem:[%s10690_s30 + $0x490] sm:$0xf]  ;;  %v7942_v45 = vld [vmem:[%s10690_s30 + $0x750] sm:$0xf0] }
 0x182   : > { %4512 = vmatpush.bf16.msra.mxu2 %v7745_v14  ;;  %4522 = vmatpush.bf16.msra.mxu3 %v8449_v15  ;;  %v8126_v14 = vld [vmem:[%s10690_s30 + $0x8c8] sm:$0xf0]  ;;  %v7876_v15 = vld [vmem:[%s10690_s30 + $0x690] sm:$0xf]  ;;  %v8961_v17 = vor.u32 %v10162_v8, %v8958_v9  ;;  %v8390_v37 = vld [vmem:[%s10690_s30 + $0xad0] sm:$0xf0] }
 0x183   : > { %4438 = vmatmul.bf16.vlgmr.msra.gmra.mxu1 %v11135_v35  ;;  %v7877_v28 = vor.u32 %v9899_v16, %v7876_v15  ;;  %v7046_v15 = vld [vmem:[%s10690_s30 + $0x50] sm:$0xf0]  ;;  %v7500_v16 = vld [vmem:[%s10690_s30 + $0x398] sm:$0xf]  ;;  %v9028_v33 = vld [vmem:[%s10690_s30 + $0xf90] sm:$0xf] }
 0x184   : > { %4486 = vmatpush.bf16.msrb.mxu1 %v8765_v21  ;;  %4552 = vmatpush.bf16.msrb.mxu0 %v7173_v23  ;;  %v8129_v21 = vor.u32 %v9954_v13, %v8126_v14  ;;  %v8894_v23 = vld [vmem:[%s10690_s30 + $0xec8] sm:$0xf0]  ;;  %v8964_v49 = vld [vmem:[%s10690_s30 + $0xf10] sm:$0xf] }
 0x185   : > { %v8897_v34 = vor.u32 %v10146_v18, %v8894_v23  ;;  %v7556_v18 = vld [vmem:[%s10690_s30 + $0x410] sm:$0xf] }
 0x186   : > { %4513 = vmatpush.bf16.msra.mxu2 %v7681_v29  ;;  %4523 = vmatpush.bf16.msra.mxu3 %v8385_v30  ;;  %v8062_v29 = vld [vmem:[%s10690_s30 + $0x848] sm:$0xf0]  ;;  %v7812_v30 = vld [vmem:[%s10690_s30 + $0x610] sm:$0xf] }
 0x187   : > { %v7813_v39 = vor.u32 %v9883_v31, %v7812_v30  ;;  %v8574_v30 = vld [vmem:[%s10690_s30 + $0xc48] sm:$0xf0] }
 0x188   : > { %4487 = vmatpush.bf16.msrb.mxu1 %v8701_v36  ;;  %4553 = vmatpush.bf16.msrb.mxu0 %v7109_v24  ;;  %v7305_v36 = vor.u32 %v9747_v26, %v7302_v27  ;;  %v8065_v24 = vor.u32 %v9938_v22, %v8062_v29  ;;  %v9995_v26 = vld [vmem:[%s10690_s30 + $0x9cc] sm:$0xf0]  ;;  %v9923_v27 = vld [vmem:[%s10690_s30 + $0x794] sm:$0xf]  ;;  %v7049_v22 = vor.u32 %v9683_v12, %v7046_v15  ;;  %v10066_v29 = vld [vmem:[%s10690_s30 + $0xc0c] sm:$0xf] }
 0x18a   : > { %4514 = vmatpush.bf16.msra.mxu2 %v7617_v42  ;;  %4524 = vmatpush.bf16.msra.mxu3 %v8321_v43  ;;  %v9731_v42 = vld [vmem:[%s10690_s30 + $0x194] sm:$0xf] }
 0x18b   : > { %v7238_v43 = vld [vmem:[%s10690_s30 + $0x1d0] sm:$0xf0] }
 0x18c   : > { %4488 = vmatpush.bf16.msrb.mxu1 %v8637_v51  ;;  %4554 = vmatpush.bf16.msrb.mxu0 %v7045_v52  ;;  %v7241_v50 = vor.u32 %v9731_v42, %v7238_v43  ;;  %v10114_v51 = vld [vmem:[%s10690_s30 + $0xd8c] sm:$0xf]  ;;  %v9979_v42 = vld [vmem:[%s10690_s30 + $0x94c] sm:$0xf0] }
 0x18d   : > { %v8766_v52 = vld [vmem:[%s10690_s30 + $0xdc8] sm:$0xf0] }
 0x18e   : > { %4515 = vmatpush.bf16.msra.mxu2 %v7553_v58  ;;  %4525 = vmatpush.bf16.msra.mxu3 %v8257_v59  ;;  %v9851_v58 = vld [vmem:[%s10690_s30 + $0x54c] sm:$0xf0]  ;;  %v8769_v61 = vor.u32 %v10114_v51, %v8766_v52  ;;  %v7372_v51 = vld [vmem:[%s10690_s30 + $0x298] sm:$0xf] }
 0x18f   : > { %4555 = vmatmul.bf16.vlgmr.msrb.gmra.mxu0 %v11025_v46  ;;  %v8388_v59 = vld [vmem:[%s10690_s30 + $0xa90] sm:$0xf]  ;;  %v7685_v41 = vor.u32 %v9851_v58, %v7684_v57  ;;  %v9772_v52 = vld [vmem:[%s10690_s30 + $0x2d4] sm:$0xf0]  ;;  %v9891_v57 = vld [vmem:[%s10690_s30 + $0x694] sm:$0xf] }
 0x190   : > { %4599 = vmatpush.bf16.msra.mxu0 %v7497_v55  ;;  %4489 = vmatpush.bf16.msrb.mxu1 %v8573_v2  ;;  %v9715_v55 = vld [vmem:[%s10690_s30 + $0x114] sm:$0xf]  ;;  %v8389_v1 = vor.u32 %v10027_v60, %v8388_v59  ;;  %v7373_v59 = vor.u32 %v9772_v52, %v7372_v51  ;;  %v8900_v60 = vld [vmem:[%s10690_s30 + $0xe90] sm:$0xf] }
 0x191   : > { %4516 = vmatmul.bf16.vlgmr.msra.gmra.mxu2 %v11076_v0  ;;  %v7177_v62 = vor.u32 %v9715_v55, %v7174_v56  ;;  %v9699_v2 = vld [vmem:[%s10690_s30 + $0x94] sm:$0xf]  ;;  %v9963_v55 = vld [vmem:[%s10690_s30 + $0x8cc] sm:$0xf0] }
 0x192   : > { %4560 = vmatpush.bf16.msrb.mxu2 %v8005_v48  ;;  %4526 = vmatpush.bf16.msra.mxu3 %v8193_v7  ;;  %v10098_v48 = vld [vmem:[%s10690_s30 + $0xd0c] sm:$0xf]  ;;  %v10011_v7 = vld [vmem:[%s10690_s30 + $0xa4c] sm:$0xf0]  ;;  %v7113_v9 = vor.u32 %v9699_v2, %v7110_v3  ;;  %v7878_v58 = vld [vmem:[%s10690_s30 + $0x6d0] sm:$0xf0] }
 0x193   : > { %4490 = vmatmul.bf16.vlgmr.msrb.gmra.mxu1 %v11135_v35  ;;  %v8705_v8 = vor.u32 %v10098_v48, %v8702_v63  ;;  %v7308_v48 = vld [vmem:[%s10690_s30 + $0x218] sm:$0xf]  ;;  %v9947_v2 = vld [vmem:[%s10690_s30 + $0x84c] sm:$0xf0]  ;;  %v9875_v3 = vld [vmem:[%s10690_s30 + $0x614] sm:$0xf] }
 0x194   : > { %4534 = vmatpush.bf16.msra.mxu1 %v9025_v5  ;;  %4600 = vmatpush.bf16.msra.mxu0 %v7433_v6  ;;  %v9835_v5 = vld [vmem:[%s10690_s30 + $0x4cc] sm:$0xf0]  ;;  %v9756_v63 = vld [vmem:[%s10690_s30 + $0x254] sm:$0xf0]  ;;  %v8326_v51 = vld [vmem:[%s10690_s30 + $0xa50] sm:$0xf0] }
 0x195   : > { %v8324_v6 = vld [vmem:[%s10690_s30 + $0xa10] sm:$0xf]  ;;  %v7621_v13 = vor.u32 %v9835_v5, %v7620_v4 }
 0x196   : > { %4561 = vmatpush.bf16.msrb.mxu2 %v7941_v11  ;;  %4527 = vmatpush.bf16.msra.mxu3 %v8129_v21  ;;  %v8638_v11 = vld [vmem:[%s10690_s30 + $0xcc8] sm:$0xf0]  ;;  %v8325_v14 = vor.u32 %v10011_v7, %v8324_v6  ;;  %v8260_v21 = vld [vmem:[%s10690_s30 + $0x990] sm:$0xf]  ;;  %v7814_v6 = vld [vmem:[%s10690_s30 + $0x650] sm:$0xf0] }
 0x197   : > { %v8641_v23 = vor.u32 %v10082_v10, %v8638_v11  ;;  %v10051_v7 = vld [vmem:[%s10690_s30 + $0xb94] sm:$0xf]  ;;  %v8836_v10 = vld [vmem:[%s10690_s30 + $0xe10] sm:$0xf]  ;;  %v7817_v15 = vor.u32 %v9875_v3, %v7814_v6  ;;  %v8012_v3 = vld [vmem:[%s10690_s30 + $0x798] sm:$0xf] }
 0x198   : > { %4535 = vmatpush.bf16.msra.mxu1 %v8961_v17  ;;  %4601 = vmatpush.bf16.msra.mxu0 %v7369_v20  ;;  %v9804_v17 = vld [vmem:[%s10690_s30 + $0x3d4] sm:$0xf0]  ;;  %v9819_v20 = vld [vmem:[%s10690_s30 + $0x44c] sm:$0xf0] }
 0x199   : > { %v7501_v31 = vor.u32 %v9804_v17, %v7500_v16  ;;  %v7557_v32 = vor.u32 %v9819_v20, %v7556_v18  ;;  %v10139_v11 = vld [vmem:[%s10690_s30 + $0xe4c] sm:$0xf0]  ;;  %v9859_v17 = vld [vmem:[%s10690_s30 + $0x594] sm:$0xf] }
 0x19a   : > { %4562 = vmatpush.bf16.msrb.mxu2 %v7877_v28  ;;  %4528 = vmatpush.bf16.msra.mxu3 %v8065_v24  ;;  %v8006_v28 = vld [vmem:[%s10690_s30 + $0x7d0] sm:$0xf0]  ;;  %v8837_v18 = vor.u32 %v10139_v11, %v8836_v10 }
 0x19b   : > { %v8009_v24 = vor.u32 %v9923_v27, %v8006_v28  ;;  %v7750_v20 = vld [vmem:[%s10690_s30 + $0x5d0] sm:$0xf0]  ;;  %v8772_v27 = vld [vmem:[%s10690_s30 + $0xd90] sm:$0xf] }
 0x19c   : > { %4536 = vmatpush.bf16.msra.mxu1 %v8897_v34  ;;  %4602 = vmatpush.bf16.msra.mxu0 %v7305_v36  ;;  %v10187_v34 = vld [vmem:[%s10690_s30 + $0xfcc] sm:$0xf0]  ;;  %v8261_v36 = vor.u32 %v9995_v26, %v8260_v21  ;;  %v10035_v21 = vld [vmem:[%s10690_s30 + $0xb14] sm:$0xf] }
 0x19d   : > { %4529 = vmatmul.bf16.vlgmr.msra.gmra.mxu3 %v11095_v19  ;;  %v9029_v43 = vor.u32 %v10187_v34, %v9028_v33  ;;  %v10123_v28 = vld [vmem:[%s10690_s30 + $0xdcc] sm:$0xf0]  ;;  %v10179_v11 = vld [vmem:[%s10690_s30 + $0xf94] sm:$0xf] }
 0x19e   : > { %4563 = vmatpush.bf16.msrb.mxu2 %v7813_v39  ;;  %4573 = vmatpush.bf16.msrb.mxu3 %v8517_v40  ;;  %v8577_v39 = vor.u32 %v10066_v29, %v8574_v30  ;;  %v8196_v40 = vld [vmem:[%s10690_s30 + $0x910] sm:$0xf]  ;;  %v9724_v29 = vld [vmem:[%s10690_s30 + $0x154] sm:$0xf0]  ;;  %v7753_v30 = vor.u32 %v9859_v17, %v7750_v20  ;;  %v8773_v34 = vor.u32 %v10123_v28, %v8772_v27  ;;  %v8198_v17 = vld [vmem:[%s10690_s30 + $0x950] sm:$0xf0] }
 0x19f   : > { %v7948_v20 = vld [vmem:[%s10690_s30 + $0x718] sm:$0xf]  ;;  %v10163_v28 = vld [vmem:[%s10690_s30 + $0xf14] sm:$0xf] }
 0x1a0   : > { %4537 = vmatpush.bf16.msra.mxu1 %v8833_v25  ;;  %4603 = vmatpush.bf16.msra.mxu0 %v7241_v50  ;;  %v10171_v25 = vld [vmem:[%s10690_s30 + $0xf4c] sm:$0xf0]  ;;  %v8197_v50 = vor.u32 %v9979_v42, %v8196_v40  ;;  %v7116_v42 = vld [vmem:[%s10690_s30 + $0x98] sm:$0xf] }
 0x1a1   : > { %v8965_v56 = vor.u32 %v10171_v25, %v8964_v49  ;;  %v10107_v40 = vld [vmem:[%s10690_s30 + $0xd4c] sm:$0xf0]  ;;  %v7622_v25 = vld [vmem:[%s10690_s30 + $0x4d0] sm:$0xf0] }
 0x1a2   : > { %4564 = vmatpush.bf16.msrb.mxu2 %v7749_v53  ;;  %4574 = vmatpush.bf16.msrb.mxu3 %v8453_v54  ;;  %v7945_v53 = vor.u32 %v9907_v44, %v7942_v45  ;;  %v8132_v54 = vld [vmem:[%s10690_s30 + $0x890] sm:$0xf] }
 0x1a4   : > { %4538 = vmatpush.bf16.msra.mxu1 %v8769_v61  ;;  %4604 = vmatpush.bf16.msra.mxu0 %v7177_v62  ;;  %v10155_v61 = vld [vmem:[%s10690_s30 + $0xecc] sm:$0xf0]  ;;  %v8133_v62 = vor.u32 %v9963_v55, %v8132_v54  ;;  %v7052_v55 = vld [vmem:[%s10690_s30 + $0x18] sm:$0xf] }
 0x1a5   : > { %v8901_v5 = vor.u32 %v10155_v61, %v8900_v60  ;;  %v10091_v54 = vld [vmem:[%s10690_s30 + $0xccc] sm:$0xf0]  ;;  %v7502_v60 = vld [vmem:[%s10690_s30 + $0x3d8] sm:$0xf0]  ;;  %v9811_v61 = vld [vmem:[%s10690_s30 + $0x414] sm:$0xf] }
 0x1a6   : > { %4565 = vmatpush.bf16.msrb.mxu2 %v7685_v41  ;;  %4575 = vmatpush.bf16.msrb.mxu3 %v8389_v1  ;;  %v7881_v41 = vor.u32 %v9891_v57, %v7878_v58  ;;  %v8068_v1 = vld [vmem:[%s10690_s30 + $0x810] sm:$0xf] }
 0x1a7   : > { %v8069_v12 = vor.u32 %v9947_v2, %v8068_v1  ;;  %v8262_v1 = vld [vmem:[%s10690_s30 + $0x9d0] sm:$0xf0] }
 0x1a8   : > { %4539 = vmatpush.bf16.msra.mxu1 %v8705_v8  ;;  %4605 = vmatpush.bf16.msra.mxu0 %v7113_v9  ;;  %v8518_v8 = vld [vmem:[%s10690_s30 + $0xbd0] sm:$0xf0]  ;;  %v7309_v9 = vor.u32 %v9756_v63, %v7308_v48 }
 0x1a9   : > { %v8521_v16 = vor.u32 %v10051_v7, %v8518_v8  ;;  %v7558_v63 = vld [vmem:[%s10690_s30 + $0x450] sm:$0xf0]  ;;  %v8580_v7 = vld [vmem:[%s10690_s30 + $0xc10] sm:$0xf] }
 0x1aa   : > { %4566 = vmatpush.bf16.msrb.mxu2 %v7621_v13  ;;  %4576 = vmatpush.bf16.msrb.mxu3 %v8325_v14  ;;  %v7244_v13 = vld [vmem:[%s10690_s30 + $0x198] sm:$0xf]  ;;  %v10075_v8 = vld [vmem:[%s10690_s30 + $0xc4c] sm:$0xf0] }
 0x1ab   : > { %v9740_v14 = vld [vmem:[%s10690_s30 + $0x1d4] sm:$0xf0] }
 0x1ac   : > { %4540 = vmatpush.bf16.msra.mxu1 %v8641_v23  ;;  %4606 = vmatpush.bf16.msra.mxu0 %v7049_v22  ;;  %v11291_v4 = vpop.f32.mrf.mxu0  ;;  %v8454_v23 = vld [vmem:[%s10690_s30 + $0xb50] sm:$0xf0]  ;;  %v7245_v26 = vor.u32 %v9740_v14, %v7244_v13  ;;  %v7180_v22 = vld [vmem:[%s10690_s30 + $0x118] sm:$0xf]  ;;  %v9780_v13 = vld [vmem:[%s10690_s30 + $0x31c] sm:$0xf] }
 0x1ad   : > { %v7181_v38 = vor.u32 %v9724_v29, %v7180_v22  ;;  %v8966_v22 = vld [vmem:[%s10690_s30 + $0xf50] sm:$0xf0]  ;;  %v9764_v29 = vld [vmem:[%s10690_s30 + $0x29c] sm:$0xf] }
 0x1ae   : > { %4567 = vmatpush.bf16.msrb.mxu2 %v7557_v32  ;;  %4577 = vmatpush.bf16.msrb.mxu3 %v8261_v36  ;;  %v9843_v32 = vld [vmem:[%s10690_s30 + $0x514] sm:$0xf] }
 0x1af   : > { %4607 = vmatmul.bf16.vlgmr.msra.gmra.mxu0 %v11025_v46  ;;  %v7686_v36 = vld [vmem:[%s10690_s30 + $0x550] sm:$0xf0] }
 0x1b0   : > { %4651 = vmatpush.bf16.msrb.mxu0 %v7501_v31  ;;  %4541 = vmatpush.bf16.msra.mxu1 %v8577_v39  ;;  %v8457_v31 = vor.u32 %v10035_v21, %v8454_v23  ;;  %v8708_v39 = vld [vmem:[%s10690_s30 + $0xd10] sm:$0xf]  ;;  %v7689_v44 = vor.u32 %v9843_v32, %v7686_v36  ;;  %v9916_v21 = vld [vmem:[%s10690_s30 + $0x754] sm:$0xf0]  ;;  %v7374_v32 = vld [vmem:[%s10690_s30 + $0x2d8] sm:$0xf0] }
 0x1b1   : > { %4568 = vmatmul.bf16.vlgmr.msrb.gmra.mxu2 %v11076_v0  ;;  %v8709_v49 = vor.u32 %v10107_v40, %v8708_v39  ;;  %v7884_v36 = vld [vmem:[%s10690_s30 + $0x698] sm:$0xf]  ;;  %v7377_v39 = vor.u32 %v9764_v29, %v7374_v32  ;;  %v7118_v29 = vld [vmem:[%s10690_s30 + $0xd8] sm:$0xf0] }
 0x1b2   : > { %4612 = vmatpush.bf16.msra.mxu2 %v8009_v24  ;;  %4578 = vmatpush.bf16.msrb.mxu3 %v8197_v50  ;;  %v10019_v24 = vld [vmem:[%s10690_s30 + $0xa94] sm:$0xf]  ;;  %v10012_v32 = vld [vmem:[%s10690_s30 + $0xa54] sm:$0xf0] }
 0x1b3   : > { %4542 = vmatmul.bf16.vlgmr.msra.gmra.mxu1 %v11135_v35  ;;  %v8393_v45 = vor.u32 %v10019_v24, %v8390_v37  ;;  %v10003_v50 = vld [vmem:[%s10690_s30 + $0xa14] sm:$0xf]  ;;  %v9900_v24 = vld [vmem:[%s10690_s30 + $0x6d4] sm:$0xf0]  ;;  %v8969_v37 = vor.u32 %v10163_v28, %v8966_v22  ;;  %v9700_v22 = vld [vmem:[%s10690_s30 + $0x9c] sm:$0xf] }
 0x1b4   : > { %4586 = vmatpush.bf16.msrb.mxu1 %v9029_v43  ;;  %4652 = vmatpush.bf16.msrb.mxu0 %v7437_v47  ;;  %v4350_v33 = vpop.f32.mrf.mxu0  ;;  %v9708_v43 = vld [vmem:[%s10690_s30 + $0xd4] sm:$0xf0]  ;;  %v9827_v47 = vld [vmem:[%s10690_s30 + $0x494] sm:$0xf]  ;;  %v8329_v58 = vor.u32 %v10003_v50, %v8326_v51 }
 0x1b5   : > { %v7117_v52 = vor.u32 %v9708_v43, %v7116_v42  ;;  %v7625_v57 = vor.u32 %v9827_v47, %v7622_v25  ;;  %v9955_v33 = vld [vmem:[%s10690_s30 + $0x894] sm:$0xf]  ;;  %v9748_v43 = vld [vmem:[%s10690_s30 + $0x21c] sm:$0xf]  ;;  %v7820_v25 = vld [vmem:[%s10690_s30 + $0x618] sm:$0xf] }
 0x1b6   : > { %4613 = vmatpush.bf16.msra.mxu2 %v7945_v53  ;;  %4579 = vmatpush.bf16.msrb.mxu3 %v8133_v62  ;;  %v8644_v53 = vld [vmem:[%s10690_s30 + $0xc90] sm:$0xf]  ;;  %v8902_v42 = vld [vmem:[%s10690_s30 + $0xed0] sm:$0xf0]  ;;  %v9884_v50 = vld [vmem:[%s10690_s30 + $0x654] sm:$0xf0] }
 0x1b7   : > { %v8645_v48 = vor.u32 %v10091_v54, %v8644_v53  ;;  %v9939_v47 = vld [vmem:[%s10690_s30 + $0x814] sm:$0xf]  ;;  %v8524_v51 = vld [vmem:[%s10690_s30 + $0xb98] sm:$0xf] }
 0x1b8   : > { %4587 = vmatpush.bf16.msrb.mxu1 %v8965_v56  ;;  %4653 = vmatpush.bf16.msrb.mxu0 %v7373_v59  ;;  %v9692_v56 = vld [vmem:[%s10690_s30 + $0x54] sm:$0xf0]  ;;  %v9796_v59 = vld [vmem:[%s10690_s30 + $0x39c] sm:$0xf] }
 0x1b9   : > { %v7053_v2 = vor.u32 %v9692_v56, %v7052_v55  ;;  %v7505_v6 = vor.u32 %v9796_v59, %v7502_v60  ;;  %v10131_v56 = vld [vmem:[%s10690_s30 + $0xe14] sm:$0xf]  ;;  %v7821_v59 = vor.u32 %v9884_v50, %v7820_v25  ;;  %v9996_v50 = vld [vmem:[%s10690_s30 + $0x9d4] sm:$0xf0] }
 0x1ba   : > { %4614 = vmatpush.bf16.msra.mxu2 %v7881_v41  ;;  %4580 = vmatpush.bf16.msrb.mxu3 %v8069_v12  ;;  %v9987_v41 = vld [vmem:[%s10690_s30 + $0x994] sm:$0xf] }
 0x1bb   : > { %v8265_v10 = vor.u32 %v9987_v41, %v8262_v1  ;;  %v9030_v12 = vld [vmem:[%s10690_s30 + $0xfd0] sm:$0xf0]  ;;  %v9868_v41 = vld [vmem:[%s10690_s30 + $0x5d4] sm:$0xf0] }
 0x1bc   : > { %4588 = vmatpush.bf16.msrb.mxu1 %v8901_v5  ;;  %4654 = vmatpush.bf16.msrb.mxu0 %v7309_v9  ;;  %v11328_v62 = vpop.f32.mrf.mxu0  ;;  %v9932_v5 = vld [vmem:[%s10690_s30 + $0x7d4] sm:$0xf0]  ;;  %v7561_v9 = vor.u32 %v9811_v61, %v7558_v63  ;;  %v9033_v23 = vor.u32 %v10179_v11, %v9030_v12  ;;  %v9732_v61 = vld [vmem:[%s10690_s30 + $0x19c] sm:$0xf] }
 0x1bd   : > { %4581 = vmatmul.bf16.vlgmr.msrb.gmra.mxu3 %v11095_v19  ;;  %v8013_v14 = vor.u32 %v9932_v5, %v8012_v3  ;;  %v7756_v63 = vld [vmem:[%s10690_s30 + $0x598] sm:$0xf]  ;;  %v7182_v11 = vld [vmem:[%s10690_s30 + $0x158] sm:$0xf0] }
 0x1be   : > { %4615 = vmatpush.bf16.msra.mxu2 %v7817_v15  ;;  %4625 = vmatpush.bf16.msra.mxu3 %v8521_v16  ;;  %v7438_v15 = vld [vmem:[%s10690_s30 + $0x358] sm:$0xf0]  ;;  %v9971_v16 = vld [vmem:[%s10690_s30 + $0x914] sm:$0xf]  ;;  %v8460_v1 = vld [vmem:[%s10690_s30 + $0xb18] sm:$0xf] }
 0x1bf   : > { %v8201_v27 = vor.u32 %v9971_v16, %v8198_v17  ;;  %v7692_v12 = vld [vmem:[%s10690_s30 + $0x518] sm:$0xf] }
 0x1c0   : > { %4589 = vmatpush.bf16.msrb.mxu1 %v8837_v18  ;;  %4655 = vmatpush.bf16.msrb.mxu0 %v7245_v26  ;;  %v8581_v18 = vor.u32 %v10075_v8, %v8580_v7  ;;  %v7441_v26 = vor.u32 %v9780_v13, %v7438_v15  ;;  %v8774_v7 = vld [vmem:[%s10690_s30 + $0xdd0] sm:$0xf0]  ;;  %v7757_v8 = vor.u32 %v9868_v41, %v7756_v63  ;;  %v8396_v15 = vld [vmem:[%s10690_s30 + $0xa98] sm:$0xf]  ;;  %v7444_v41 = vld [vmem:[%s10690_s30 + $0x320] sm:$0xf] }
 0x1c1   : > { %v10028_v16 = vld [vmem:[%s10690_s30 + $0xad4] sm:$0xf0] }
 0x1c2   : > { %4616 = vmatpush.bf16.msra.mxu2 %v7753_v30  ;;  %4626 = vmatpush.bf16.msra.mxu3 %v8457_v31  ;;  %v7949_v31 = vor.u32 %v9916_v21, %v7948_v20  ;;  %v10099_v21 = vld [vmem:[%s10690_s30 + $0xd14] sm:$0xf]  ;;  %v8397_v28 = vor.u32 %v10028_v16, %v8396_v15  ;;  %v7380_v15 = vld [vmem:[%s10690_s30 + $0x2a0] sm:$0xf] }
 0x1c3   : > { %v9773_v16 = vld [vmem:[%s10690_s30 + $0x2dc] sm:$0xf0] }
 0x1c4   : > { %4590 = vmatpush.bf16.msrb.mxu1 %v8773_v34  ;;  %4656 = vmatpush.bf16.msrb.mxu0 %v7181_v38  ;;  %v4402_v30 = vpop.f32.mrf.mxu0  ;;  %v8134_v34 = vld [vmem:[%s10690_s30 + $0x8d0] sm:$0xf0] }
 0x1c5   : > { %v10147_v38 = vld [vmem:[%s10690_s30 + $0xe94] sm:$0xf]  ;;  %v8137_v40 = vor.u32 %v9955_v33, %v8134_v34  ;;  %v9836_v30 = vld [vmem:[%s10690_s30 + $0x4d4] sm:$0xf0]  ;;  %v7121_v34 = vor.u32 %v9700_v22, %v7118_v29 }
 0x1c6   : > { %4617 = vmatpush.bf16.msra.mxu2 %v7689_v44  ;;  %4627 = vmatpush.bf16.msra.mxu3 %v8393_v45  ;;  %v7310_v44 = vld [vmem:[%s10690_s30 + $0x258] sm:$0xf0]  ;;  %v7885_v45 = vor.u32 %v9900_v24, %v7884_v36  ;;  %v8905_v53 = vor.u32 %v10147_v38, %v8902_v42  ;;  %v10083_v36 = vld [vmem:[%s10690_s30 + $0xc94] sm:$0xf]  ;;  %v7508_v42 = vld [vmem:[%s10690_s30 + $0x3a0] sm:$0xf] }
 0x1c7   : > { %v7313_v54 = vor.u32 %v9748_v43, %v7310_v44  ;;  %v8646_v24 = vld [vmem:[%s10690_s30 + $0xcd0] sm:$0xf0]  ;;  %v9805_v43 = vld [vmem:[%s10690_s30 + $0x3dc] sm:$0xf0]  ;;  %v8908_v22 = vld [vmem:[%s10690_s30 + $0xe98] sm:$0xf] }
 0x1c8   : > { %4591 = vmatpush.bf16.msrb.mxu1 %v8709_v49  ;;  %4657 = vmatpush.bf16.msrb.mxu0 %v7117_v52  ;;  %v8070_v49 = vld [vmem:[%s10690_s30 + $0x850] sm:$0xf0]  ;;  %v10060_v52 = vld [vmem:[%s10690_s30 + $0xbd4] sm:$0xf0]  ;;  %v8649_v25 = vor.u32 %v10083_v36, %v8646_v24  ;;  %v9876_v36 = vld [vmem:[%s10690_s30 + $0x61c] sm:$0xf] }
 0x1c9   : > { %v8073_v55 = vor.u32 %v9939_v47, %v8070_v49  ;;  %v8525_v60 = vor.u32 %v10060_v52, %v8524_v51  ;;  %v9820_v47 = vld [vmem:[%s10690_s30 + $0x454] sm:$0xf0]  ;;  %v9924_v51 = vld [vmem:[%s10690_s30 + $0x79c] sm:$0xf] }
 0x1ca   : > { %4618 = vmatpush.bf16.msra.mxu2 %v7625_v57  ;;  %4628 = vmatpush.bf16.msra.mxu3 %v8329_v58  ;;  %v8838_v57 = vld [vmem:[%s10690_s30 + $0xe50] sm:$0xf0]  ;;  %v8268_v49 = vld [vmem:[%s10690_s30 + $0x998] sm:$0xf]  ;;  %v8014_v52 = vld [vmem:[%s10690_s30 + $0x7d8] sm:$0xf0] }
 0x1cb   : > { %v8841_v3 = vor.u32 %v10131_v56, %v8838_v57  ;;  %v7509_v56 = vor.u32 %v9805_v43, %v7508_v42  ;;  %v8017_v63 = vor.u32 %v9924_v51, %v8014_v52  ;;  %v8844_v42 = vld [vmem:[%s10690_s30 + $0xe18] sm:$0xf] }
 0x1cc   : > { %4592 = vmatpush.bf16.msrb.mxu1 %v8645_v48  ;;  %4658 = vmatpush.bf16.msrb.mxu0 %v7053_v2  ;;  %v11368_v58 = vpop.f32.mrf.mxu0  ;;  %v7246_v48 = vld [vmem:[%s10690_s30 + $0x1d8] sm:$0xf0]  ;;  %v10044_v2 = vld [vmem:[%s10690_s30 + $0xb54] sm:$0xf0] }
 0x1cd   : > { %v7249_v5 = vor.u32 %v9732_v61, %v7246_v48  ;;  %v8269_v48 = vor.u32 %v9996_v50, %v8268_v49  ;;  %v10140_v43 = vld [vmem:[%s10690_s30 + $0xe54] sm:$0xf0]  ;;  %v7252_v49 = vld [vmem:[%s10690_s30 + $0x1a0] sm:$0xf] }
 0x1ce   : > { %4619 = vmatpush.bf16.msra.mxu2 %v7561_v9  ;;  %4629 = vmatpush.bf16.msra.mxu3 %v8265_v10  ;;  %v8461_v9 = vor.u32 %v10044_v2, %v8460_v1  ;;  %v9716_v10 = vld [vmem:[%s10690_s30 + $0x11c] sm:$0xf]  ;;  %v9789_v1 = vld [vmem:[%s10690_s30 + $0x35c] sm:$0xf0] }
 0x1cf   : > { %4659 = vmatmul.bf16.vlgmr.msrb.gmra.mxu0 %v11025_v46  ;;  %v7185_v20 = vor.u32 %v9716_v10, %v7182_v11  ;;  %v7445_v10 = vor.u32 %v9789_v1, %v7444_v41  ;;  %v8972_v11 = vld [vmem:[%s10690_s30 + $0xf18] sm:$0xf]  ;;  %v9725_v41 = vld [vmem:[%s10690_s30 + $0x15c] sm:$0xf0] }
 0x1d0   : > { %4703 = vmatpush.bf16.msra.mxu0 %v7505_v6  ;;  %4593 = vmatpush.bf16.msrb.mxu1 %v8581_v18  ;;  %v10115_v6 = vld [vmem:[%s10690_s30 + $0xd94] sm:$0xf] }
 0x1d1   : > { %4620 = vmatmul.bf16.vlgmr.msra.gmra.mxu2 %v11076_v0  ;;  %v8777_v18 = vor.u32 %v10115_v6, %v8774_v7  ;;  %v9980_v6 = vld [vmem:[%s10690_s30 + $0x954] sm:$0xf0] }
 0x1d2   : > { %4664 = vmatpush.bf16.msrb.mxu2 %v8013_v14  ;;  %4630 = vmatpush.bf16.msra.mxu3 %v8201_v27  ;;  %v9852_v14 = vld [vmem:[%s10690_s30 + $0x554] sm:$0xf0] }
 0x1d3   : > { %4594 = vmatmul.bf16.vlgmr.msrb.gmra.mxu1 %v11135_v35  ;;  %v7693_v27 = vor.u32 %v9852_v14, %v7692_v12  ;;  %v10172_v12 = vld [vmem:[%s10690_s30 + $0xf54] sm:$0xf0] }
 0x1d4   : > { %4638 = vmatpush.bf16.msra.mxu1 %v9033_v23  ;;  %4704 = vmatpush.bf16.msra.mxu0 %v7441_v26  ;;  %v4361_v13 = vpop.f32.mrf.mxu2  ;;  %v8710_v23 = vld [vmem:[%s10690_s30 + $0xd50] sm:$0xf0]  ;;  %v4454_v26 = vpop.f32.mrf.mxu0 }
 0x1d5   : > { %v4362_v17 = vadd.f32 %v4361_v13, %v11291_v4  ;;  %v7628_v4 = vld [vmem:[%s10690_s30 + $0x498] sm:$0xf]  ;;  %v8713_v33 = vor.u32 %v10099_v21, %v8710_v23  ;;  %v8973_v23 = vor.u32 %v10172_v12, %v8972_v11  ;;  %v9892_v26 = vld [vmem:[%s10690_s30 + $0x69c] sm:$0xf] }
 0x1d6   : > { %4665 = vmatpush.bf16.msrb.mxu2 %v7949_v31  ;;  %4631 = vmatpush.bf16.msra.mxu3 %v8137_v40  ;;  %v8332_v31 = vld [vmem:[%s10690_s30 + $0xa18] sm:$0xf]  ;;  %v7629_v38 = vor.u32 %v9836_v30, %v7628_v4  ;;  %v7054_v40 = vld [vmem:[%s10690_s30 + $0x58] sm:$0xf0]  ;;  %v7316_v30 = vld [vmem:[%s10690_s30 + $0x220] sm:$0xf] }
 0x1d7   : > { %v9964_v21 = vld [vmem:[%s10690_s30 + $0x8d4] sm:$0xf0] }
 0x1d8   : > { %4639 = vmatpush.bf16.msra.mxu1 %v8969_v37  ;;  %4705 = vmatpush.bf16.msra.mxu0 %v7377_v39  ;;  %v9684_v37 = vld [vmem:[%s10690_s30 + $0x1c] sm:$0xf]  ;;  %v8333_v39 = vor.u32 %v10012_v32, %v8332_v31  ;;  %v9757_v31 = vld [vmem:[%s10690_s30 + $0x25c] sm:$0xf0]  ;;  %v8716_v11 = vld [vmem:[%s10690_s30 + $0xd18] sm:$0xf] }
 0x1d9   : > { %v10108_v12 = vld [vmem:[%s10690_s30 + $0xd54] sm:$0xf0] }
 0x1da   : > { %4666 = vmatpush.bf16.msrb.mxu2 %v7885_v45  ;;  %4632 = vmatpush.bf16.msra.mxu3 %v8073_v55  ;;  %v7564_v45 = vld [vmem:[%s10690_s30 + $0x418] sm:$0xf]  ;;  %v8582_v55 = vld [vmem:[%s10690_s30 + $0xc50] sm:$0xf0] }
 0x1db   : > { %v7565_v57 = vor.u32 %v9820_v47, %v7564_v45 }
 0x1dc   : > { %4640 = vmatpush.bf16.msra.mxu1 %v8905_v53  ;;  %4706 = vmatpush.bf16.msra.mxu0 %v7313_v54  ;;  %v4363_v44 = vpop.f32.mrf.mxu2  ;;  %v7057_v53 = vor.u32 %v9684_v37, %v7054_v40  ;;  %v10067_v54 = vld [vmem:[%s10690_s30 + $0xc14] sm:$0xf]  ;;  %v7822_v37 = vld [vmem:[%s10690_s30 + $0x658] sm:$0xf0]  ;;  %v7317_v40 = vor.u32 %v9757_v31, %v7316_v30  ;;  %v7060_v31 = vld [vmem:[%s10690_s30 + $0x20] sm:$0xf] }
 0x1dd   : > { %4633 = vmatmul.bf16.vlgmr.msra.gmra.mxu3 %v11095_v19  ;;  %v7825_v51 = vor.u32 %v9876_v36, %v7822_v37  ;;  %v9797_v36 = vld [vmem:[%s10690_s30 + $0x3a4] sm:$0xf]  ;;  %v9812_v37 = vld [vmem:[%s10690_s30 + $0x41c] sm:$0xf] }
 0x1de   : > { %4667 = vmatpush.bf16.msrb.mxu2 %v7821_v59  ;;  %4677 = vmatpush.bf16.msrb.mxu3 %v8525_v60  ;;  %v9036_v59 = vld [vmem:[%s10690_s30 + $0xf98] sm:$0xf] }
 0x1df   : > { %v10188_v60 = vld [vmem:[%s10690_s30 + $0xfd4] sm:$0xf0] }
 0x1e0   : > { %4641 = vmatpush.bf16.msra.mxu1 %v8841_v3  ;;  %4707 = vmatpush.bf16.msra.mxu0 %v7249_v5  ;;  %v4374_v61 = vpop.f32.mrf.mxu3  ;;  %v8585_v3 = vor.u32 %v10067_v54, %v8582_v55  ;;  %v8204_v5 = vld [vmem:[%s10690_s30 + $0x918] sm:$0xf]  ;;  %v9037_v7 = vor.u32 %v10188_v60, %v9036_v59  ;;  %v8845_v54 = vor.u32 %v10140_v43, %v8844_v42  ;;  %v7758_v55 = vld [vmem:[%s10690_s30 + $0x5d8] sm:$0xf0] }
 0x1e1   : > { %v11412_v2 = vadd.f32 %v4374_v61, %v4362_v17  ;;  %v8205_v14 = vor.u32 %v9980_v6, %v8204_v5  ;;  %v8780_v60 = vld [vmem:[%s10690_s30 + $0xd98] sm:$0xf]  ;;  %v9844_v5 = vld [vmem:[%s10690_s30 + $0x51c] sm:$0xf] }
 0x1e2   : > { %4668 = vmatpush.bf16.msrb.mxu2 %v7757_v8  ;;  %4678 = vmatpush.bf16.msrb.mxu3 %v8461_v9  ;;  %v9908_v8 = vld [vmem:[%s10690_s30 + $0x71c] sm:$0xf]  ;;  %v10124_v61 = vld [vmem:[%s10690_s30 + $0xdd4] sm:$0xf0] }
 0x1e3   : > { %v7950_v9 = vld [vmem:[%s10690_s30 + $0x758] sm:$0xf0]  ;;  %v8781_v6 = vor.u32 %v10124_v61, %v8780_v60  ;;  %v9781_v60 = vld [vmem:[%s10690_s30 + $0x324] sm:$0xf] }
 0x1e4   : > { %4642 = vmatpush.bf16.msra.mxu1 %v8777_v18  ;;  %4708 = vmatpush.bf16.msra.mxu0 %v7185_v20  ;;  %v4413_v13 = vpop.f32.mrf.mxu2  ;;  %v7953_v18 = vor.u32 %v9908_v8, %v7950_v9  ;;  %v8140_v20 = vld [vmem:[%s10690_s30 + $0x898] sm:$0xf]  ;;  %v10020_v8 = vld [vmem:[%s10690_s30 + $0xa9c] sm:$0xf] }
 0x1e5   : > { %v11424_v17 = vadd.f32 %v4413_v13, %v11328_v62  ;;  %v10156_v62 = vld [vmem:[%s10690_s30 + $0xed4] sm:$0xf0]  ;;  %v8141_v4 = vor.u32 %v9964_v21, %v8140_v20  ;;  %v8398_v9 = vld [vmem:[%s10690_s30 + $0xad8] sm:$0xf0] }
 0x1e6   : > { %4669 = vmatpush.bf16.msrb.mxu2 %v7693_v27  ;;  %4679 = vmatpush.bf16.msrb.mxu3 %v8397_v28  ;;  %v7886_v27 = vld [vmem:[%s10690_s30 + $0x6d8] sm:$0xf0]  ;;  %v7381_v28 = vor.u32 %v9773_v16, %v7380_v15  ;;  %v8909_v24 = vor.u32 %v10156_v62, %v8908_v22  ;;  %v9709_v15 = vld [vmem:[%s10690_s30 + $0xdc] sm:$0xf0]  ;;  %v8401_v21 = vor.u32 %v10020_v8, %v8398_v9 }
 0x1e7   : > { %v7889_v32 = vor.u32 %v9892_v26, %v7886_v27  ;;  %v8717_v26 = vor.u32 %v10108_v12, %v8716_v11  ;;  %v7630_v27 = vld [vmem:[%s10690_s30 + $0x4d8] sm:$0xf0] }
 0x1e8   : > { %4643 = vmatpush.bf16.msra.mxu1 %v8713_v33  ;;  %4709 = vmatpush.bf16.msra.mxu0 %v7121_v34  ;;  %v4376_v29 = vpop.f32.mrf.mxu3  ;;  %v8076_v33 = vld [vmem:[%s10690_s30 + $0x818] sm:$0xf]  ;;  %v8334_v22 = vld [vmem:[%s10690_s30 + $0xa58] sm:$0xf0] }
 0x1e9   : > { %v9948_v34 = vld [vmem:[%s10690_s30 + $0x854] sm:$0xf0]  ;;  %v8270_v42 = vld [vmem:[%s10690_s30 + $0x9d8] sm:$0xf0] }
 0x1ea   : > { %4670 = vmatpush.bf16.msrb.mxu2 %v7629_v38  ;;  %4680 = vmatpush.bf16.msrb.mxu3 %v8333_v39  ;;  %v10052_v38 = vld [vmem:[%s10690_s30 + $0xb9c] sm:$0xf]  ;;  %v8077_v47 = vor.u32 %v9948_v34, %v8076_v33  ;;  %v8652_v29 = vld [vmem:[%s10690_s30 + $0xc98] sm:$0xf] }
 0x1eb   : > { %v8526_v39 = vld [vmem:[%s10690_s30 + $0xbd8] sm:$0xf0] }
 0x1ec   : > { %4644 = vmatpush.bf16.msra.mxu1 %v8649_v25  ;;  %4710 = vmatpush.bf16.msra.mxu0 %v7057_v53  ;;  %v11444_v44 = vpop.f32.mrf.mxu0  ;;  %v4415_v45 = vpop.f32.mrf.mxu2  ;;  %v9741_v25 = vld [vmem:[%s10690_s30 + $0x1dc] sm:$0xf0]  ;;  %v8529_v52 = vor.u32 %v10052_v38, %v8526_v39  ;;  %v9860_v53 = vld [vmem:[%s10690_s30 + $0x59c] sm:$0xf] }
 0x1ed   : > { %v7253_v59 = vor.u32 %v9741_v25, %v7252_v49  ;;  %v7761_v1 = vor.u32 %v9860_v53, %v7758_v55  ;;  %v7566_v39 = vld [vmem:[%s10690_s30 + $0x458] sm:$0xf0]  ;;  %v8020_v45 = vld [vmem:[%s10690_s30 + $0x7a0] sm:$0xf] }
 0x1ee   : > { %4671 = vmatpush.bf16.msrb.mxu2 %v7565_v57  ;;  %4681 = vmatpush.bf16.msrb.mxu3 %v8269_v48  ;;  %v8462_v57 = vld [vmem:[%s10690_s30 + $0xb58] sm:$0xf0]  ;;  %v7569_v55 = vor.u32 %v9812_v37, %v7566_v39  ;;  %v10061_v37 = vld [vmem:[%s10690_s30 + $0xbdc] sm:$0xf0] }
 0x1ef   : > { %4711 = vmatmul.bf16.vlgmr.msra.gmra.mxu0 %v11025_v46  ;;  %v10164_v12 = vld [vmem:[%s10690_s30 + $0xf1c] sm:$0xf] }
 0x1f0   : > { %4755 = vmatpush.bf16.msrb.mxu0 %v7509_v56  ;;  %4645 = vmatpush.bf16.msra.mxu1 %v8585_v3  ;;  %v11448_v50 = vpop.f32.mrf.mxu1  ;;  %v10036_v56 = vld [vmem:[%s10690_s30 + $0xb1c] sm:$0xf]  ;;  %v4426_v48 = vpop.f32.mrf.mxu3 }
 0x1f1   : > { %4672 = vmatmul.bf16.vlgmr.msrb.gmra.mxu2 %v11076_v0  ;;  %v8465_v3 = vor.u32 %v10036_v56, %v8462_v57  ;;  %v4427_v49 = vadd.f32 %v4426_v48, %v11424_v17  ;;  %v10180_v57 = vld [vmem:[%s10690_s30 + $0xf9c] sm:$0xf]  ;;  %v7446_v48 = vld [vmem:[%s10690_s30 + $0x360] sm:$0xf0] }
 0x1f2   : > { %4716 = vmatpush.bf16.msra.mxu2 %v8017_v63  ;;  %4682 = vmatpush.bf16.msrb.mxu3 %v8205_v14  ;;  %v7188_v63 = vld [vmem:[%s10690_s30 + $0x120] sm:$0xf] }
 0x1f3   : > { %4646 = vmatmul.bf16.vlgmr.msra.gmra.mxu1 %v11135_v35  ;;  %v7124_v14 = vld [vmem:[%s10690_s30 + $0xa0] sm:$0xf] }
 0x1f4   : > { %4690 = vmatpush.bf16.msrb.mxu1 %v9037_v7  ;;  %4756 = vmatpush.bf16.msrb.mxu0 %v7445_v10  ;;  %v7694_v7 = vld [vmem:[%s10690_s30 + $0x558] sm:$0xf0]  ;;  %v7189_v10 = vor.u32 %v9725_v41, %v7188_v63  ;;  %v4506_v13 = vpop.f32.mrf.mxu0  ;;  %v11467_v16 = vpop.f32.mrf.mxu2  ;;  %v7125_v62 = vor.u32 %v9709_v15, %v7124_v14  ;;  %v9765_v14 = vld [vmem:[%s10690_s30 + $0x2a4] sm:$0xf] }
 0x1f5   : > { %v7697_v20 = vor.u32 %v9844_v5, %v7694_v7  ;;  %v9972_v63 = vld [vmem:[%s10690_s30 + $0x91c] sm:$0xf]  ;;  %v9917_v5 = vld [vmem:[%s10690_s30 + $0x75c] sm:$0xf0]  ;;  %v7382_v15 = vld [vmem:[%s10690_s30 + $0x2e0] sm:$0xf0] }
 0x1f6   : > { %4717 = vmatpush.bf16.msra.mxu2 %v7953_v18  ;;  %4683 = vmatpush.bf16.msrb.mxu3 %v8141_v4  ;;  %v10092_v4 = vld [vmem:[%s10690_s30 + $0xcd4] sm:$0xf0]  ;;  %v8206_v41 = vld [vmem:[%s10690_s30 + $0x958] sm:$0xf0] }
 0x1f7   : > { %v8653_v38 = vor.u32 %v10092_v4, %v8652_v29  ;;  %v8209_v11 = vor.u32 %v9972_v63, %v8206_v41  ;;  %v8974_v13 = vld [vmem:[%s10690_s30 + $0xf58] sm:$0xf0]  ;;  %v9749_v4 = vld [vmem:[%s10690_s30 + $0x224] sm:$0xf] }
 0x1f8   : > { %4691 = vmatpush.bf16.msrb.mxu1 %v8973_v23  ;;  %4757 = vmatpush.bf16.msrb.mxu0 %v7381_v28  ;;  %v4389_v18 = vpop.f32.mrf.mxu1  ;;  %v9828_v23 = vld [vmem:[%s10690_s30 + $0x49c] sm:$0xf]  ;;  %v4428_v30 = vpop.f32.mrf.mxu3  ;;  %v9717_v41 = vld [vmem:[%s10690_s30 + $0x124] sm:$0xf] }
 0x1f9   : > { %v10004_v28 = vld [vmem:[%s10690_s30 + $0xa1c] sm:$0xf]  ;;  %v7633_v33 = vor.u32 %v9828_v23, %v7630_v27  ;;  %v9901_v23 = vld [vmem:[%s10690_s30 + $0x6dc] sm:$0xf0]  ;;  %v7318_v30 = vld [vmem:[%s10690_s30 + $0x260] sm:$0xf0] }
 0x1fa   : > { %4718 = vmatpush.bf16.msra.mxu2 %v7889_v32  ;;  %4684 = vmatpush.bf16.msrb.mxu3 %v8077_v47  ;;  %v9693_v32 = vld [vmem:[%s10690_s30 + $0x5c] sm:$0xf0]  ;;  %v8337_v34 = vor.u32 %v10004_v28, %v8334_v22  ;;  %v9956_v18 = vld [vmem:[%s10690_s30 + $0x89c] sm:$0xf]  ;;  %v7385_v22 = vor.u32 %v9765_v14, %v7382_v15 }
 0x1fb   : > { %v7061_v43 = vor.u32 %v9693_v32, %v7060_v31  ;;  %v9933_v47 = vld [vmem:[%s10690_s30 + $0x7dc] sm:$0xf0]  ;;  %v10148_v27 = vld [vmem:[%s10690_s30 + $0xe9c] sm:$0xf] }
 0x1fc   : > { %4692 = vmatpush.bf16.msrb.mxu1 %v8909_v24  ;;  %4758 = vmatpush.bf16.msrb.mxu0 %v7317_v40  ;;  %v7510_v24 = vld [vmem:[%s10690_s30 + $0x3e0] sm:$0xf0]  ;;  %v9988_v40 = vld [vmem:[%s10690_s30 + $0x99c] sm:$0xf]  ;;  %v4467_v53 = vpop.f32.mrf.mxu2  ;;  %v8021_v17 = vor.u32 %v9933_v47, %v8020_v45 }
 0x1fd   : > { %4685 = vmatmul.bf16.vlgmr.msrb.gmra.mxu3 %v11095_v19  ;;  %v7513_v25 = vor.u32 %v9797_v36, %v7510_v24  ;;  %v8273_v56 = vor.u32 %v9988_v40, %v8270_v42  ;;  %v8910_v29 = vld [vmem:[%s10690_s30 + $0xed8] sm:$0xf0]  ;;  %v9885_v36 = vld [vmem:[%s10690_s30 + $0x65c] sm:$0xf0]  ;;  %v7321_v42 = vor.u32 %v9749_v4, %v7318_v30  ;;  %v9685_v30 = vld [vmem:[%s10690_s30 + $0x24] sm:$0xf] }
 0x1fe   : > { %4719 = vmatpush.bf16.msra.mxu2 %v7825_v51  ;;  %4729 = vmatpush.bf16.msra.mxu3 %v8529_v52  ;;  %v8588_v51 = vld [vmem:[%s10690_s30 + $0xc18] sm:$0xf]  ;;  %v9940_v32 = vld [vmem:[%s10690_s30 + $0x81c] sm:$0xf]  ;;  %v8532_v24 = vld [vmem:[%s10690_s30 + $0xba0] sm:$0xf] }
 0x1ff   : > { %v10076_v52 = vld [vmem:[%s10690_s30 + $0xc54] sm:$0xf0]  ;;  %v10132_v45 = vld [vmem:[%s10690_s30 + $0xe1c] sm:$0xf]  ;;  %v7764_v53 = vld [vmem:[%s10690_s30 + $0x5a0] sm:$0xf] }
 0x200   : > { %4693 = vmatpush.bf16.msrb.mxu1 %v8845_v54  ;;  %4759 = vmatpush.bf16.msrb.mxu0 %v7253_v59  ;;  %v4439_v54 = vpop.f32.mrf.mxu1  ;;  %v9038_v59 = vld [vmem:[%s10690_s30 + $0xfd8] sm:$0xf0]  ;;  %v11498_v9 = vpop.f32.mrf.mxu3 }
 0x201   : > { %v4440_v61 = vadd.f32 %v4439_v54, %v4427_v49  ;;  %v9041_v8 = vor.u32 %v10180_v57, %v9038_v59  ;;  %v8846_v47 = vld [vmem:[%s10690_s30 + $0xe58] sm:$0xf0]  ;;  %v9869_v54 = vld [vmem:[%s10690_s30 + $0x5dc] sm:$0xf0] }
 0x202   : > { %4720 = vmatpush.bf16.msra.mxu2 %v7761_v1  ;;  %4730 = vmatpush.bf16.msra.mxu3 %v8465_v3  ;;  %v8589_v1 = vor.u32 %v10076_v52, %v8588_v51  ;;  %v7956_v3 = vld [vmem:[%s10690_s30 + $0x720] sm:$0xf]  ;;  %v9733_v51 = vld [vmem:[%s10690_s30 + $0x1a4] sm:$0xf]  ;;  %v8849_v57 = vor.u32 %v10132_v45, %v8846_v47  ;;  %v8718_v14 = vld [vmem:[%s10690_s30 + $0xd58] sm:$0xf0] }
 0x203   : > { %v5187_v7 = vrot.slane %v4440_v61, 6  ;;  %v7254_v52 = vld [vmem:[%s10690_s30 + $0x1e0] sm:$0xf0]  ;;  %v10116_v61 = vld [vmem:[%s10690_s30 + $0xd9c] sm:$0xf] }
 0x204   : > { %4694 = vmatpush.bf16.msrb.mxu1 %v8781_v6  ;;  %4760 = vmatpush.bf16.msrb.mxu0 %v7189_v10  ;;  %v4388_v6 = vadd.f32 %v11448_v50, %v11412_v2  ;;  %v7449_v10 = vor.u32 %v9781_v60, %v7446_v48  ;;  %v7957_v50 = vor.u32 %v9917_v5, %v7956_v3  ;;  %v7700_v3 = vld [vmem:[%s10690_s30 + $0x520] sm:$0xf]  ;;  %v8654_v4 = vld [vmem:[%s10690_s30 + $0xcd8] sm:$0xf0]  ;;  %v8022_v45 = vld [vmem:[%s10690_s30 + $0x7e0] sm:$0xf0] }
 0x205   : > { %v7257_v60 = vor.u32 %v9733_v51, %v7254_v52  ;;  %v7765_v48 = vor.u32 %v9869_v54, %v7764_v53  ;;  %v9853_v5 = vld [vmem:[%s10690_s30 + $0x55c] sm:$0xf0]  ;;  %v8590_v51 = vld [vmem:[%s10690_s30 + $0xc58] sm:$0xf0] }
 0x206   : > { %4721 = vmatpush.bf16.msra.mxu2 %v7697_v20  ;;  %4731 = vmatpush.bf16.msra.mxu3 %v8401_v21  ;;  %v11504_v2 = vsel %vm5199_vm3, %v4388_v6, %v5187_v7  ;;  %v8142_v20 = vld [vmem:[%s10690_s30 + $0x8d8] sm:$0xf0]  ;;  %v7892_v21 = vld [vmem:[%s10690_s30 + $0x6a0] sm:$0xf] }
 0x207   : > { %v7893_v31 = vor.u32 %v9901_v23, %v7892_v21  ;;  %v8404_v6 = vld [vmem:[%s10690_s30 + $0xaa0] sm:$0xf] }
 0x208   : > { %4695 = vmatpush.bf16.msrb.mxu1 %v8717_v26  ;;  %4761 = vmatpush.bf16.msrb.mxu0 %v7125_v62  ;;  %v8977_v26 = vor.u32 %v10164_v12, %v8974_v13  ;;  %v4441_v28 = vpop.f32.mrf.mxu1  ;;  %v8145_v62 = vor.u32 %v9956_v18, %v8142_v20  ;;  %v4480_v40 = vpop.f32.mrf.mxu3  ;;  %v10029_v7 = vld [vmem:[%s10690_s30 + $0xadc] sm:$0xf0]  ;;  %v10100_v13 = vld [vmem:[%s10690_s30 + $0xd1c] sm:$0xf]  ;;  %v9701_v18 = vld [vmem:[%s10690_s30 + $0xa4] sm:$0xf] }
 0x209   : > { %v8405_v15 = vor.u32 %v10029_v7, %v8404_v6  ;;  %v7126_v20 = vld [vmem:[%s10690_s30 + $0xe0] sm:$0xf0]  ;;  %v7636_v21 = vld [vmem:[%s10690_s30 + $0x4a0] sm:$0xf]  ;;  %v8721_v28 = vor.u32 %v10100_v13, %v8718_v14  ;;  %v9774_v13 = vld [vmem:[%s10690_s30 + $0x2e4] sm:$0xf0] }
 0x20a   : > { %4722 = vmatpush.bf16.msra.mxu2 %v7633_v33  ;;  %4732 = vmatpush.bf16.msra.mxu3 %v8337_v34  ;;  %v8078_v33 = vld [vmem:[%s10690_s30 + $0x858] sm:$0xf0]  ;;  %v7828_v34 = vld [vmem:[%s10690_s30 + $0x620] sm:$0xf] }
 0x20b   : > { %v7829_v49 = vor.u32 %v9885_v36, %v7828_v34  ;;  %v9837_v23 = vld [vmem:[%s10690_s30 + $0x4dc] sm:$0xf0]  ;;  %v7516_v34 = vld [vmem:[%s10690_s30 + $0x3a8] sm:$0xf] }
 0x20c   : > { %4696 = vmatpush.bf16.msrb.mxu1 %v8653_v38  ;;  %4762 = vmatpush.bf16.msrb.mxu0 %v7061_v43  ;;  %v8913_v38 = vor.u32 %v10148_v27, %v8910_v29  ;;  %v11524_v39 = vpop.f32.mrf.mxu0  ;;  %v8081_v43 = vor.u32 %v9940_v32, %v8078_v33  ;;  %v10013_v27 = vld [vmem:[%s10690_s30 + $0xa5c] sm:$0xf0]  ;;  %v10084_v29 = vld [vmem:[%s10690_s30 + $0xc9c] sm:$0xf]  ;;  %v7062_v33 = vld [vmem:[%s10690_s30 + $0x60] sm:$0xf0] }
 0x20d   : > { %v9806_v36 = vld [vmem:[%s10690_s30 + $0x3e4] sm:$0xf0]  ;;  %v8657_v40 = vor.u32 %v10084_v29, %v8654_v4  ;;  %v9044_v54 = vld [vmem:[%s10690_s30 + $0xfa0] sm:$0xf] }
 0x20e   : > { %4723 = vmatpush.bf16.msra.mxu2 %v7569_v55  ;;  %4733 = vmatpush.bf16.msra.mxu3 %v8273_v56  ;;  %v8468_v55 = vld [vmem:[%s10690_s30 + $0xb20] sm:$0xf]  ;;  %v7517_v52 = vor.u32 %v9806_v36, %v7516_v34  ;;  %v7830_v36 = vld [vmem:[%s10690_s30 + $0x660] sm:$0xf0] }
 0x20f   : > { %4763 = vmatmul.bf16.vlgmr.msrb.gmra.mxu0 %v11025_v46  ;;  %v10045_v56 = vld [vmem:[%s10690_s30 + $0xb5c] sm:$0xf0] }
 0x210   : > { %4807 = vmatpush.bf16.msra.mxu0 %v7513_v25  ;;  %4697 = vmatpush.bf16.msrb.mxu1 %v8589_v1  ;;  %v8533_v25 = vor.u32 %v10061_v37, %v8532_v24  ;;  %v11534_v59 = vpop.f32.mrf.mxu1  ;;  %v8469_v63 = vor.u32 %v10045_v56, %v8468_v55  ;;  %v7190_v1 = vld [vmem:[%s10690_s30 + $0x160] sm:$0xf0]  ;;  %v7572_v24 = vld [vmem:[%s10690_s30 + $0x420] sm:$0xf] }
 0x211   : > { %4724 = vmatmul.bf16.vlgmr.msra.gmra.mxu2 %v11076_v0  ;;  %v7193_v12 = vor.u32 %v9717_v41, %v7190_v1  ;;  %v9821_v37 = vld [vmem:[%s10690_s30 + $0x45c] sm:$0xf0] }
 0x212   : > { %4768 = vmatpush.bf16.msrb.mxu2 %v8021_v17  ;;  %4734 = vmatpush.bf16.msra.mxu3 %v8209_v11  ;;  %v8782_v17 = vld [vmem:[%s10690_s30 + $0xdd8] sm:$0xf0]  ;;  %v7573_v53 = vor.u32 %v9821_v37, %v7572_v24  ;;  %v10189_v55 = vld [vmem:[%s10690_s30 + $0xfdc] sm:$0xf0]  ;;  %v10053_v24 = vld [vmem:[%s10690_s30 + $0xba4] sm:$0xf] }
 0x213   : > { %4698 = vmatmul.bf16.vlgmr.msrb.gmra.mxu1 %v11135_v35  ;;  %v9045_v1 = vor.u32 %v10189_v55, %v9044_v54  ;;  %v8980_v7 = vld [vmem:[%s10690_s30 + $0xf20] sm:$0xf]  ;;  %v8534_v37 = vld [vmem:[%s10690_s30 + $0xbe0] sm:$0xf0] }
 0x214   : > { %4742 = vmatpush.bf16.msra.mxu1 %v9041_v8  ;;  %4808 = vmatpush.bf16.msra.mxu0 %v7449_v10  ;;  %v8785_v8 = vor.u32 %v10116_v61, %v8782_v17  ;;  %v11545_v10 = vpop.f32.mrf.mxu2  ;;  %v4558_v11 = vpop.f32.mrf.mxu0  ;;  %v9790_v61 = vld [vmem:[%s10690_s30 + $0x364] sm:$0xf0]  ;;  %v8084_v4 = vld [vmem:[%s10690_s30 + $0x820] sm:$0xf]  ;;  %v10037_v54 = vld [vmem:[%s10690_s30 + $0xb24] sm:$0xf] }
 0x215   : > { %v8470_v55 = vld [vmem:[%s10690_s30 + $0xb60] sm:$0xf0] }
 0x216   : > { %4769 = vmatpush.bf16.msrb.mxu2 %v7957_v50  ;;  %4735 = vmatpush.bf16.msra.mxu3 %v8145_v62  ;;  %v7701_v50 = vor.u32 %v9853_v5, %v7700_v3  ;;  %v7129_v62 = vor.u32 %v9701_v18, %v7126_v20  ;;  %v9909_v3 = vld [vmem:[%s10690_s30 + $0x724] sm:$0xf] }
 0x217   : > { %v7958_v5 = vld [vmem:[%s10690_s30 + $0x760] sm:$0xf0] }
 0x218   : > { %4743 = vmatpush.bf16.msra.mxu1 %v8977_v26  ;;  %4809 = vmatpush.bf16.msra.mxu0 %v7385_v22  ;;  %v8340_v26 = vld [vmem:[%s10690_s30 + $0xa20] sm:$0xf]  ;;  %v4493_v22 = vpop.f32.mrf.mxu1  ;;  %v7961_v14 = vor.u32 %v9909_v3, %v7958_v5  ;;  %v9893_v20 = vld [vmem:[%s10690_s30 + $0x6a4] sm:$0xf] }
 0x219   : > { %v8341_v32 = vor.u32 %v10013_v27, %v8340_v26  ;;  %v8916_v26 = vld [vmem:[%s10690_s30 + $0xea0] sm:$0xf]  ;;  %v7324_v22 = vld [vmem:[%s10690_s30 + $0x228] sm:$0xf]  ;;  %v7702_v3 = vld [vmem:[%s10690_s30 + $0x560] sm:$0xf0] }
 0x21a   : > { %4770 = vmatpush.bf16.msrb.mxu2 %v7893_v31  ;;  %4736 = vmatpush.bf16.msra.mxu3 %v8081_v43  ;;  %v7637_v31 = vor.u32 %v9837_v23, %v7636_v21  ;;  %v9925_v43 = vld [vmem:[%s10690_s30 + $0x7a4] sm:$0xf]  ;;  %v10157_v27 = vld [vmem:[%s10690_s30 + $0xedc] sm:$0xf0] }
 0x21b   : > { %v7894_v21 = vld [vmem:[%s10690_s30 + $0x6e0] sm:$0xf0]  ;;  %v8917_v34 = vor.u32 %v10157_v27, %v8916_v26  ;;  %v9710_v26 = vld [vmem:[%s10690_s30 + $0xe4] sm:$0xf0] }
 0x21c   : > { %4744 = vmatpush.bf16.msra.mxu1 %v8913_v38  ;;  %4810 = vmatpush.bf16.msra.mxu0 %v7321_v42  ;;  %v8276_v38 = vld [vmem:[%s10690_s30 + $0x9a0] sm:$0xf]  ;;  %v4519_v47 = vpop.f32.mrf.mxu2  ;;  %v7897_v29 = vor.u32 %v9893_v20, %v7894_v21 }
 0x21d   : > { %4737 = vmatmul.bf16.vlgmr.msra.gmra.mxu3 %v11095_v19  ;;  %v9997_v42 = vld [vmem:[%s10690_s30 + $0x9dc] sm:$0xf0]  ;;  %v7260_v47 = vld [vmem:[%s10690_s30 + $0x1a8] sm:$0xf] }
 0x21e   : > { %4771 = vmatpush.bf16.msrb.mxu2 %v7829_v49  ;;  %4781 = vmatpush.bf16.msrb.mxu3 %v8533_v25  ;;  %v7065_v49 = vor.u32 %v9685_v30, %v7062_v33  ;;  %v10068_v25 = vld [vmem:[%s10690_s30 + $0xc1c] sm:$0xf]  ;;  %v8277_v56 = vor.u32 %v9997_v42, %v8276_v38  ;;  %v9949_v30 = vld [vmem:[%s10690_s30 + $0x85c] sm:$0xf0] }
 0x21f   : > { %v8593_v17 = vor.u32 %v10068_v25, %v8590_v51  ;;  %v10141_v42 = vld [vmem:[%s10690_s30 + $0xe5c] sm:$0xf0]  ;;  %v8537_v51 = vor.u32 %v10053_v24, %v8534_v37  ;;  %v9694_v24 = vld [vmem:[%s10690_s30 + $0x64] sm:$0xf0] }
 0x220   : > { %4745 = vmatpush.bf16.msra.mxu1 %v8849_v57  ;;  %4811 = vmatpush.bf16.msra.mxu0 %v7257_v60  ;;  %v8025_v57 = vor.u32 %v9925_v43, %v8022_v45  ;;  %v7452_v60 = vld [vmem:[%s10690_s30 + $0x328] sm:$0xf]  ;;  %v4530_v41 = vpop.f32.mrf.mxu3  ;;  %v8085_v45 = vor.u32 %v9949_v30, %v8084_v4  ;;  %v10005_v30 = vld [vmem:[%s10690_s30 + $0xa24] sm:$0xf] }
 0x221   : > { %v7453_v6 = vor.u32 %v9790_v61, %v7452_v60  ;;  %v8788_v60 = vld [vmem:[%s10690_s30 + $0xda0] sm:$0xf] }
 0x222   : > { %4772 = vmatpush.bf16.msrb.mxu2 %v7765_v48  ;;  %4782 = vmatpush.bf16.msrb.mxu3 %v8469_v63  ;;  %v8212_v48 = vld [vmem:[%s10690_s30 + $0x920] sm:$0xf] }
 0x223   : > { %v9981_v63 = vld [vmem:[%s10690_s30 + $0x95c] sm:$0xf0] }
 0x224   : > { %4746 = vmatpush.bf16.msra.mxu1 %v8785_v8  ;;  %4812 = vmatpush.bf16.msra.mxu0 %v7193_v12  ;;  %v10173_v8 = vld [vmem:[%s10690_s30 + $0xf5c] sm:$0xf0]  ;;  %v8213_v11 = vor.u32 %v9981_v63, %v8212_v48  ;;  %v7388_v12 = vld [vmem:[%s10690_s30 + $0x2a8] sm:$0xf] }
 0x225   : > { %v8981_v18 = vor.u32 %v10173_v8, %v8980_v7  ;;  %v7389_v23 = vor.u32 %v9774_v13, %v7388_v12  ;;  %v10125_v61 = vld [vmem:[%s10690_s30 + $0xddc] sm:$0xf0]  ;;  %v7196_v48 = vld [vmem:[%s10690_s30 + $0x128] sm:$0xf]  ;;  %v10021_v8 = vld [vmem:[%s10690_s30 + $0xaa4] sm:$0xf] }
 0x226   : > { %4773 = vmatpush.bf16.msrb.mxu2 %v7701_v50  ;;  %4783 = vmatpush.bf16.msrb.mxu3 %v8405_v15  ;;  %v8148_v50 = vld [vmem:[%s10690_s30 + $0x8a0] sm:$0xf]  ;;  %v9726_v63 = vld [vmem:[%s10690_s30 + $0x164] sm:$0xf0]  ;;  %v8789_v7 = vor.u32 %v10125_v61, %v8788_v60  ;;  %v1259_v12 = vld [vmem:[#allocation2 + $0x10] sm:$0xff] }
 0x227   : > { %v9965_v15 = vld [vmem:[%s10690_s30 + $0x8dc] sm:$0xf0]  ;;  %v9782_v60 = vld [vmem:[%s10690_s30 + $0x32c] sm:$0xf] }
 0x228   : > { %4747 = vmatpush.bf16.msra.mxu1 %v8721_v28  ;;  %4813 = vmatpush.bf16.msra.mxu0 %v7129_v62  ;;  %v8149_v28 = vor.u32 %v9965_v15, %v8148_v50  ;;  %v9758_v62 = vld [vmem:[%s10690_s30 + $0x264] sm:$0xf0]  ;;  %v4532_v33 = vpop.f32.mrf.mxu3  ;;  %v8724_v50 = vld [vmem:[%s10690_s30 + $0xd20] sm:$0xf] }
 0x229   : > { %v7325_v38 = vor.u32 %v9758_v62, %v7324_v22  ;;  %v10109_v15 = vld [vmem:[%s10690_s30 + $0xd5c] sm:$0xf0]  ;;  %v9829_v62 = vld [vmem:[%s10690_s30 + $0x4a4] sm:$0xf] }
 0x22a   : > { %4774 = vmatpush.bf16.msrb.mxu2 %v7637_v31  ;;  %4784 = vmatpush.bf16.msrb.mxu3 %v8341_v32  ;;  %v9877_v31 = vld [vmem:[%s10690_s30 + $0x624] sm:$0xf]  ;;  %v4466_v32 = vadd.f32 %v11467_v16, %v11368_v58  ;;  %v4518_v58 = vadd.f32 %v11545_v10, %v11444_v44  ;;  %v8725_v4 = vor.u32 %v10109_v15, %v8724_v50  ;;  %v8660_v33 = vld [vmem:[%s10690_s30 + $0xca0] sm:$0xf]  ;;  %v7390_v50 = vld [vmem:[%s10690_s30 + $0x2e8] sm:$0xf0] }
 0x22b   : > { %v7833_v25 = vor.u32 %v9877_v31, %v7830_v36  ;;  %v7766_v10 = vld [vmem:[%s10690_s30 + $0x5e0] sm:$0xf0]  ;;  %v7068_v36 = vld [vmem:[%s10690_s30 + $0x28] sm:$0xf] }
 0x22c   : > { %4748 = vmatpush.bf16.msra.mxu1 %v8657_v40  ;;  %4814 = vmatpush.bf16.msra.mxu0 %v7065_v49  ;;  %v8852_v40 = vld [vmem:[%s10690_s30 + $0xe20] sm:$0xf]  ;;  %v4479_v43 = vadd.f32 %v11498_v9, %v4466_v32  ;;  %v11605_v16 = vpop.f32.mrf.mxu0  ;;  %v9742_v49 = vld [vmem:[%s10690_s30 + $0x1e4] sm:$0xf0]  ;;  %v8342_v31 = vld [vmem:[%s10690_s30 + $0xa60] sm:$0xf0] }
 0x22d   : > { %v8853_v44 = vor.u32 %v10141_v42, %v8852_v40  ;;  %v9798_v40 = vld [vmem:[%s10690_s30 + $0x3ac] sm:$0xf]  ;;  %v9957_v15 = vld [vmem:[%s10690_s30 + $0x8a4] sm:$0xf] }
 0x22e   : > { %4775 = vmatpush.bf16.msrb.mxu2 %v7573_v53  ;;  %4785 = vmatpush.bf16.msrb.mxu3 %v8277_v56  ;;  %v4492_v9 = vadd.f32 %v11534_v59, %v4479_v43  ;;  %v4531_v53 = vadd.f32 %v4530_v41, %v4518_v58  ;;  %v8473_v41 = vor.u32 %v10037_v54, %v8470_v55  ;;  %v7518_v42 = vld [vmem:[%s10690_s30 + $0x3e8] sm:$0xf0]  ;;  %v9813_v43 = vld [vmem:[%s10690_s30 + $0x424] sm:$0xf] }
 0x22f   : > { %4815 = vmatmul.bf16.vlgmr.msra.gmra.mxu0 %v11025_v46 }
 0x230   : > { %4859 = vmatpush.bf16.msrb.mxu0 %v7517_v52  ;;  %4749 = vmatpush.bf16.msra.mxu1 %v8593_v17  ;;  %v9861_v52 = vld [vmem:[%s10690_s30 + $0x5a4] sm:$0xf]  ;;  %v4543_v56 = vpop.f32.mrf.mxu1  ;;  %v5188_v5 = vrot.slane %v4492_v9, 4  ;;  %v9934_v9 = vld [vmem:[%s10690_s30 + $0x7e4] sm:$0xf0] }
 0x231   : > { %4776 = vmatmul.bf16.vlgmr.msrb.gmra.mxu2 %v11076_v0  ;;  %v4544_v17 = vadd.f32 %v4543_v56, %v4531_v53  ;;  %v7769_v59 = vor.u32 %v9861_v52, %v7766_v10  ;;  %v8028_v52 = vld [vmem:[%s10690_s30 + $0x7a8] sm:$0xf]  ;;  %v7521_v53 = vor.u32 %v9798_v40, %v7518_v42  ;;  %v10077_v10 = vld [vmem:[%s10690_s30 + $0xc5c] sm:$0xf0]  ;;  %v10181_v56 = vld [vmem:[%s10690_s30 + $0xfa4] sm:$0xf] }
 0x232   : > { %4820 = vmatpush.bf16.msra.mxu2 %v8025_v57  ;;  %4786 = vmatpush.bf16.msrb.mxu3 %v8213_v11  ;;  %v7261_v57 = vor.u32 %v9742_v49, %v7260_v47  ;;  %v8406_v11 = vld [vmem:[%s10690_s30 + $0xae0] sm:$0xf0]  ;;  %v8029_v61 = vor.u32 %v9934_v9, %v8028_v52  ;;  %v10046_v52 = vld [vmem:[%s10690_s30 + $0xb64] sm:$0xf0] }
 0x233   : > { %4750 = vmatmul.bf16.vlgmr.msra.gmra.mxu1 %v11135_v35  ;;  %v8409_v22 = vor.u32 %v10021_v8, %v8406_v11  ;;  %v9989_v47 = vld [vmem:[%s10690_s30 + $0x9a4] sm:$0xf] }
 0x234   : > { %4794 = vmatpush.bf16.msrb.mxu1 %v9045_v1  ;;  %4860 = vmatpush.bf16.msrb.mxu0 %v7453_v6  ;;  %v9845_v1 = vld [vmem:[%s10690_s30 + $0x524] sm:$0xf]  ;;  %v5189_v6 = vrot.slane %v4544_v17, 2  ;;  %v4569_v13 = vpop.f32.mrf.mxu2  ;;  %v4610_v21 = vpop.f32.mrf.mxu0  ;;  %v7454_v17 = vld [vmem:[%s10690_s30 + $0x368] sm:$0xf0] }
 0x235   : > { %v11627_v20 = vadd.f32 %v4569_v13, %v11524_v39  ;;  %v7638_v39 = vld [vmem:[%s10690_s30 + $0x4e0] sm:$0xf0]  ;;  %v9766_v13 = vld [vmem:[%s10690_s30 + $0x2ac] sm:$0xf]  ;;  %v7900_v21 = vld [vmem:[%s10690_s30 + $0x6a8] sm:$0xf] }
 0x236   : > { %4821 = vmatpush.bf16.msra.mxu2 %v7961_v14  ;;  %4787 = vmatpush.bf16.msrb.mxu3 %v8149_v28  ;;  %v7197_v14 = vor.u32 %v9726_v63, %v7196_v48  ;;  %v7705_v28 = vor.u32 %v9845_v1, %v7702_v3  ;;  %v7641_v37 = vor.u32 %v9829_v62, %v7638_v39  ;;  %v8278_v49 = vld [vmem:[%s10690_s30 + $0x9e0] sm:$0xf0]  ;;  %v9918_v1 = vld [vmem:[%s10690_s30 + $0x764] sm:$0xf0]  ;;  %v9750_v62 = vld [vmem:[%s10690_s30 + $0x22c] sm:$0xf] }
 0x237   : > { %v8281_v55 = vor.u32 %v9989_v47, %v8278_v49  ;;  %v9973_v48 = vld [vmem:[%s10690_s30 + $0x924] sm:$0xf]  ;;  %v7262_v47 = vld [vmem:[%s10690_s30 + $0x1e8] sm:$0xf0]  ;;  %v7772_v49 = vld [vmem:[%s10690_s30 + $0x5a8] sm:$0xf] }
 0x238   : > { %4795 = vmatpush.bf16.msrb.mxu1 %v8981_v18  ;;  %4861 = vmatpush.bf16.msrb.mxu0 %v7389_v23  ;;  %v5202_v18 = vsel %vm5201_vm4, %v5188_v5, %v5189_v6  ;;  %v7132_v23 = vld [vmem:[%s10690_s30 + $0xa8] sm:$0xf]  ;;  %v4545_v32 = vpop.f32.mrf.mxu1  ;;  %v8214_v63 = vld [vmem:[%s10690_s30 + $0x960] sm:$0xf0] }
 0x239   : > { %v5203_v27 = vsel %vm1084_vm1, %v11504_v2, %v5202_v18  ;;  %v7133_v2 = vor.u32 %v9710_v26, %v7132_v23  ;;  %v8217_v8 = vor.u32 %v9973_v48, %v8214_v63  ;;  %v10165_v11 = vld [vmem:[%s10690_s30 + $0xf24] sm:$0xf]  ;;  %v9886_v32 = vld [vmem:[%s10690_s30 + $0x664] sm:$0xf0] }
 0x23a   : > { %4822 = vmatpush.bf16.msra.mxu2 %v7897_v29  ;;  %4788 = vmatpush.bf16.msrb.mxu3 %v8085_v45  ;;  %v5217_v29 = vadd.f32 %v5203_v27, %v1259_v12  ;;  %v7574_v45 = vld [vmem:[%s10690_s30 + $0x460] sm:$0xf0]  ;;  %v7393_v27 = vor.u32 %v9766_v13, %v7390_v50  ;;  %v9854_v48 = vld [vmem:[%s10690_s30 + $0x564] sm:$0xf0]  ;;  %v9702_v13 = vld [vmem:[%s10690_s30 + $0xac] sm:$0xf] }
 0x23b   : > { %v7577_v54 = vor.u32 %v9813_v43, %v7574_v45  ;;  %v8982_v12 = vld [vmem:[%s10690_s30 + $0xf60] sm:$0xf0]  ;;  %v9734_v45 = vld [vmem:[%s10690_s30 + $0x1ac] sm:$0xf]  ;;  %v8412_v63 = vld [vmem:[%s10690_s30 + $0xaa8] sm:$0xf] }
 0x23c   : > { %4796 = vmatpush.bf16.msrb.mxu1 %v8917_v34  ;;  %4862 = vmatpush.bf16.msrb.mxu0 %v7325_v38  ;;  %v10093_v34 = vld [vmem:[%s10690_s30 + $0xcdc] sm:$0xf0]  ;;  %5221 = vst [vmem:[#allocation2 + $0x10] sm:$0xff] %v5217_v29  ;;  %v8345_v38 = vor.u32 %v10005_v30, %v8342_v31  ;;  %v8150_v18 = vld [vmem:[%s10690_s30 + $0x8e0] sm:$0xf0]  ;;  %v8985_v23 = vor.u32 %v10165_v11, %v8982_v12 }
 0x23d   : > { %4789 = vmatmul.bf16.vlgmr.msrb.gmra.mxu3 %v11095_v19  ;;  %v8661_v58 = vor.u32 %v10093_v34, %v8660_v33  ;;  %v10149_v26 = vld [vmem:[%s10690_s30 + $0xea4] sm:$0xf]  ;;  %v7326_v29 = vld [vmem:[%s10690_s30 + $0x268] sm:$0xf0]  ;;  %v7836_v31 = vld [vmem:[%s10690_s30 + $0x628] sm:$0xf] }
 0x23e   : > { %4823 = vmatpush.bf16.msra.mxu2 %v7833_v25  ;;  %4833 = vmatpush.bf16.msra.mxu3 %v8537_v51  ;;  %v4571_v25 = vpop.f32.mrf.mxu2  ;;  %v7069_v51 = vor.u32 %v9694_v24, %v7068_v36  ;;  %v9941_v39 = vld [vmem:[%s10690_s30 + $0x824] sm:$0xf]  ;;  %v10062_v33 = vld [vmem:[%s10690_s30 + $0xbe4] sm:$0xf0]  ;;  %v7837_v43 = vor.u32 %v9886_v32, %v7836_v31 }
 0x23f   : > { %v8086_v30 = vld [vmem:[%s10690_s30 + $0x860] sm:$0xf0]  ;;  %v9870_v25 = vld [vmem:[%s10690_s30 + $0x5e4] sm:$0xf0] }
 0x240   : > { %4797 = vmatpush.bf16.msrb.mxu1 %v8853_v44  ;;  %4863 = vmatpush.bf16.msrb.mxu0 %v7261_v57  ;;  %v8596_v44 = vld [vmem:[%s10690_s30 + $0xc20] sm:$0xf]  ;;  %v9046_v57 = vld [vmem:[%s10690_s30 + $0xfe0] sm:$0xf0]  ;;  %v4582_v3 = vpop.f32.mrf.mxu3  ;;  %v7644_v50 = vld [vmem:[%s10690_s30 + $0x4a8] sm:$0xf] }
 0x241   : > { %v9049_v5 = vor.u32 %v10181_v56, %v9046_v57  ;;  %v11660_v6 = vadd.f32 %v4582_v3, %v11627_v20  ;;  %v9902_v20 = vld [vmem:[%s10690_s30 + $0x6e4] sm:$0xf0]  ;;  %v10133_v40 = vld [vmem:[%s10690_s30 + $0xe24] sm:$0xf]  ;;  %v7773_v56 = vor.u32 %v9870_v25, %v7772_v49 }
 0x242   : > { %4824 = vmatpush.bf16.msra.mxu2 %v7769_v59  ;;  %4834 = vmatpush.bf16.msra.mxu3 %v8473_v41  ;;  %v8597_v59 = vor.u32 %v10077_v10, %v8596_v44  ;;  %v7964_v41 = vld [vmem:[%s10690_s30 + $0x728] sm:$0xf]  ;;  %v8854_v42 = vld [vmem:[%s10690_s30 + $0xe60] sm:$0xf0]  ;;  %v7265_v44 = vor.u32 %v9734_v45, %v7262_v47 }
 0x243   : > { %v8857_v9 = vor.u32 %v10133_v40, %v8854_v42  ;;  %v10117_v10 = vld [vmem:[%s10690_s30 + $0xda4] sm:$0xf]  ;;  %v9822_v31 = vld [vmem:[%s10690_s30 + $0x464] sm:$0xf0] }
 0x244   : > { %4798 = vmatpush.bf16.msrb.mxu1 %v8789_v7  ;;  %4864 = vmatpush.bf16.msrb.mxu0 %v7197_v14  ;;  %v7457_v7 = vor.u32 %v9782_v60, %v7454_v17  ;;  %v7965_v14 = vor.u32 %v9918_v1, %v7964_v41  ;;  %v9718_v60 = vld [vmem:[%s10690_s30 + $0x12c] sm:$0xf]  ;;  %v7708_v17 = vld [vmem:[%s10690_s30 + $0x528] sm:$0xf]  ;;  %v10069_v40 = vld [vmem:[%s10690_s30 + $0xc24] sm:$0xf] }
 0x245   : > { %v7709_v11 = vor.u32 %v9854_v48, %v7708_v17  ;;  %v8284_v32 = vld [vmem:[%s10690_s30 + $0x9a8] sm:$0xf]  ;;  %v8598_v42 = vld [vmem:[%s10690_s30 + $0xc60] sm:$0xf0] }
 0x246   : > { %4825 = vmatpush.bf16.msra.mxu2 %v7705_v28  ;;  %4835 = vmatpush.bf16.msra.mxu3 %v8409_v22  ;;  %v8153_v28 = vor.u32 %v9957_v15, %v8150_v18  ;;  %v8918_v22 = vld [vmem:[%s10690_s30 + $0xee0] sm:$0xf0]  ;;  %v9838_v15 = vld [vmem:[%s10690_s30 + $0x4e4] sm:$0xf0] }
 0x247   : > { %v8921_v36 = vor.u32 %v10149_v26, %v8918_v22  ;;  %v8348_v18 = vld [vmem:[%s10690_s30 + $0xa28] sm:$0xf]  ;;  %v10085_v26 = vld [vmem:[%s10690_s30 + $0xca4] sm:$0xf]  ;;  %v7645_v22 = vor.u32 %v9838_v15, %v7644_v50  ;;  %v7332_v50 = vld [vmem:[%s10690_s30 + $0x230] sm:$0xf] }
 0x248   : > { %4799 = vmatpush.bf16.msrb.mxu1 %v8725_v4  ;;  %4865 = vmatpush.bf16.msrb.mxu0 %v7133_v2  ;;  %v7901_v4 = vor.u32 %v9902_v20, %v7900_v21  ;;  %v8540_v2 = vld [vmem:[%s10690_s30 + $0xba8] sm:$0xf]  ;;  %v4584_v34 = vpop.f32.mrf.mxu3  ;;  %v9759_v15 = vld [vmem:[%s10690_s30 + $0x26c] sm:$0xf0] }
 0x249   : > { %v10014_v21 = vld [vmem:[%s10690_s30 + $0xa64] sm:$0xf0]  ;;  %v9926_v34 = vld [vmem:[%s10690_s30 + $0x7ac] sm:$0xf] }
 0x24a   : > { %4826 = vmatpush.bf16.msra.mxu2 %v7641_v37  ;;  %4836 = vmatpush.bf16.msra.mxu3 %v8345_v38  ;;  %v7329_v37 = vor.u32 %v9750_v62, %v7326_v29  ;;  %v8089_v38 = vor.u32 %v9941_v39, %v8086_v30  ;;  %v8349_v62 = vor.u32 %v10014_v21, %v8348_v18  ;;  %v7070_v29 = vld [vmem:[%s10690_s30 + $0x68] sm:$0xf0]  ;;  %v9807_v39 = vld [vmem:[%s10690_s30 + $0x3ec] sm:$0xf0]  ;;  %v7580_v30 = vld [vmem:[%s10690_s30 + $0x428] sm:$0xf] }
 0x24b   : > { %v9052_v45 = vld [vmem:[%s10690_s30 + $0xfa8] sm:$0xf] }
 0x24c   : > { %4800 = vmatpush.bf16.msrb.mxu1 %v8661_v58  ;;  %4866 = vmatpush.bf16.msrb.mxu0 %v7069_v51  ;;  %v11683_v24 = vpop.f32.mrf.mxu0  ;;  %v8541_v58 = vor.u32 %v10062_v33, %v8540_v2  ;;  %v8476_v51 = vld [vmem:[%s10690_s30 + $0xb28] sm:$0xf] }
 0x24d   : > { %v8477_v57 = vor.u32 %v10046_v52, %v8476_v51  ;;  %v9998_v33 = vld [vmem:[%s10690_s30 + $0x9e4] sm:$0xf0]  ;;  %v7460_v51 = vld [vmem:[%s10690_s30 + $0x330] sm:$0xf] }
 0x24e   : > { %4827 = vmatpush.bf16.msra.mxu2 %v7577_v54  ;;  %4837 = vmatpush.bf16.msra.mxu3 %v8281_v55  ;;  %v8790_v54 = vld [vmem:[%s10690_s30 + $0xde0] sm:$0xf0]  ;;  %v10190_v47 = vld [vmem:[%s10690_s30 + $0xfe4] sm:$0xf0]  ;;  %v8285_v49 = vor.u32 %v9998_v33, %v8284_v32  ;;  %v9791_v52 = vld [vmem:[%s10690_s30 + $0x36c] sm:$0xf0] }
 0x24f   : > { %4867 = vmatmul.bf16.vlgmr.msrb.gmra.mxu0 %v11025_v46  ;;  %v8793_v41 = vor.u32 %v10117_v10, %v8790_v54  ;;  %v9053_v54 = vor.u32 %v10190_v47, %v9052_v45  ;;  %v8988_v17 = vld [vmem:[%s10690_s30 + $0xf28] sm:$0xf]  ;;  %v9743_v32 = vld [vmem:[%s10690_s30 + $0x1ec] sm:$0xf0] }
 0x250   : > { %4911 = vmatpush.bf16.msra.mxu0 %v7521_v53  ;;  %4801 = vmatpush.bf16.msrb.mxu1 %v8597_v59  ;;  %v4595_v53 = vpop.f32.mrf.mxu1  ;;  %v10030_v59 = vld [vmem:[%s10690_s30 + $0xae4] sm:$0xf0] }
 0x251   : > { %4828 = vmatmul.bf16.vlgmr.msra.gmra.mxu2 %v11076_v0  ;;  %v11696_v55 = vadd.f32 %v4595_v53, %v11660_v6  ;;  %v10101_v6 = vld [vmem:[%s10690_s30 + $0xd24] sm:$0xf]  ;;  %v8413_v12 = vor.u32 %v10030_v59, %v8412_v63  ;;  %v8220_v53 = vld [vmem:[%s10690_s30 + $0x928] sm:$0xf]  ;;  %v7396_v59 = vld [vmem:[%s10690_s30 + $0x2b0] sm:$0xf] }
 0x252   : > { %4872 = vmatpush.bf16.msrb.mxu2 %v8029_v61  ;;  %4838 = vmatpush.bf16.msra.mxu3 %v8217_v8  ;;  %v7198_v61 = vld [vmem:[%s10690_s30 + $0x168] sm:$0xf0]  ;;  %v10174_v48 = vld [vmem:[%s10690_s30 + $0xf64] sm:$0xf0] }
 0x253   : > { %4802 = vmatmul.bf16.vlgmr.msrb.gmra.mxu1 %v11135_v35  ;;  %v8092_v21 = vld [vmem:[%s10690_s30 + $0x828] sm:$0xf] }
 0x254   : > { %4846 = vmatpush.bf16.msra.mxu1 %v9049_v5  ;;  %4912 = vmatpush.bf16.msra.mxu0 %v7457_v7  ;;  %v4621_v1 = vpop.f32.mrf.mxu2  ;;  %v4662_v3 = vpop.f32.mrf.mxu0  ;;  %v7201_v5 = vor.u32 %v9718_v60, %v7198_v61  ;;  %v8726_v7 = vld [vmem:[%s10690_s30 + $0xd60] sm:$0xf0]  ;;  %v7461_v61 = vor.u32 %v9791_v52, %v7460_v51  ;;  %v10126_v45 = vld [vmem:[%s10690_s30 + $0xde4] sm:$0xf0] }
 0x255   : > { %v4622_v8 = vadd.f32 %v4621_v1, %v11605_v16  ;;  %v8729_v20 = vor.u32 %v10101_v6, %v8726_v7  ;;  %v8156_v3 = vld [vmem:[%s10690_s30 + $0x8a8] sm:$0xf]  ;;  %v8989_v6 = vor.u32 %v10174_v48, %v8988_v17  ;;  %v9894_v7 = vld [vmem:[%s10690_s30 + $0x6ac] sm:$0xf] }
 0x256   : > { %4873 = vmatpush.bf16.msrb.mxu2 %v7965_v14  ;;  %4839 = vmatpush.bf16.msra.mxu3 %v8153_v28  ;;  %v7134_v14 = vld [vmem:[%s10690_s30 + $0xe8] sm:$0xf0]  ;;  %v10110_v17 = vld [vmem:[%s10690_s30 + $0xd64] sm:$0xf0] }
 0x257   : > { %v9686_v28 = vld [vmem:[%s10690_s30 + $0x2c] sm:$0xf] }
 0x258   : > { %4847 = vmatpush.bf16.msra.mxu1 %v8985_v23  ;;  %4913 = vmatpush.bf16.msra.mxu0 %v7393_v27  ;;  %v4597_v16 = vpop.f32.mrf.mxu1  ;;  %v7137_v23 = vor.u32 %v9702_v13, %v7134_v14  ;;  %v8662_v27 = vld [vmem:[%s10690_s30 + $0xce0] sm:$0xf0]  ;;  %v10158_v13 = vld [vmem:[%s10690_s30 + $0xee4] sm:$0xf0] }
 0x259   : > { %v8665_v2 = vor.u32 %v10085_v26, %v8662_v27  ;;  %v9878_v16 = vld [vmem:[%s10690_s30 + $0x62c] sm:$0xf] }
 0x25a   : > { %4874 = vmatpush.bf16.msrb.mxu2 %v7901_v4  ;;  %4840 = vmatpush.bf16.msra.mxu3 %v8089_v38  ;;  %v7524_v4 = vld [vmem:[%s10690_s30 + $0x3b0] sm:$0xf]  ;;  %v7073_v38 = vor.u32 %v9686_v28, %v7070_v29  ;;  %v7838_v27 = vld [vmem:[%s10690_s30 + $0x668] sm:$0xf0]  ;;  %v8860_v29 = vld [vmem:[%s10690_s30 + $0xe28] sm:$0xf] }
 0x25b   : > { %v10054_v28 = vld [vmem:[%s10690_s30 + $0xbac] sm:$0xf] }
 0x25c   : > { %4848 = vmatpush.bf16.msra.mxu1 %v8921_v36  ;;  %4914 = vmatpush.bf16.msra.mxu0 %v7329_v37  ;;  %v8030_v36 = vld [vmem:[%s10690_s30 + $0x7e8] sm:$0xf0]  ;;  %v4623_v37 = vpop.f32.mrf.mxu2 }
 0x25d   : > { %4841 = vmatmul.bf16.vlgmr.msra.gmra.mxu3 %v11095_v19  ;;  %v8033_v25 = vor.u32 %v9926_v34, %v8030_v36  ;;  %v9862_v34 = vld [vmem:[%s10690_s30 + $0x5ac] sm:$0xf] }
 0x25e   : > { %4875 = vmatpush.bf16.msrb.mxu2 %v7837_v43  ;;  %4885 = vmatpush.bf16.msrb.mxu3 %v8541_v58  ;;  %v7525_v43 = vor.u32 %v9807_v39, %v7524_v4  ;;  %v7581_v58 = vor.u32 %v9822_v31, %v7580_v30  ;;  %v10142_v4 = vld [vmem:[%s10690_s30 + $0xe64] sm:$0xf0]  ;;  %v7268_v31 = vld [vmem:[%s10690_s30 + $0x1b0] sm:$0xf]  ;;  %v7774_v37 = vld [vmem:[%s10690_s30 + $0x5e8] sm:$0xf0] }
 0x25f   : > { %v8861_v36 = vor.u32 %v10142_v4, %v8860_v29  ;;  %v7777_v51 = vor.u32 %v9862_v34, %v7774_v37  ;;  %v8036_v4 = vld [vmem:[%s10690_s30 + $0x7b0] sm:$0xf]  ;;  %v9054_v37 = vld [vmem:[%s10690_s30 + $0xfe8] sm:$0xf0] }
 0x260   : > { %4849 = vmatpush.bf16.msra.mxu1 %v8857_v9  ;;  %4915 = vmatpush.bf16.msra.mxu0 %v7265_v44  ;;  %v8601_v9 = vor.u32 %v10069_v40, %v8598_v42  ;;  %v9982_v44 = vld [vmem:[%s10690_s30 + $0x964] sm:$0xf0]  ;;  %v4634_v10 = vpop.f32.mrf.mxu3  ;;  %v8478_v40 = vld [vmem:[%s10690_s30 + $0xb68] sm:$0xf0] }
 0x261   : > { %v11736_v60 = vadd.f32 %v4634_v10, %v4622_v8  ;;  %v8221_v63 = vor.u32 %v9982_v44, %v8220_v53  ;;  %v7902_v8 = vld [vmem:[%s10690_s30 + $0x6e8] sm:$0xf0] }
 0x262   : > { %4876 = vmatpush.bf16.msrb.mxu2 %v7773_v56  ;;  %4886 = vmatpush.bf16.msrb.mxu3 %v8477_v57  ;;  %v9910_v56 = vld [vmem:[%s10690_s30 + $0x72c] sm:$0xf]  ;;  %v7905_v18 = vor.u32 %v9894_v7, %v7902_v8 }
 0x263   : > { %v7966_v57 = vld [vmem:[%s10690_s30 + $0x768] sm:$0xf0] }
 0x264   : > { %4850 = vmatpush.bf16.msra.mxu1 %v8793_v41  ;;  %4916 = vmatpush.bf16.msra.mxu0 %v7201_v5  ;;  %v9775_v41 = vld [vmem:[%s10690_s30 + $0x2ec] sm:$0xf0]  ;;  %v7969_v1 = vor.u32 %v9910_v56, %v7966_v57  ;;  %v9966_v5 = vld [vmem:[%s10690_s30 + $0x8e4] sm:$0xf0]  ;;  %v7710_v53 = vld [vmem:[%s10690_s30 + $0x568] sm:$0xf0] }
 0x265   : > { %v8157_v14 = vor.u32 %v9966_v5, %v8156_v3  ;;  %v8414_v56 = vld [vmem:[%s10690_s30 + $0xae8] sm:$0xf0] }
 0x266   : > { %4877 = vmatpush.bf16.msrb.mxu2 %v7709_v11  ;;  %4887 = vmatpush.bf16.msrb.mxu3 %v8413_v12  ;;  %v7397_v11 = vor.u32 %v9775_v41, %v7396_v59  ;;  %v8924_v12 = vld [vmem:[%s10690_s30 + $0xea8] sm:$0xf]  ;;  %v7140_v59 = vld [vmem:[%s10690_s30 + $0xb0] sm:$0xf]  ;;  %v9830_v5 = vld [vmem:[%s10690_s30 + $0x4ac] sm:$0xf] }
 0x267   : > { %v8925_v26 = vor.u32 %v10158_v13, %v8924_v12  ;;  %v9711_v41 = vld [vmem:[%s10690_s30 + $0xec] sm:$0xf0]  ;;  %v7646_v7 = vld [vmem:[%s10690_s30 + $0x4e8] sm:$0xf0]  ;;  %v8668_v13 = vld [vmem:[%s10690_s30 + $0xca8] sm:$0xf] }
 0x268   : > { %4851 = vmatpush.bf16.msra.mxu1 %v8729_v20  ;;  %4917 = vmatpush.bf16.msra.mxu0 %v7137_v23  ;;  %v9950_v20 = vld [vmem:[%s10690_s30 + $0x864] sm:$0xf0]  ;;  %v4636_v23 = vpop.f32.mrf.mxu3  ;;  %v8350_v8 = vld [vmem:[%s10690_s30 + $0xa68] sm:$0xf0]  ;;  %v7141_v12 = vor.u32 %v9711_v41, %v7140_v59 }
 0x269   : > { %v8093_v30 = vor.u32 %v9950_v20, %v8092_v21  ;;  %v9799_v20 = vld [vmem:[%s10690_s30 + $0x3b4] sm:$0xf]  ;;  %v9814_v23 = vld [vmem:[%s10690_s30 + $0x42c] sm:$0xf] }
 0x26a   : > { %4878 = vmatpush.bf16.msrb.mxu2 %v7645_v22  ;;  %4888 = vmatpush.bf16.msrb.mxu3 %v8349_v62  ;;  %v8542_v22 = vld [vmem:[%s10690_s30 + $0xbe8] sm:$0xf0]  ;;  %v7333_v62 = vor.u32 %v9759_v15, %v7332_v50  ;;  %v7076_v50 = vld [vmem:[%s10690_s30 + $0x30] sm:$0xf] }
 0x26b   : > { %v8545_v33 = vor.u32 %v10054_v28, %v8542_v22  ;;  %v9695_v15 = vld [vmem:[%s10690_s30 + $0x6c] sm:$0xf0]  ;;  %v9990_v28 = vld [vmem:[%s10690_s30 + $0x9ac] sm:$0xf] }
 0x26c   : > { %4852 = vmatpush.bf16.msra.mxu1 %v8665_v2  ;;  %4918 = vmatpush.bf16.msra.mxu0 %v7073_v38  ;;  %v11761_v39 = vpop.f32.mrf.mxu0  ;;  %v7841_v2 = vor.u32 %v9878_v16, %v7838_v27  ;;  %v10038_v38 = vld [vmem:[%s10690_s30 + $0xb2c] sm:$0xf]  ;;  %v7526_v16 = vld [vmem:[%s10690_s30 + $0x3f0] sm:$0xf0]  ;;  %v7077_v29 = vor.u32 %v9695_v15, %v7076_v50  ;;  %v10063_v50 = vld [vmem:[%s10690_s30 + $0xbec] sm:$0xf0] }
 0x26d   : > { %v8481_v52 = vor.u32 %v10038_v38, %v8478_v40  ;;  %v7582_v27 = vld [vmem:[%s10690_s30 + $0x468] sm:$0xf0]  ;;  %v9783_v38 = vld [vmem:[%s10690_s30 + $0x334] sm:$0xf] }
 0x26e   : > { %4879 = vmatpush.bf16.msrb.mxu2 %v7581_v58  ;;  %4889 = vmatpush.bf16.msrb.mxu3 %v8285_v49  ;;  %v8796_v58 = vld [vmem:[%s10690_s30 + $0xda8] sm:$0xf]  ;;  %v7204_v49 = vld [vmem:[%s10690_s30 + $0x130] sm:$0xf]  ;;  %v8286_v22 = vld [vmem:[%s10690_s30 + $0x9e8] sm:$0xf0] }
 0x26f   : > { %4919 = vmatmul.bf16.vlgmr.msra.gmra.mxu0 %v11025_v46  ;;  %v8797_v10 = vor.u32 %v10126_v45, %v8796_v58  ;;  %v8289_v34 = vor.u32 %v9990_v28, %v8286_v22  ;;  %v8222_v58 = vld [vmem:[%s10690_s30 + $0x968] sm:$0xf0]  ;;  %v9735_v22 = vld [vmem:[%s10690_s30 + $0x1b4] sm:$0xf] }
 0x270   : > { %4963 = vmatpush.bf16.msrb.mxu0 %v7525_v43  ;;  %4853 = vmatpush.bf16.msra.mxu1 %v8601_v9  ;;  %v4647_v42 = vpop.f32.mrf.mxu1  ;;  %v7269_v43 = vor.u32 %v9743_v32, %v7268_v31  ;;  %v9846_v9 = vld [vmem:[%s10690_s30 + $0x52c] sm:$0xf]  ;;  %v7529_v31 = vor.u32 %v9799_v20, %v7526_v16  ;;  %v8604_v32 = vld [vmem:[%s10690_s30 + $0xc28] sm:$0xf] }
 0x271   : > { %4880 = vmatmul.bf16.vlgmr.msrb.gmra.mxu2 %v11076_v0  ;;  %v4648_v47 = vadd.f32 %v4647_v42, %v11736_v60  ;;  %v7462_v42 = vld [vmem:[%s10690_s30 + $0x370] sm:$0xf0]  ;;  %v10150_v41 = vld [vmem:[%s10690_s30 + $0xeac] sm:$0xf] }
 0x272   : > { %4924 = vmatpush.bf16.msra.mxu2 %v8033_v25  ;;  %4890 = vmatpush.bf16.msrb.mxu3 %v8221_v63  ;;  %v9727_v25 = vld [vmem:[%s10690_s30 + $0x16c] sm:$0xf0] }
 0x273   : > { %4854 = vmatmul.bf16.vlgmr.msra.gmra.mxu1 %v11135_v35  ;;  %v5190_v44 = vrot.slane %v4648_v47, 6  ;;  %v7205_v60 = vor.u32 %v9727_v25, %v7204_v49  ;;  %v7972_v47 = vld [vmem:[%s10690_s30 + $0x730] sm:$0xf] }
 0x274   : > { %4898 = vmatpush.bf16.msrb.mxu1 %v9053_v54  ;;  %4964 = vmatpush.bf16.msrb.mxu0 %v7461_v61  ;;  %v10022_v54 = vld [vmem:[%s10690_s30 + $0xaac] sm:$0xf]  ;;  %v11779_v57 = vpop.f32.mrf.mxu2  ;;  %v8732_v61 = vld [vmem:[%s10690_s30 + $0xd28] sm:$0xf]  ;;  %v4714_v63 = vpop.f32.mrf.mxu0  ;;  %v9919_v49 = vld [vmem:[%s10690_s30 + $0x76c] sm:$0xf0] }
 0x275   : > { %v11785_v48 = vsel %vm5199_vm3, %v11696_v55, %v5190_v44  ;;  %v8417_v3 = vor.u32 %v10022_v54, %v8414_v56  ;;  %v10006_v55 = vld [vmem:[%s10690_s30 + $0xa2c] sm:$0xf]  ;;  %v7973_v54 = vor.u32 %v9919_v49, %v7972_v47  ;;  %v7398_v56 = vld [vmem:[%s10690_s30 + $0x2f0] sm:$0xf0]  ;;  %v9903_v63 = vld [vmem:[%s10690_s30 + $0x6ec] sm:$0xf0] }
 0x276   : > { %4925 = vmatpush.bf16.msra.mxu2 %v7969_v1  ;;  %4891 = vmatpush.bf16.msrb.mxu3 %v8157_v14  ;;  %v7713_v1 = vor.u32 %v9846_v9, %v7710_v53  ;;  %v10094_v14 = vld [vmem:[%s10690_s30 + $0xce4] sm:$0xf0]  ;;  %v8353_v21 = vor.u32 %v10006_v55, %v8350_v8  ;;  %v10166_v53 = vld [vmem:[%s10690_s30 + $0xf2c] sm:$0xf]  ;;  %v10031_v47 = vld [vmem:[%s10690_s30 + $0xaec] sm:$0xf0] }
 0x277   : > { %v8990_v44 = vld [vmem:[%s10690_s30 + $0xf68] sm:$0xf0] }
 0x278   : > { %4899 = vmatpush.bf16.msrb.mxu1 %v8989_v6  ;;  %4965 = vmatpush.bf16.msrb.mxu0 %v7397_v11  ;;  %v8733_v6 = vor.u32 %v10110_v17, %v8732_v61  ;;  %v4649_v11 = vpop.f32.mrf.mxu1  ;;  %v8158_v61 = vld [vmem:[%s10690_s30 + $0x8e8] sm:$0xf0]  ;;  %v7908_v17 = vld [vmem:[%s10690_s30 + $0x6b0] sm:$0xf]  ;;  %v8993_v59 = vor.u32 %v10166_v53, %v8990_v44 }
 0x279   : > { %v7909_v55 = vor.u32 %v9903_v63, %v7908_v17  ;;  %v9942_v8 = vld [vmem:[%s10690_s30 + $0x82c] sm:$0xf]  ;;  %v9839_v17 = vld [vmem:[%s10690_s30 + $0x4ec] sm:$0xf0] }
 0x27a   : > { %4926 = vmatpush.bf16.msra.mxu2 %v7905_v18  ;;  %4892 = vmatpush.bf16.msrb.mxu3 %v8093_v30  ;;  %v7649_v18 = vor.u32 %v9830_v5, %v7646_v7  ;;  %v9935_v30 = vld [vmem:[%s10690_s30 + $0x7ec] sm:$0xf0]  ;;  %v8926_v5 = vld [vmem:[%s10690_s30 + $0xee8] sm:$0xf0]  ;;  %v7334_v7 = vld [vmem:[%s10690_s30 + $0x270] sm:$0xf0] }
 0x27b   : > { %v8037_v40 = vor.u32 %v9935_v30, %v8036_v4  ;;  %v8094_v11 = vld [vmem:[%s10690_s30 + $0x868] sm:$0xf0]  ;;  %v9871_v4 = vld [vmem:[%s10690_s30 + $0x5ec] sm:$0xf0] }
 0x27c   : > { %4900 = vmatpush.bf16.msrb.mxu1 %v8925_v26  ;;  %4966 = vmatpush.bf16.msrb.mxu0 %v7333_v62  ;;  %v8669_v26 = vor.u32 %v10094_v14, %v8668_v13  ;;  %v4675_v62 = vpop.f32.mrf.mxu2  ;;  %v9887_v13 = vld [vmem:[%s10690_s30 + $0x66c] sm:$0xf0]  ;;  %v8097_v16 = vor.u32 %v9942_v8, %v8094_v11  ;;  %v10102_v53 = vld [vmem:[%s10690_s30 + $0xd2c] sm:$0xf]  ;;  %v7078_v11 = vld [vmem:[%s10690_s30 + $0x70] sm:$0xf0] }
 0x27d   : > { %4893 = vmatmul.bf16.vlgmr.msrb.gmra.mxu3 %v11095_v19  ;;  %v8548_v14 = vld [vmem:[%s10690_s30 + $0xbb0] sm:$0xf]  ;;  %v7270_v62 = vld [vmem:[%s10690_s30 + $0x1f0] sm:$0xf0]  ;;  %v8734_v44 = vld [vmem:[%s10690_s30 + $0xd68] sm:$0xf0] }
 0x27e   : > { %4927 = vmatpush.bf16.msra.mxu2 %v7841_v2  ;;  %4937 = vmatpush.bf16.msra.mxu3 %v8545_v33  ;;  %v10078_v2 = vld [vmem:[%s10690_s30 + $0xc64] sm:$0xf0]  ;;  %v7585_v33 = vor.u32 %v9814_v23, %v7582_v27  ;;  %v10134_v23 = vld [vmem:[%s10690_s30 + $0xe2c] sm:$0xf]  ;;  %v8549_v28 = vor.u32 %v10063_v50, %v8548_v14  ;;  %v8484_v30 = vld [vmem:[%s10690_s30 + $0xb30] sm:$0xf] }
 0x27f   : > { %v8605_v45 = vor.u32 %v10078_v2, %v8604_v32  ;;  %v8356_v63 = vld [vmem:[%s10690_s30 + $0xa30] sm:$0xf] }
 0x280   : > { %4901 = vmatpush.bf16.msrb.mxu1 %v8861_v36  ;;  %4967 = vmatpush.bf16.msrb.mxu0 %v7269_v43  ;;  %v10182_v36 = vld [vmem:[%s10690_s30 + $0xfac] sm:$0xf]  ;;  %v11815_v25 = vpop.f32.mrf.mxu3  ;;  %v7588_v14 = vld [vmem:[%s10690_s30 + $0x430] sm:$0xf] }
 0x281   : > { %v9974_v43 = vld [vmem:[%s10690_s30 + $0x92c] sm:$0xf]  ;;  %v9823_v50 = vld [vmem:[%s10690_s30 + $0x46c] sm:$0xf0] }
 0x282   : > { %4928 = vmatpush.bf16.msra.mxu2 %v7777_v51  ;;  %4938 = vmatpush.bf16.msra.mxu3 %v8481_v52  ;;  %v9057_v51 = vor.u32 %v10182_v36, %v9054_v37  ;;  %v7465_v52 = vor.u32 %v9783_v38, %v7462_v42  ;;  %v8225_v9 = vor.u32 %v9974_v43, %v8222_v58  ;;  %v8798_v36 = vld [vmem:[%s10690_s30 + $0xde8] sm:$0xf0]  ;;  %v7206_v42 = vld [vmem:[%s10690_s30 + $0x170] sm:$0xf0]  ;;  %v7716_v43 = vld [vmem:[%s10690_s30 + $0x530] sm:$0xf] }
 0x283   : > { %v9855_v58 = vld [vmem:[%s10690_s30 + $0x56c] sm:$0xf0] }
 0x284   : > { %4902 = vmatpush.bf16.msrb.mxu1 %v8797_v10  ;;  %4968 = vmatpush.bf16.msrb.mxu0 %v7205_v60  ;;  %v9767_v10 = vld [vmem:[%s10690_s30 + $0x2b4] sm:$0xf]  ;;  %v9958_v60 = vld [vmem:[%s10690_s30 + $0x8ac] sm:$0xf] }
 0x286   : > { %4929 = vmatpush.bf16.msra.mxu2 %v7713_v1  ;;  %4939 = vmatpush.bf16.msra.mxu3 %v8417_v3  ;;  %v7401_v1 = vor.u32 %v9767_v10, %v7398_v56  ;;  %v8161_v3 = vor.u32 %v9958_v60, %v8158_v61  ;;  %v7717_v10 = vor.u32 %v9855_v58, %v7716_v43  ;;  %v9703_v56 = vld [vmem:[%s10690_s30 + $0xb4] sm:$0xf]  ;;  %v7652_v61 = vld [vmem:[%s10690_s30 + $0x4b0] sm:$0xf] }
 0x287   : > { %v7142_v60 = vld [vmem:[%s10690_s30 + $0xf0] sm:$0xf0] }
 0x288   : > { %4903 = vmatpush.bf16.msrb.mxu1 %v8733_v6  ;;  %4969 = vmatpush.bf16.msrb.mxu0 %v7141_v12  ;;  %v9751_v6 = vld [vmem:[%s10690_s30 + $0x234] sm:$0xf]  ;;  %v7844_v12 = vld [vmem:[%s10690_s30 + $0x630] sm:$0xf]  ;;  %v4688_v15 = vpop.f32.mrf.mxu3 }
 0x289   : > { %v7337_v20 = vor.u32 %v9751_v6, %v7334_v7  ;;  %v7845_v27 = vor.u32 %v9887_v13, %v7844_v12  ;;  %v8670_v6 = vld [vmem:[%s10690_s30 + $0xce8] sm:$0xf0]  ;;  %v9687_v7 = vld [vmem:[%s10690_s30 + $0x34] sm:$0xf]  ;;  %v7532_v12 = vld [vmem:[%s10690_s30 + $0x3b8] sm:$0xf] }
 0x28a   : > { %4930 = vmatpush.bf16.msra.mxu2 %v7649_v18  ;;  %4940 = vmatpush.bf16.msra.mxu3 %v8353_v21  ;;  %v8929_v18 = vor.u32 %v10150_v41, %v8926_v5  ;;  %v8737_v41 = vor.u32 %v10102_v53, %v8734_v44  ;;  %v10086_v5 = vld [vmem:[%s10690_s30 + $0xcac] sm:$0xf]  ;;  %v9808_v13 = vld [vmem:[%s10690_s30 + $0x3f4] sm:$0xf0]  ;;  %v8292_v15 = vld [vmem:[%s10690_s30 + $0x9b0] sm:$0xf] }
 0x28b   : > { %v9911_v43 = vld [vmem:[%s10690_s30 + $0x734] sm:$0xf]  ;;  %v9776_v53 = vld [vmem:[%s10690_s30 + $0x2f4] sm:$0xf0] }
 0x28c   : > { %4904 = vmatpush.bf16.msrb.mxu1 %v8669_v26  ;;  %4970 = vmatpush.bf16.msrb.mxu0 %v7077_v29  ;;  %v11838_v21 = vpop.f32.mrf.mxu0  ;;  %v8862_v26 = vld [vmem:[%s10690_s30 + $0xe68] sm:$0xf0]  ;;  %v7780_v29 = vld [vmem:[%s10690_s30 + $0x5b0] sm:$0xf]  ;;  %v7974_v58 = vld [vmem:[%s10690_s30 + $0x770] sm:$0xf0] }
 0x28d   : > { %v8865_v32 = vor.u32 %v10134_v23, %v8862_v26  ;;  %v7781_v37 = vor.u32 %v9871_v4, %v7780_v29  ;;  %v8038_v23 = vld [vmem:[%s10690_s30 + $0x7f0] sm:$0xf0]  ;;  %v7589_v29 = vor.u32 %v9823_v50, %v7588_v14  ;;  %v9060_v4 = vld [vmem:[%s10690_s30 + $0xfb0] sm:$0xf]  ;;  %v7977_v44 = vor.u32 %v9911_v43, %v7974_v58 }
 0x28e   : > { %4931 = vmatpush.bf16.msra.mxu2 %v7585_v33  ;;  %4941 = vmatpush.bf16.msra.mxu3 %v8289_v34  ;;  %v7273_v33 = vor.u32 %v9735_v22, %v7270_v62  ;;  %v10118_v34 = vld [vmem:[%s10690_s30 + $0xdac] sm:$0xf]  ;;  %v7533_v62 = vor.u32 %v9808_v13, %v7532_v12  ;;  %v7846_v13 = vld [vmem:[%s10690_s30 + $0x670] sm:$0xf0] }
 0x28f   : > { %4971 = vmatmul.bf16.vlgmr.msrb.gmra.mxu0 %v11025_v46  ;;  %v8801_v49 = vor.u32 %v10118_v34, %v8798_v36  ;;  %v8606_v22 = vld [vmem:[%s10690_s30 + $0xc68] sm:$0xf0]  ;;  %v9792_v34 = vld [vmem:[%s10690_s30 + $0x374] sm:$0xf0]  ;;  %v10055_v14 = vld [vmem:[%s10690_s30 + $0xbb4] sm:$0xf] }
 0x290   : > { %5015 = vmatpush.bf16.msra.mxu0 %v7529_v31  ;;  %4905 = vmatpush.bf16.msrb.mxu1 %v8605_v45  ;;  %v10047_v31 = vld [vmem:[%s10690_s30 + $0xb6c] sm:$0xf0]  ;;  %v11848_v2 = vpop.f32.mrf.mxu1  ;;  %v8550_v50 = vld [vmem:[%s10690_s30 + $0xbf0] sm:$0xf0] }
 0x291   : > { %4932 = vmatmul.bf16.vlgmr.msra.gmra.mxu2 %v11076_v0  ;;  %v8485_v38 = vor.u32 %v10047_v31, %v8484_v30  ;;  %v8420_v45 = vld [vmem:[%s10690_s30 + $0xab0] sm:$0xf]  ;;  %v7718_v43 = vld [vmem:[%s10690_s30 + $0x570] sm:$0xf0] }
 0x292   : > { %4976 = vmatpush.bf16.msrb.mxu2 %v8037_v40  ;;  %4942 = vmatpush.bf16.msra.mxu3 %v8225_v9  ;;  %v9719_v40 = vld [vmem:[%s10690_s30 + $0x134] sm:$0xf]  ;;  %v10191_v30 = vld [vmem:[%s10690_s30 + $0xfec] sm:$0xf0] }
 0x293   : > { %4906 = vmatmul.bf16.vlgmr.msrb.gmra.mxu1 %v11135_v35  ;;  %v7209_v9 = vor.u32 %v9719_v40, %v7206_v42  ;;  %v9061_v42 = vor.u32 %v10191_v30, %v9060_v4  ;;  %v10039_v4 = vld [vmem:[%s10690_s30 + $0xb34] sm:$0xf] }
 0x294   : > { %4950 = vmatpush.bf16.msra.mxu1 %v9057_v51  ;;  %5016 = vmatpush.bf16.msra.mxu0 %v7465_v52  ;;  %v11859_v51 = vpop.f32.mrf.mxu2  ;;  %v4766_v52 = vpop.f32.mrf.mxu0  ;;  %v8486_v30 = vld [vmem:[%s10690_s30 + $0xb70] sm:$0xf0] }
 0x296   : > { %4977 = vmatpush.bf16.msrb.mxu2 %v7973_v54  ;;  %4943 = vmatpush.bf16.msra.mxu3 %v8161_v3  ;;  %v8421_v54 = vor.u32 %v10031_v47, %v8420_v45  ;;  %v7145_v3 = vor.u32 %v9703_v56, %v7142_v60  ;;  %v8996_v47 = vld [vmem:[%s10690_s30 + $0xf30] sm:$0xf]  ;;  %v9895_v60 = vld [vmem:[%s10690_s30 + $0x6b4] sm:$0xf] }
 0x298   : > { %4951 = vmatpush.bf16.msra.mxu1 %v8993_v59  ;;  %5017 = vmatpush.bf16.msra.mxu0 %v7401_v1  ;;  %v10015_v59 = vld [vmem:[%s10690_s30 + $0xa6c] sm:$0xf0]  ;;  %v4701_v1 = vpop.f32.mrf.mxu1 }
 0x299   : > { %v8357_v8 = vor.u32 %v10015_v59, %v8356_v63  ;;  %v8932_v63 = vld [vmem:[%s10690_s30 + $0xeb0] sm:$0xf]  ;;  %v7340_v1 = vld [vmem:[%s10690_s30 + $0x238] sm:$0xf] }
 0x29a   : > { %4978 = vmatpush.bf16.msrb.mxu2 %v7909_v55  ;;  %4944 = vmatpush.bf16.msra.mxu3 %v8097_v16  ;;  %v7653_v55 = vor.u32 %v9839_v17, %v7652_v61  ;;  %v9927_v16 = vld [vmem:[%s10690_s30 + $0x7b4] sm:$0xf]  ;;  %v10159_v59 = vld [vmem:[%s10690_s30 + $0xeec] sm:$0xf0] }
 0x29b   : > { %v7910_v61 = vld [vmem:[%s10690_s30 + $0x6f0] sm:$0xf0]  ;;  %v8933_v12 = vor.u32 %v10159_v59, %v8932_v63  ;;  %v9712_v63 = vld [vmem:[%s10690_s30 + $0xf4] sm:$0xf0] }
 0x29c   : > { %4952 = vmatpush.bf16.msra.mxu1 %v8929_v18  ;;  %5018 = vmatpush.bf16.msra.mxu0 %v7337_v20  ;;  %v8673_v18 = vor.u32 %v10086_v5, %v8670_v6  ;;  %v9999_v20 = vld [vmem:[%s10690_s30 + $0x9ec] sm:$0xf0]  ;;  %v4727_v26 = vpop.f32.mrf.mxu2  ;;  %v7913_v5 = vor.u32 %v9895_v60, %v7910_v61 }
 0x29d   : > { %4945 = vmatmul.bf16.vlgmr.msra.gmra.mxu3 %v11095_v19  ;;  %v8293_v31 = vor.u32 %v9999_v20, %v8292_v15  ;;  %v8100_v6 = vld [vmem:[%s10690_s30 + $0x830] sm:$0xf]  ;;  %v7276_v26 = vld [vmem:[%s10690_s30 + $0x1b8] sm:$0xf] }
 0x29e   : > { %4979 = vmatpush.bf16.msrb.mxu2 %v7845_v27  ;;  %4989 = vmatpush.bf16.msrb.mxu3 %v8549_v28  ;;  %v7081_v27 = vor.u32 %v9687_v7, %v7078_v11  ;;  %v10070_v28 = vld [vmem:[%s10690_s30 + $0xc2c] sm:$0xf]  ;;  %v9951_v7 = vld [vmem:[%s10690_s30 + $0x86c] sm:$0xf0] }
 0x29f   : > { %v8609_v36 = vor.u32 %v10070_v28, %v8606_v22  ;;  %v10143_v20 = vld [vmem:[%s10690_s30 + $0xe6c] sm:$0xf0]  ;;  %v8553_v22 = vor.u32 %v10055_v14, %v8550_v50  ;;  %v9696_v14 = vld [vmem:[%s10690_s30 + $0x74] sm:$0xf0] }
 0x2a0   : > { %4953 = vmatpush.bf16.msra.mxu1 %v8865_v32  ;;  %5019 = vmatpush.bf16.msra.mxu0 %v7273_v33  ;;  %v8041_v32 = vor.u32 %v9927_v16, %v8038_v23  ;;  %v7468_v33 = vld [vmem:[%s10690_s30 + $0x338] sm:$0xf]  ;;  %v4738_v40 = vpop.f32.mrf.mxu3  ;;  %v8101_v23 = vor.u32 %v9951_v7, %v8100_v6  ;;  %v10007_v7 = vld [vmem:[%s10690_s30 + $0xa34] sm:$0xf] }
 0x2a1   : > { %v7469_v45 = vor.u32 %v9792_v34, %v7468_v33  ;;  %v8804_v33 = vld [vmem:[%s10690_s30 + $0xdb0] sm:$0xf] }
 0x2a2   : > { %4980 = vmatpush.bf16.msrb.mxu2 %v7781_v37  ;;  %4990 = vmatpush.bf16.msrb.mxu3 %v8485_v38  ;;  %v8228_v37 = vld [vmem:[%s10690_s30 + $0x930] sm:$0xf] }
 0x2a3   : > { %v9983_v38 = vld [vmem:[%s10690_s30 + $0x96c] sm:$0xf0] }
 0x2a4   : > { %4954 = vmatpush.bf16.msra.mxu1 %v8801_v49  ;;  %5020 = vmatpush.bf16.msra.mxu0 %v7209_v9  ;;  %v10175_v49 = vld [vmem:[%s10690_s30 + $0xf6c] sm:$0xf0]  ;;  %v8229_v52 = vor.u32 %v9983_v38, %v8228_v37  ;;  %v7404_v9 = vld [vmem:[%s10690_s30 + $0x2b8] sm:$0xf] }
 0x2a5   : > { %v8997_v56 = vor.u32 %v10175_v49, %v8996_v47  ;;  %v7405_v17 = vor.u32 %v9776_v53, %v7404_v9  ;;  %v10127_v34 = vld [vmem:[%s10690_s30 + $0xdec] sm:$0xf0]  ;;  %v7212_v37 = vld [vmem:[%s10690_s30 + $0x138] sm:$0xf]  ;;  %v10023_v49 = vld [vmem:[%s10690_s30 + $0xab4] sm:$0xf] }
 0x2a6   : > { %4981 = vmatpush.bf16.msrb.mxu2 %v7717_v10  ;;  %4991 = vmatpush.bf16.msrb.mxu3 %v8421_v54  ;;  %v8164_v10 = vld [vmem:[%s10690_s30 + $0x8b0] sm:$0xf]  ;;  %v9728_v38 = vld [vmem:[%s10690_s30 + $0x174] sm:$0xf0]  ;;  %v8805_v47 = vor.u32 %v10127_v34, %v8804_v33  ;;  %v1260_v9 = vld [vmem:[#allocation2] sm:$0xff] }
 0x2a7   : > { %v9967_v54 = vld [vmem:[%s10690_s30 + $0x8ec] sm:$0xf0]  ;;  %v9784_v33 = vld [vmem:[%s10690_s30 + $0x33c] sm:$0xf] }
 0x2a8   : > { %4955 = vmatpush.bf16.msra.mxu1 %v8737_v41  ;;  %5021 = vmatpush.bf16.msra.mxu0 %v7145_v3  ;;  %v8165_v41 = vor.u32 %v9967_v54, %v8164_v10  ;;  %v9760_v3 = vld [vmem:[%s10690_s30 + $0x274] sm:$0xf0]  ;;  %v4740_v11 = vpop.f32.mrf.mxu3  ;;  %v8740_v10 = vld [vmem:[%s10690_s30 + $0xd30] sm:$0xf] }
 0x2a9   : > { %v7341_v15 = vor.u32 %v9760_v3, %v7340_v1  ;;  %v10111_v54 = vld [vmem:[%s10690_s30 + $0xd6c] sm:$0xf0]  ;;  %v9831_v3 = vld [vmem:[%s10690_s30 + $0x4b4] sm:$0xf] }
 0x2aa   : > { %4982 = vmatpush.bf16.msrb.mxu2 %v7653_v55  ;;  %4992 = vmatpush.bf16.msrb.mxu3 %v8357_v8  ;;  %v9879_v55 = vld [vmem:[%s10690_s30 + $0x634] sm:$0xf]  ;;  %v4674_v8 = vadd.f32 %v11779_v57, %v11683_v24  ;;  %v4726_v24 = vadd.f32 %v11859_v51, %v11761_v39  ;;  %v8741_v6 = vor.u32 %v10111_v54, %v8740_v10  ;;  %v8676_v11 = vld [vmem:[%s10690_s30 + $0xcb0] sm:$0xf]  ;;  %v7406_v10 = vld [vmem:[%s10690_s30 + $0x2f8] sm:$0xf0] }
 0x2ab   : > { %v7849_v28 = vor.u32 %v9879_v55, %v7846_v13  ;;  %v7782_v51 = vld [vmem:[%s10690_s30 + $0x5f0] sm:$0xf0]  ;;  %v7084_v13 = vld [vmem:[%s10690_s30 + $0x38] sm:$0xf] }
 0x2ac   : > { %4956 = vmatpush.bf16.msra.mxu1 %v8673_v18  ;;  %5022 = vmatpush.bf16.msra.mxu0 %v7081_v27  ;;  %v8868_v18 = vld [vmem:[%s10690_s30 + $0xe30] sm:$0xf]  ;;  %v4687_v16 = vadd.f32 %v11815_v25, %v4674_v8  ;;  %v11919_v57 = vpop.f32.mrf.mxu0  ;;  %v9744_v27 = vld [vmem:[%s10690_s30 + $0x1f4] sm:$0xf0]  ;;  %v8358_v55 = vld [vmem:[%s10690_s30 + $0xa70] sm:$0xf0] }
 0x2ad   : > { %v8869_v39 = vor.u32 %v10143_v20, %v8868_v18  ;;  %v9800_v18 = vld [vmem:[%s10690_s30 + $0x3bc] sm:$0xf]  ;;  %v9959_v54 = vld [vmem:[%s10690_s30 + $0x8b4] sm:$0xf] }
 0x2ae   : > { %4983 = vmatpush.bf16.msrb.mxu2 %v7589_v29  ;;  %4993 = vmatpush.bf16.msrb.mxu3 %v8293_v31  ;;  %v4700_v25 = vadd.f32 %v11848_v2, %v4687_v16  ;;  %v4739_v29 = vadd.f32 %v4738_v40, %v4726_v24  ;;  %v8489_v40 = vor.u32 %v10039_v4, %v8486_v30  ;;  %v7534_v20 = vld [vmem:[%s10690_s30 + $0x3f8] sm:$0xf0]  ;;  %v9815_v16 = vld [vmem:[%s10690_s30 + $0x434] sm:$0xf] }
 0x2af   : > { %5023 = vmatmul.bf16.vlgmr.msra.gmra.mxu0 %v11025_v46 }
 0x2b0   : > { %5067 = vmatpush.bf16.msrb.mxu0 %v7533_v62  ;;  %4957 = vmatpush.bf16.msra.mxu1 %v8609_v36  ;;  %v9863_v62 = vld [vmem:[%s10690_s30 + $0x5b4] sm:$0xf]  ;;  %v4751_v31 = vpop.f32.mrf.mxu1  ;;  %v5191_v58 = vrot.slane %v4700_v25, 4  ;;  %v9936_v25 = vld [vmem:[%s10690_s30 + $0x7f4] sm:$0xf0] }
 0x2b1   : > { %4984 = vmatmul.bf16.vlgmr.msrb.gmra.mxu2 %v11076_v0  ;;  %v4752_v36 = vadd.f32 %v4751_v31, %v4739_v29  ;;  %v7785_v2 = vor.u32 %v9863_v62, %v7782_v51  ;;  %v8044_v62 = vld [vmem:[%s10690_s30 + $0x7b8] sm:$0xf]  ;;  %v7537_v29 = vor.u32 %v9800_v18, %v7534_v20  ;;  %v10079_v51 = vld [vmem:[%s10690_s30 + $0xc6c] sm:$0xf0]  ;;  %v10183_v31 = vld [vmem:[%s10690_s30 + $0xfb4] sm:$0xf] }
 0x2b2   : > { %5028 = vmatpush.bf16.msra.mxu2 %v8041_v32  ;;  %4994 = vmatpush.bf16.msrb.mxu3 %v8229_v52  ;;  %v7277_v32 = vor.u32 %v9744_v27, %v7276_v26  ;;  %v8422_v52 = vld [vmem:[%s10690_s30 + $0xaf0] sm:$0xf0]  ;;  %v8045_v34 = vor.u32 %v9936_v25, %v8044_v62  ;;  %v10048_v62 = vld [vmem:[%s10690_s30 + $0xb74] sm:$0xf0] }
 0x2b3   : > { %4958 = vmatmul.bf16.vlgmr.msra.gmra.mxu1 %v11135_v35  ;;  %v8425_v1 = vor.u32 %v10023_v49, %v8422_v52  ;;  %v9991_v26 = vld [vmem:[%s10690_s30 + $0x9b4] sm:$0xf] }
 0x2b4   : > { %5002 = vmatpush.bf16.msrb.mxu1 %v9061_v42  ;;  %5068 = vmatpush.bf16.msrb.mxu0 %v7469_v45  ;;  %v9847_v42 = vld [vmem:[%s10690_s30 + $0x534] sm:$0xf]  ;;  %v5192_v45 = vrot.slane %v4752_v36, 2  ;;  %v4777_v53 = vpop.f32.mrf.mxu2  ;;  %v4818_v61 = vpop.f32.mrf.mxu0  ;;  %v7470_v36 = vld [vmem:[%s10690_s30 + $0x378] sm:$0xf0] }
 0x2b5   : > { %v11941_v60 = vadd.f32 %v4777_v53, %v11838_v21  ;;  %v7654_v21 = vld [vmem:[%s10690_s30 + $0x4f0] sm:$0xf0]  ;;  %v9768_v53 = vld [vmem:[%s10690_s30 + $0x2bc] sm:$0xf]  ;;  %v7916_v61 = vld [vmem:[%s10690_s30 + $0x6b8] sm:$0xf] }
 0x2b6   : > { %5029 = vmatpush.bf16.msra.mxu2 %v7977_v44  ;;  %4995 = vmatpush.bf16.msrb.mxu3 %v8165_v41  ;;  %v7213_v44 = vor.u32 %v9728_v38, %v7212_v37  ;;  %v7721_v41 = vor.u32 %v9847_v42, %v7718_v43  ;;  %v7657_v50 = vor.u32 %v9831_v3, %v7654_v21  ;;  %v8294_v27 = vld [vmem:[%s10690_s30 + $0x9f0] sm:$0xf0]  ;;  %v9920_v42 = vld [vmem:[%s10690_s30 + $0x774] sm:$0xf0]  ;;  %v9752_v3 = vld [vmem:[%s10690_s30 + $0x23c] sm:$0xf] }
 0x2b7   : > { %v8297_v30 = vor.u32 %v9991_v26, %v8294_v27  ;;  %v9975_v37 = vld [vmem:[%s10690_s30 + $0x934] sm:$0xf]  ;;  %v7278_v26 = vld [vmem:[%s10690_s30 + $0x1f8] sm:$0xf0]  ;;  %v7788_v27 = vld [vmem:[%s10690_s30 + $0x5b8] sm:$0xf] }
 0x2b8   : > { %5003 = vmatpush.bf16.msrb.mxu1 %v8997_v56  ;;  %5069 = vmatpush.bf16.msrb.mxu0 %v7405_v17  ;;  %v5205_v56 = vsel %vm5201_vm4, %v5191_v58, %v5192_v45  ;;  %v7148_v17 = vld [vmem:[%s10690_s30 + $0xb8] sm:$0xf]  ;;  %v4753_v8 = vpop.f32.mrf.mxu1  ;;  %v8230_v38 = vld [vmem:[%s10690_s30 + $0x970] sm:$0xf0] }
 0x2b9   : > { %v5206_v59 = vsel %vm1084_vm1, %v11785_v48, %v5205_v56  ;;  %v7149_v48 = vor.u32 %v9712_v63, %v7148_v17  ;;  %v8233_v49 = vor.u32 %v9975_v37, %v8230_v38  ;;  %v10167_v52 = vld [vmem:[%s10690_s30 + $0xf34] sm:$0xf]  ;;  %v9888_v8 = vld [vmem:[%s10690_s30 + $0x674] sm:$0xf0] }
 0x2ba   : > { %5030 = vmatpush.bf16.msra.mxu2 %v7913_v5  ;;  %4996 = vmatpush.bf16.msrb.mxu3 %v8101_v23  ;;  %v5218_v5 = vadd.f32 %v5206_v59, %v1260_v9  ;;  %v7590_v23 = vld [vmem:[%s10690_s30 + $0x470] sm:$0xf0]  ;;  %v7409_v59 = vor.u32 %v9768_v53, %v7406_v10  ;;  %v9856_v37 = vld [vmem:[%s10690_s30 + $0x574] sm:$0xf0]  ;;  %v9704_v53 = vld [vmem:[%s10690_s30 + $0xbc] sm:$0xf] }
 0x2bb   : > { %v7593_v4 = vor.u32 %v9815_v16, %v7590_v23  ;;  %v8998_v9 = vld [vmem:[%s10690_s30 + $0xf70] sm:$0xf0]  ;;  %v9736_v23 = vld [vmem:[%s10690_s30 + $0x1bc] sm:$0xf]  ;;  %v8428_v38 = vld [vmem:[%s10690_s30 + $0xab8] sm:$0xf] }
 0x2bc   : > { %5004 = vmatpush.bf16.msrb.mxu1 %v8933_v12  ;;  %5070 = vmatpush.bf16.msrb.mxu0 %v7341_v15  ;;  %v10095_v12 = vld [vmem:[%s10690_s30 + $0xcec] sm:$0xf0]  ;;  %5222 = vst [vmem:[#allocation2] sm:$0xff] %v5218_v5  ;;  %v8361_v15 = vor.u32 %v10007_v7, %v8358_v55  ;;  %v8166_v56 = vld [vmem:[%s10690_s30 + $0x8f0] sm:$0xf0]  ;;  %v9001_v17 = vor.u32 %v10167_v52, %v8998_v9 }
 0x2bd   : > { %4997 = vmatmul.bf16.vlgmr.msrb.gmra.mxu3 %v11095_v19  ;;  %v8677_v24 = vor.u32 %v10095_v12, %v8676_v11  ;;  %v10151_v63 = vld [vmem:[%s10690_s30 + $0xeb4] sm:$0xf]  ;;  %v7342_v5 = vld [vmem:[%s10690_s30 + $0x278] sm:$0xf0]  ;;  %v7852_v55 = vld [vmem:[%s10690_s30 + $0x638] sm:$0xf] }
 0x2be   : > { %5031 = vmatpush.bf16.msra.mxu2 %v7849_v28  ;;  %5041 = vmatpush.bf16.msra.mxu3 %v8553_v22  ;;  %v4779_v28 = vpop.f32.mrf.mxu2  ;;  %v7085_v22 = vor.u32 %v9696_v14, %v7084_v13  ;;  %v9943_v21 = vld [vmem:[%s10690_s30 + $0x834] sm:$0xf]  ;;  %v10064_v11 = vld [vmem:[%s10690_s30 + $0xbf4] sm:$0xf0]  ;;  %v7853_v16 = vor.u32 %v9888_v8, %v7852_v55 }
 0x2bf   : > { %v8102_v7 = vld [vmem:[%s10690_s30 + $0x870] sm:$0xf0]  ;;  %v9872_v28 = vld [vmem:[%s10690_s30 + $0x5f4] sm:$0xf0] }
 0x2c0   : > { %5005 = vmatpush.bf16.msrb.mxu1 %v8869_v39  ;;  %5071 = vmatpush.bf16.msrb.mxu0 %v7277_v32  ;;  %v8612_v39 = vld [vmem:[%s10690_s30 + $0xc30] sm:$0xf]  ;;  %v9062_v32 = vld [vmem:[%s10690_s30 + $0xff0] sm:$0xf0]  ;;  %v4790_v43 = vpop.f32.mrf.mxu3  ;;  %v7660_v10 = vld [vmem:[%s10690_s30 + $0x4b8] sm:$0xf] }
 0x2c1   : > { %v9065_v58 = vor.u32 %v10183_v31, %v9062_v32  ;;  %v11974_v45 = vadd.f32 %v4790_v43, %v11941_v60  ;;  %v9904_v60 = vld [vmem:[%s10690_s30 + $0x6f4] sm:$0xf0]  ;;  %v10135_v18 = vld [vmem:[%s10690_s30 + $0xe34] sm:$0xf]  ;;  %v7789_v31 = vor.u32 %v9872_v28, %v7788_v27 }
 0x2c2   : > { %5032 = vmatpush.bf16.msra.mxu2 %v7785_v2  ;;  %5042 = vmatpush.bf16.msra.mxu3 %v8489_v40  ;;  %v8613_v2 = vor.u32 %v10079_v51, %v8612_v39  ;;  %v7980_v40 = vld [vmem:[%s10690_s30 + $0x738] sm:$0xf]  ;;  %v8870_v20 = vld [vmem:[%s10690_s30 + $0xe70] sm:$0xf0]  ;;  %v7281_v39 = vor.u32 %v9736_v23, %v7278_v26 }
 0x2c3   : > { %v8873_v25 = vor.u32 %v10135_v18, %v8870_v20  ;;  %v10119_v51 = vld [vmem:[%s10690_s30 + $0xdb4] sm:$0xf]  ;;  %v10000_v55 = vld [vmem:[%s10690_s30 + $0x9f4] sm:$0xf0] }
 0x2c4   : > { %5006 = vmatpush.bf16.msrb.mxu1 %v8805_v47  ;;  %5072 = vmatpush.bf16.msrb.mxu0 %v7213_v44  ;;  %v7473_v47 = vor.u32 %v9784_v33, %v7470_v36  ;;  %v7981_v44 = vor.u32 %v9920_v42, %v7980_v40  ;;  %v9720_v33 = vld [vmem:[%s10690_s30 + $0x13c] sm:$0xf]  ;;  %v7724_v36 = vld [vmem:[%s10690_s30 + $0x538] sm:$0xf] }
 0x2c5   : > { %v7725_v52 = vor.u32 %v9856_v37, %v7724_v36  ;;  %v8236_v26 = vld [vmem:[%s10690_s30 + $0x938] sm:$0xf]  ;;  %v9896_v36 = vld [vmem:[%s10690_s30 + $0x6bc] sm:$0xf] }
 0x2c6   : > { %5033 = vmatpush.bf16.msra.mxu2 %v7721_v41  ;;  %5043 = vmatpush.bf16.msra.mxu3 %v8425_v1  ;;  %v8169_v41 = vor.u32 %v9959_v54, %v8166_v56  ;;  %v8934_v1 = vld [vmem:[%s10690_s30 + $0xef0] sm:$0xf0]  ;;  %v9840_v54 = vld [vmem:[%s10690_s30 + $0x4f4] sm:$0xf0]  ;;  %v7918_v37 = vld [vmem:[%s10690_s30 + $0x6f8] sm:$0xf0] }
 0x2c7   : > { %v8937_v13 = vor.u32 %v10151_v63, %v8934_v1  ;;  %v8364_v56 = vld [vmem:[%s10690_s30 + $0xa38] sm:$0xf]  ;;  %v10087_v63 = vld [vmem:[%s10690_s30 + $0xcb4] sm:$0xf] }
 0x2c8   : > { %5007 = vmatpush.bf16.msrb.mxu1 %v8741_v6  ;;  %5073 = vmatpush.bf16.msrb.mxu0 %v7149_v48  ;;  %v7917_v6 = vor.u32 %v9904_v60, %v7916_v61  ;;  %v8556_v48 = vld [vmem:[%s10690_s30 + $0xbb8] sm:$0xf]  ;;  %v4792_v12 = vpop.f32.mrf.mxu3 }
 0x2c9   : > { %v10016_v61 = vld [vmem:[%s10690_s30 + $0xa74] sm:$0xf0] }
 0x2ca   : > { %5034 = vmatpush.bf16.msra.mxu2 %v7657_v50  ;;  %5044 = vmatpush.bf16.msra.mxu3 %v8361_v15  ;;  %v7345_v50 = vor.u32 %v9752_v3, %v7342_v5  ;;  %v8105_v15 = vor.u32 %v9943_v21, %v8102_v7  ;;  %v8365_v1 = vor.u32 %v10016_v61, %v8364_v56  ;;  %v9688_v3 = vld [vmem:[%s10690_s30 + $0x3c] sm:$0xf]  ;;  %v9824_v21 = vld [vmem:[%s10690_s30 + $0x474] sm:$0xf0] }
 0x2cb   : > { %v7086_v5 = vld [vmem:[%s10690_s30 + $0x78] sm:$0xf0]  ;;  %v8300_v7 = vld [vmem:[%s10690_s30 + $0x9b8] sm:$0xf] }
 0x2cc   : > { %5008 = vmatpush.bf16.msrb.mxu1 %v8677_v24  ;;  %5074 = vmatpush.bf16.msrb.mxu0 %v7085_v22  ;;  %v11997_v14 = vpop.f32.mrf.mxu0  ;;  %v8557_v24 = vor.u32 %v10064_v11, %v8556_v48  ;;  %v8492_v22 = vld [vmem:[%s10690_s30 + $0xb38] sm:$0xf]  ;;  %v9928_v48 = vld [vmem:[%s10690_s30 + $0x7bc] sm:$0xf]  ;;  %v8301_v20 = vor.u32 %v10000_v55, %v8300_v7 }
 0x2cd   : > { %v8493_v32 = vor.u32 %v10048_v62, %v8492_v22  ;;  %v8046_v11 = vld [vmem:[%s10690_s30 + $0x7f8] sm:$0xf0]  ;;  %v9984_v27 = vld [vmem:[%s10690_s30 + $0x974] sm:$0xf0] }
 0x2ce   : > { %5035 = vmatpush.bf16.msra.mxu2 %v7593_v4  ;;  %5045 = vmatpush.bf16.msra.mxu3 %v8297_v30  ;;  %v8806_v4 = vld [vmem:[%s10690_s30 + $0xdf0] sm:$0xf0]  ;;  %v8049_v23 = vor.u32 %v9928_v48, %v8046_v11  ;;  %v9912_v22 = vld [vmem:[%s10690_s30 + $0x73c] sm:$0xf] }
 0x2cf   : > { %5075 = vmatmul.bf16.vlgmr.msrb.gmra.mxu0 %v11025_v46  ;;  %v8809_v40 = vor.u32 %v10119_v51, %v8806_v4  ;;  %v7982_v62 = vld [vmem:[%s10690_s30 + $0x778] sm:$0xf0]  ;;  %v8237_v51 = vor.u32 %v9984_v27, %v8236_v26  ;;  %v9004_v4 = vld [vmem:[%s10690_s30 + $0xf38] sm:$0xf] }
 0x2d0   : > { %5119 = vmatpush.bf16.msra.mxu0 %v7537_v29  ;;  %5009 = vmatpush.bf16.msrb.mxu1 %v8613_v2  ;;  %v4803_v29 = vpop.f32.mrf.mxu1  ;;  %v10032_v2 = vld [vmem:[%s10690_s30 + $0xaf4] sm:$0xf0]  ;;  %v9848_v55 = vld [vmem:[%s10690_s30 + $0x53c] sm:$0xf] }
 0x2d1   : > { %5036 = vmatmul.bf16.vlgmr.msra.gmra.mxu2 %v11076_v0  ;;  %v12010_v30 = vadd.f32 %v4803_v29, %v11974_v45  ;;  %v10103_v45 = vld [vmem:[%s10690_s30 + $0xd34] sm:$0xf]  ;;  %v8429_v9 = vor.u32 %v10032_v2, %v8428_v38  ;;  %v10024_v48 = vld [vmem:[%s10690_s30 + $0xabc] sm:$0xf] }
 0x2d2   : > { %5080 = vmatpush.bf16.msrb.mxu2 %v8045_v34  ;;  %5046 = vmatpush.bf16.msra.mxu3 %v8233_v49  ;;  %v7214_v34 = vld [vmem:[%s10690_s30 + $0x178] sm:$0xf0] }
 0x2d3   : > { %5010 = vmatmul.bf16.vlgmr.msrb.gmra.mxu1 %v11135_v35  ;;  %v8430_v11 = vld [vmem:[%s10690_s30 + $0xaf8] sm:$0xf0] }
 0x2d4   : > { %5054 = vmatpush.bf16.msra.mxu1 %v9065_v58  ;;  %5120 = vmatpush.bf16.msra.mxu0 %v7473_v47  ;;  %v4829_v42 = vpop.f32.mrf.mxu2  ;;  %v4870_v43 = vpop.f32.mrf.mxu0  ;;  %v7217_v58 = vor.u32 %v9720_v33, %v7214_v34  ;;  %v8742_v47 = vld [vmem:[%s10690_s30 + $0xd70] sm:$0xf0]  ;;  %v8172_v33 = vld [vmem:[%s10690_s30 + $0x8b8] sm:$0xf]  ;;  %v9832_v26 = vld [vmem:[%s10690_s30 + $0x4bc] sm:$0xf] }
 0x2d5   : > { %v4830_v49 = vadd.f32 %v4829_v42, %v11919_v57  ;;  %v8745_v60 = vor.u32 %v10103_v45, %v8742_v47  ;;  %v9968_v34 = vld [vmem:[%s10690_s30 + $0x8f4] sm:$0xf0]  ;;  %v9880_v45 = vld [vmem:[%s10690_s30 + $0x63c] sm:$0xf] }
 0x2d6   : > { %5081 = vmatpush.bf16.msrb.mxu2 %v7981_v44  ;;  %5047 = vmatpush.bf16.msra.mxu3 %v8169_v41  ;;  %v7150_v44 = vld [vmem:[%s10690_s30 + $0xf8] sm:$0xf0]  ;;  %v7661_v41 = vor.u32 %v9840_v54, %v7660_v10  ;;  %v8173_v2 = vor.u32 %v9968_v34, %v8172_v33  ;;  %v10160_v42 = vld [vmem:[%s10690_s30 + $0xef4] sm:$0xf0] }
 0x2d7   : > { %v8108_v43 = vld [vmem:[%s10690_s30 + $0x838] sm:$0xf]  ;;  %v7854_v47 = vld [vmem:[%s10690_s30 + $0x678] sm:$0xf0] }
 0x2d8   : > { %5055 = vmatpush.bf16.msra.mxu1 %v9001_v17  ;;  %5121 = vmatpush.bf16.msra.mxu0 %v7409_v59  ;;  %v4805_v57 = vpop.f32.mrf.mxu1  ;;  %v7153_v17 = vor.u32 %v9704_v53, %v7150_v44  ;;  %v8678_v59 = vld [vmem:[%s10690_s30 + $0xcf0] sm:$0xf0]  ;;  %v8876_v10 = vld [vmem:[%s10690_s30 + $0xe38] sm:$0xf]  ;;  %v7857_v61 = vor.u32 %v9880_v45, %v7854_v47  ;;  %v7662_v27 = vld [vmem:[%s10690_s30 + $0x4f8] sm:$0xf0] }
 0x2d9   : > { %v8681_v8 = vor.u32 %v10087_v63, %v8678_v59  ;;  %v10144_v54 = vld [vmem:[%s10690_s30 + $0xe74] sm:$0xf0]  ;;  %v9864_v57 = vld [vmem:[%s10690_s30 + $0x5bc] sm:$0xf] }
 0x2da   : > { %5082 = vmatpush.bf16.msrb.mxu2 %v7917_v6  ;;  %5048 = vmatpush.bf16.msra.mxu3 %v8105_v15  ;;  %v7596_v6 = vld [vmem:[%s10690_s30 + $0x438] sm:$0xf]  ;;  %v8614_v15 = vld [vmem:[%s10690_s30 + $0xc70] sm:$0xf0]  ;;  %v10040_v63 = vld [vmem:[%s10690_s30 + $0xb3c] sm:$0xf] }
 0x2db   : > { %v7597_v18 = vor.u32 %v9824_v21, %v7596_v6  ;;  %v8494_v59 = vld [vmem:[%s10690_s30 + $0xb78] sm:$0xf0] }
 0x2dc   : > { %5056 = vmatpush.bf16.msra.mxu1 %v8937_v13  ;;  %5122 = vmatpush.bf16.msra.mxu0 %v7345_v50  ;;  %v4831_v12 = vpop.f32.mrf.mxu2  ;;  %v7089_v13 = vor.u32 %v9688_v3, %v7086_v5  ;;  %v10071_v50 = vld [vmem:[%s10690_s30 + $0xc34] sm:$0xf]  ;;  %v8812_v3 = vld [vmem:[%s10690_s30 + $0xdb8] sm:$0xf]  ;;  %v8497_v7 = vor.u32 %v10040_v63, %v8494_v59  ;;  %v8302_v33 = vld [vmem:[%s10690_s30 + $0x9f8] sm:$0xf0] }
 0x2dd   : > { %5049 = vmatmul.bf16.vlgmr.msra.gmra.mxu3 %v11095_v19  ;;  %v8617_v28 = vor.u32 %v10071_v50, %v8614_v15  ;;  %v10128_v5 = vld [vmem:[%s10690_s30 + $0xdf4] sm:$0xf0]  ;;  %v8110_v63 = vld [vmem:[%s10690_s30 + $0x878] sm:$0xf0] }
 0x2de   : > { %5083 = vmatpush.bf16.msrb.mxu2 %v7853_v16  ;;  %5093 = vmatpush.bf16.msrb.mxu3 %v8557_v24  ;;  %v9068_v16 = vld [vmem:[%s10690_s30 + $0xfb8] sm:$0xf] }
 0x2df   : > { %v10192_v24 = vld [vmem:[%s10690_s30 + $0xff4] sm:$0xf0] }
 0x2e0   : > { %5057 = vmatpush.bf16.msra.mxu1 %v8873_v25  ;;  %5123 = vmatpush.bf16.msra.mxu0 %v7281_v39  ;;  %v4842_v25 = vpop.f32.mrf.mxu3  ;;  %v9069_v29 = vor.u32 %v10192_v24, %v9068_v16  ;;  %v8748_v15 = vld [vmem:[%s10690_s30 + $0xd38] sm:$0xf] }
 0x2e1   : > { %v4843_v39 = vadd.f32 %v4842_v25, %v4830_v49  ;;  %v10056_v49 = vld [vmem:[%s10690_s30 + $0xbbc] sm:$0xf] }
 0x2e2   : > { %5084 = vmatpush.bf16.msrb.mxu2 %v7789_v31  ;;  %5094 = vmatpush.bf16.msrb.mxu3 %v8493_v32  ;;  %v10176_v31 = vld [vmem:[%s10690_s30 + $0xf74] sm:$0xf0]  ;;  %v7985_v32 = vor.u32 %v9912_v22, %v7982_v62  ;;  %v8366_v22 = vld [vmem:[%s10690_s30 + $0xa78] sm:$0xf0] }
 0x2e3   : > { %v9005_v38 = vor.u32 %v10176_v31, %v9004_v4  ;;  %v9816_v4 = vld [vmem:[%s10690_s30 + $0x43c] sm:$0xf] }
 0x2e4   : > { %5058 = vmatpush.bf16.msra.mxu1 %v8809_v40  ;;  %5124 = vmatpush.bf16.msra.mxu0 %v7217_v58  ;;  %v8940_v40 = vld [vmem:[%s10690_s30 + $0xeb8] sm:$0xf]  ;;  %v7598_v31 = vld [vmem:[%s10690_s30 + $0x478] sm:$0xf0] }
 0x2e5   : > { %v9952_v58 = vld [vmem:[%s10690_s30 + $0x874] sm:$0xf0]  ;;  %v8941_v53 = vor.u32 %v10160_v42, %v8940_v40  ;;  %v10184_v42 = vld [vmem:[%s10690_s30 + $0xfbc] sm:$0xf] }
 0x2e6   : > { %5085 = vmatpush.bf16.msrb.mxu2 %v7725_v52  ;;  %5095 = vmatpush.bf16.msrb.mxu3 %v8429_v9  ;;  %v8558_v52 = vld [vmem:[%s10690_s30 + $0xbf8] sm:$0xf0]  ;;  %v8109_v44 = vor.u32 %v9952_v58, %v8108_v43 }
 0x2e7   : > { %v9976_v43 = vld [vmem:[%s10690_s30 + $0x93c] sm:$0xf] }
 0x2e8   : > { %5059 = vmatpush.bf16.msra.mxu1 %v8745_v60  ;;  %5125 = vmatpush.bf16.msra.mxu0 %v7153_v17  ;;  %v4844_v9 = vpop.f32.mrf.mxu3  ;;  %v8561_v60 = vor.u32 %v10056_v49, %v8558_v52  ;;  %v7790_v17 = vld [vmem:[%s10690_s30 + $0x5f8] sm:$0xf0] }
 0x2e9   : > { %v7793_v21 = vor.u32 %v9864_v57, %v7790_v17  ;;  %v8238_v58 = vld [vmem:[%s10690_s30 + $0x978] sm:$0xf0] }
 0x2ea   : > { %5086 = vmatpush.bf16.msrb.mxu2 %v7661_v41  ;;  %5096 = vmatpush.bf16.msrb.mxu3 %v8365_v1  ;;  %v8877_v41 = vor.u32 %v10144_v54, %v8876_v10  ;;  %v8241_v52 = vor.u32 %v9976_v43, %v8238_v58  ;;  %v10168_v9 = vld [vmem:[%s10690_s30 + $0xf3c] sm:$0xf] }
 0x2eb   : > { %v8174_v10 = vld [vmem:[%s10690_s30 + $0x8f8] sm:$0xf0] }
 0x2ec   : > { %5060 = vmatpush.bf16.msra.mxu1 %v8681_v8  ;;  %5126 = vmatpush.bf16.msra.mxu0 %v7089_v13  ;;  %v12065_v56 = vpop.f32.mrf.mxu0  ;;  %v7726_v8 = vld [vmem:[%s10690_s30 + $0x578] sm:$0xf0]  ;;  %v8813_v13 = vor.u32 %v10128_v5, %v8812_v3 }
 0x2ed   : > { %v7729_v24 = vor.u32 %v9848_v55, %v7726_v8  ;;  %v8942_v57 = vld [vmem:[%s10690_s30 + $0xef8] sm:$0xf0] }
 0x2ee   : > { %5087 = vmatpush.bf16.msrb.mxu2 %v7597_v18  ;;  %5097 = vmatpush.bf16.msrb.mxu3 %v8301_v20  ;;  %v10112_v18 = vld [vmem:[%s10690_s30 + $0xd74] sm:$0xf0]  ;;  %v9944_v17 = vld [vmem:[%s10690_s30 + $0x83c] sm:$0xf] }
 0x2ef   : > { %5127 = vmatmul.bf16.vlgmr.msra.gmra.mxu0 %v11025_v46  ;;  %v7921_v46 = vor.u32 %v9896_v36, %v7918_v37  ;;  %v8749_v62 = vor.u32 %v10112_v18, %v8748_v15  ;;  %v8620_v37 = vld [vmem:[%s10690_s30 + $0xc38] sm:$0xf]  ;;  %v8878_v3 = vld [vmem:[%s10690_s30 + $0xe78] sm:$0xf0] }
 0x2f0   : > { %5061 = vmatpush.bf16.msra.mxu1 %v8617_v28  ;;  %v4855_v1 = vpop.f32.mrf.mxu1  ;;  %v10008_v28 = vld [vmem:[%s10690_s30 + $0xa3c] sm:$0xf] }
 0x2f1   : > { %5088 = vmatmul.bf16.vlgmr.msrb.gmra.mxu2 %v11076_v0  ;;  %v4856_v6 = vadd.f32 %v4855_v1, %v4843_v39  ;;  %v7665_v39 = vor.u32 %v9832_v26, %v7662_v27  ;;  %v10136_v1 = vld [vmem:[%s10690_s30 + $0xe3c] sm:$0xf] }
 0x2f2   : > { %5132 = vmatpush.bf16.msra.mxu2 %v8049_v23  ;;  %5098 = vmatpush.bf16.msrb.mxu3 %v8237_v51  ;;  %v8433_v23 = vor.u32 %v10024_v48, %v8430_v11  ;;  %v8369_v51 = vor.u32 %v10008_v28, %v8366_v22  ;;  %v10104_v48 = vld [vmem:[%s10690_s30 + $0xd3c] sm:$0xf] }
 0x2f3   : > { %5062 = vmatmul.bf16.vlgmr.msra.gmra.mxu1 %v11135_v35  ;;  %v5193_v12 = vrot.slane %v4856_v6, 6  ;;  %v8881_v6 = vor.u32 %v10136_v1, %v8878_v3  ;;  %v8750_v11 = vld [vmem:[%s10690_s30 + $0xd78] sm:$0xf0] }
 0x2f4   : > { %5106 = vmatpush.bf16.msrb.mxu1 %v9069_v29  ;;  %v12078_v50 = vpop.f32.mrf.mxu2  ;;  %v4922_v16 = vpop.f32.mrf.mxu0  ;;  %v10096_v29 = vld [vmem:[%s10690_s30 + $0xcf4] sm:$0xf0]  ;;  %v8753_v15 = vor.u32 %v10104_v48, %v8750_v11  ;;  %v10088_v18 = vld [vmem:[%s10690_s30 + $0xcbc] sm:$0xf] }
 0x2f5   : > { %v12084_v20 = vsel %vm5199_vm3, %v12010_v30, %v5193_v12  ;;  %v8684_v30 = vld [vmem:[%s10690_s30 + $0xcb8] sm:$0xf]  ;;  %v8686_v16 = vld [vmem:[%s10690_s30 + $0xcf8] sm:$0xf0] }
 0x2f6   : > { %5133 = vmatpush.bf16.msra.mxu2 %v7985_v32  ;;  %5099 = vmatpush.bf16.msrb.mxu3 %v8173_v2  ;;  %v9992_v32 = vld [vmem:[%s10690_s30 + $0x9bc] sm:$0xf]  ;;  %v8685_v34 = vor.u32 %v10096_v29, %v8684_v30  ;;  %v7601_v2 = vor.u32 %v9816_v4, %v7598_v31 }
 0x2f7   : > { %v8305_v40 = vor.u32 %v9992_v32, %v8302_v33  ;;  %v10072_v26 = vld [vmem:[%s10690_s30 + $0xc3c] sm:$0xf] }
 0x2f8   : > { %5107 = vmatpush.bf16.msrb.mxu1 %v9005_v38  ;;  %v4857_v25 = vpop.f32.mrf.mxu1  ;;  %v10080_v38 = vld [vmem:[%s10690_s30 + $0xc74] sm:$0xf0]  ;;  %v8622_v27 = vld [vmem:[%s10690_s30 + $0xc78] sm:$0xf0] }
 0x2f9   : > { %v8621_v45 = vor.u32 %v10080_v38, %v8620_v37  ;;  %v8625_v22 = vor.u32 %v10072_v26, %v8622_v27  ;;  %v1262_v27 = vld [vmem:[#allocation2 + $0x8] sm:$0xff] }
 0x2fa   : > { %5134 = vmatpush.bf16.msra.mxu2 %v7921_v46  ;;  %5100 = vmatpush.bf16.msrb.mxu3 %v8109_v44  ;;  %v9070_v46 = vld [vmem:[%s10690_s30 + $0xff8] sm:$0xf0] }
 0x2fb   : > { %v9073_v47 = vor.u32 %v10184_v42, %v9070_v46  ;;  %v9960_v44 = vld [vmem:[%s10690_s30 + $0x8bc] sm:$0xf] }
 0x2fc   : > { %5108 = vmatpush.bf16.msrb.mxu1 %v8941_v53  ;;  %v4883_v36 = vpop.f32.mrf.mxu2  ;;  %v9006_v53 = vld [vmem:[%s10690_s30 + $0xf78] sm:$0xf0] }
 0x2fd   : > { %5101 = vmatmul.bf16.vlgmr.msrb.gmra.mxu3 %v11095_v19  ;;  %v9009_v54 = vor.u32 %v10168_v9, %v9006_v53  ;;  %v1261_v36 = vld [vmem:[#allocation2 + $0x18] sm:$0xff] }
 0x2fe   : > { %5135 = vmatpush.bf16.msra.mxu2 %v7857_v61  ;;  %5145 = vmatpush.bf16.msra.mxu3 %v8561_v60  ;;  %v8177_v61 = vor.u32 %v9960_v44, %v8174_v10  ;;  %v10152_v60 = vld [vmem:[%s10690_s30 + $0xebc] sm:$0xf] }
 0x2ff   : > { %v8945_v59 = vor.u32 %v10152_v60, %v8942_v57 }
 0x300   : > { %5109 = vmatpush.bf16.msrb.mxu1 %v8877_v41  ;;  %v4894_v49 = vpop.f32.mrf.mxu3 }
 0x302   : > { %5136 = vmatpush.bf16.msra.mxu2 %v7793_v21  ;;  %5146 = vmatpush.bf16.msra.mxu3 %v8497_v7  ;;  %v10120_v21 = vld [vmem:[%s10690_s30 + $0xdbc] sm:$0xf] }
 0x303   : > { %v8814_v7 = vld [vmem:[%s10690_s30 + $0xdf8] sm:$0xf0] }
 0x304   : > { %5110 = vmatpush.bf16.msrb.mxu1 %v8813_v13  ;;  %v8817_v8 = vor.u32 %v10120_v21, %v8814_v7 }
 0x306   : > { %5137 = vmatpush.bf16.msra.mxu2 %v7729_v24  ;;  %5147 = vmatpush.bf16.msra.mxu3 %v8433_v23  ;;  %v8689_v23 = vor.u32 %v10088_v18, %v8686_v16 }
 0x308   : > { %5111 = vmatpush.bf16.msrb.mxu1 %v8749_v62  ;;  %v4896_v41 = vpop.f32.mrf.mxu3 }
 0x30a   : > { %5138 = vmatpush.bf16.msra.mxu2 %v7665_v39  ;;  %5148 = vmatpush.bf16.msra.mxu3 %v8369_v51 }
 0x30c   : > { %5112 = vmatpush.bf16.msrb.mxu1 %v8685_v34  ;;  %v4972_v5 = vpop.f32.mrf.mxu0 }
 0x30e   : > { %5139 = vmatpush.bf16.msra.mxu2 %v7601_v2  ;;  %5149 = vmatpush.bf16.msra.mxu3 %v8305_v40 }
 0x310   : > { %5113 = vmatpush.bf16.msrb.mxu1 %v8621_v45  ;;  %v4907_v55 = vpop.f32.mrf.mxu1 }
 0x311   : > { %5140 = vmatmul.bf16.vlgmr.msra.gmra.mxu2 %v11076_v0  ;;  %v8113_v0 = vor.u32 %v9944_v17, %v8110_v63 }
 0x312   : > { %5150 = vmatpush.bf16.msra.mxu3 %v8241_v52 }
 0x313   : > { %5114 = vmatmul.bf16.vlgmr.msrb.gmra.mxu1 %v11135_v35 }
 0x314   : > { %5158 = vmatpush.bf16.msra.mxu1 %v9073_v47  ;;  %v4933_v12 = vpop.f32.mrf.mxu2  ;;  %v4974_v13 = vpop.f32.mrf.mxu0 }
 0x315   : > { %v4934_v29 = vadd.f32 %v4933_v12, %v12065_v56 }
 0x316   : > { %5151 = vmatpush.bf16.msra.mxu3 %v8177_v61 }
 0x318   : > { %5159 = vmatpush.bf16.msra.mxu1 %v9009_v54  ;;  %v4909_v24 = vpop.f32.mrf.mxu1 }
 0x31a   : > { %5152 = vmatpush.bf16.msra.mxu3 %v8113_v0 }
 0x31c   : > { %5160 = vmatpush.bf16.msra.mxu1 %v8945_v59  ;;  %v4935_v28 = vpop.f32.mrf.mxu2 }
 0x31d   : > { %5153 = vmatmul.bf16.vlgmr.msra.gmra.mxu3 %v11095_v19  ;;  %v4882_v19 = vadd.f32 %v12078_v50, %v11997_v14 }
 0x31f   : > { %v4895_v30 = vadd.f32 %v4894_v49, %v4882_v19 }
 0x320   : > { %5161 = vmatpush.bf16.msra.mxu1 %v8881_v6  ;;  %v4946_v62 = vpop.f32.mrf.mxu3 }
 0x321   : > { %v4908_v51 = vadd.f32 %v4907_v55, %v4895_v30  ;;  %v4947_v4 = vadd.f32 %v4946_v62, %v4934_v29 }
 0x323   : > { %v5194_v33 = vrot.slane %v4908_v51, 4 }
 0x324   : > { %5162 = vmatpush.bf16.msra.mxu1 %v8817_v8 }
 0x328   : > { %5163 = vmatpush.bf16.msra.mxu1 %v8753_v15  ;;  %v4948_v25 = vpop.f32.mrf.mxu3 }
 0x32c   : > { %5164 = vmatpush.bf16.msra.mxu1 %v8689_v23  ;;  %v5024_v39 = vpop.f32.mrf.mxu0 }
 0x330   : > { %5165 = vmatpush.bf16.msra.mxu1 %v8625_v22  ;;  %v4959_v31 = vpop.f32.mrf.mxu1 }
 0x331   : > { %v4960_v32 = vadd.f32 %v4959_v31, %v4947_v4 }
 0x333   : > { %5166 = vmatmul.bf16.vlgmr.msra.gmra.mxu1 %v11135_v35  ;;  %v5195_v34 = vrot.slane %v4960_v32, 2 }
 0x334   : > { %v4985_v37 = vpop.f32.mrf.mxu2  ;;  %v5026_v35 = vpop.f32.mrf.mxu0 }
 0x335   : > { %v5208_v38 = vsel %vm5201_vm4, %v5194_v33, %v5195_v34  ;;  %v4986_v2 = vadd.f32 %v4985_v37, %v4972_v5 }
 0x336   : > { %v5209_v14 = vsel %vm1084_vm1, %v12084_v20, %v5208_v38 }
 0x337   : > { %v5219_v50 = vadd.f32 %v5209_v14, %v1261_v36 }
 0x338   : > { %v4961_v40 = vpop.f32.mrf.mxu1 }
 0x339   : > { %5223 = vst [vmem:[#allocation2 + $0x18] sm:$0xff] %v5219_v50 }
 0x33c   : > { %v4987_v56 = vpop.f32.mrf.mxu2 }
 0x340   : > { %v4998_v42 = vpop.f32.mrf.mxu3 }
 0x341   : > { %v4999_v46 = vadd.f32 %v4998_v42, %v4986_v2 }
 0x348   : > { %v5000_v43 = vpop.f32.mrf.mxu3 }
 0x34c   : > { %v5076_v58 = vpop.f32.mrf.mxu0 }
 0x350   : > { %v5011_v45 = vpop.f32.mrf.mxu1 }
 0x351   : > { %v5012_v47 = vadd.f32 %v5011_v45, %v4999_v46 }
 0x354   : > { %v5037_v49 = vpop.f32.mrf.mxu2  ;;  %v5078_v52 = vpop.f32.mrf.mxu0 }
 0x355   : > { %v5038_v9 = vadd.f32 %v5037_v49, %v5024_v39 }
 0x358   : > { %v5013_v53 = vpop.f32.mrf.mxu1 }
 0x35c   : > { %v5039_v44 = vpop.f32.mrf.mxu2 }
 0x360   : > { %v5050_v10 = vpop.f32.mrf.mxu3 }
 0x361   : > { %v5051_v54 = vadd.f32 %v5050_v10, %v5038_v9 }
 0x368   : > { %v5052_v61 = vpop.f32.mrf.mxu3 }
 0x36c   : > { %v5128_v60 = vpop.f32.mrf.mxu0 }
 0x370   : > { %v5063_v20 = vpop.f32.mrf.mxu1 }
 0x371   : > { %v5064_v57 = vadd.f32 %v5063_v20, %v5051_v54 }
 0x373   : > { %v5196_v17 = vrot.slane %v5064_v57, 6 }
 0x374   : > { %v5089_v63 = vpop.f32.mrf.mxu2  ;;  %v5130_v41 = vpop.f32.mrf.mxu0 }
 0x375   : > { %v5210_v59 = vsel %vm5199_vm3, %v5012_v47, %v5196_v17  ;;  %v5090_v48 = vadd.f32 %v5089_v63, %v5076_v58 }
 0x378   : > { %v5065_v0 = vpop.f32.mrf.mxu1 }
 0x37c   : > { %v5091_v1 = vpop.f32.mrf.mxu2 }
 0x380   : > { %v5102_v3 = vpop.f32.mrf.mxu3 }
 0x381   : > { %v5103_v12 = vadd.f32 %v5102_v3, %v5090_v48 }
 0x388   : > { %v5104_v5 = vpop.f32.mrf.mxu3 }
 0x390   : > { %v5115_v6 = vpop.f32.mrf.mxu1 }
 0x391   : > { %v5116_v15 = vadd.f32 %v5115_v6, %v5103_v12 }
 0x393   : > { %v5197_v23 = vrot.slane %v5116_v15, 4 }
 0x394   : > { %v5141_v21 = vpop.f32.mrf.mxu2 }
 0x395   : > { %v5142_v13 = vadd.f32 %v5141_v21, %v5128_v60 }
 0x398   : > { %v5117_v7 = vpop.f32.mrf.mxu1 }
 0x39c   : > { %v5143_v55 = vpop.f32.mrf.mxu2 }
 0x3a0   : > { %v5154_v8 = vpop.f32.mrf.mxu3 }
 0x3a1   : > { %v5155_v18 = vadd.f32 %v5154_v8, %v5142_v13 }
 0x3a8   : > { %v5156_v11 = vpop.f32.mrf.mxu3 }
 0x3b0   : > { %v5167_v16 = vpop.f32.mrf.mxu1 }
 0x3b1   : > { %v5168_v24 = vadd.f32 %v5167_v16, %v5155_v18 }
 0x3b3   : > { %v5198_v26 = vrot.slane %v5168_v24, 2 }
 0x3b5   : > { %v5211_v28 = vsel %vm5201_vm4, %v5197_v23, %v5198_v26  ;;  %5228 = sbr.rel (%p9074_p11) target bundleno = 1225 (0x4c9), region = 79 }
 0x3b6   : > { %v5212_v22 = vsel %vm1084_vm1, %v5210_v59, %v5211_v28 }
 0x3b7   : > { %v5220_v62 = vadd.f32 %v5212_v22, %v1262_v27 }
 0x3b8   : > { %v5169_v19 = vpop.f32.mrf.mxu1 }
 0x3b9   : > { %5224 = vst [vmem:[#allocation2 + $0x8] sm:$0xff] %v5220_v62 }
 0x3ba   : > { %v10200_v25 = vld [vmem:[%s12568_s5 + $0x38] sm:$0xff]  ;;  %v10199_v51 = vld [vmem:[%s12568_s5 + $0x30] sm:$0xff]  ;;  %v10198_v33 = vld [vmem:[%s12568_s5 + $0x28] sm:$0xff]  ;;  %vm6582_vm5 = vcmask 9216  }
 0x3bb   : > { %v10208_v30 = vld [vmem:[%s12568_s5 + $0x78] sm:$0xff]  ;;  %6374 = vmatpush.bf16.msra.mxu0 %v10200_v25  ;;  %v10207_v4 = vld [vmem:[%s12568_s5 + $0x70] sm:$0xff]  ;;  %v10206_v34 = vld [vmem:[%s12568_s5 + $0x68] sm:$0xff] }
 0x3bc   : > { %v10216_v29 = vld [vmem:[%s12568_s5 + $0xb8] sm:$0xff]  ;;  %6387 = vmatpush.bf16.msra.mxu1 %v10208_v30  ;;  %v10215_v31 = vld [vmem:[%s12568_s5 + $0xb0] sm:$0xff]  ;;  %v10214_v36 = vld [vmem:[%s12568_s5 + $0xa8] sm:$0xff] }
 0x3bd   : > { %v10224_v39 = vld [vmem:[%s12568_s5 + $0xf8] sm:$0xff]  ;;  %6400 = vmatpush.bf16.msra.mxu2 %v10216_v29  ;;  %v10223_v32 = vld [vmem:[%s12568_s5 + $0xf0] sm:$0xff]  ;;  %v10222_v37 = vld [vmem:[%s12568_s5 + $0xe8] sm:$0xff] }
 0x3be   : > { %6413 = vmatpush.bf16.msra.mxu3 %v10224_v39  ;;  %v10197_v38 = vld [vmem:[%s12568_s5 + $0x20] sm:$0xff]  ;;  %v10196_v50 = vld [vmem:[%s12568_s5 + $0x18] sm:$0xff]  ;;  %v10195_v43 = vld [vmem:[%s12568_s5 + $0x10] sm:$0xff] }
 0x3bf   : > { %6375 = vmatpush.bf16.msra.mxu0 %v10199_v51  ;;  %v10205_v2 = vld [vmem:[%s12568_s5 + $0x60] sm:$0xff]  ;;  %v10204_v40 = vld [vmem:[%s12568_s5 + $0x58] sm:$0xff]  ;;  %v10203_v58 = vld [vmem:[%s12568_s5 + $0x50] sm:$0xff] }
 0x3c0   : > { %6388 = vmatpush.bf16.msra.mxu1 %v10207_v4  ;;  %v10213_v35 = vld [vmem:[%s12568_s5 + $0xa0] sm:$0xff]  ;;  %v10212_v56 = vld [vmem:[%s12568_s5 + $0x98] sm:$0xff]  ;;  %v10211_v9 = vld [vmem:[%s12568_s5 + $0x90] sm:$0xff] }
 0x3c1   : > { %6401 = vmatpush.bf16.msra.mxu2 %v10215_v31  ;;  %v10221_v14 = vld [vmem:[%s12568_s5 + $0xe0] sm:$0xff]  ;;  %v10220_v42 = vld [vmem:[%s12568_s5 + $0xd8] sm:$0xff]  ;;  %v10219_v53 = vld [vmem:[%s12568_s5 + $0xd0] sm:$0xff] }
 0x3c2   : > { %6414 = vmatpush.bf16.msra.mxu3 %v10223_v32  ;;  %v5233_v46 = vld [vmem:[%s12567_s4] sm:$0xff]  ;;  %v5229_v17 = vld [vmem:[#allocation2 + $0x10] sm:$0xff]  ;;  %v12212_v63 = vld [vmem:[%s12567_s4 + $0x8] sm:$0xff] }
 0x3c3   : > { %6376 = vmatpush.bf16.msra.mxu0 %v10198_v33  ;;  %v5237_v45 = vperm.slane %v5233_v46, 0  ;;  %v5238_v47 = vperm.slane %v5233_v46, 1  ;;  %v5239_v49 = vperm.slane %v5233_v46, 2  ;;  %v5240_v52 = vperm.slane %v5233_v46, 3  ;;  %v10194_v0 = vld [vmem:[%s12568_s5 + $0x8] sm:$0xff]  ;;  %v10193_v27 = vld [vmem:[%s12568_s5] sm:$0xff] }
 0x3c4   : > { %6389 = vmatpush.bf16.msra.mxu1 %v10206_v34  ;;  %v5241_v44 = vperm.slane %v5233_v46, 4  ;;  %v5242_v10 = vperm.slane %v5233_v46, 5  ;;  %v5243_v54 = vperm.slane %v5233_v46, 6  ;;  %v5244_v57 = vperm.slane %v5233_v46, 7  ;;  %v10202_v1 = vld [vmem:[%s12568_s5 + $0x48] sm:$0xff]  ;;  %v10201_v28 = vld [vmem:[%s12568_s5 + $0x40] sm:$0xff] }
 0x3c5   : > { %6402 = vmatpush.bf16.msra.mxu2 %v10214_v36  ;;  %v5253_v61 = vrot.slane %v5238_v47, 6  ;;  %v5254_v60 = vrot.slane %v5239_v49, 4  ;;  %v5255_v20 = vrot.slane %v5240_v52, 2  ;;  %v5245_v6 = vperm.slane %v12212_v63, 0  ;;  %v10210_v7 = vld [vmem:[%s12568_s5 + $0x88] sm:$0xff]  ;;  %v5231_v62 = vld [vmem:[#allocation2 + $0x18] sm:$0xff] }
 0x3c6   : > { %6415 = vmatpush.bf16.msra.mxu3 %v10222_v37  ;;  %v5256_v59 = vrot.slane %v5242_v10, 6  ;;  %v5257_v41 = vrot.slane %v5243_v54, 4  ;;  %v5246_v21 = vperm.slane %v12212_v63, 1  ;;  %v10218_v55 = vld [vmem:[%s12568_s5 + $0xc8] sm:$0xff]  ;;  %v5247_v48 = vperm.slane %v12212_v63, 2  ;;  %v10209_v30 = vld [vmem:[%s12568_s5 + $0x80] sm:$0xff] }
 0x3c7   : > { %6377 = vmatpush.bf16.msra.mxu0 %v10197_v38  ;;  %v5265_v3 = vsel %vm5199_vm3, %v5237_v45, %v5253_v61  ;;  %v5266_v5 = vsel %vm5201_vm4, %v5254_v60, %v5255_v20  ;;  %v5248_v11 = vperm.slane %v12212_v63, 3  ;;  %v5258_v12 = vrot.slane %v5244_v57, 2  ;;  %v5230_v18 = vld [vmem:[#allocation2] sm:$0xff]  ;;  %v10217_v29 = vld [vmem:[%s12568_s5 + $0xc0] sm:$0xff]  ;;  %v10232_v4 = vld [vmem:[%s12568_s5 + $0x138] sm:$0xff] }
 0x3c8   : > { %6390 = vmatpush.bf16.msra.mxu1 %v10205_v2  ;;  %v5267_v8 = vsel %vm1084_vm1, %v5265_v3, %v5266_v5  ;;  %v5259_v15 = vrot.slane %v5246_v21, 6  ;;  %v5268_v16 = vsel %vm5199_vm3, %v5241_v44, %v5256_v59  ;;  %v5260_v24 = vrot.slane %v5247_v48, 4  ;;  %v10240_v31 = vld [vmem:[%s12568_s5 + $0x178] sm:$0xff]  ;;  %v10231_v38 = vld [vmem:[%s12568_s5 + $0x130] sm:$0xff]  ;;  %v10246_v49 = vld [vmem:[%s12568_s5 + $0x1a8] sm:$0xff] }
 0x3c9   : > { %6403 = vmatpush.bf16.msra.mxu2 %v10213_v35  ;;  %v5281_v13 = vadd.f32 %v5267_v8, %v5229_v17  ;;  %v5261_v23 = vrot.slane %v5248_v11, 2  ;;  %v5269_v26 = vsel %vm5201_vm4, %v5257_v41, %v5258_v12  ;;  %v10248_v33 = vld [vmem:[%s12568_s5 + $0x1b8] sm:$0xff]  ;;  %v10239_v2 = vld [vmem:[%s12568_s5 + $0x170] sm:$0xff]  ;;  %v10254_v52 = vld [vmem:[%s12568_s5 + $0x1e8] sm:$0xff]  ;;  %v5249_v54 = vperm.slane %v12212_v63, 4 }
 0x3ca   : > { %6416 = vmatpush.bf16.msra.mxu3 %v10221_v14  ;;  %v5271_v19 = vsel %vm5199_vm3, %v5245_v6, %v5259_v15  ;;  %v5270_v25 = vsel %vm1084_vm1, %v5268_v16, %v5269_v26  ;;  %v10256_v34 = vld [vmem:[%s12568_s5 + $0x1f8] sm:$0xff]  ;;  %v10247_v35 = vld [vmem:[%s12568_s5 + $0x1b0] sm:$0xff]  ;;  %v10229_v44 = vld [vmem:[%s12568_s5 + $0x120] sm:$0xff]  ;;  %v5250_v61 = vperm.slane %v12212_v63, 5  ;;  %v5251_v60 = vperm.slane %v12212_v63, 6 }
 0x3cb   : > { %6378 = vmatpush.bf16.msra.mxu0 %v10196_v50  ;;  %v5285_v22 = vmax.f32 %v5281_v13, 0.0  ;;  %v5272_v39 = vsel %vm5201_vm4, %v5260_v24, %v5261_v23  ;;  %v5282_v51 = vadd.f32 %v5270_v25, %v5230_v18  ;;  %v10255_v14 = vld [vmem:[%s12568_s5 + $0x1f0] sm:$0xff]  ;;  %v10237_v10 = vld [vmem:[%s12568_s5 + $0x160] sm:$0xff]  ;;  %v5252_v20 = vperm.slane %v12212_v63, 7  ;;  %v10228_v63 = vld [vmem:[%s12568_s5 + $0x118] sm:$0xff] }
 0x3cc   : > { %6391 = vmatpush.bf16.msra.mxu1 %v10204_v40  ;;  %v5273_v32 = vsel %vm1084_vm1, %v5271_v19, %v5272_v39  ;;  %v10230_v40 = vld [vmem:[%s12568_s5 + $0x128] sm:$0xff]  ;;  %v10245_v57 = vld [vmem:[%s12568_s5 + $0x1a0] sm:$0xff]  ;;  %v5262_v59 = vrot.slane %v5250_v61, 6  ;;  %v5263_v41 = vrot.slane %v5251_v60, 4  ;;  %v10236_v3 = vld [vmem:[%s12568_s5 + $0x158] sm:$0xff] }
 0x3cd   : > { %6404 = vmatpush.bf16.msra.mxu2 %v10212_v56  ;;  %5293 = vst [vmem:[#allocation1] ss:$4 sm:$0xff] %v5285_v22  ;;  %v5283_v36 = vadd.f32 %v5273_v32, %v5231_v62  ;;  %v5286_v37 = vmax.f32 %v5282_v51, 0.0  ;;  %v10238_v56 = vld [vmem:[%s12568_s5 + $0x168] sm:$0xff]  ;;  %v10253_v17 = vld [vmem:[%s12568_s5 + $0x1e0] sm:$0xff]  ;;  %v10244_v21 = vld [vmem:[%s12568_s5 + $0x198] sm:$0xff] }
 0x3ce   : > { %6417 = vmatpush.bf16.msra.mxu3 %v10220_v42  ;;  %v5274_v5 = vsel %vm5199_vm3, %v5249_v54, %v5262_v59  ;;  %v10227_v48 = vld [vmem:[%s12568_s5 + $0x110] sm:$0xff]  ;;  %v10226_v26 = vld [vmem:[%s12568_s5 + $0x108] sm:$0xff]  ;;  %v10225_v62 = vld [vmem:[%s12568_s5 + $0x100] sm:$0xff] }
 0x3cf   : > { %6379 = vmatpush.bf16.msra.mxu0 %v10195_v43  ;;  %5295 = vst [vmem:[#allocation1 + $0x20] ss:$4 sm:$0xff] %v5286_v37  ;;  %v5287_v50 = vmax.f32 %v5283_v36, 0.0  ;;  %v10235_v11 = vld [vmem:[%s12568_s5 + $0x150] sm:$0xff]  ;;  %v10250_v22 = vld [vmem:[%s12568_s5 + $0x1c8] sm:$0xff]  ;;  %v10233_v19 = vld [vmem:[%s12568_s5 + $0x140] sm:$0xff] }
 0x3d0   : > { %6392 = vmatpush.bf16.msra.mxu1 %v10203_v58  ;;  %v10243_v13 = vld [vmem:[%s12568_s5 + $0x190] sm:$0xff]  ;;  %v10241_v25 = vld [vmem:[%s12568_s5 + $0x180] sm:$0xff]  ;;  %v10272_v39 = vld [vmem:[%s12568_s5 + $0x278] sm:$0xff] }
 0x3d1   : > { %6405 = vmatpush.bf16.msra.mxu2 %v10211_v9  ;;  %v10251_v15 = vld [vmem:[%s12568_s5 + $0x1d0] sm:$0xff]  ;;  %v10280_v51 = vld [vmem:[%s12568_s5 + $0x2b8] sm:$0xff]  ;;  %v10266_v54 = vld [vmem:[%s12568_s5 + $0x248] sm:$0xff] }
 0x3d2   : > { %6418 = vmatpush.bf16.msra.mxu3 %v10219_v53  ;;  %v10263_v36 = vld [vmem:[%s12568_s5 + $0x230] sm:$0xff]  ;;  %v10274_v61 = vld [vmem:[%s12568_s5 + $0x288] sm:$0xff]  ;;  %v10281_v59 = vld [vmem:[%s12568_s5 + $0x2c0] sm:$0xff] }
 0x3d3   : > { %6380 = vmatpush.bf16.msra.mxu0 %v10194_v0  ;;  %v5264_v0 = vrot.slane %v5252_v20, 2  ;;  %v10271_v37 = vld [vmem:[%s12568_s5 + $0x270] sm:$0xff]  ;;  %v10282_v60 = vld [vmem:[%s12568_s5 + $0x2c8] sm:$0xff]  ;;  %v10257_v20 = vld [vmem:[%s12568_s5 + $0x200] sm:$0xff] }
 0x3d4   : > { %6393 = vmatpush.bf16.msra.mxu1 %v10202_v1  ;;  %v5298_v42 = vld.sshfl [vmem:[#allocation1 + $0x10] sm:$0xff pattern:$0x73625140]  ;;  %v5296_v46 = vld.sshfl [vmem:[#allocation1] sm:$0xff pattern:$0x73625140] }
 0x3d5   : > { %6406 = vmatpush.bf16.msra.mxu2 %v10210_v7  ;;  %v5332_v43 = vpack.c.bf16 %v5298_v42, %v5298_v42  ;;  %v5330_v58 = vpack.c.bf16 %v5296_v46, %v5296_v46  ;;  %v5299_v45 = vld.sshfl [vmem:[#allocation1 + $0x18] sm:$0xff pattern:$0x73625140]  ;;  %v5297_v47 = vld.sshfl [vmem:[#allocation1 + $0x8] sm:$0xff pattern:$0x73625140]  ;;  %v5275_v6 = vsel %vm5201_vm4, %v5263_v41, %v5264_v0 }
 0x3d6   : > { %6419 = vmatpush.bf16.msra.mxu3 %v10218_v55  ;;  %v5333_v9 = vpack.c.bf16 %v5299_v45, %v5299_v45  ;;  %5304 = vst [vmem:[#allocation1] ss:$4 sm:$0xff] %v5287_v50  ;;  %v5331_v53 = vpack.c.bf16 %v5297_v47, %v5297_v47  ;;  %v5232_v1 = vld [vmem:[#allocation2 + $0x8] sm:$0xff]  ;;  %v10252_v7 = vld [vmem:[%s12568_s5 + $0x1d8] sm:$0xff]  ;;  %v5276_v55 = vsel %vm1084_vm1, %v5274_v5, %v5275_v6  ;;  %v10278_v50 = vld [vmem:[%s12568_s5 + $0x2a8] sm:$0xff] }
 0x3d7   : > { %6381 = vmatpush.bf16.msra.mxu0 %v10193_v27  ;;  %v5284_v8 = vadd.f32 %v5276_v55, %v5232_v1  ;;  %v5302_v12 = vld.sshfl [vmem:[#allocation1 + $0x30] sm:$0xff pattern:$0x73625140]  ;;  %v5300_v18 = vld.sshfl [vmem:[#allocation1 + $0x20] sm:$0xff pattern:$0x73625140] }
 0x3d8   : > { %6394 = vmatpush.bf16.msra.mxu1 %v10201_v28  ;;  %v5303_v24 = vld.sshfl [vmem:[#allocation1 + $0x38] sm:$0xff pattern:$0x73625140]  ;;  %v5301_v23 = vld.sshfl [vmem:[#allocation1 + $0x28] sm:$0xff pattern:$0x73625140]  ;;  %v5334_v32 = vpack.c.bf16 %v5300_v18, %v5300_v18 }
 0x3d9   : > { %6407 = vmatpush.bf16.msra.mxu2 %v10209_v30  ;;  %v5288_v16 = vmax.f32 %v5284_v8, 0.0  ;;  %v10234_v27 = vld [vmem:[%s12568_s5 + $0x148] sm:$0xff]  ;;  %v10249_v30 = vld [vmem:[%s12568_s5 + $0x1c0] sm:$0xff]  ;;  %v10268_v45 = vld [vmem:[%s12568_s5 + $0x258] sm:$0xff] }
 0x3da   : > { %6420 = vmatpush.bf16.msra.mxu3 %v10217_v29  ;;  %6382 = vmatmul.bf16.vlgmr.msra.gmra.mxu0 %v5330_v58  ;;  %v10242_v28 = vld [vmem:[%s12568_s5 + $0x188] sm:$0xff]  ;;  %v10264_v29 = vld [vmem:[%s12568_s5 + $0x238] sm:$0xff]  ;;  %v10269_v42 = vld [vmem:[%s12568_s5 + $0x260] sm:$0xff] }
 0x3db   : > { %6426 = vmatpush.bf16.msrb.mxu0 %v10232_v4  ;;  %6395 = vmatmul.bf16.vlgmr.msra.gmra.mxu1 %v5331_v53  ;;  %5305 = vst [vmem:[#allocation1 + $0x20] ss:$4 sm:$0xff] %v5288_v16  ;;  %v10288_v4 = vld [vmem:[%s12568_s5 + $0x2f8] sm:$0xff]  ;;  %v10277_v46 = vld [vmem:[%s12568_s5 + $0x2a0] sm:$0xff]  ;;  %v10275_v53 = vld [vmem:[%s12568_s5 + $0x290] sm:$0xff] }
 0x3dc   : > { %6439 = vmatpush.bf16.msrb.mxu1 %v10240_v31  ;;  %6408 = vmatmul.bf16.vlgmr.msra.gmra.mxu2 %v5332_v43  ;;  %v5336_v31 = vpack.c.bf16 %v5302_v12, %v5302_v12  ;;  %v10285_v43 = vld [vmem:[%s12568_s5 + $0x2e0] sm:$0xff]  ;;  %v10260_v58 = vld [vmem:[%s12568_s5 + $0x218] sm:$0xff]  ;;  %v10303_v12 = vld [vmem:[%s12568_s5 + $0x370] sm:$0xff] }
 0x3dd   : > { %6452 = vmatpush.bf16.msrb.mxu2 %v10248_v33  ;;  %6421 = vmatmul.bf16.vlgmr.msra.gmra.mxu3 %v5333_v9  ;;  %v5337_v33 = vpack.c.bf16 %v5303_v24, %v5303_v24  ;;  %v10276_v47 = vld [vmem:[%s12568_s5 + $0x298] sm:$0xff]  ;;  %v10267_v9 = vld [vmem:[%s12568_s5 + $0x250] sm:$0xff]  ;;  %v5306_v1 = vld.sshfl [vmem:[#allocation1] sm:$0xff pattern:$0x73625140] }
 0x3de   : > { %6465 = vmatpush.bf16.msrb.mxu3 %v10256_v34  ;;  %v5335_v34 = vpack.c.bf16 %v5301_v23, %v5301_v23  ;;  %v10296_v41 = vld [vmem:[%s12568_s5 + $0x338] sm:$0xff]  ;;  %v10294_v18 = vld [vmem:[%s12568_s5 + $0x328] sm:$0xff] }
 0x3df   : > { %6427 = vmatpush.bf16.msrb.mxu0 %v10231_v38  ;;  %v10279_v38 = vld [vmem:[%s12568_s5 + $0x2b0] sm:$0xff]  ;;  %v10304_v0 = vld [vmem:[%s12568_s5 + $0x378] sm:$0xff]  ;;  %v10302_v16 = vld [vmem:[%s12568_s5 + $0x368] sm:$0xff] }
 0x3e0   : > { %6440 = vmatpush.bf16.msrb.mxu1 %v10239_v2  ;;  %v10287_v2 = vld [vmem:[%s12568_s5 + $0x2f0] sm:$0xff]  ;;  %v5309_v5 = vld.sshfl [vmem:[#allocation1 + $0x18] sm:$0xff pattern:$0x73625140]  ;;  %v10310_v24 = vld [vmem:[%s12568_s5 + $0x3a8] sm:$0xff] }
 0x3e1   : > { %6453 = vmatpush.bf16.msrb.mxu2 %v10247_v35  ;;  %v10262_v35 = vld [vmem:[%s12568_s5 + $0x228] sm:$0xff]  ;;  %v10312_v6 = vld [vmem:[%s12568_s5 + $0x3b8] sm:$0xff] }
 0x3e2   : > { %6466 = vmatpush.bf16.msrb.mxu3 %v10255_v14  ;;  %v10270_v14 = vld [vmem:[%s12568_s5 + $0x268] sm:$0xff] }
 0x3e3   : > { %6428 = vmatpush.bf16.msrb.mxu0 %v10230_v40  ;;  %v10286_v40 = vld [vmem:[%s12568_s5 + $0x2e8] sm:$0xff] }
 0x3e4   : > { %6441 = vmatpush.bf16.msrb.mxu1 %v10238_v56  ;;  %v10261_v56 = vld [vmem:[%s12568_s5 + $0x220] sm:$0xff]  ;;  %v10318_v23 = vld [vmem:[%s12568_s5 + $0x3e8] sm:$0xff] }
 0x3e5   : > { %6454 = vmatpush.bf16.msrb.mxu2 %v10246_v49  ;;  %v10284_v49 = vld [vmem:[%s12568_s5 + $0x2d8] sm:$0xff] }
 0x3e6   : > { %6467 = vmatpush.bf16.msrb.mxu3 %v10254_v52  ;;  %v10259_v52 = vld [vmem:[%s12568_s5 + $0x210] sm:$0xff] }
 0x3e7   : > { %6429 = vmatpush.bf16.msrb.mxu0 %v10229_v44  ;;  %v10283_v44 = vld [vmem:[%s12568_s5 + $0x2d0] sm:$0xff] }
 0x3e8   : > { %6442 = vmatpush.bf16.msrb.mxu1 %v10237_v10  ;;  %v10258_v10 = vld [vmem:[%s12568_s5 + $0x208] sm:$0xff] }
 0x3e9   : > { %6455 = vmatpush.bf16.msrb.mxu2 %v10245_v57  ;;  %v10265_v57 = vld [vmem:[%s12568_s5 + $0x240] sm:$0xff] }
 0x3ea   : > { %6468 = vmatpush.bf16.msrb.mxu3 %v10253_v17  ;;  %v10273_v17 = vld [vmem:[%s12568_s5 + $0x280] sm:$0xff] }
 0x3eb   : > { %6430 = vmatpush.bf16.msrb.mxu0 %v10228_v63  ;;  %v5308_v63 = vld.sshfl [vmem:[#allocation1 + $0x10] sm:$0xff pattern:$0x73625140] }
 0x3ec   : > { %6443 = vmatpush.bf16.msrb.mxu1 %v10236_v3  ;;  %v5307_v3 = vld.sshfl [vmem:[#allocation1 + $0x8] sm:$0xff pattern:$0x73625140]  ;;  %v5340_v55 = vpack.c.bf16 %v5308_v63, %v5308_v63 }
 0x3ed   : > { %6456 = vmatpush.bf16.msrb.mxu2 %v10244_v21  ;;  %v10320_v21 = vld [vmem:[%s12568_s5 + $0x3f8] sm:$0xff]  ;;  %v5339_v8 = vpack.c.bf16 %v5307_v3, %v5307_v3 }
 0x3ee   : > { %6469 = vmatpush.bf16.msrb.mxu3 %v10252_v7  ;;  %v5338_v7 = vpack.c.bf16 %v5306_v1, %v5306_v1 }
 0x3ef   : > { %6431 = vmatpush.bf16.msrb.mxu0 %v10227_v48  ;;  %v5341_v48 = vpack.c.bf16 %v5309_v5, %v5309_v5 }
 0x3f0   : > { %6444 = vmatpush.bf16.msrb.mxu1 %v10235_v11  ;;  %v10295_v11 = vld [vmem:[%s12568_s5 + $0x330] sm:$0xff] }
 0x3f1   : > { %6457 = vmatpush.bf16.msrb.mxu2 %v10243_v13  ;;  %v10311_v13 = vld [vmem:[%s12568_s5 + $0x3b0] sm:$0xff] }
 0x3f2   : > { %6470 = vmatpush.bf16.msrb.mxu3 %v10251_v15  ;;  %v10319_v15 = vld [vmem:[%s12568_s5 + $0x3f0] sm:$0xff] }
 0x3f3   : > { %6432 = vmatpush.bf16.msrb.mxu0 %v10226_v26  ;;  %v10293_v26 = vld [vmem:[%s12568_s5 + $0x320] sm:$0xff] }
 0x3f4   : > { %6445 = vmatpush.bf16.msrb.mxu1 %v10234_v27  ;;  %v10301_v27 = vld [vmem:[%s12568_s5 + $0x360] sm:$0xff] }
 0x3f5   : > { %6458 = vmatpush.bf16.msrb.mxu2 %v10242_v28  ;;  %v10309_v28 = vld [vmem:[%s12568_s5 + $0x3a0] sm:$0xff] }
 0x3f6   : > { %6471 = vmatpush.bf16.msrb.mxu3 %v10250_v22  ;;  %v10317_v22 = vld [vmem:[%s12568_s5 + $0x3e0] sm:$0xff] }
 0x3f7   : > { %6433 = vmatpush.bf16.msrb.mxu0 %v10225_v62  ;;  %v10292_v62 = vld [vmem:[%s12568_s5 + $0x318] sm:$0xff] }
 0x3f8   : > { %6446 = vmatpush.bf16.msrb.mxu1 %v10233_v19  ;;  %v10300_v19 = vld [vmem:[%s12568_s5 + $0x358] sm:$0xff] }
 0x3f9   : > { %6459 = vmatpush.bf16.msrb.mxu2 %v10241_v25  ;;  %v10308_v25 = vld [vmem:[%s12568_s5 + $0x398] sm:$0xff] }
 0x3fa   : > { %6472 = vmatpush.bf16.msrb.mxu3 %v10249_v30  ;;  %6434 = vmatmul.bf16.vlgmr.msrb.gmra.mxu0 %v5334_v32  ;;  %v10316_v30 = vld [vmem:[%s12568_s5 + $0x3d8] sm:$0xff]  ;;  %v10298_v32 = vld [vmem:[%s12568_s5 + $0x348] sm:$0xff] }
 0x3fb   : > { %6478 = vmatpush.bf16.msra.mxu0 %v10264_v29  ;;  %6447 = vmatmul.bf16.vlgmr.msrb.gmra.mxu1 %v5335_v34  ;;  %v10291_v29 = vld [vmem:[%s12568_s5 + $0x310] sm:$0xff]  ;;  %v10314_v34 = vld [vmem:[%s12568_s5 + $0x3c8] sm:$0xff] }
 0x3fc   : > { %6491 = vmatpush.bf16.msra.mxu1 %v10272_v39  ;;  %6460 = vmatmul.bf16.vlgmr.msrb.gmra.mxu2 %v5336_v31  ;;  %v10299_v39 = vld [vmem:[%s12568_s5 + $0x350] sm:$0xff]  ;;  %v10290_v31 = vld [vmem:[%s12568_s5 + $0x308] sm:$0xff] }
 0x3fd   : > { %6504 = vmatpush.bf16.msra.mxu2 %v10280_v51  ;;  %6473 = vmatmul.bf16.vlgmr.msrb.gmra.mxu3 %v5337_v33  ;;  %v10307_v51 = vld [vmem:[%s12568_s5 + $0x390] sm:$0xff]  ;;  %v10306_v33 = vld [vmem:[%s12568_s5 + $0x388] sm:$0xff] }
 0x3fe   : > { %6517 = vmatpush.bf16.msra.mxu3 %v10288_v4  ;;  %v10315_v4 = vld [vmem:[%s12568_s5 + $0x3d0] sm:$0xff] }
 0x3ff   : > { %6479 = vmatpush.bf16.msra.mxu0 %v10263_v36  ;;  %v10289_v36 = vld [vmem:[%s12568_s5 + $0x300] sm:$0xff] }
 0x400   : > { %6492 = vmatpush.bf16.msra.mxu1 %v10271_v37  ;;  %v10297_v37 = vld [vmem:[%s12568_s5 + $0x340] sm:$0xff] }
 0x401   : > { %6505 = vmatpush.bf16.msra.mxu2 %v10279_v38  ;;  %v10305_v38 = vld [vmem:[%s12568_s5 + $0x380] sm:$0xff] }
 0x402   : > { %6518 = vmatpush.bf16.msra.mxu3 %v10287_v2  ;;  %v10313_v2 = vld [vmem:[%s12568_s5 + $0x3c0] sm:$0xff] }
 0x403   : > { %6480 = vmatpush.bf16.msra.mxu0 %v10262_v35  ;;  %v5310_v35 = vld.sshfl [vmem:[#allocation1 + $0x20] sm:$0xff pattern:$0x73625140] }
 0x404   : > { %6493 = vmatpush.bf16.msra.mxu1 %v10270_v14  ;;  %v5311_v14 = vld.sshfl [vmem:[#allocation1 + $0x28] sm:$0xff pattern:$0x73625140] }
 0x405   : > { %6506 = vmatpush.bf16.msra.mxu2 %v10278_v50  ;;  %v5312_v50 = vld.sshfl [vmem:[#allocation1 + $0x30] sm:$0xff pattern:$0x73625140] }
 0x406   : > { %6519 = vmatpush.bf16.msra.mxu3 %v10286_v40  ;;  %v5313_v40 = vld.sshfl [vmem:[#allocation1 + $0x38] sm:$0xff pattern:$0x73625140] }
 0x407   : > { %6481 = vmatpush.bf16.msra.mxu0 %v10261_v56  ;;  %v5342_v56 = vpack.c.bf16 %v5310_v35, %v5310_v35 }
 0x408   : > { %6494 = vmatpush.bf16.msra.mxu1 %v10269_v42  ;;  %v5343_v42 = vpack.c.bf16 %v5311_v14, %v5311_v14 }
 0x409   : > { %6507 = vmatpush.bf16.msra.mxu2 %v10277_v46  ;;  %v5344_v46 = vpack.c.bf16 %v5312_v50, %v5312_v50 }
 0x40a   : > { %6520 = vmatpush.bf16.msra.mxu3 %v10285_v43  ;;  %v5345_v43 = vpack.c.bf16 %v5313_v40, %v5313_v40 }
 0x40b   : > { %6482 = vmatpush.bf16.msra.mxu0 %v10260_v58  ;;  %v10356_v58 = vld [vmem:[%s12569_s6] ss:$0 sm:$0xff] }
 0x40c   : > { %6495 = vmatpush.bf16.msra.mxu1 %v10268_v45 }
 0x40d   : > { %6508 = vmatpush.bf16.msra.mxu2 %v10276_v47 }
 0x40e   : > { %6521 = vmatpush.bf16.msra.mxu3 %v10284_v49 }
 0x40f   : > { %6483 = vmatpush.bf16.msra.mxu0 %v10259_v52 }
 0x410   : > { %6496 = vmatpush.bf16.msra.mxu1 %v10267_v9 }
 0x411   : > { %6509 = vmatpush.bf16.msra.mxu2 %v10275_v53 }
 0x412   : > { %6522 = vmatpush.bf16.msra.mxu3 %v10283_v44 }
 0x413   : > { %6484 = vmatpush.bf16.msra.mxu0 %v10258_v10 }
 0x414   : > { %6497 = vmatpush.bf16.msra.mxu1 %v10266_v54 }
 0x415   : > { %6510 = vmatpush.bf16.msra.mxu2 %v10274_v61 }
 0x416   : > { %6523 = vmatpush.bf16.msra.mxu3 %v10282_v60 }
 0x417   : > { %6485 = vmatpush.bf16.msra.mxu0 %v10257_v20 }
 0x418   : > { %6498 = vmatpush.bf16.msra.mxu1 %v10265_v57 }
 0x419   : > { %6511 = vmatpush.bf16.msra.mxu2 %v10273_v17 }
 0x41a   : > { %6524 = vmatpush.bf16.msra.mxu3 %v10281_v59  ;;  %6486 = vmatmul.bf16.vlgmr.msra.gmra.mxu0 %v5338_v7 }
 0x41b   : > { %6530 = vmatpush.bf16.msrb.mxu0 %v10296_v41  ;;  %6499 = vmatmul.bf16.vlgmr.msra.gmra.mxu1 %v5339_v8 }
 0x41c   : > { %6543 = vmatpush.bf16.msrb.mxu1 %v10304_v0  ;;  %6512 = vmatmul.bf16.vlgmr.msra.gmra.mxu2 %v5340_v55 }
 0x41d   : > { %6556 = vmatpush.bf16.msrb.mxu2 %v10312_v6  ;;  %6525 = vmatmul.bf16.vlgmr.msra.gmra.mxu3 %v5341_v48 }
 0x41e   : > { %6569 = vmatpush.bf16.msrb.mxu3 %v10320_v21 }
 0x41f   : > { %6531 = vmatpush.bf16.msrb.mxu0 %v10295_v11 }
 0x420   : > { %6544 = vmatpush.bf16.msrb.mxu1 %v10303_v12 }
 0x421   : > { %6557 = vmatpush.bf16.msrb.mxu2 %v10311_v13 }
 0x422   : > { %6570 = vmatpush.bf16.msrb.mxu3 %v10319_v15 }
 0x423   : > { %6532 = vmatpush.bf16.msrb.mxu0 %v10294_v18 }
 0x424   : > { %6545 = vmatpush.bf16.msrb.mxu1 %v10302_v16 }
 0x425   : > { %6558 = vmatpush.bf16.msrb.mxu2 %v10310_v24 }
 0x426   : > { %6571 = vmatpush.bf16.msrb.mxu3 %v10318_v23 }
 0x427   : > { %6533 = vmatpush.bf16.msrb.mxu0 %v10293_v26 }
 0x428   : > { %6546 = vmatpush.bf16.msrb.mxu1 %v10301_v27 }
 0x429   : > { %6559 = vmatpush.bf16.msrb.mxu2 %v10309_v28 }
 0x42a   : > { %6572 = vmatpush.bf16.msrb.mxu3 %v10317_v22 }
 0x42b   : > { %6534 = vmatpush.bf16.msrb.mxu0 %v10292_v62 }
 0x42c   : > { %6547 = vmatpush.bf16.msrb.mxu1 %v10300_v19 }
 0x42d   : > { %6560 = vmatpush.bf16.msrb.mxu2 %v10308_v25 }
 0x42e   : > { %6573 = vmatpush.bf16.msrb.mxu3 %v10316_v30 }
 0x42f   : > { %6535 = vmatpush.bf16.msrb.mxu0 %v10291_v29 }
 0x430   : > { %6548 = vmatpush.bf16.msrb.mxu1 %v10299_v39 }
 0x431   : > { %6561 = vmatpush.bf16.msrb.mxu2 %v10307_v51 }
 0x432   : > { %6574 = vmatpush.bf16.msrb.mxu3 %v10315_v4 }
 0x433   : > { %6536 = vmatpush.bf16.msrb.mxu0 %v10290_v31 }
 0x434   : > { %6549 = vmatpush.bf16.msrb.mxu1 %v10298_v32 }
 0x435   : > { %6562 = vmatpush.bf16.msrb.mxu2 %v10306_v33 }
 0x436   : > { %6575 = vmatpush.bf16.msrb.mxu3 %v10314_v34 }
 0x437   : > { %6537 = vmatpush.bf16.msrb.mxu0 %v10289_v36 }
 0x438   : > { %6550 = vmatpush.bf16.msrb.mxu1 %v10297_v37 }
 0x439   : > { %6563 = vmatpush.bf16.msrb.mxu2 %v10305_v38 }
 0x43a   : > { %6576 = vmatpush.bf16.msrb.mxu3 %v10313_v2  ;;  %6538 = vmatmul.bf16.vlgmr.msrb.gmra.mxu0 %v5342_v56 }
 0x43b   : > { %6551 = vmatmul.bf16.vlgmr.msrb.gmra.mxu1 %v5343_v42 }
 0x43c   : > { %6564 = vmatmul.bf16.vlgmr.msrb.gmra.mxu2 %v5344_v46 }
 0x43d   : > { %6577 = vmatmul.bf16.vlgmr.msrb.gmra.mxu3 %v5345_v43 }
 0x457   : > { %v6383_v45 = vpop.f32.mrf.mxu0 }
 0x458   : > { %v6384_v47 = vadd.f32 %v10356_v58, %v6383_v45  ;;  %v6396_v49 = vpop.f32.mrf.mxu1 }
 0x45a   : > { %v6397_v52 = vadd.f32 %v6396_v49, %v6384_v47 }
 0x45f   : > { %v6409_v9 = vpop.f32.mrf.mxu2  ;;  %v6385_v44 = vpop.f32.mrf.mxu0 }
 0x460   : > { %v6422_v53 = vpop.f32.mrf.mxu3  ;;  %v6398_v10 = vpop.f32.mrf.mxu1  ;;  %v6410_v63 = vadd.f32 %v6409_v9, %v6397_v52 }
 0x462   : > { %v6423_v5 = vadd.f32 %v6422_v53, %v6410_v63 }
 0x467   : > { %v6411_v54 = vpop.f32.mrf.mxu2 }
 0x468   : > { %v6424_v61 = vpop.f32.mrf.mxu3 }
 0x477   : > { %v6435_v60 = vpop.f32.mrf.mxu0 }
 0x478   : > { %v6448_v20 = vpop.f32.mrf.mxu1  ;;  %v6436_v21 = vadd.f32 %v6435_v60, %v6423_v5 }
 0x47a   : > { %v6449_v48 = vadd.f32 %v6448_v20, %v6436_v21 }
 0x47f   : > { %v6461_v57 = vpop.f32.mrf.mxu2  ;;  %v6437_v59 = vpop.f32.mrf.mxu0 }
 0x480   : > { %v6474_v17 = vpop.f32.mrf.mxu3  ;;  %v6450_v41 = vpop.f32.mrf.mxu1  ;;  %v6462_v12 = vadd.f32 %v6461_v57, %v6449_v48 }
 0x482   : > { %v6475_v18 = vadd.f32 %v6474_v17, %v6462_v12 }
 0x487   : > { %v6463_v0 = vpop.f32.mrf.mxu2 }
 0x488   : > { %v6476_v1 = vpop.f32.mrf.mxu3 }
 0x497   : > { %v6487_v3 = vpop.f32.mrf.mxu0 }
 0x498   : > { %v6500_v6 = vpop.f32.mrf.mxu1  ;;  %v6488_v16 = vadd.f32 %v6487_v3, %v6475_v18 }
 0x49a   : > { %v6501_v24 = vadd.f32 %v6500_v6, %v6488_v16 }
 0x49f   : > { %v6513_v7 = vpop.f32.mrf.mxu2  ;;  %v6489_v8 = vpop.f32.mrf.mxu0 }
 0x4a0   : > { %v6526_v55 = vpop.f32.mrf.mxu3  ;;  %v6502_v11 = vpop.f32.mrf.mxu1  ;;  %v6514_v23 = vadd.f32 %v6513_v7, %v6501_v24 }
 0x4a2   : > { %v6527_v26 = vadd.f32 %v6526_v55, %v6514_v23 }
 0x4a7   : > { %v6515_v13 = vpop.f32.mrf.mxu2 }
 0x4a8   : > { %v6528_v15 = vpop.f32.mrf.mxu3 }
 0x4b7   : > { %v6539_v27 = vpop.f32.mrf.mxu0 }
 0x4b8   : > { %v6552_v28 = vpop.f32.mrf.mxu1  ;;  %v6540_v22 = vadd.f32 %v6539_v27, %v6527_v26 }
 0x4ba   : > { %v6553_v62 = vadd.f32 %v6552_v28, %v6540_v22 }
 0x4bf   : > { %v6565_v19 = vpop.f32.mrf.mxu2  ;;  %v6541_v29 = vpop.f32.mrf.mxu0 }
 0x4c0   : > { %v6578_v25 = vpop.f32.mrf.mxu3  ;;  %v6566_v30 = vadd.f32 %v6565_v19, %v6553_v62  ;;  %v6554_v39 = vpop.f32.mrf.mxu1 }
 0x4c2   : > { %v6579_v51 = vadd.f32 %v6578_v25, %v6566_v30 }
 0x4c4   : > { %6583 = vst.msk [vmem:[#allocation4] sm:$0x3] %vm6582_vm5, %v6579_v51 }
 0x4c7   : > { %v6567_v4 = vpop.f32.mrf.mxu2 }
 0x4c8   : > { %v6580_v31 = vpop.f32.mrf.mxu3 }
 0x4c9 PF: > { %p10327_p12 = scmp.eq.s32.totalorder %s10472_s27, 3  ;;  %s10415_s9 = smov [#allocation4]  }
 0x4ca   : > { %s6590_s10 = sshll.u32 %s10415_s9, 4  ;;  %s6592_s13 = sshll.u32 %s12570_s7, 4  ;;  %s6591_s10 = int_to_ptr.vmem [resolvable:$true] %s6590_s10  ;;  %s6593_s13 = int_to_ptr.hbm [resolvable:$true] %s6592_s13 }
 0x4cb   : > { %10324 = dma.vmem_to_hbm [thread:$0]  (%p10327_p12), %s6591_s10, 32, %s6593_s13, [#allocation5]  }
 0x4cc   : > { %10398 = dma.done.wait (%p10327_p12), [#allocation5], 32  }
 0x4cd   : > { %10400 = vsyncadd (%p10327_p12), [#allocation5], 4294967264 }
 0x4ce PF: > { %p15_p13 = scmp.ge.s32.totalorder %s10475_s28, 6   ;;  %s12571_s24 = smov %s10407_s25 }
 0x4cf   : > { %s12572_s25 = smov %s10484_s8  ;;  %s12573_s26 = smov %s10475_s28 }
 0x4d0   :  { %17 = sbr.rel (!%p15_p13) target bundleno = 2 (0x2), region = 118 }
 0x4d5   :  { %6606 = vsyncpa [#allocation5], 1 }
 0x4d6   :  { %6608 = vsyncpa [#allocation5 + $0x1], 1 }

</bundles_post_ra>
